<compile_context>
chip_gen: v7x
topology: tpu7x:2x2x1
jax: 0.10.0
libtpu: 0.0.40
codegen_flags: <defaults>
</compile_context>

<pallas_src>
import functools

import numpy as np
import jax
import jax.numpy as jnp
from jax.experimental import pallas as pl
from jax.experimental.pallas import tpu as pltpu


def autopad(k, p=None, d=1):
    if d > 1:
        k = d * (k - 1) + 1
    if p is None:
        p = k // 2
    return p


def _round_up(x, m):
    return ((x + m - 1) // m) * m


def _vmem_capacity_bytes():
    try:
        info = pltpu.get_tpu_info()
        cap = getattr(info, "vmem_capacity_bytes", None)
        if cap:
            return int(cap)
    except Exception:
        pass
    return 64 * 1024 * 1024   # conservative default (v7x physical VMEM / core)


# ---------------------------------------------------------------------------
# Shared epilogue: folded-BN bias + SiLU (f32) + lane-dense / natural store.
#   y     : (tile_h*W_out, Cout) f32 matmul result
#   b_ref : (1, Cout) f32
#   o_ref : (1, tile_h, W_out*Cout)  if lane_dense  else (1, tile_h, W_out, Cout)
# ---------------------------------------------------------------------------
def _epilogue(y, b_ref, o_ref, *, tile_h, W_out, Cout, activate, lane_dense):
    y = y + b_ref[...]
    if activate:                       # SiLU kept in f32 (EUP slot; v5e-safe)
        y = y * jax.nn.sigmoid(y)
    y = y.astype(o_ref.dtype)
    if lane_dense:
        o_ref[0] = y.reshape(tile_h, W_out * Cout)
    else:
        o_ref[0] = y.reshape(tile_h, W_out, Cout)


# ---------------------------------------------------------------------------
# Packed-contraction kernel (small Cin): one MXU matmul per grid step.
#   x_ref : (1, 1, tile_in_h, Wp, Cin)  bf16 halo row slab
#   w_ref : (K*K*Cin, Cout)             bf16 BN-folded weights, (kh, kw, cin)-major
#   b_ref : (1, Cout)                   f32 folded bias
# ---------------------------------------------------------------------------
def _conv_packed_kernel(x_ref, w_ref, b_ref, o_ref, *, K, dil, tile_h, W_out,
                        Cin, Cout, activate, lane_dense):
    M = tile_h * W_out
    taps = [x_ref[0, 0, pl.ds(kh * dil, tile_h), pl.ds(kw * dil, W_out), :]
            for kh in range(K) for kw in range(K)]
    patch = jnp.concatenate(taps, axis=-1)            # (tile_h, W_out, K*K*Cin)
    patch = patch.reshape(M, K * K * Cin)
    y = jnp.dot(patch, w_ref[...], preferred_element_type=jnp.float32)
    _epilogue(y, b_ref, o_ref, tile_h=tile_h, W_out=W_out, Cout=Cout,
              activate=activate, lane_dense=lane_dense)


# ---------------------------------------------------------------------------
# Per-tap accumulation kernel (large Cin): K*K shifted matmuls accumulated
# into a VMEM f32 scratch (no live (M, Cout) register value -> no spill).
# ---------------------------------------------------------------------------
def _conv_taps_kernel(x_ref, w_ref, b_ref, o_ref, acc_ref, *, K, dil, tile_h,
                      W_out, Cin, Cout, activate, lane_dense):
    M = tile_h * W_out
    for t in range(K * K):
        kh, kw = divmod(t, K)
        patch = x_ref[0, 0, pl.ds(kh * dil, tile_h), pl.ds(kw * dil, W_out), :]
        contrib = jnp.dot(patch.reshape(M, Cin),
                          w_ref[pl.ds(t * Cin, Cin), :],
                          preferred_element_type=jnp.float32)
        if t == 0:
            acc_ref[...] = contrib
        else:
            acc_ref[...] += contrib
    _epilogue(acc_ref[...], b_ref, o_ref, tile_h=tile_h, W_out=W_out, Cout=Cout,
              activate=activate, lane_dense=lane_dense)


# ---------------------------------------------------------------------------
# BN (eval) folding: W' = W * gamma/sqrt(var+eps), b' = conv_b*scale + shift.
# Weights returned as (K*K*Cin, Cout) bf16 with rows ordered (kh, kw, cin).
# ---------------------------------------------------------------------------
def fold_conv_bn(params, cfg, eps=1e-5):
    Cout = cfg['out_planes']
    K = cfg['kernel_size']
    w = params['conv_w'].astype(jnp.float32)          # (Cout, Cin, K, K)
    Cin = w.shape[1]
    if cfg.get('bn', True):
        p = params['bn']
        scale = p['gamma'] / jnp.sqrt(p['var'] + eps)
        shift = p['beta'] - p['mean'] * scale
    else:
        scale = jnp.ones((Cout,), jnp.float32)
        shift = jnp.zeros((Cout,), jnp.float32)
    conv_b = params.get('conv_b')
    conv_b = jnp.zeros((Cout,), jnp.float32) if conv_b is None else conv_b.astype(jnp.float32)

    w_fold = w * scale[:, None, None, None]
    b_fold = conv_b * scale + shift
    w_k = jnp.transpose(w_fold, (2, 3, 1, 0)).reshape(K * K * Cin, Cout)
    return w_k.astype(jnp.bfloat16), b_fold.reshape(1, Cout).astype(jnp.float32)


# ---------------------------------------------------------------------------
# NHWC forward (preferred entry point for layer chaining: no transposes).
# ---------------------------------------------------------------------------
def conv_forward_nhwc(x_nhwc, params, cfg, out_dtype=jnp.float32):
    N, H, W, Cin = x_nhwc.shape
    Cout = cfg['out_planes']
    K = cfg['kernel_size']
    stride = cfg.get('stride', 1)
    dil = cfg.get('dilation', 1)
    groups = cfg.get('groups', 1)
    pad = autopad(K, cfg.get('padding'), dil)
    activate = bool(cfg.get('activation', True))

    # TODO(synk): stride>1 and grouped/depthwise conv are not implemented in the
    #             Pallas path (module defaults are stride=1, groups=1).
    assert stride == 1, "Pallas path covers stride=1 (module default)"
    assert groups == 1, "Pallas path covers groups=1 (module default)"

    halo = dil * (K - 1)
    H_out = H + 2 * pad - halo
    W_out = W + 2 * pad - halo
    Wp = W_out + halo                                  # == W + 2*pad for stride 1

    w_k, b_fold = fold_conv_bn(params, cfg)            # (K*K*Cin, Cout) bf16, (1,Cout) f32

    # ---- row tiling under an explicit VMEM budget -------------------------
    out_itemsize = jnp.dtype(out_dtype).itemsize

    def _need(th):                                     # per-step VMEM estimate
        ti = th + halo
        in_blk = ti * Wp * Cin * 2                     # bf16 slab
        out_blk = th * W_out * Cout * out_itemsize
        w_bytes = K * K * Cin * Cout * 2
        acc_bytes = th * W_out * Cout * 4              # scratch acc / live result
        patch_bytes = th * W_out * K * K * Cin * 2     # packed im2col patch
        return 2 * in_blk + 2 * out_blk + w_bytes + acc_bytes + patch_bytes + (2 << 20)

    budget = int(_vmem_capacity_bytes() * 0.7)
    target_rows = 2048                                 # ~matmul rows per grid step
    tile_h = min(_round_up(max(1, target_rows // max(W_out, 1)), 8),
                 _round_up(H_out, 8))
    while tile_h > 8 and _need(tile_h) > budget:
        tile_h -= 8
    # TODO(synk): add W-axis tiling for images so wide that even tile_h=8 blows
    #             the budget; not needed at these sizes.

    n_row = pl.cdiv(H_out, tile_h)
    H_out_pad = n_row * tile_h
    tile_in_h = tile_h + halo

    # ---- pad / cast / halo-slab gather (single wrapper pass, fused by XLA) -
    Hp_need = H_out_pad + halo
    x_pad = jnp.pad(x_nhwc.astype(jnp.bfloat16),
                    ((0, 0), (pad, Hp_need - H - pad), (pad, pad), (0, 0)))
    # Overlapping row slabs: (K-1)*dil duplicated halo rows per tile is the price
    # for fully pipelined, VMEM-bounded blocked input DMA (<= (K-1)/tile_h extra).
    x_tiles = jnp.stack(
        [jax.lax.slice_in_dim(x_pad, i * tile_h, i * tile_h + tile_in_h, axis=1)
         for i in range(n_row)], axis=1)               # (N, n_row, tile_in_h, Wp, Cin)

    # ---- pallas_call builder ----------------------------------------------
    def _build(packed, lane_dense):
        kern_kwargs = dict(K=K, dil=dil, tile_h=tile_h, W_out=W_out, Cin=Cin,
                           Cout=Cout, activate=activate, lane_dense=lane_dense)
        if lane_dense:
            out_shape = jax.ShapeDtypeStruct((N, H_out_pad, W_out * Cout), out_dtype)
            out_spec = pl.BlockSpec((1, tile_h, W_out * Cout), lambda n, i: (n, i, 0))
        else:
            out_shape = jax.ShapeDtypeStruct((N, H_out_pad, W_out, Cout), out_dtype)
            out_spec = pl.BlockSpec((1, tile_h, W_out, Cout), lambda n, i: (n, i, 0, 0))
        if packed:
            kernel = functools.partial(_conv_packed_kernel, **kern_kwargs)
            scratch = []
        else:
            kernel = functools.partial(_conv_taps_kernel, **kern_kwargs)
            scratch = [pltpu.VMEM((tile_h * W_out, Cout), jnp.float32)]
        return pl.pallas_call(
            kernel,
            out_shape=out_shape,
            grid=(N, n_row),
            in_specs=[
                # halo row slab for this (batch, row-tile); blocked -> pipelined
                pl.BlockSpec((1, 1, tile_in_h, Wp, Cin), lambda n, i: (n, i, 0, 0, 0)),
                # weights + bias resident across the whole grid
                pl.BlockSpec((K * K * Cin, Cout), lambda n, i: (0, 0)),
                pl.BlockSpec((1, Cout), lambda n, i: (0, 0)),
            ],
            out_specs=out_spec,
            scratch_shapes=scratch,
            compiler_params=pltpu.CompilerParams(
                dimension_semantics=("parallel", "parallel"),
                vmem_limit_bytes=int(budget)),
        )

    packed_pref = Cin < 128            # fold taps into the contraction for small Cin
    lane_dense_pref = Cout < 128       # densify stores only when Cout is sub-lane-width

    attempts = []
    for combo in ((packed_pref, lane_dense_pref), (packed_pref, False), (False, False)):
        if combo not in attempts:
            attempts.append(combo)

    out = None
    used_lane_dense = False
    last_err = None
    for packed, lane_dense in attempts:
        try:
            out = _build(packed, lane_dense)(x_tiles, w_k, b_fold)
            used_lane_dense = lane_dense
            break
        except Exception as e:   # Mosaic lowering fallback (eager-mode only)
            last_err = e
            out = None
    if out is None:
        raise last_err

    if used_lane_dense:
        out = out.reshape(N, H_out_pad, W_out, Cout)   # free: same memory layout
    return out[:, :H_out]                              # drop row-tile padding (NHWC)


# ---------------------------------------------------------------------------
# NCHW module boundary (matches the PyTorch Conv forward).
# ---------------------------------------------------------------------------
def conv_forward(x_nchw, params, cfg, out_dtype=jnp.float32):
    # TODO(synk): for chained fused layers keep activations NHWC end-to-end
    #             (call conv_forward_nhwc directly) and skip these transposes.
    x_nhwc = jnp.transpose(x_nchw, (0, 2, 3, 1))
    y = conv_forward_nhwc(x_nhwc, params, cfg, out_dtype=out_dtype)
    return jnp.transpose(y, (0, 3, 1, 2))


# ---------------------------------------------------------------------------
# References for validation
# ---------------------------------------------------------------------------
def reference_same_precision(x_nchw, params, cfg):
    """Pure-jnp conv with identical bf16 operands / f32 accumulation (tight check)."""
    N, Cin, H, W = x_nchw.shape
    Cout = cfg['out_planes']
    K = cfg['kernel_size']
    dil = cfg.get('dilation', 1)
    pad = autopad(K, cfg.get('padding'), dil)
    H_out = H + 2 * pad - dil * (K - 1)
    W_out = W + 2 * pad - dil * (K - 1)

    w_k, b_fold = fold_conv_bn(params, cfg)
    w_f = w_k.astype(jnp.float32).reshape(K * K, Cin, Cout)
    x = jnp.transpose(x_nchw, (0, 2, 3, 1)).astype(jnp.bfloat16).astype(jnp.float32)
    x = jnp.pad(x, ((0, 0), (pad, pad), (pad, pad), (0, 0)))

    acc = jnp.zeros((N, H_out, W_out, Cout), jnp.float32)
    for kh in range(K):
        for kw in range(K):
            patch = x[:, kh * dil: kh * dil + H_out, kw * dil: kw * dil + W_out, :]
            acc = acc + jnp.einsum('nhwc,co->nhwo', patch, w_f[kh * K + kw])
    y = acc + b_fold
    if cfg.get('activation', True):
        y = y * jax.nn.sigmoid(y)
    return jnp.transpose(y, (0, 3, 1, 2))


def reference_full_precision(x_nchw, params, cfg, eps=1e-5):
    """f32 lax.conv + BN(eval) + SiLU (semantic check; loose tol covers bf16)."""
    K = cfg['kernel_size']
    stride = cfg.get('stride', 1)
    dil = cfg.get('dilation', 1)
    groups = cfg.get('groups', 1)
    pad = autopad(K, cfg.get('padding'), dil)
    conv = jax.lax.conv_general_dilated(
        x_nchw.astype(jnp.float32), params['conv_w'].astype(jnp.float32),
        window_strides=(stride, stride), padding=((pad, pad), (pad, pad)),
        rhs_dilation=(dil, dil), dimension_numbers=('NCHW', 'OIHW', 'NCHW'),
        feature_group_count=groups)
    if params.get('conv_b') is not None:
        conv = conv + params['conv_b'][None, :, None, None]
    if cfg.get('bn', True):
        p = params['bn']
        scale = p['gamma'] / jnp.sqrt(p['var'] + eps)
        conv = conv * scale[None, :, None, None] + \
            (p['beta'] - p['mean'] * scale)[None, :, None, None]
    if cfg.get('activation', True):
        conv = conv * jax.nn.sigmoid(conv)
    return conv


# ---------------------------------------------------------------------------
# Deterministic parameter init (shapes follow the PyTorch module)
# ---------------------------------------------------------------------------
def init_params(key, cfg):
    Cin, Cout, K = cfg['in_planes'], cfg['out_planes'], cfg['kernel_size']
    ks = jax.random.split(key, 6)
    params = dict(
        conv_w=(1.0 / np.sqrt(Cin * K * K)) *
        jax.random.normal(ks[0], (Cout, Cin, K, K), jnp.float32))
    if cfg.get('bias', False):
        params['conv_b'] = 0.05 * jax.random.normal(ks[1], (Cout,), jnp.float32)
    if cfg.get('bn', True):
        params['bn'] = dict(
            gamma=1.0 + 0.1 * jax.random.normal(ks[2], (Cout,), jnp.float32),
            beta=0.1 * jax.random.normal(ks[3], (Cout,), jnp.float32),
            mean=0.1 * jax.random.normal(ks[4], (Cout,), jnp.float32),
            var=jax.random.uniform(ks[5], (Cout,), jnp.float32,
                                   minval=0.5, maxval=1.5))
    return params


def _check(y, x, params, cfg):
    np.testing.assert_allclose(np.asarray(y),
                               np.asarray(reference_same_precision(x, params, cfg)),
                               atol=2e-3, rtol=2e-3)
    np.testing.assert_allclose(np.asarray(y),
                               np.asarray(reference_full_precision(x, params, cfg)),
                               atol=5e-2, rtol=5e-2)


if __name__ == "__main__":
    key = jax.random.PRNGKey(0)
    k1, k2, k3, k4 = jax.random.split(key, 4)

    # Case 1: small Cin -> packed-contraction (im2col-in-kernel) path.
    cfg1 = dict(in_planes=4, out_planes=32, kernel_size=3, stride=1, padding=None,
                dilation=1, groups=1, activation=True, bn=True, bias=False)
    x1 = jax.random.normal(k1, (2, cfg1['in_planes'], 16, 16), jnp.float32)   # NCHW
    p1 = init_params(k2, cfg1)
    y1 = jax.block_until_ready(conv_forward(x1, p1, cfg1))
    assert y1.shape == (2, cfg1['out_planes'], 16, 16)
    _check(y1, x1, p1, cfg1)

    # Case 2: large Cin (+ conv bias) -> per-tap MXU accumulation into VMEM scratch.
    cfg2 = dict(in_planes=128, out_planes=64, kernel_size=3, stride=1, padding=None,
                dilation=1, groups=1, activation=True, bn=True, bias=True)
    x2 = jax.random.normal(k3, (1, cfg2['in_planes'], 8, 8), jnp.float32)     # NCHW
    p2 = init_params(k4, cfg2)
    y2 = jax.block_until_ready(conv_forward(x2, p2, cfg2))
    assert y2.shape == (1, cfg2['out_planes'], 8, 8)
    _check(y2, x2, p2, cfg2)

    print("KERNEL_OK")
</pallas_src>

<mosaic_0001>
module attributes {stable_mosaic.version = 11 : i64} {
  func.func @_conv_packed_kernel(%arg0: i32, %arg1: i32, %arg2: memref<1x1x18x18x4xbf16, #tpu.memory_space<vmem>>, %arg3: memref<36x32xbf16, #tpu.memory_space<vmem>>, %arg4: memref<1x32xf32, #tpu.memory_space<vmem>>, %arg5: memref<1x16x512xf32, #tpu.memory_space<vmem>>) attributes {dimension_semantics = [#tpu.dimension_semantics<parallel>, #tpu.dimension_semantics<parallel>], iteration_bounds = array<i64: 2, 1>, scalar_prefetch = 0 : i64, scratch_operands = 0 : i64, tpu.core_type = #tpu.core_type<tc>, window_params = [{transform_indices = @transform_0, window_bounds = array<i64: 1, 1, 18, 18, 4>}, {pipeline_mode = #tpu.pipeline_mode<synchronous>, transform_indices = @transform_1, window_bounds = array<i64: 36, 32>}, {pipeline_mode = #tpu.pipeline_mode<synchronous>, transform_indices = @transform_2, window_bounds = array<i64: 1, 32>}, {transform_indices = @transform_3, window_bounds = array<i64: 1, 16, 512>}]} {
    %c0 = arith.constant 0 : index
    %c0_0 = arith.constant 0 : index
    %c0_1 = arith.constant 0 : index
    %c0_2 = arith.constant 0 : index
    %c0_3 = arith.constant 0 : index
    %0 = vector.load %arg2[%c0, %c0_0, %c0_1, %c0_2, %c0_3] : memref<1x1x18x18x4xbf16, #tpu.memory_space<vmem>>, vector<1x1x16x16x4xbf16>
    %1 = vector.shape_cast %0 : vector<1x1x16x16x4xbf16> to vector<16x16x4xbf16>
    %c0_4 = arith.constant 0 : index
    %c0_5 = arith.constant 0 : index
    %c0_6 = arith.constant 0 : index
    %c1 = arith.constant 1 : index
    %c0_7 = arith.constant 0 : index
    %2 = vector.load %arg2[%c0_4, %c0_5, %c0_6, %c1, %c0_7] : memref<1x1x18x18x4xbf16, #tpu.memory_space<vmem>>, vector<1x1x16x16x4xbf16>
    %3 = vector.shape_cast %2 : vector<1x1x16x16x4xbf16> to vector<16x16x4xbf16>
    %c0_8 = arith.constant 0 : index
    %c0_9 = arith.constant 0 : index
    %c0_10 = arith.constant 0 : index
    %c2 = arith.constant 2 : index
    %c0_11 = arith.constant 0 : index
    %4 = vector.load %arg2[%c0_8, %c0_9, %c0_10, %c2, %c0_11] : memref<1x1x18x18x4xbf16, #tpu.memory_space<vmem>>, vector<1x1x16x16x4xbf16>
    %5 = vector.shape_cast %4 : vector<1x1x16x16x4xbf16> to vector<16x16x4xbf16>
    %c0_12 = arith.constant 0 : index
    %c0_13 = arith.constant 0 : index
    %c1_14 = arith.constant 1 : index
    %c0_15 = arith.constant 0 : index
    %c0_16 = arith.constant 0 : index
    %6 = vector.load %arg2[%c0_12, %c0_13, %c1_14, %c0_15, %c0_16] : memref<1x1x18x18x4xbf16, #tpu.memory_space<vmem>>, vector<1x1x16x16x4xbf16>
    %7 = vector.shape_cast %6 : vector<1x1x16x16x4xbf16> to vector<16x16x4xbf16>
    %c0_17 = arith.constant 0 : index
    %c0_18 = arith.constant 0 : index
    %c1_19 = arith.constant 1 : index
    %c1_20 = arith.constant 1 : index
    %c0_21 = arith.constant 0 : index
    %8 = vector.load %arg2[%c0_17, %c0_18, %c1_19, %c1_20, %c0_21] : memref<1x1x18x18x4xbf16, #tpu.memory_space<vmem>>, vector<1x1x16x16x4xbf16>
    %9 = vector.shape_cast %8 : vector<1x1x16x16x4xbf16> to vector<16x16x4xbf16>
    %c0_22 = arith.constant 0 : index
    %c0_23 = arith.constant 0 : index
    %c1_24 = arith.constant 1 : index
    %c2_25 = arith.constant 2 : index
    %c0_26 = arith.constant 0 : index
    %10 = vector.load %arg2[%c0_22, %c0_23, %c1_24, %c2_25, %c0_26] : memref<1x1x18x18x4xbf16, #tpu.memory_space<vmem>>, vector<1x1x16x16x4xbf16>
    %11 = vector.shape_cast %10 : vector<1x1x16x16x4xbf16> to vector<16x16x4xbf16>
    %c0_27 = arith.constant 0 : index
    %c0_28 = arith.constant 0 : index
    %c2_29 = arith.constant 2 : index
    %c0_30 = arith.constant 0 : index
    %c0_31 = arith.constant 0 : index
    %12 = vector.load %arg2[%c0_27, %c0_28, %c2_29, %c0_30, %c0_31] : memref<1x1x18x18x4xbf16, #tpu.memory_space<vmem>>, vector<1x1x16x16x4xbf16>
    %13 = vector.shape_cast %12 : vector<1x1x16x16x4xbf16> to vector<16x16x4xbf16>
    %c0_32 = arith.constant 0 : index
    %c0_33 = arith.constant 0 : index
    %c2_34 = arith.constant 2 : index
    %c1_35 = arith.constant 1 : index
    %c0_36 = arith.constant 0 : index
    %14 = vector.load %arg2[%c0_32, %c0_33, %c2_34, %c1_35, %c0_36] : memref<1x1x18x18x4xbf16, #tpu.memory_space<vmem>>, vector<1x1x16x16x4xbf16>
    %15 = vector.shape_cast %14 : vector<1x1x16x16x4xbf16> to vector<16x16x4xbf16>
    %c0_37 = arith.constant 0 : index
    %c0_38 = arith.constant 0 : index
    %c2_39 = arith.constant 2 : index
    %c2_40 = arith.constant 2 : index
    %c0_41 = arith.constant 0 : index
    %16 = vector.load %arg2[%c0_37, %c0_38, %c2_39, %c2_40, %c0_41] : memref<1x1x18x18x4xbf16, #tpu.memory_space<vmem>>, vector<1x1x16x16x4xbf16>
    %17 = vector.shape_cast %16 : vector<1x1x16x16x4xbf16> to vector<16x16x4xbf16>
    %18 = tpu.concatenate %1, %3, %5, %7, %9, %11, %13, %15, %17 in 2 : vector<16x16x4xbf16>, vector<16x16x4xbf16>, vector<16x16x4xbf16>, vector<16x16x4xbf16>, vector<16x16x4xbf16>, vector<16x16x4xbf16>, vector<16x16x4xbf16>, vector<16x16x4xbf16>, vector<16x16x4xbf16> -> vector<16x16x36xbf16>
    %19 = vector.shape_cast %18 : vector<16x16x36xbf16> to vector<256x36xbf16>
    %c0_42 = arith.constant 0 : index
    %c0_43 = arith.constant 0 : index
    %20 = vector.load %arg3[%c0_42, %c0_43] : memref<36x32xbf16, #tpu.memory_space<vmem>>, vector<36x32xbf16>
    %cst = arith.constant dense<0.000000e+00> : vector<256x32xf32>
    %21 = tpu.matmul %19, %20, %cst {dimension_numbers = #tpu.dot_dimension_numbers<[1], [0], [0], [1], [0, 0, 1, 1], [], []>} : vector<256x36xbf16>, vector<36x32xbf16>, vector<256x32xf32> -> vector<256x32xf32>
    %c0_44 = arith.constant 0 : index
    %c0_45 = arith.constant 0 : index
    %22 = vector.load %arg4[%c0_44, %c0_45] : memref<1x32xf32, #tpu.memory_space<vmem>>, vector<1x32xf32>
    %23 = vector.broadcast %22 : vector<1x32xf32> to vector<256x32xf32>
    %24 = arith.addf %21, %23 : vector<256x32xf32>
    %25 = arith.negf %24 : vector<256x32xf32>
    %26 = math.exp %25 : vector<256x32xf32>
    %cst_46 = arith.constant 1.000000e+00 : f32
    %27 = vector.broadcast %cst_46 : f32 to vector<256x32xf32>
    %28 = arith.addf %27, %26 : vector<256x32xf32>
    %29 = arith.divf %27, %28 : vector<256x32xf32>
    %30 = arith.mulf %24, %29 : vector<256x32xf32>
    %31 = vector.shape_cast %30 : vector<256x32xf32> to vector<16x512xf32>
    %c0_47 = arith.constant 0 : index
    %c0_48 = arith.constant 0 : index
    %c0_49 = arith.constant 0 : index
    %32 = vector.load %arg5[%c0_47, %c0_48, %c0_49] : memref<1x16x512xf32, #tpu.memory_space<vmem>>, vector<1x16x512xf32>
    %33 = vector.shape_cast %32 : vector<1x16x512xf32> to vector<16x512xf32>
    %34 = vector.shape_cast %31 : vector<16x512xf32> to vector<1x16x512xf32>
    tpu.vector_store %arg5[%c0_47, %c0_48, %c0_49], %34 {strides = array<i32>} : memref<1x16x512xf32, #tpu.memory_space<vmem>>, vector<1x16x512xf32>,
    return
  }
  func.func @transform_0(%arg0: i32, %arg1: i32) -> (i32, i32, i32, i32, i32) {
    %c0_i32 = arith.constant 0 : i32
    %c0_i32_0 = arith.constant 0 : i32
    %c0_i32_1 = arith.constant 0 : i32
    %c0_i32_2 = arith.constant 0 : i32
    return %arg0, %arg1, %c0_i32, %c0_i32_0, %c0_i32_1 : i32, i32, i32, i32, i32
  }
  func.func @transform_1(%arg0: i32, %arg1: i32) -> (i32, i32) {
    %c0_i32 = arith.constant 0 : i32
    %c0_i32_0 = arith.constant 0 : i32
    %c0_i32_1 = arith.constant 0 : i32
    return %c0_i32, %c0_i32_0 : i32, i32
  }
  func.func @transform_2(%arg0: i32, %arg1: i32) -> (i32, i32) {
    %c0_i32 = arith.constant 0 : i32
    %c0_i32_0 = arith.constant 0 : i32
    %c0_i32_1 = arith.constant 0 : i32
    return %c0_i32, %c0_i32_0 : i32, i32
  }
  func.func @transform_3(%arg0: i32, %arg1: i32) -> (i32, i32, i32) {
    %c0_i32 = arith.constant 0 : i32
    %c0_i32_0 = arith.constant 0 : i32
    return %arg0, %arg1, %c0_i32 : i32, i32, i32
  }
}

module attributes {stable_mosaic.version = 11 : i64} {
  func.func @_conv_packed_kernel(%arg0: i32, %arg1: i32, %arg2: memref<1x1x18x18x4xbf16, #tpu.memory_space<vmem>>, %arg3: memref<36x32xbf16, #tpu.memory_space<vmem>>, %arg4: memref<1x32xf32, #tpu.memory_space<vmem>>, %arg5: memref<1x16x16x32xf32, #tpu.memory_space<vmem>>) attributes {dimension_semantics = [#tpu.dimension_semantics<parallel>, #tpu.dimension_semantics<parallel>], iteration_bounds = array<i64: 2, 1>, scalar_prefetch = 0 : i64, scratch_operands = 0 : i64, tpu.core_type = #tpu.core_type<tc>, window_params = [{transform_indices = @transform_0, window_bounds = array<i64: 1, 1, 18, 18, 4>}, {pipeline_mode = #tpu.pipeline_mode<synchronous>, transform_indices = @transform_1, window_bounds = array<i64: 36, 32>}, {pipeline_mode = #tpu.pipeline_mode<synchronous>, transform_indices = @transform_2, window_bounds = array<i64: 1, 32>}, {transform_indices = @transform_3, window_bounds = array<i64: 1, 16, 16, 32>}]} {
    %c0 = arith.constant 0 : index
    %c0_0 = arith.constant 0 : index
    %c0_1 = arith.constant 0 : index
    %c0_2 = arith.constant 0 : index
    %c0_3 = arith.constant 0 : index
    %0 = vector.load %arg2[%c0, %c0_0, %c0_1, %c0_2, %c0_3] : memref<1x1x18x18x4xbf16, #tpu.memory_space<vmem>>, vector<1x1x16x16x4xbf16>
    %1 = vector.shape_cast %0 : vector<1x1x16x16x4xbf16> to vector<16x16x4xbf16>
    %c0_4 = arith.constant 0 : index
    %c0_5 = arith.constant 0 : index
    %c0_6 = arith.constant 0 : index
    %c1 = arith.constant 1 : index
    %c0_7 = arith.constant 0 : index
    %2 = vector.load %arg2[%c0_4, %c0_5, %c0_6, %c1, %c0_7] : memref<1x1x18x18x4xbf16, #tpu.memory_space<vmem>>, vector<1x1x16x16x4xbf16>
    %3 = vector.shape_cast %2 : vector<1x1x16x16x4xbf16> to vector<16x16x4xbf16>
    %c0_8 = arith.constant 0 : index
    %c0_9 = arith.constant 0 : index
    %c0_10 = arith.constant 0 : index
    %c2 = arith.constant 2 : index
    %c0_11 = arith.constant 0 : index
    %4 = vector.load %arg2[%c0_8, %c0_9, %c0_10, %c2, %c0_11] : memref<1x1x18x18x4xbf16, #tpu.memory_space<vmem>>, vector<1x1x16x16x4xbf16>
    %5 = vector.shape_cast %4 : vector<1x1x16x16x4xbf16> to vector<16x16x4xbf16>
    %c0_12 = arith.constant 0 : index
    %c0_13 = arith.constant 0 : index
    %c1_14 = arith.constant 1 : index
    %c0_15 = arith.constant 0 : index
    %c0_16 = arith.constant 0 : index
    %6 = vector.load %arg2[%c0_12, %c0_13, %c1_14, %c0_15, %c0_16] : memref<1x1x18x18x4xbf16, #tpu.memory_space<vmem>>, vector<1x1x16x16x4xbf16>
    %7 = vector.shape_cast %6 : vector<1x1x16x16x4xbf16> to vector<16x16x4xbf16>
    %c0_17 = arith.constant 0 : index
    %c0_18 = arith.constant 0 : index
    %c1_19 = arith.constant 1 : index
    %c1_20 = arith.constant 1 : index
    %c0_21 = arith.constant 0 : index
    %8 = vector.load %arg2[%c0_17, %c0_18, %c1_19, %c1_20, %c0_21] : memref<1x1x18x18x4xbf16, #tpu.memory_space<vmem>>, vector<1x1x16x16x4xbf16>
    %9 = vector.shape_cast %8 : vector<1x1x16x16x4xbf16> to vector<16x16x4xbf16>
    %c0_22 = arith.constant 0 : index
    %c0_23 = arith.constant 0 : index
    %c1_24 = arith.constant 1 : index
    %c2_25 = arith.constant 2 : index
    %c0_26 = arith.constant 0 : index
    %10 = vector.load %arg2[%c0_22, %c0_23, %c1_24, %c2_25, %c0_26] : memref<1x1x18x18x4xbf16, #tpu.memory_space<vmem>>, vector<1x1x16x16x4xbf16>
    %11 = vector.shape_cast %10 : vector<1x1x16x16x4xbf16> to vector<16x16x4xbf16>
    %c0_27 = arith.constant 0 : index
    %c0_28 = arith.constant 0 : index
    %c2_29 = arith.constant 2 : index
    %c0_30 = arith.constant 0 : index
    %c0_31 = arith.constant 0 : index
    %12 = vector.load %arg2[%c0_27, %c0_28, %c2_29, %c0_30, %c0_31] : memref<1x1x18x18x4xbf16, #tpu.memory_space<vmem>>, vector<1x1x16x16x4xbf16>
    %13 = vector.shape_cast %12 : vector<1x1x16x16x4xbf16> to vector<16x16x4xbf16>
    %c0_32 = arith.constant 0 : index
    %c0_33 = arith.constant 0 : index
    %c2_34 = arith.constant 2 : index
    %c1_35 = arith.constant 1 : index
    %c0_36 = arith.constant 0 : index
    %14 = vector.load %arg2[%c0_32, %c0_33, %c2_34, %c1_35, %c0_36] : memref<1x1x18x18x4xbf16, #tpu.memory_space<vmem>>, vector<1x1x16x16x4xbf16>
    %15 = vector.shape_cast %14 : vector<1x1x16x16x4xbf16> to vector<16x16x4xbf16>
    %c0_37 = arith.constant 0 : index
    %c0_38 = arith.constant 0 : index
    %c2_39 = arith.constant 2 : index
    %c2_40 = arith.constant 2 : index
    %c0_41 = arith.constant 0 : index
    %16 = vector.load %arg2[%c0_37, %c0_38, %c2_39, %c2_40, %c0_41] : memref<1x1x18x18x4xbf16, #tpu.memory_space<vmem>>, vector<1x1x16x16x4xbf16>
    %17 = vector.shape_cast %16 : vector<1x1x16x16x4xbf16> to vector<16x16x4xbf16>
    %18 = tpu.concatenate %1, %3, %5, %7, %9, %11, %13, %15, %17 in 2 : vector<16x16x4xbf16>, vector<16x16x4xbf16>, vector<16x16x4xbf16>, vector<16x16x4xbf16>, vector<16x16x4xbf16>, vector<16x16x4xbf16>, vector<16x16x4xbf16>, vector<16x16x4xbf16>, vector<16x16x4xbf16> -> vector<16x16x36xbf16>
    %19 = vector.shape_cast %18 : vector<16x16x36xbf16> to vector<256x36xbf16>
    %c0_42 = arith.constant 0 : index
    %c0_43 = arith.constant 0 : index
    %20 = vector.load %arg3[%c0_42, %c0_43] : memref<36x32xbf16, #tpu.memory_space<vmem>>, vector<36x32xbf16>
    %cst = arith.constant dense<0.000000e+00> : vector<256x32xf32>
    %21 = tpu.matmul %19, %20, %cst {dimension_numbers = #tpu.dot_dimension_numbers<[1], [0], [0], [1], [0, 0, 1, 1], [], []>} : vector<256x36xbf16>, vector<36x32xbf16>, vector<256x32xf32> -> vector<256x32xf32>
    %c0_44 = arith.constant 0 : index
    %c0_45 = arith.constant 0 : index
    %22 = vector.load %arg4[%c0_44, %c0_45] : memref<1x32xf32, #tpu.memory_space<vmem>>, vector<1x32xf32>
    %23 = vector.broadcast %22 : vector<1x32xf32> to vector<256x32xf32>
    %24 = arith.addf %21, %23 : vector<256x32xf32>
    %25 = arith.negf %24 : vector<256x32xf32>
    %26 = math.exp %25 : vector<256x32xf32>
    %cst_46 = arith.constant 1.000000e+00 : f32
    %27 = vector.broadcast %cst_46 : f32 to vector<256x32xf32>
    %28 = arith.addf %27, %26 : vector<256x32xf32>
    %29 = arith.divf %27, %28 : vector<256x32xf32>
    %30 = arith.mulf %24, %29 : vector<256x32xf32>
    %31 = vector.shape_cast %30 : vector<256x32xf32> to vector<16x16x32xf32>
    %c0_47 = arith.constant 0 : index
    %c0_48 = arith.constant 0 : index
    %c0_49 = arith.constant 0 : index
    %c0_50 = arith.constant 0 : index
    %32 = vector.load %arg5[%c0_47, %c0_48, %c0_49, %c0_50] : memref<1x16x16x32xf32, #tpu.memory_space<vmem>>, vector<1x16x16x32xf32>
    %33 = vector.shape_cast %32 : vector<1x16x16x32xf32> to vector<16x16x32xf32>
    %34 = vector.shape_cast %31 : vector<16x16x32xf32> to vector<1x16x16x32xf32>
    tpu.vector_store %arg5[%c0_47, %c0_48, %c0_49, %c0_50], %34 {strides = array<i32>} : memref<1x16x16x32xf32, #tpu.memory_space<vmem>>, vector<1x16x16x32xf32>,
    return
  }
  func.func @transform_0(%arg0: i32, %arg1: i32) -> (i32, i32, i32, i32, i32) {
    %c0_i32 = arith.constant 0 : i32
    %c0_i32_0 = arith.constant 0 : i32
    %c0_i32_1 = arith.constant 0 : i32
    %c0_i32_2 = arith.constant 0 : i32
    return %arg0, %arg1, %c0_i32, %c0_i32_0, %c0_i32_1 : i32, i32, i32, i32, i32
  }
  func.func @transform_1(%arg0: i32, %arg1: i32) -> (i32, i32) {
    %c0_i32 = arith.constant 0 : i32
    %c0_i32_0 = arith.constant 0 : i32
    %c0_i32_1 = arith.constant 0 : i32
    return %c0_i32, %c0_i32_0 : i32, i32
  }
  func.func @transform_2(%arg0: i32, %arg1: i32) -> (i32, i32) {
    %c0_i32 = arith.constant 0 : i32
    %c0_i32_0 = arith.constant 0 : i32
    %c0_i32_1 = arith.constant 0 : i32
    return %c0_i32, %c0_i32_0 : i32, i32
  }
  func.func @transform_3(%arg0: i32, %arg1: i32) -> (i32, i32, i32, i32) {
    %c0_i32 = arith.constant 0 : i32
    %c0_i32_0 = arith.constant 0 : i32
    %c0_i32_1 = arith.constant 0 : i32
    return %arg0, %arg1, %c0_i32, %c0_i32_0 : i32, i32, i32, i32
  }
}

module attributes {stable_mosaic.version = 11 : i64} {
  func.func @_conv_taps_kernel(%arg0: i32, %arg1: i32, %arg2: memref<1x1x18x18x4xbf16, #tpu.memory_space<vmem>>, %arg3: memref<36x32xbf16, #tpu.memory_space<vmem>>, %arg4: memref<1x32xf32, #tpu.memory_space<vmem>>, %arg5: memref<1x16x16x32xf32, #tpu.memory_space<vmem>>, %arg6: memref<256x32xf32, #tpu.memory_space<vmem>>) attributes {dimension_semantics = [#tpu.dimension_semantics<parallel>, #tpu.dimension_semantics<parallel>], iteration_bounds = array<i64: 2, 1>, scalar_prefetch = 0 : i64, scratch_operands = 1 : i64, tpu.core_type = #tpu.core_type<tc>, window_params = [{transform_indices = @transform_0, window_bounds = array<i64: 1, 1, 18, 18, 4>}, {pipeline_mode = #tpu.pipeline_mode<synchronous>, transform_indices = @transform_1, window_bounds = array<i64: 36, 32>}, {pipeline_mode = #tpu.pipeline_mode<synchronous>, transform_indices = @transform_2, window_bounds = array<i64: 1, 32>}, {transform_indices = @transform_3, window_bounds = array<i64: 1, 16, 16, 32>}]} {
    %c0 = arith.constant 0 : index
    %c0_0 = arith.constant 0 : index
    %c0_1 = arith.constant 0 : index
    %c0_2 = arith.constant 0 : index
    %c0_3 = arith.constant 0 : index
    %0 = vector.load %arg2[%c0, %c0_0, %c0_1, %c0_2, %c0_3] : memref<1x1x18x18x4xbf16, #tpu.memory_space<vmem>>, vector<1x1x16x16x4xbf16>
    %1 = vector.shape_cast %0 : vector<1x1x16x16x4xbf16> to vector<16x16x4xbf16>
    %2 = vector.shape_cast %1 : vector<16x16x4xbf16> to vector<256x4xbf16>
    %c0_4 = arith.constant 0 : index
    %c0_5 = arith.constant 0 : index
    %3 = vector.load %arg3[%c0_4, %c0_5] : memref<36x32xbf16, #tpu.memory_space<vmem>>, vector<4x32xbf16>
    %cst = arith.constant dense<0.000000e+00> : vector<256x32xf32>
    %4 = tpu.matmul %2, %3, %cst {dimension_numbers = #tpu.dot_dimension_numbers<[1], [0], [0], [1], [0, 0, 1, 1], [], []>} : vector<256x4xbf16>, vector<4x32xbf16>, vector<256x32xf32> -> vector<256x32xf32>
    %c0_6 = arith.constant 0 : index
    %c0_7 = arith.constant 0 : index
    %5 = vector.load %arg6[%c0_6, %c0_7] : memref<256x32xf32, #tpu.memory_space<vmem>>, vector<256x32xf32>
    tpu.vector_store %arg6[%c0_6, %c0_7], %4 {strides = array<i32>} : memref<256x32xf32, #tpu.memory_space<vmem>>, vector<256x32xf32>,
    %c0_8 = arith.constant 0 : index
    %c0_9 = arith.constant 0 : index
    %c0_10 = arith.constant 0 : index
    %c1 = arith.constant 1 : index
    %c0_11 = arith.constant 0 : index
    %6 = vector.load %arg2[%c0_8, %c0_9, %c0_10, %c1, %c0_11] : memref<1x1x18x18x4xbf16, #tpu.memory_space<vmem>>, vector<1x1x16x16x4xbf16>
    %7 = vector.shape_cast %6 : vector<1x1x16x16x4xbf16> to vector<16x16x4xbf16>
    %8 = vector.shape_cast %7 : vector<16x16x4xbf16> to vector<256x4xbf16>
    %c4 = arith.constant 4 : index
    %c0_12 = arith.constant 0 : index
    %9 = vector.load %arg3[%c4, %c0_12] : memref<36x32xbf16, #tpu.memory_space<vmem>>, vector<4x32xbf16>
    %cst_13 = arith.constant dense<0.000000e+00> : vector<256x32xf32>
    %10 = tpu.matmul %8, %9, %cst_13 {dimension_numbers = #tpu.dot_dimension_numbers<[1], [0], [0], [1], [0, 0, 1, 1], [], []>} : vector<256x4xbf16>, vector<4x32xbf16>, vector<256x32xf32> -> vector<256x32xf32>
    %c0_14 = arith.constant 0 : index
    %c0_15 = arith.constant 0 : index
    %11 = vector.load %arg6[%c0_14, %c0_15] : memref<256x32xf32, #tpu.memory_space<vmem>>, vector<256x32xf32>
    %12 = arith.addf %11, %10 : vector<256x32xf32>
    %c0_16 = arith.constant 0 : index
    %c0_17 = arith.constant 0 : index
    %13 = vector.load %arg6[%c0_16, %c0_17] : memref<256x32xf32, #tpu.memory_space<vmem>>, vector<256x32xf32>
    tpu.vector_store %arg6[%c0_16, %c0_17], %12 {strides = array<i32>} : memref<256x32xf32, #tpu.memory_space<vmem>>, vector<256x32xf32>,
    %c0_18 = arith.constant 0 : index
    %c0_19 = arith.constant 0 : index
    %c0_20 = arith.constant 0 : index
    %c2 = arith.constant 2 : index
    %c0_21 = arith.constant 0 : index
    %14 = vector.load %arg2[%c0_18, %c0_19, %c0_20, %c2, %c0_21] : memref<1x1x18x18x4xbf16, #tpu.memory_space<vmem>>, vector<1x1x16x16x4xbf16>
    %15 = vector.shape_cast %14 : vector<1x1x16x16x4xbf16> to vector<16x16x4xbf16>
    %16 = vector.shape_cast %15 : vector<16x16x4xbf16> to vector<256x4xbf16>
    %c8 = arith.constant 8 : index
    %c0_22 = arith.constant 0 : index
    %17 = vector.load %arg3[%c8, %c0_22] : memref<36x32xbf16, #tpu.memory_space<vmem>>, vector<4x32xbf16>
    %cst_23 = arith.constant dense<0.000000e+00> : vector<256x32xf32>
    %18 = tpu.matmul %16, %17, %cst_23 {dimension_numbers = #tpu.dot_dimension_numbers<[1], [0], [0], [1], [0, 0, 1, 1], [], []>} : vector<256x4xbf16>, vector<4x32xbf16>, vector<256x32xf32> -> vector<256x32xf32>
    %c0_24 = arith.constant 0 : index
    %c0_25 = arith.constant 0 : index
    %19 = vector.load %arg6[%c0_24, %c0_25] : memref<256x32xf32, #tpu.memory_space<vmem>>, vector<256x32xf32>
    %20 = arith.addf %19, %18 : vector<256x32xf32>
    %c0_26 = arith.constant 0 : index
    %c0_27 = arith.constant 0 : index
    %21 = vector.load %arg6[%c0_26, %c0_27] : memref<256x32xf32, #tpu.memory_space<vmem>>, vector<256x32xf32>
    tpu.vector_store %arg6[%c0_26, %c0_27], %20 {strides = array<i32>} : memref<256x32xf32, #tpu.memory_space<vmem>>, vector<256x32xf32>,
    %c0_28 = arith.constant 0 : index
    %c0_29 = arith.constant 0 : index
    %c1_30 = arith.constant 1 : index
    %c0_31 = arith.constant 0 : index
    %c0_32 = arith.constant 0 : index
    %22 = vector.load %arg2[%c0_28, %c0_29, %c1_30, %c0_31, %c0_32] : memref<1x1x18x18x4xbf16, #tpu.memory_space<vmem>>, vector<1x1x16x16x4xbf16>
    %23 = vector.shape_cast %22 : vector<1x1x16x16x4xbf16> to vector<16x16x4xbf16>
    %24 = vector.shape_cast %23 : vector<16x16x4xbf16> to vector<256x4xbf16>
    %c12 = arith.constant 12 : index
    %c0_33 = arith.constant 0 : index
    %25 = vector.load %arg3[%c12, %c0_33] : memref<36x32xbf16, #tpu.memory_space<vmem>>, vector<4x32xbf16>
    %cst_34 = arith.constant dense<0.000000e+00> : vector<256x32xf32>
    %26 = tpu.matmul %24, %25, %cst_34 {dimension_numbers = #tpu.dot_dimension_numbers<[1], [0], [0], [1], [0, 0, 1, 1], [], []>} : vector<256x4xbf16>, vector<4x32xbf16>, vector<256x32xf32> -> vector<256x32xf32>
    %c0_35 = arith.constant 0 : index
    %c0_36 = arith.constant 0 : index
    %27 = vector.load %arg6[%c0_35, %c0_36] : memref<256x32xf32, #tpu.memory_space<vmem>>, vector<256x32xf32>
    %28 = arith.addf %27, %26 : vector<256x32xf32>
    %c0_37 = arith.constant 0 : index
    %c0_38 = arith.constant 0 : index
    %29 = vector.load %arg6[%c0_37, %c0_38] : memref<256x32xf32, #tpu.memory_space<vmem>>, vector<256x32xf32>
    tpu.vector_store %arg6[%c0_37, %c0_38], %28 {strides = array<i32>} : memref<256x32xf32, #tpu.memory_space<vmem>>, vector<256x32xf32>,
    %c0_39 = arith.constant 0 : index
    %c0_40 = arith.constant 0 : index
    %c1_41 = arith.constant 1 : index
    %c1_42 = arith.constant 1 : index
    %c0_43 = arith.constant 0 : index
    %30 = vector.load %arg2[%c0_39, %c0_40, %c1_41, %c1_42, %c0_43] : memref<1x1x18x18x4xbf16, #tpu.memory_space<vmem>>, vector<1x1x16x16x4xbf16>
    %31 = vector.shape_cast %30 : vector<1x1x16x16x4xbf16> to vector<16x16x4xbf16>
    %32 = vector.shape_cast %31 : vector<16x16x4xbf16> to vector<256x4xbf16>
    %c16 = arith.constant 16 : index
    %c0_44 = arith.constant 0 : index
    %33 = vector.load %arg3[%c16, %c0_44] : memref<36x32xbf16, #tpu.memory_space<vmem>>, vector<4x32xbf16>
    %cst_45 = arith.constant dense<0.000000e+00> : vector<256x32xf32>
    %34 = tpu.matmul %32, %33, %cst_45 {dimension_numbers = #tpu.dot_dimension_numbers<[1], [0], [0], [1], [0, 0, 1, 1], [], []>} : vector<256x4xbf16>, vector<4x32xbf16>, vector<256x32xf32> -> vector<256x32xf32>
    %c0_46 = arith.constant 0 : index
    %c0_47 = arith.constant 0 : index
    %35 = vector.load %arg6[%c0_46, %c0_47] : memref<256x32xf32, #tpu.memory_space<vmem>>, vector<256x32xf32>
    %36 = arith.addf %35, %34 : vector<256x32xf32>
    %c0_48 = arith.constant 0 : index
    %c0_49 = arith.constant 0 : index
    %37 = vector.load %arg6[%c0_48, %c0_49] : memref<256x32xf32, #tpu.memory_space<vmem>>, vector<256x32xf32>
    tpu.vector_store %arg6[%c0_48, %c0_49], %36 {strides = array<i32>} : memref<256x32xf32, #tpu.memory_space<vmem>>, vector<256x32xf32>,
    %c0_50 = arith.constant 0 : index
    %c0_51 = arith.constant 0 : index
    %c1_52 = arith.constant 1 : index
    %c2_53 = arith.constant 2 : index
    %c0_54 = arith.constant 0 : index
    %38 = vector.load %arg2[%c0_50, %c0_51, %c1_52, %c2_53, %c0_54] : memref<1x1x18x18x4xbf16, #tpu.memory_space<vmem>>, vector<1x1x16x16x4xbf16>
    %39 = vector.shape_cast %38 : vector<1x1x16x16x4xbf16> to vector<16x16x4xbf16>
    %40 = vector.shape_cast %39 : vector<16x16x4xbf16> to vector<256x4xbf16>
    %c20 = arith.constant 20 : index
    %c0_55 = arith.constant 0 : index
    %41 = vector.load %arg3[%c20, %c0_55] : memref<36x32xbf16, #tpu.memory_space<vmem>>, vector<4x32xbf16>
    %cst_56 = arith.constant dense<0.000000e+00> : vector<256x32xf32>
    %42 = tpu.matmul %40, %41, %cst_56 {dimension_numbers = #tpu.dot_dimension_numbers<[1], [0], [0], [1], [0, 0, 1, 1], [], []>} : vector<256x4xbf16>, vector<4x32xbf16>, vector<256x32xf32> -> vector<256x32xf32>
    %c0_57 = arith.constant 0 : index
    %c0_58 = arith.constant 0 : index
    %43 = vector.load %arg6[%c0_57, %c0_58] : memref<256x32xf32, #tpu.memory_space<vmem>>, vector<256x32xf32>
    %44 = arith.addf %43, %42 : vector<256x32xf32>
    %c0_59 = arith.constant 0 : index
    %c0_60 = arith.constant 0 : index
    %45 = vector.load %arg6[%c0_59, %c0_60] : memref<256x32xf32, #tpu.memory_space<vmem>>, vector<256x32xf32>
    tpu.vector_store %arg6[%c0_59, %c0_60], %44 {strides = array<i32>} : memref<256x32xf32, #tpu.memory_space<vmem>>, vector<256x32xf32>,
    %c0_61 = arith.constant 0 : index
    %c0_62 = arith.constant 0 : index
    %c2_63 = arith.constant 2 : index
    %c0_64 = arith.constant 0 : index
    %c0_65 = arith.constant 0 : index
    %46 = vector.load %arg2[%c0_61, %c0_62, %c2_63, %c0_64, %c0_65] : memref<1x1x18x18x4xbf16, #tpu.memory_space<vmem>>, vector<1x1x16x16x4xbf16>
    %47 = vector.shape_cast %46 : vector<1x1x16x16x4xbf16> to vector<16x16x4xbf16>
    %48 = vector.shape_cast %47 : vector<16x16x4xbf16> to vector<256x4xbf16>
    %c24 = arith.constant 24 : index
    %c0_66 = arith.constant 0 : index
    %49 = vector.load %arg3[%c24, %c0_66] : memref<36x32xbf16, #tpu.memory_space<vmem>>, vector<4x32xbf16>
    %cst_67 = arith.constant dense<0.000000e+00> : vector<256x32xf32>
    %50 = tpu.matmul %48, %49, %cst_67 {dimension_numbers = #tpu.dot_dimension_numbers<[1], [0], [0], [1], [0, 0, 1, 1], [], []>} : vector<256x4xbf16>, vector<4x32xbf16>, vector<256x32xf32> -> vector<256x32xf32>
    %c0_68 = arith.constant 0 : index
    %c0_69 = arith.constant 0 : index
    %51 = vector.load %arg6[%c0_68, %c0_69] : memref<256x32xf32, #tpu.memory_space<vmem>>, vector<256x32xf32>
    %52 = arith.addf %51, %50 : vector<256x32xf32>
    %c0_70 = arith.constant 0 : index
    %c0_71 = arith.constant 0 : index
    %53 = vector.load %arg6[%c0_70, %c0_71] : memref<256x32xf32, #tpu.memory_space<vmem>>, vector<256x32xf32>
    tpu.vector_store %arg6[%c0_70, %c0_71], %52 {strides = array<i32>} : memref<256x32xf32, #tpu.memory_space<vmem>>, vector<256x32xf32>,
    %c0_72 = arith.constant 0 : index
    %c0_73 = arith.constant 0 : index
    %c2_74 = arith.constant 2 : index
    %c1_75 = arith.constant 1 : index
    %c0_76 = arith.constant 0 : index
    %54 = vector.load %arg2[%c0_72, %c0_73, %c2_74, %c1_75, %c0_76] : memref<1x1x18x18x4xbf16, #tpu.memory_space<vmem>>, vector<1x1x16x16x4xbf16>
    %55 = vector.shape_cast %54 : vector<1x1x16x16x4xbf16> to vector<16x16x4xbf16>
    %56 = vector.shape_cast %55 : vector<16x16x4xbf16> to vector<256x4xbf16>
    %c28 = arith.constant 28 : index
    %c0_77 = arith.constant 0 : index
    %57 = vector.load %arg3[%c28, %c0_77] : memref<36x32xbf16, #tpu.memory_space<vmem>>, vector<4x32xbf16>
    %cst_78 = arith.constant dense<0.000000e+00> : vector<256x32xf32>
    %58 = tpu.matmul %56, %57, %cst_78 {dimension_numbers = #tpu.dot_dimension_numbers<[1], [0], [0], [1], [0, 0, 1, 1], [], []>} : vector<256x4xbf16>, vector<4x32xbf16>, vector<256x32xf32> -> vector<256x32xf32>
    %c0_79 = arith.constant 0 : index
    %c0_80 = arith.constant 0 : index
    %59 = vector.load %arg6[%c0_79, %c0_80] : memref<256x32xf32, #tpu.memory_space<vmem>>, vector<256x32xf32>
    %60 = arith.addf %59, %58 : vector<256x32xf32>
    %c0_81 = arith.constant 0 : index
    %c0_82 = arith.constant 0 : index
    %61 = vector.load %arg6[%c0_81, %c0_82] : memref<256x32xf32, #tpu.memory_space<vmem>>, vector<256x32xf32>
    tpu.vector_store %arg6[%c0_81, %c0_82], %60 {strides = array<i32>} : memref<256x32xf32, #tpu.memory_space<vmem>>, vector<256x32xf32>,
    %c0_83 = arith.constant 0 : index
    %c0_84 = arith.constant 0 : index
    %c2_85 = arith.constant 2 : index
    %c2_86 = arith.constant 2 : index
    %c0_87 = arith.constant 0 : index
    %62 = vector.load %arg2[%c0_83, %c0_84, %c2_85, %c2_86, %c0_87] : memref<1x1x18x18x4xbf16, #tpu.memory_space<vmem>>, vector<1x1x16x16x4xbf16>
    %63 = vector.shape_cast %62 : vector<1x1x16x16x4xbf16> to vector<16x16x4xbf16>
    %64 = vector.shape_cast %63 : vector<16x16x4xbf16> to vector<256x4xbf16>
    %c32 = arith.constant 32 : index
    %c0_88 = arith.constant 0 : index
    %65 = vector.load %arg3[%c32, %c0_88] : memref<36x32xbf16, #tpu.memory_space<vmem>>, vector<4x32xbf16>
    %cst_89 = arith.constant dense<0.000000e+00> : vector<256x32xf32>
    %66 = tpu.matmul %64, %65, %cst_89 {dimension_numbers = #tpu.dot_dimension_numbers<[1], [0], [0], [1], [0, 0, 1, 1], [], []>} : vector<256x4xbf16>, vector<4x32xbf16>, vector<256x32xf32> -> vector<256x32xf32>
    %c0_90 = arith.constant 0 : index
    %c0_91 = arith.constant 0 : index
    %67 = vector.load %arg6[%c0_90, %c0_91] : memref<256x32xf32, #tpu.memory_space<vmem>>, vector<256x32xf32>
    %68 = arith.addf %67, %66 : vector<256x32xf32>
    %c0_92 = arith.constant 0 : index
    %c0_93 = arith.constant 0 : index
    %69 = vector.load %arg6[%c0_92, %c0_93] : memref<256x32xf32, #tpu.memory_space<vmem>>, vector<256x32xf32>
    tpu.vector_store %arg6[%c0_92, %c0_93], %68 {strides = array<i32>} : memref<256x32xf32, #tpu.memory_space<vmem>>, vector<256x32xf32>,
    %c0_94 = arith.constant 0 : index
    %c0_95 = arith.constant 0 : index
    %70 = vector.load %arg6[%c0_94, %c0_95] : memref<256x32xf32, #tpu.memory_space<vmem>>, vector<256x32xf32>
    %c0_96 = arith.constant 0 : index
    %c0_97 = arith.constant 0 : index
    %71 = vector.load %arg4[%c0_96, %c0_97] : memref<1x32xf32, #tpu.memory_space<vmem>>, vector<1x32xf32>
    %72 = vector.broadcast %71 : vector<1x32xf32> to vector<256x32xf32>
    %73 = arith.addf %70, %72 : vector<256x32xf32>
    %74 = arith.negf %73 : vector<256x32xf32>
    %75 = math.exp %74 : vector<256x32xf32>
    %cst_98 = arith.constant 1.000000e+00 : f32
    %76 = vector.broadcast %cst_98 : f32 to vector<256x32xf32>
    %77 = arith.addf %76, %75 : vector<256x32xf32>
    %78 = arith.divf %76, %77 : vector<256x32xf32>
    %79 = arith.mulf %73, %78 : vector<256x32xf32>
    %80 = vector.shape_cast %79 : vector<256x32xf32> to vector<16x16x32xf32>
    %c0_99 = arith.constant 0 : index
    %c0_100 = arith.constant 0 : index
    %c0_101 = arith.constant 0 : index
    %c0_102 = arith.constant 0 : index
    %81 = vector.load %arg5[%c0_99, %c0_100, %c0_101, %c0_102] : memref<1x16x16x32xf32, #tpu.memory_space<vmem>>, vector<1x16x16x32xf32>
    %82 = vector.shape_cast %81 : vector<1x16x16x32xf32> to vector<16x16x32xf32>
    %83 = vector.shape_cast %80 : vector<16x16x32xf32> to vector<1x16x16x32xf32>
    tpu.vector_store %arg5[%c0_99, %c0_100, %c0_101, %c0_102], %83 {strides = array<i32>} : memref<1x16x16x32xf32, #tpu.memory_space<vmem>>, vector<1x16x16x32xf32>,
    return
  }
  func.func @transform_0(%arg0: i32, %arg1: i32) -> (i32, i32, i32, i32, i32) {
    %c0_i32 = arith.constant 0 : i32
    %c0_i32_0 = arith.constant 0 : i32
    %c0_i32_1 = arith.constant 0 : i32
    %c0_i32_2 = arith.constant 0 : i32
    return %arg0, %arg1, %c0_i32, %c0_i32_0, %c0_i32_1 : i32, i32, i32, i32, i32
  }
  func.func @transform_1(%arg0: i32, %arg1: i32) -> (i32, i32) {
    %c0_i32 = arith.constant 0 : i32
    %c0_i32_0 = arith.constant 0 : i32
    %c0_i32_1 = arith.constant 0 : i32
    return %c0_i32, %c0_i32_0 : i32, i32
  }
  func.func @transform_2(%arg0: i32, %arg1: i32) -> (i32, i32) {
    %c0_i32 = arith.constant 0 : i32
    %c0_i32_0 = arith.constant 0 : i32
    %c0_i32_1 = arith.constant 0 : i32
    return %c0_i32, %c0_i32_0 : i32, i32
  }
  func.func @transform_3(%arg0: i32, %arg1: i32) -> (i32, i32, i32, i32) {
    %c0_i32 = arith.constant 0 : i32
    %c0_i32_0 = arith.constant 0 : i32
    %c0_i32_1 = arith.constant 0 : i32
    return %arg0, %arg1, %c0_i32, %c0_i32_0 : i32, i32, i32, i32
  }
}

</mosaic_0001>

<bundles_post_ra>
// kernel: tpu_custom_call.1
= control target key start
LH: loop header
LB: loop body
LE: loop exit
PB: predicated region body
PF: predicated region fallthrough
CT: control target
= control target key end

     0   :  { %8 = vsyncpa [#allocation3], 0  ;;  %s5048_s0 = inlined_call_operand.vmem [shape: bf16[2,1,18,18,4], index: 0, kind: input, shape index: {}]   ;;  %s5049_s1 = inlined_call_operand.vmem [shape: bf16[36,32], index: 1, kind: input, shape index: {}]   ;;  %s5050_s2 = inlined_call_operand.vmem [shape: f32[1,32], index: 2, kind: input, shape index: {}]   ;;  %s5051_s3 = inlined_call_operand.hbm [shape: f32[2,16,16,32], index: 3, kind: output, shape index: {}]  }
   0x1   :  { %10 = vsyncpa [#allocation3 + $0x1], 0  ;;  %s3595_s12 = smov 0   ;;  %s3597_s13 = smov 0  }
   0x2   :  { %s3599_s14 = smov 0   ;;  %s3601_s15 = smov 0  }
   0x3   :  { %s3603_s16 = smov 0   ;;  %s3605_s17 = smov 0  }
   0x4 LB: > { %s2743_s18 = sadd.s32 4294967295, %s3563_s17   ;;  %s2744_s19 = sadd.s32 4294967294, %s3563_s17   ;;  %s3563_s17 = sphi %s3605_s17, %s16_s17   ;;  %s3559_s16 = sphi %s3603_s16, %s5070_s16   ;;  %s3555_s15 = sphi %s3601_s15, %s5069_s15   ;;  %s3551_s14 = sphi %s3599_s14, %s5068_s14   ;;  %s3547_s13 = sphi %s3597_s13, %s5067_s13   ;;  %s3543_s12 = sphi %s3595_s12, %s5066_s12  }
   0x5   : > { %s28_s20 = sadd.s32 1, %s3559_s16  ;;  %s107_s21 = sadd.s32 1, %s3551_s14 }
   0x6   : > { %p30_p0 = scmp.ge.s32.totalorder %s28_s20, 2  ;;  %p117_p1 = scmp.ne.s32.totalorder %s3551_s14, %s3547_s13 }
   0x7   : > { %p118_p2 = scmp.eq.s32.totalorder %s2743_s18, 1  ;;  %p123_p3 = scmp.ne.s32.totalorder %s3547_s13, %s3543_s12 }
   0x8   : > { %s5072_s20 = smov (%p30_p0, %s28_s20), 0  ;;  %p124_p5 = scmp.eq.s32.totalorder %s2744_s19, 1 }
   0x9   : > { %p3635_p4 = por %p118_p2, %p117_p1  ;;  %s102_s23 = ssub.s32 %s3559_s16, %s5072_s20 }
   0xa   : > { %p2747_p6 = scmp.ge.s32.totalorder %s3563_s17, 1  ;;  %p105_p7 = scmp.eq.s32.totalorder %s102_s23, 0 }
   0xb   : > { %p3642_p8 = por %p124_p5, %p123_p3  ;;  %p160_p9 = scmp.lt.s32.totalorder %s3563_s17, 3 }
   0xc   : > { %s3648_s25 = scalar_select %p105_p7, %s3551_s14, %s107_s21  }
   0xd   : > { %p161_p10 = pnand %p2747_p6, %p160_p9 }
   0xf   : > { %164 = sbr.rel (%p161_p10) target bundleno = 666 (0x29a), region = 32 }
  0x16   : > { %p188_p11 = scmp.lt.s32.totalorder %s3555_s15, 1  ;;  %s3565_s4 = smov 12   ;;  %vm794_vm0 = vcmask 1046528   ;;  %vm521_vm1 = vsmask.f32 7424  ;;  %vm2223_vm2 = vcmask 1041408  }
  0x17   : > { %s3566_s5 = smov 8   ;;  %s3567_s6 = smov 4   ;;  %vm1899_vm3 = vcmask 31744   ;;  %vm1932_vm4 = vcmask 64512   ;;  %vm1965_vm5 = vcmask 97280   ;;  %vm1998_vm6 = vcmask 130048  }
  0x18   : > { %s189_s26 = scalar_select %p188_p11, %s3555_s15, 1  ;;  %vm2031_vm7 = vcmask 162816   ;;  %vm2064_vm8 = vcmask 195584   ;;  %vm2097_vm9 = vcmask 228352   ;;  %vm2130_vm10 = vcmask 261120  }
  0x19   : > { %s3568_s7 = smov 16   ;;  %s3569_s8 = smov 20   ;;  %vm2190_vm11 = vcmask 293888  }
  0x1a   : > { %s3145_s27 = smul.u32 216, %s189_s26  ;;  %s3570_s11 = smov 24  }
  0x1b   : > { %s3571_s21 = smov 28   ;;  %s3572_s23 = smov 32  }
  0x1c   : > { %s3655_s30 = scalar_lea.vmem %s5048_s0, %s3145_s27  ;;  %s3573_s19 = smov [#allocation2]  }
  0x1d   : > { %v2766_v0 = vld [vmem:[%s3655_s30 + $0x6c] sm:$0xf]  ;;  %v3659_v1 = vld [vmem:[%s3655_s30 + $0x70] sm:$0xf]  ;;  %v216_v6 = vld [vmem:[%s3655_s30 + $0x64] sm:$0xf] }
  0x1e   : > { %v3662_v2 = vcombine.low %v2766_v0, %v3659_v1  ;;  %v2750_v3 = vld [vmem:[%s3655_s30 + $0xc] sm:$0xf]  ;;  %v3666_v4 = vld [vmem:[%s3655_s30 + $0x10] sm:$0xf]  ;;  %v255_v7 = vld [vmem:[%s3655_s30 + $0x60] sm:$0xe] }
  0x1f   : > { %v3669_v5 = vcombine.low %v2750_v3, %v3666_v4  ;;  %v3676_v8 = vld [vmem:[%s3655_s30 + $0x68] ss:$0 sps:$4 sm:$0x11]   ;;  %v2918_v9 = vcombine.low %v255_v7, %v216_v6  ;;  %v215_v10 = vld [vmem:[%s3655_s30 + $0x60] sm:$0xf] }
  0x20   : > { %971 = vrot.lane.b32.xlu1 %v3662_v2, %s3565_s4  ;;  %v1134_v11 = vshll.u32 %v3662_v2, 16  ;;  %v200_v12 = vld [vmem:[%s3655_s30 + $0x4] sm:$0xf]  ;;  %v820_v14 = vrot.slane %v3676_v8, 1  ;;  %v247_v15 = vld [vmem:[%s3655_s30] sm:$0xe]  ;;  %v3687_v18 = vcombine.low %v215_v10, %v216_v6 }
  0x21   : > { %955 = vrot.lane.b32.xlu0 %v3669_v5, %s3565_s4  ;;  %v819_v13 = vrot.slane %v2918_v9, 1  ;;  %v199_v16 = vld [vmem:[%s3655_s30] sm:$0xf]  ;;  %v1038_v17 = vshll.u32 %v3669_v5, 16  ;;  %v2910_v20 = vcombine.low %v247_v15, %v200_v12  ;;  %v217_v21 = vld [vmem:[%s3655_s30 + $0x6c] sm:$0xf] }
  0x22   : > { %v3217_v19 = vld [vmem:[%s3655_s30 + $0x8] ss:$0 sps:$4 sm:$0x11]   ;;  %v3692_v23 = vcombine.low %v199_v16, %v200_v12  ;;  %v218_v24 = vld [vmem:[%s3655_s30 + $0x70] sm:$0xf]  ;;  %v619_v30 = vshrl.u32 %v3687_v18, 16 }
  0x23   : > { %v821_v22 = vsel %vm794_vm0, %v819_v13, %v820_v14  ;;  %v256_v25 = vld [vmem:[%s3655_s30 + $0x6c] sm:$0xe]  ;;  %v795_v26 = vrot.slane %v2910_v20, 1  ;;  %v796_v27 = vrot.slane %v3217_v19, 1  ;;  %v3699_v31 = vcombine.low %v217_v21, %v218_v24  ;;  %v202_v33 = vld [vmem:[%s3655_s30 + $0x10] sm:$0xf] }
  0x24   : > { %859 = vrot.lane.b32.xlu1 %v821_v22, %s3566_s5  ;;  %v3221_v28 = vld [vmem:[%s3655_s30 + $0x74] ss:$0 sps:$4 sm:$0x11]   ;;  %v2919_v29 = vcombine.low %v256_v25, %v218_v24  ;;  %v201_v32 = vld [vmem:[%s3655_s30 + $0xc] sm:$0xf]  ;;  %v523_v41 = vshrl.u32 %v3692_v23, 16 }
  0x25   : > { %v797_v34 = vsel %vm794_vm0, %v795_v26, %v796_v27  ;;  %v823_v36 = vrot.slane %v3221_v28, 1  ;;  %v248_v37 = vld [vmem:[%s3655_s30 + $0xc] sm:$0xe]  ;;  %v3705_v38 = vcombine.low %v201_v32, %v202_v33  ;;  %v3224_v39 = vld [vmem:[%s3655_s30 + $0x14] ss:$0 sps:$4 sm:$0x11]  }
  0x26   : > { %v822_v35 = vrot.slane %v2919_v29, 1  ;;  %843 = vrot.lane.b32.xlu0 %v797_v34, %s3566_s5  ;;  %v2911_v40 = vcombine.low %v248_v37, %v202_v33  ;;  %v525_v42 = vshll.u32 %v3692_v23, 16  ;;  %v530_v43 = vshll.u32 %v3217_v19, 16  ;;  %v2768_v52 = vld [vmem:[%s3655_s30 + $0x78] sm:$0xf] }
  0x27   : > { %v535_v45 = vshrl.u32 %v3705_v38, 16  ;;  %v537_v46 = vshll.u32 %v3705_v38, 16  ;;  %v631_v47 = vshrl.u32 %v3699_v31, 16  ;;  %v799_v49 = vrot.slane %v3224_v39, 1  ;;  %v3719_v57 = vld [vmem:[%s3655_s30 + $0x7c] sm:$0xf] }
  0x28   : > { %v824_v44 = vsel %vm794_vm0, %v822_v35, %v823_v36  ;;  %v798_v48 = vrot.slane %v2911_v40, 1  ;;  %v542_v50 = vshll.u32 %v3224_v39, 16  ;;  %v527_v51 = vrot.slane %v525_v42, 1  ;;  %v2752_v62 = vld [vmem:[%s3655_s30 + $0x18] sm:$0xf] }
  0x29   : > { %861 = vrot.lane.b32.xlu1 %v824_v44, %s3566_s5  ;;  %v539_v53 = vrot.slane %v537_v46, 1  ;;  %v532_v54 = vrot.slane %v530_v43, 1  ;;  %v633_v55 = vshll.u32 %v3699_v31, 16  ;;  %v638_v56 = vshll.u32 %v3221_v28, 16  ;;  %v3725_v63 = vld [vmem:[%s3655_s30 + $0x1c] sm:$0xf] }
  0x2a   : > { %v800_v58 = vsel %vm794_vm0, %v798_v48, %v799_v49  ;;  %v544_v59 = vrot.slane %v542_v50, 1  ;;  %v528_v60 = vor.u32 %v527_v51, %v523_v41  ;;  %v621_v61 = vshll.u32 %v3687_v18, 16  ;;  %v3732_v13 = vld [vmem:[%s3655_s30 + $0x74] ss:$0 sps:$4 sm:$0x11]  }
  0x2b   : > { %845 = vrot.lane.b32.xlu0 %v800_v58, %s3566_s5  ;;  %v540_v0 = vor.u32 %v539_v53, %v535_v45  ;;  %v635_v3 = vrot.slane %v633_v55, 1  ;;  %v640_v6 = vrot.slane %v638_v56, 1  ;;  %v626_v7 = vshll.u32 %v3676_v8, 16  ;;  %v3737_v20 = vld [vmem:[%s3655_s30 + $0x14] ss:$0 sps:$4 sm:$0x11]  }
  0x2c   : > { %v533_v9 = vsel %vm521_vm1, %v528_v60, %v532_v54  ;;  %v623_v10 = vrot.slane %v621_v61, 1  ;;  %v2935_v12 = vcombine.low %v2768_v52, %v3719_v57  ;;  %v2927_v19 = vcombine.low %v2752_v62, %v3725_v63  ;;  %v3744_v24 = vld [vmem:[%s3655_s30 + $0x80] ss:$0 sps:$4 sm:$0x11]   ;;  %v2806_v40 = vld [vmem:[%s3655_s30 + $0x6c] sm:$0xe] }
  0x2d   : > { %v545_v14 = vsel %vm521_vm1, %v540_v0, %v544_v59  ;;  %v636_v15 = vor.u32 %v635_v3, %v631_v47  ;;  %v628_v16 = vrot.slane %v626_v7, 1  ;;  %v1132_v21 = vshrl.u32 %v3662_v2, 16  ;;  %v2798_v43 = vld [vmem:[%s3655_s30 + $0xc] sm:$0xe]  ;;  %v2807_v49 = vld [vmem:[%s3655_s30 + $0x78] sm:$0xe] }
  0x2e   : > { %716 = vrot.lane.b32.xlu1 %v545_v14, %s3567_s6  ;;  %v624_v8 = vor.u32 %v623_v10, %v619_v30  ;;  %v1136_v22 = vrot.slane %v1134_v11, 1  ;;  %v1146_v26 = vshll.u32 %v2935_v12, 16  ;;  %v1139_v27 = vshll.u32 %v3732_v13, 16  ;;  %v3755_v11 = vld [vmem:[%s3655_s30 + $0x20] ss:$0 sps:$4 sm:$0x11]  }
  0x2f   : > { %714 = vrot.lane.b32.xlu0 %v533_v9, %s3567_s6  ;;  %v641_v25 = vsel %vm521_vm1, %v636_v15, %v640_v6  ;;  %v1036_v28 = vshrl.u32 %v3669_v5, 16  ;;  %v1050_v30 = vshll.u32 %v2927_v19, 16  ;;  %v1040_v32 = vrot.slane %v1038_v17, 1  ;;  %v2799_v53 = vld [vmem:[%s3655_s30 + $0x18] sm:$0xe] }
  0x30   : > { %v629_v29 = vsel %vm521_vm1, %v624_v8, %v628_v16  ;;  %v1043_v2 = vshll.u32 %v3737_v20, 16  ;;  %v1137_v33 = vor.u32 %v1136_v22, %v1132_v21  ;;  %v1141_v34 = vrot.slane %v1139_v27, 1  ;;  %v2830_v54 = vld [vmem:[%s3655_s30 + $0x78] sm:$0xf]  ;;  %v3782_v60 = vld [vmem:[%s3655_s30 + $0x1c] sm:$0xf] }
  0x31   : > { %v1041_v35 = vor.u32 %v1040_v32, %v1036_v28  ;;  %v1144_v36 = vshrl.u32 %v2935_v12, 16  ;;  %v1148_v37 = vrot.slane %v1146_v26, 1  ;;  %v1151_v39 = vshll.u32 %v3744_v24, 16  ;;  %v2814_v55 = vld [vmem:[%s3655_s30 + $0x18] sm:$0xf] }
  0x32   : > { %732 = vrot.lane.b32.xlu1 %v641_v25, %s3567_s6  ;;  %v1045_v5 = vrot.slane %v1043_v2, 1  ;;  %v1048_v17 = vshrl.u32 %v2927_v19, 16  ;;  %v1052_v41 = vrot.slane %v1050_v30, 1  ;;  %v1055_v42 = vshll.u32 %v3755_v11, 16  ;;  %v2832_v7 = vld [vmem:[%s3655_s30 + $0x84] sm:$0xf] }
  0x33   : > { %730 = vrot.lane.b32.xlu0 %v629_v29, %s3567_s6  ;;  %v2966_v44 = vcombine.low %v2806_v40, %v3659_v1  ;;  %v1142_v45 = vsel %vm521_vm1, %v1137_v33, %v1141_v34  ;;  %v1149_v46 = vor.u32 %v1148_v37, %v1144_v36  ;;  %v1153_v47 = vrot.slane %v1151_v39, 1  ;;  %v3774_v1 = vld [vmem:[%s3655_s30 + $0x7c] sm:$0xf]  ;;  %v3792_v9 = vld [vmem:[%s3655_s30 + $0x88] sm:$0xf] }
  0x34   : > { %v2958_v48 = vcombine.low %v2798_v43, %v3666_v4  ;;  %v1046_v50 = vsel %vm521_vm1, %v1041_v35, %v1045_v5  ;;  %v1053_v51 = vor.u32 %v1052_v41, %v1048_v17  ;;  %v1057_v52 = vrot.slane %v1055_v42, 1  ;;  %v3799_v14 = vld [vmem:[%s3655_s30 + $0x28] sm:$0xf]  ;;  %v3805_v21 = vld [vmem:[%s3655_s30 + $0x80] ss:$0 sps:$4 sm:$0x11]  }
  0x35   : > { %v2967_v56 = vcombine.low %v2807_v49, %v3719_v57  ;;  %v1154_v4 = vsel %vm521_vm1, %v1149_v46, %v1153_v47  ;;  %v1331_v58 = vrot.slane %v2966_v44, 1  ;;  %v1332_v59 = vrot.slane %v3732_v13, 1  ;;  %v2816_v13 = vld [vmem:[%s3655_s30 + $0x24] sm:$0xf]  ;;  %v219_v37 = vld [vmem:[%s3655_s30 + $0x78] sm:$0xf] }
  0x36   : > { %973 = vrot.lane.b32.xlu1 %v2935_v12, %s3565_s4  ;;  %v2959_v61 = vcombine.low %v2799_v53, %v3725_v63  ;;  %v1058_v62 = vsel %vm521_vm1, %v1053_v51, %v1057_v52  ;;  %v1307_v0 = vrot.slane %v2958_v48, 1  ;;  %v1308_v3 = vrot.slane %v3737_v20, 1  ;;  %v3812_v26 = vld [vmem:[%s3655_s30 + $0x20] ss:$0 sps:$4 sm:$0x11]  }
  0x37   : > { %957 = vrot.lane.b32.xlu0 %v2927_v19, %s3565_s4  ;;  %v2982_v57 = vcombine.low %v2830_v54, %v3774_v1  ;;  %v2974_v6 = vcombine.low %v2814_v55, %v3782_v60  ;;  %v1333_v10 = vsel %vm794_vm0, %v1331_v58, %v1332_v59  ;;  %v1334_v63 = vrot.slane %v2967_v56, 1  ;;  %v3818_v34 = vld [vmem:[%s3655_s30 + $0x8c] ss:$0 sps:$4 sm:$0x11]   ;;  %v3827_v39 = vld [vmem:[%s3655_s30 + $0x7c] sm:$0xf] }
  0x38   : > { %v1335_v12 = vrot.slane %v3744_v24, 1  ;;  %v1309_v15 = vsel %vm794_vm0, %v1307_v0, %v1308_v3  ;;  %v1310_v16 = vrot.slane %v2959_v61, 1  ;;  %v1311_v19 = vrot.slane %v3755_v11, 1  ;;  %v3823_v36 = vld [vmem:[%s3655_s30 + $0x2c] ss:$0 sps:$4 sm:$0x11]  }
  0x39   : > { %v1646_v20 = vshll.u32 %v2982_v57, 16  ;;  %v2983_v8 = vcombine.low %v2832_v7, %v3792_v9  ;;  %v1550_v22 = vshll.u32 %v2974_v6, 16  ;;  %v2975_v24 = vcombine.low %v2816_v13, %v3799_v14  ;;  %v203_v40 = vld [vmem:[%s3655_s30 + $0x18] sm:$0xf]  ;;  %v3831_v17 = vld [vmem:[%s3655_s30 + $0x1c] sm:$0xf] }
  0x3a   : > { %1243 = vrot.lane.b32.xlu1 %v1142_v45, %s3568_s7  ;;  %v1336_v25 = vsel %vm794_vm0, %v1334_v63, %v1335_v12  ;;  %v1312_v27 = vsel %vm794_vm0, %v1310_v16, %v1311_v19  ;;  %v1644_v29 = vshrl.u32 %v2982_v57, 16  ;;  %v1651_v32 = vshll.u32 %v3805_v21, 16  ;;  %v3306_v41 = vld [vmem:[%s5049_s1] sm:$0xff]   ;;  %v2870_v42 = vld [vmem:[%s3655_s30 + $0x78] sm:$0xe]  ;;  %v3311_v56 = vld [vmem:[%s5049_s1 + $0x8] sm:$0xff]  }
  0x3b   : > { %1227 = vrot.lane.b32.xlu0 %v1046_v50, %s3568_s7  ;;  %v1658_v28 = vshll.u32 %v2983_v8, 16  ;;  %v1648_v30 = vrot.slane %v1646_v20, 1  ;;  %v1562_v2 = vshll.u32 %v2975_v24, 16  ;;  %v1548_v11 = vshrl.u32 %v2974_v6, 16  ;;  %v2862_v47 = vld [vmem:[%s3655_s30 + $0x18] sm:$0xe]  ;;  %3099 = vmatprep.subr.bf16.mxu0 %v3306_v41 }
  0x3c   : > { %v1552_v33 = vrot.slane %v1550_v22, 1  ;;  %v1555_v35 = vshll.u32 %v3812_v26, 16  ;;  %v1653_v43 = vrot.slane %v1651_v32, 1  ;;  %v1656_v44 = vshrl.u32 %v2983_v8, 16  ;;  %3137 = vmatprep.subr.bf16.mxu1 %v3306_v41  ;;  %3100 = vmatpush3.bf16.msra.mxu0 %v3306_v41  ;;  %v221_v7 = vld [vmem:[%s3655_s30 + $0x84] sm:$0xf] }
  0x3d   : > { %v1649_v5 = vor.u32 %v1648_v30, %v1644_v29  ;;  %v1660_v45 = vrot.slane %v1658_v28, 1  ;;  %v1663_v46 = vshll.u32 %v3818_v34, 16  ;;  %v1560_v48 = vshrl.u32 %v2975_v24, 16  ;;  %3140 = vmatpush3.bf16.msra.mxu1 %v3306_v41  ;;  %v3855_v61 = vld [vmem:[%s3655_s30 + $0x80] ss:$0 sps:$4 sm:$0x11]   ;;  %3101 = vmatprep.subr.bf16.mxu0 %v3311_v56 }
  0x3e   : > { %1245 = vrot.lane.b32.xlu1 %v1154_v4, %s3568_s7  ;;  %v1564_v49 = vrot.slane %v1562_v2, 1  ;;  %v1567_v50 = vshll.u32 %v3823_v36, 16  ;;  %v3843_v51 = vcombine.low %v219_v37, %v3827_v39  ;;  %v1553_v52 = vor.u32 %v1552_v33, %v1548_v11  ;;  %3138 = vmatprep.subr.bf16.mxu1 %v3311_v56  ;;  %v205_v13 = vld [vmem:[%s3655_s30 + $0x24] sm:$0xf] }
  0x3f   : > { %1229 = vrot.lane.b32.xlu0 %v1058_v62, %s3568_s7  ;;  %v1557_v53 = vrot.slane %v1555_v35, 1  ;;  %v3846_v54 = vcombine.low %v203_v40, %v3831_v17  ;;  %v3014_v55 = vcombine.low %v2870_v42, %v3774_v1  ;;  %v3006_v4 = vcombine.low %v2862_v47, %v3782_v60  ;;  %v2871_v16 = vld [vmem:[%s3655_s30 + $0x84] sm:$0xe]  ;;  %v3897_v40 = vld [vmem:[%s3655_s30 + $0x8c] ss:$0 sps:$4 sm:$0x11]  }
  0x40   : > { %v1661_v58 = vor.u32 %v1660_v45, %v1656_v44  ;;  %v1665_v59 = vrot.slane %v1663_v46, 1  ;;  %v1654_v1 = vsel %vm521_vm1, %v1649_v5, %v1653_v43  ;;  %v1565_v62 = vor.u32 %v1564_v49, %v1560_v48  ;;  %3102 = vmatpush3.bf16.msra.mxu0 %v3311_v56 }
  0x41   : > { %v1569_v0 = vrot.slane %v1567_v50, 1  ;;  %v645_v3 = vshll.u32 %v3843_v51, 16  ;;  %v1558_v60 = vsel %vm521_vm1, %v1553_v52, %v1557_v53  ;;  %v1843_v63 = vrot.slane %v3014_v55, 1  ;;  %3141 = vmatpush3.bf16.msra.mxu1 %v3311_v56  ;;  %v257_v53 = vld [vmem:[%s3655_s30 + $0x78] sm:$0xe] }
  0x42   : > { %1371 = vrot.lane.b32.xlu1 %v1333_v10, %s3569_s8  ;;  %v3867_v10 = vld [vmem:[%s3655_s30 + $0x88] sm:$0xf]  ;;  %v1844_v12 = vrot.slane %v3805_v21, 1  ;;  %v1666_v19 = vsel %vm521_vm1, %v1661_v58, %v1665_v59  ;;  %v1819_v20 = vrot.slane %v3006_v4, 1  ;;  %v650_v22 = vshll.u32 %v3855_v61, 16 }
  0x43   : > { %1355 = vrot.lane.b32.xlu0 %v1309_v15, %s3569_s8  ;;  %v3872_v15 = vld [vmem:[%s3655_s30 + $0x28] sm:$0xf]  ;;  %v1570_v21 = vsel %vm521_vm1, %v1565_v62, %v1569_v0  ;;  %v3884_v28 = vcombine.low %v221_v7, %v3867_v10  ;;  %v547_v29 = vshrl.u32 %v3846_v54, 16  ;;  %v3015_v2 = vcombine.low %v2871_v16, %v3792_v9  ;;  %v3902_v9 = vld [vmem:[%s3655_s30 + $0x2c] ss:$0 sps:$4 sm:$0x11]  }
  0x44   : > { %v3889_v32 = vcombine.low %v205_v13, %v3872_v15  ;;  %v652_v33 = vrot.slane %v650_v22, 1  ;;  %v1845_v35 = vsel %vm794_vm0, %v1843_v63, %v1844_v12  ;;  %v1847_v45 = vrot.slane %v3818_v34, 1  ;;  %v250_v63 = vld [vmem:[%s3655_s30 + $0x24] sm:$0xe] }
  0x45   : > { %v657_v5 = vshll.u32 %v3884_v28, 16  ;;  %v1846_v44 = vrot.slane %v3015_v2, 1  ;;  %v1823_v47 = vrot.slane %v3823_v36, 1  ;;  %v655_v49 = vshrl.u32 %v3884_v28, 16  ;;  %v249_v36 = vld [vmem:[%s3655_s30 + $0x18] sm:$0xe] }
  0x46   : > { %1373 = vrot.lane.b32.xlu1 %v1336_v25, %s3569_s8  ;;  %v643_v25 = vshrl.u32 %v3843_v51, 16  ;;  %v662_v52 = vshll.u32 %v3897_v40, 16  ;;  %v559_v56 = vshrl.u32 %v3889_v32, 16  ;;  %v566_v4 = vshll.u32 %v3902_v9, 16 }
  0x47   : > { %1357 = vrot.lane.b32.xlu0 %v1312_v27, %s3569_s8  ;;  %v647_v27 = vrot.slane %v645_v3, 1  ;;  %v659_v50 = vrot.slane %v657_v5, 1  ;;  %v1848_v58 = vsel %vm794_vm0, %v1846_v44, %v1847_v45  ;;  %v2920_v62 = vcombine.low %v257_v53, %v3827_v39  ;;  %v258_v3 = vld [vmem:[%s3655_s30 + $0x84] sm:$0xe] }
  0x48   : > { %v2912_v0 = vcombine.low %v249_v36, %v3831_v17  ;;  %v568_v7 = vrot.slane %v566_v4, 1  ;;  %v826_v12 = vrot.slane %v3855_v61, 1  ;;  %v2921_v16 = vcombine.low %v258_v3, %v3867_v10 }
  0x49   : > { %v648_v37 = vor.u32 %v647_v27, %v643_v25  ;;  %v660_v59 = vor.u32 %v659_v50, %v655_v49  ;;  %v825_v17 = vrot.slane %v2920_v62, 1  ;;  %v2913_v61 = vcombine.low %v250_v63, %v3872_v15  ;;  %v3949_v15 = vld [vmem:[%s3655_s30 + $0x94] sm:$0xf]  ;;  %v2800_v62 = vld [vmem:[%s3655_s30 + $0x24] sm:$0xe] }
  0x4a   : > { %1483 = vrot.lane.b32.xlu1 %v2982_v57, %s3570_s11  ;;  %v3861_v57 = vld [vmem:[%s3655_s30 + $0x20] ss:$0 sps:$4 sm:$0x11]   ;;  %v828_v10 = vrot.slane %v2921_v16, 1 }
  0x4b   : > { %1467 = vrot.lane.b32.xlu0 %v2974_v6, %s3570_s11  ;;  %v549_v6 = vshll.u32 %v3846_v54, 16  ;;  %v653_v48 = vsel %vm521_vm1, %v648_v37, %v652_v33  ;;  %v802_v13 = vrot.slane %v3861_v57, 1  ;;  %v827_v27 = vsel %vm794_vm0, %v825_v17, %v826_v12  ;;  %v2756_v33 = vld [vmem:[%s3655_s30 + $0x30] sm:$0xf] }
  0x4c   : > { %v804_v2 = vrot.slane %v2913_v61, 1  ;;  %v2809_v12 = vld [vmem:[%s3655_s30 + $0x90] sm:$0xe] }
  0x4d   : > { %v551_v30 = vrot.slane %v549_v6, 1  ;;  %v2969_v61 = vcombine.low %v2809_v12, %v3949_v15 }
  0x4e   : > { %1485 = vrot.lane.b32.xlu1 %v2983_v8, %s3570_s11  ;;  %v1820_v8 = vrot.slane %v3812_v26, 1  ;;  %v554_v26 = vshll.u32 %v3861_v57, 16  ;;  %v2754_v57 = vld [vmem:[%s3655_s30 + $0x24] sm:$0xf] }
  0x4f   : > { %1469 = vrot.lane.b32.xlu0 %v2975_v24, %s3570_s11  ;;  %v2863_v24 = vld [vmem:[%s3655_s30 + $0x24] sm:$0xe]  ;;  %v552_v42 = vor.u32 %v551_v30, %v547_v29  ;;  %v2772_v30 = vld [vmem:[%s3655_s30 + $0x90] sm:$0xf] }
  0x50   : > { %v3007_v11 = vcombine.low %v2863_v24, %v3799_v14  ;;  %v1821_v41 = vsel %vm794_vm0, %v1819_v20, %v1820_v8  ;;  %v556_v43 = vrot.slane %v554_v26, 1  ;;  %v561_v14 = vshll.u32 %v3889_v32, 16  ;;  %v2770_v20 = vld [vmem:[%s3655_s30 + $0x84] sm:$0xf]  ;;  %v3933_v8 = vld [vmem:[%s3655_s30 + $0x88] sm:$0xf] }
  0x51   : > { %v3939_v24 = vld [vmem:[%s3655_s30 + $0x28] sm:$0xf]  ;;  %v2936_v25 = vcombine.low %v2770_v20, %v3933_v8 }
  0x52   : > { %1755 = vrot.lane.b32.xlu1 %v1654_v1, %s3571_s21  ;;  %v1822_v46 = vrot.slane %v3007_v11, 1  ;;  %v557_v55 = vsel %vm521_vm1, %v552_v42, %v556_v43  ;;  %v563_v34 = vrot.slane %v561_v14, 1  ;;  %v664_v1 = vrot.slane %v662_v52, 1  ;;  %v3266_v43 = vld [vmem:[%s3655_s30 + $0x8c] ss:$0 sps:$4 sm:$0x11]  }
  0x53   : > { %1739 = vrot.lane.b32.xlu0 %v1558_v60, %s3571_s21  ;;  %v2928_v29 = vcombine.low %v2754_v57, %v3939_v24  ;;  %v805_v11 = vrot.slane %v3902_v9, 1  ;;  %v1158_v37 = vshll.u32 %v2936_v25, 16  ;;  %v3965_v14 = vld [vmem:[%s3655_s30 + $0x2c] ss:$0 sps:$4 sm:$0x11]   ;;  %v1156_v45 = vshrl.u32 %v2936_v25, 16 }
  0x54   : > { %v1824_v60 = vsel %vm794_vm0, %v1822_v46, %v1823_v47  ;;  %v564_v6 = vor.u32 %v563_v34, %v559_v56  ;;  %v665_v39 = vsel %vm521_vm1, %v660_v59, %v664_v1  ;;  %v1163_v49 = vshll.u32 %v3266_v43, 16  ;;  %v3970_v52 = vld [vmem:[%s3655_s30 + $0x98] ss:$0 sps:$4 sm:$0x11]   ;;  %v2808_v56 = vld [vmem:[%s3655_s30 + $0x84] sm:$0xe] }
  0x55   : > { %v806_v9 = vsel %vm794_vm0, %v804_v2, %v805_v11  ;;  %v1160_v46 = vrot.slane %v1158_v37, 1  ;;  %v1060_v47 = vshrl.u32 %v2928_v29, 16  ;;  %v1067_v53 = vshll.u32 %v3965_v14, 16  ;;  %v2834_v57 = vld [vmem:[%s3655_s30 + $0x90] sm:$0xf] }
  0x56   : > { %1757 = vrot.lane.b32.xlu1 %v1666_v19, %s3571_s21  ;;  %v801_v19 = vrot.slane %v2912_v0, 1  ;;  %v569_v22 = vsel %vm521_vm1, %v564_v6, %v568_v7  ;;  %v1165_v36 = vrot.slane %v1163_v49, 1  ;;  %v1175_v1 = vshll.u32 %v3970_v52, 16  ;;  %v2836_v11 = vld [vmem:[%s3655_s30 + $0x9c] sm:$0xf] }
  0x57   : > { %1741 = vrot.lane.b32.xlu0 %v1570_v21, %s3571_s21  ;;  %v829_v21 = vrot.slane %v3897_v40, 1  ;;  %v2937_v40 = vcombine.low %v2772_v30, %v3949_v15  ;;  %v1161_v34 = vor.u32 %v1160_v46, %v1156_v45  ;;  %v1069_v0 = vrot.slane %v1067_v53, 1  ;;  %v4003_v15 = vld [vmem:[%s3655_s30 + $0x34] sm:$0xf]  ;;  %v4020_v45 = vld [vmem:[%s3655_s30 + $0x40] sm:$0xf] }
  0x58   : > { %v803_v26 = vsel %vm794_vm0, %v801_v19, %v802_v13  ;;  %v2968_v7 = vcombine.low %v2808_v56, %v3933_v8  ;;  %v2960_v63 = vcombine.low %v2800_v62, %v3939_v24  ;;  %v3994_v24 = vld [vmem:[%s3655_s30 + $0x94] sm:$0xf]  ;;  %v4023_v46 = vld [vmem:[%s3655_s30 + $0x98] ss:$0 sps:$4 sm:$0x11]  }
  0x59   : > { %v830_v5 = vsel %vm794_vm0, %v828_v10, %v829_v21  ;;  %v1170_v44 = vshll.u32 %v2937_v40, 16  ;;  %v1168_v4 = vshrl.u32 %v2937_v40, 16  ;;  %v1166_v13 = vsel %vm521_vm1, %v1161_v34, %v1165_v36  ;;  %v4029_v49 = vld [vmem:[%s3655_s30 + $0x38] ss:$0 sps:$4 sm:$0x11]  }
  0x5a   : > { %1883 = vrot.lane.b32.xlu1 %v1845_v35, %s3572_s23  ;;  %v3955_v35 = vld [vmem:[%s3655_s30 + $0x34] sm:$0xf]  ;;  %v1337_v8 = vrot.slane %v2968_v7, 1  ;;  %v1338_v21 = vrot.slane %v3266_v43, 1  ;;  %v2984_v2 = vcombine.low %v2834_v57, %v3994_v24  ;;  %v1579_v62 = vshll.u32 %v4029_v49, 16 }
  0x5b   : > { %1867 = vrot.lane.b32.xlu0 %v1821_v41, %s3572_s23  ;;  %v1062_v41 = vshll.u32 %v2928_v29, 16  ;;  %v2929_v42 = vcombine.low %v2756_v33, %v3955_v35  ;;  %v1172_v59 = vrot.slane %v1170_v44, 1  ;;  %v4008_v33 = vld [vmem:[%s3655_s30 + $0xa0] sm:$0xf] }
  0x5c   : > { %v1339_v37 = vsel %vm794_vm0, %v1337_v8, %v1338_v21  ;;  %v1670_v44 = vshll.u32 %v2984_v2, 16  ;;  %v1668_v56 = vshrl.u32 %v2984_v2, 16  ;;  %v1581_v8 = vrot.slane %v1579_v62, 1 }
  0x5d   : > { %v1064_v50 = vrot.slane %v1062_v41, 1  ;;  %v1072_v3 = vshrl.u32 %v2929_v42, 16  ;;  %v1173_v16 = vor.u32 %v1172_v59, %v1168_v4  ;;  %v1675_v4 = vshll.u32 %v4023_v46, 16  ;;  %v4040_v59 = vld [vmem:[%s3655_s30 + $0x44] ss:$0 sps:$4 sm:$0x11]  }
  0x5e   : > { %734 = vrot.lane.b32.xlu1 %v653_v48, %s3567_s6  ;;  %v1074_v48 = vshll.u32 %v2929_v42, 16  ;;  %v1672_v34 = vrot.slane %v1670_v44, 1  ;;  %v2873_v44 = vld [vmem:[%s3655_s30 + $0x9c] sm:$0xe] }
  0x5f   : > { %718 = vrot.lane.b32.xlu0 %v557_v55, %s3567_s6  ;;  %v3974_v55 = vld [vmem:[%s3655_s30 + $0x38] ss:$0 sps:$4 sm:$0x11]  }
  0x60   : > { %v1079_v6 = vshll.u32 %v3974_v55, 16  ;;  %v1317_v43 = vrot.slane %v3974_v55, 1  ;;  %v2872_v55 = vld [vmem:[%s3655_s30 + $0x90] sm:$0xe] }
  0x61   : > { %v3016_v7 = vcombine.low %v2872_v55, %v3994_v24  ;;  %v1826_v55 = vrot.slane %v4029_v49, 1 }
  0x62   : > { %1885 = vrot.lane.b32.xlu1 %v1848_v58, %s3572_s23  ;;  %v1065_v58 = vor.u32 %v1064_v50, %v1060_v47  ;;  %v1081_v20 = vrot.slane %v1079_v6, 1  ;;  %v3316_v6 = vld [vmem:[%s5049_s1 + $0x10] ss:$0 sps:$4 sm:$0x33]  }
  0x63   : > { %1869 = vrot.lane.b32.xlu0 %v1824_v60, %s3572_s23  ;;  %v1076_v60 = vrot.slane %v1074_v48, 1  ;;  %3143 = vmatprep.subr.msk.bf16.mxu0 %vm2223_vm2, %v3316_v6 }
  0x64   : > { %v1070_v17 = vsel %vm521_vm1, %v1065_v58, %v1069_v0  ;;  %v4037_v58 = vld [vmem:[%s3655_s30 + $0xa4] ss:$0 sps:$4 sm:$0x11]   ;;  %v223_v0 = vld [vmem:[%s3655_s30 + $0x90] sm:$0xf]  ;;  %3144 = vmatprep.subr.msk.bf16.mxu1 %vm2223_vm2, %v3316_v6 }
  0x65   : > { %v1077_v19 = vor.u32 %v1076_v60, %v1072_v3  ;;  %v4046_v60 = vld [vmem:[%s3655_s30 + $0x94] sm:$0xf] }
  0x66   : > { %736 = vrot.lane.b32.xlu1 %v665_v39, %s3567_s6  ;;  %v1177_v39 = vrot.slane %v1175_v1, 1  ;;  %v4061_v57 = vcombine.low %v223_v0, %v4046_v60 }
  0x67   : > { %720 = vrot.lane.b32.xlu0 %v569_v22, %s3567_s6  ;;  %v2801_v22 = vld [vmem:[%s3655_s30 + $0x30] sm:$0xe]  ;;  %v1082_v30 = vsel %vm521_vm1, %v1077_v19, %v1081_v20  ;;  %v1687_v19 = vshll.u32 %v4037_v58, 16 }
  0x68   : > { %v1178_v10 = vsel %vm521_vm1, %v1173_v16, %v1177_v39  ;;  %v4054_v16 = vld [vmem:[%s3655_s30 + $0x34] sm:$0xf]  ;;  %v1677_v39 = vrot.slane %v1675_v4, 1  ;;  %v2864_v20 = vld [vmem:[%s3655_s30 + $0x30] sm:$0xe]  ;;  %5058 = vst [vmem:[#allocation5_spill] sm:$0xff] %v4061_v57 }
  0x6a   : > { %863 = vrot.lane.b32.xlu1 %v827_v27, %s3566_s5  ;;  %v1314_v27 = vrot.slane %v3965_v14, 1  ;;  %v2820_v14 = vld [vmem:[%s3655_s30 + $0x3c] sm:$0xf] }
  0x6b   : > { %847 = vrot.lane.b32.xlu0 %v803_v26, %s3566_s5  ;;  %v2818_v26 = vld [vmem:[%s3655_s30 + $0x30] sm:$0xf]  ;;  %v2977_v53 = vcombine.low %v2820_v14, %v4020_v45  ;;  %v4085_v14 = vld [vmem:[%s3655_s30 + $0xa0] sm:$0xf] }
  0x6d   : > { %v1586_v3 = vshll.u32 %v2977_v53, 16 }
  0x6e   : > { %865 = vrot.lane.b32.xlu1 %v830_v5, %s3566_s5  ;;  %v2976_v5 = vcombine.low %v2818_v26, %v4003_v15  ;;  %v4070_v26 = vld [vmem:[%s3655_s30 + $0x98] ss:$0 sps:$4 sm:$0x11]  }
  0x6f   : > { %849 = vrot.lane.b32.xlu0 %v806_v9, %s3566_s5  ;;  %v2985_v9 = vcombine.low %v2836_v11, %v4008_v33  ;;  %v1588_v24 = vrot.slane %v1586_v3, 1  ;;  %v1849_v11 = vrot.slane %v3016_v7, 1  ;;  %v674_v4 = vshll.u32 %v4070_v26, 16 }
  0x70   : > { %v1574_v48 = vshll.u32 %v2976_v5, 16  ;;  %v1572_v36 = vshrl.u32 %v2976_v5, 16  ;;  %v3017_v7 = vcombine.low %v2873_v44, %v4008_v33 }
  0x71   : > { %v1680_v12 = vshrl.u32 %v2985_v9, 16 }
  0x72   : > { %975 = vrot.lane.b32.xlu1 %v2936_v25, %s3565_s4  ;;  %v1313_v25 = vrot.slane %v2960_v63, 1  ;;  %v1576_v1 = vrot.slane %v1574_v48, 1  ;;  %v1673_v63 = vor.u32 %v1672_v34, %v1668_v56  ;;  %v4090_v48 = vld [vmem:[%s3655_s30 + $0x40] sm:$0xf]  ;;  %v667_v56 = vshrl.u32 %v4061_v57, 16 }
  0x73   : > { %959 = vrot.lane.b32.xlu0 %v2928_v29, %s3565_s4  ;;  %v2961_v29 = vcombine.low %v2801_v22, %v3955_v35  ;;  %v1340_v35 = vrot.slane %v2969_v61, 1  ;;  %v1584_v61 = vshrl.u32 %v2977_v53, 16 }
  0x74   : > { %v1315_v41 = vsel %vm794_vm0, %v1313_v25, %v1314_v27  ;;  %v1577_v22 = vor.u32 %v1576_v1, %v1572_v36  ;;  %v2225_v25 = vsel %vm2223_vm2, %v3316_v6, 0  ;;  %v3008_v27 = vcombine.low %v2864_v20, %v4003_v15 }
  0x75   : > { %3104 = vmatpush3.bf16.msra.mxu0 %v2225_v25  ;;  %3142 = vmatpush3.bf16.msra.mxu1 %v2225_v25  ;;  %v669_v15 = vshll.u32 %v4061_v57, 16  ;;  %v1853_v25 = vrot.slane %v4037_v58, 1 }
  0x76   : > { %977 = vrot.lane.b32.xlu1 %v2937_v40, %s3565_s4  ;;  %v1341_v40 = vrot.slane %v3970_v52, 1  ;;  %v1682_v52 = vshll.u32 %v2985_v9, 16 }
  0x77   : > { %961 = vrot.lane.b32.xlu0 %v2929_v42, %s3565_s4  ;;  %v1316_v42 = vrot.slane %v2961_v29, 1  ;;  %v671_v34 = vrot.slane %v669_v15, 1  ;;  %v259_v15 = vld [vmem:[%s3655_s30 + $0x90] sm:$0xe] }
  0x78   : > { %v1342_v47 = vsel %vm794_vm0, %v1340_v35, %v1341_v40  ;;  %v4077_v35 = vld [vmem:[%s3655_s30 + $0x38] ss:$0 sps:$4 sm:$0x11]   ;;  %v1582_v40 = vsel %vm521_vm1, %v1577_v22, %v1581_v8 }
  0x79   : > { %v1318_v50 = vsel %vm794_vm0, %v1316_v42, %v1317_v43  ;;  %v578_v36 = vshll.u32 %v4077_v35, 16 }
  0x7a   : > { %1247 = vrot.lane.b32.xlu1 %v1166_v13, %s3568_s7  ;;  %v207_v13 = vld [vmem:[%s3655_s30 + $0x30] sm:$0xf] }
  0x7b   : > { %1231 = vrot.lane.b32.xlu0 %v1070_v17, %s3568_s7  ;;  %v1684_v17 = vrot.slane %v1682_v52, 1  ;;  %v4065_v21 = vcombine.low %v207_v13, %v4054_v16  ;;  %v672_v13 = vor.u32 %v671_v34, %v667_v56 }
  0x7d   : > { %5059 = vst [vmem:[#allocation6_spill] sm:$0xff] %v4065_v21  ;;  %v1685_v29 = vor.u32 %v1684_v17, %v1680_v12  ;;  %v573_v43 = vshll.u32 %v4065_v21, 16  ;;  %v571_v0 = vshrl.u32 %v4065_v21, 16  ;;  %v580_v17 = vrot.slane %v578_v36, 1 }
  0x7e   : > { %1249 = vrot.lane.b32.xlu1 %v1178_v10, %s3568_s7  ;;  %v1591_v10 = vshll.u32 %v4040_v59, 16 }
  0x7f   : > { %1233 = vrot.lane.b32.xlu0 %v1082_v30, %s3568_s7  ;;  %v1689_v30 = vrot.slane %v1687_v19, 1  ;;  %v575_v3 = vrot.slane %v573_v43, 1  ;;  %v4118_v19 = vld [vmem:[%s3655_s30 + $0xa4] ss:$0 sps:$4 sm:$0x11]  }
  0x80   : > { %v1593_v42 = vrot.slane %v1591_v10, 1  ;;  %v1852_v10 = vrot.slane %v3017_v7, 1  ;;  %v251_v43 = vld [vmem:[%s3655_s30 + $0x30] sm:$0xe] }
  0x81   : > { %v1690_v52 = vsel %vm521_vm1, %v1685_v29, %v1689_v30  ;;  %v576_v8 = vor.u32 %v575_v3, %v571_v0  ;;  %v1829_v29 = vrot.slane %v4040_v59, 1  ;;  %v2914_v34 = vcombine.low %v251_v43, %v4054_v16  ;;  %v2774_v3 = vld [vmem:[%s3655_s30 + $0x9c] sm:$0xf] }
  0x82   : > { %1375 = vrot.lane.b32.xlu1 %v1339_v37, %s3569_s8  ;;  %v1850_v37 = vrot.slane %v4023_v46, 1  ;;  %v2865_v46 = vld [vmem:[%s3655_s30 + $0x3c] sm:$0xe]  ;;  %v1854_v44 = vsel %vm794_vm0, %v1852_v10, %v1853_v25  ;;  %v832_v0 = vrot.slane %v4070_v26, 1  ;;  %v2776_v25 = vld [vmem:[%s3655_s30 + $0xa8] sm:$0xf] }
  0x83   : > { %1359 = vrot.lane.b32.xlu0 %v1315_v41, %s3569_s8  ;;  %v1589_v41 = vor.u32 %v1588_v24, %v1584_v61 }
  0x84   : > { %v1851_v12 = vsel %vm794_vm0, %v1849_v11, %v1850_v37  ;;  %v686_v37 = vshll.u32 %v4118_v19, 16 }
  0x85   : > { %v1594_v62 = vsel %vm521_vm1, %v1589_v41, %v1593_v42 }
  0x86   : > { %1377 = vrot.lane.b32.xlu1 %v1342_v47, %s3569_s8  ;;  %v209_v47 = vld [vmem:[%s3655_s30 + $0x3c] sm:$0xf] }
  0x87   : > { %1361 = vrot.lane.b32.xlu0 %v1318_v50, %s3569_s8  ;;  %v4108_v49 = vcombine.low %v209_v47, %v4090_v48 }
  0x89   : > { %5061 = vst [vmem:[#allocation8_spill] sm:$0xff] %v4108_v49  ;;  %v585_v61 = vshll.u32 %v4108_v49, 16  ;;  %v583_v41 = vshrl.u32 %v4108_v49, 16 }
  0x8a   : > { %1487 = vrot.lane.b32.xlu1 %v2984_v2, %s3570_s11  ;;  %v1678_v2 = vsel %vm521_vm1, %v1673_v63, %v1677_v39  ;;  %v3009_v63 = vcombine.low %v2865_v46, %v4020_v45  ;;  %v676_v39 = vrot.slane %v674_v4, 1  ;;  %v4125_v45 = vld [vmem:[%s3655_s30 + $0x44] ss:$0 sps:$4 sm:$0x11]   ;;  %v688_v46 = vrot.slane %v686_v37, 1 }
  0x8b   : > { %1471 = vrot.lane.b32.xlu0 %v2976_v5, %s3570_s11  ;;  %v587_v42 = vrot.slane %v585_v61, 1  ;;  %v590_v58 = vshll.u32 %v4125_v45, 16  ;;  %v260_v4 = vld [vmem:[%s3655_s30 + $0x9c] sm:$0xe] }
  0x8c   : > { %v677_v30 = vsel %vm521_vm1, %v672_v13, %v676_v39  ;;  %v807_v39 = vrot.slane %v2914_v34, 1 }
  0x8d   : > { %v592_v56 = vrot.slane %v590_v58, 1 }
  0x8e   : > { %1489 = vrot.lane.b32.xlu1 %v2985_v9, %s3570_s11  ;;  %v225_v9 = vld [vmem:[%s3655_s30 + $0x9c] sm:$0xf] }
  0x8f   : > { %1473 = vrot.lane.b32.xlu0 %v2977_v53, %s3570_s11  ;;  %v1825_v53 = vrot.slane %v3008_v27, 1  ;;  %v4103_v1 = vcombine.low %v225_v9, %v4085_v14  ;;  %v1828_v27 = vrot.slane %v3009_v63, 1  ;;  %v2922_v9 = vcombine.low %v259_v15, %v4046_v60  ;;  %v252_v60 = vld [vmem:[%s3655_s30 + $0x3c] sm:$0xe]  ;;  %v2760_v15 = vld [vmem:[%s3655_s30 + $0x48] sm:$0xf] }
  0x90   : > { %v2923_v63 = vcombine.low %v260_v4, %v4085_v14  ;;  %v2915_v26 = vcombine.low %v252_v60, %v4090_v48 }
  0x91   : > { %5060 = vst [vmem:[#allocation7_spill] sm:$0xff] %v4103_v1  ;;  %v681_v20 = vshll.u32 %v4103_v1, 16  ;;  %v1827_v33 = vsel %vm794_vm0, %v1825_v53, %v1826_v55  ;;  %v1830_v53 = vsel %vm794_vm0, %v1828_v27, %v1829_v29  ;;  %v588_v55 = vor.u32 %v587_v42, %v583_v41  ;;  %v4184_v27 = vld [vmem:[%s3655_s30 + $0xac] sm:$0xf] }
  0x92   : > { %v4080_v5 = vpop.permute.xlu1 %971  ;;  %1759 = vrot.lane.b32.xlu1 %v1678_v2, %s3571_s21  ;;  %v679_v2 = vshrl.u32 %v4103_v1, 16  ;;  %v834_v10 = vrot.slane %v2923_v63, 1  ;;  %v2939_v41 = vcombine.low %v2776_v25, %v4184_v27  ;;  %v4199_v42 = vld [vmem:[%s3655_s30 + $0xa4] ss:$0 sps:$4 sm:$0x11]  }
  0x93   : > { %v4094_v50 = vpop.permute.xlu0 %955  ;;  %1743 = vrot.lane.b32.xlu0 %v1582_v40, %s3571_s21  ;;  %v683_v11 = vrot.slane %v681_v20, 1  ;;  %v581_v40 = vsel %vm521_vm1, %v576_v8, %v580_v17  ;;  %v593_v13 = vsel %vm521_vm1, %v588_v55, %v592_v56  ;;  %v808_v17 = vrot.slane %v4077_v35, 1  ;;  %v2758_v20 = vld [vmem:[%s3655_s30 + $0x3c] sm:$0xf] }
  0x94   : > { %v835_v35 = vrot.slane %v4118_v19, 1  ;;  %v1194_v55 = vshll.u32 %v2939_v41, 16  ;;  %v1187_v34 = vshll.u32 %v4199_v42, 16  ;;  %v4222_v63 = vld [vmem:[%s3655_s30 + $0x50] ss:$0 sps:$4 sm:$0x11]  }
  0x95   : > { %v684_v47 = vor.u32 %v683_v11, %v679_v2  ;;  %v810_v2 = vrot.slane %v2915_v26, 1  ;;  %v811_v11 = vrot.slane %v4125_v45, 1  ;;  %v2810_v26 = vld [vmem:[%s3655_s30 + $0x9c] sm:$0xe] }
  0x96   : > { %v4110_v6 = vpop.permute.xlu1 %859  ;;  %1761 = vrot.lane.b32.xlu1 %v1690_v52, %s3571_s21  ;;  %v836_v58 = vsel %vm794_vm0, %v834_v10, %v835_v35  ;;  %v1196_v10 = vrot.slane %v1194_v55, 1  ;;  %v2802_v25 = vld [vmem:[%s3655_s30 + $0x3c] sm:$0xe] }
  0x97   : > { %1745 = vrot.lane.b32.xlu0 %v1594_v62, %s3571_s21  ;;  %v831_v62 = vrot.slane %v2922_v9, 1  ;;  %v689_v7 = vsel %vm521_vm1, %v684_v47, %v688_v46  ;;  %v4204_v9 = vld [vmem:[%s3655_s30 + $0x44] ss:$0 sps:$4 sm:$0x11]  }
  0x98   : > { %v4121_v22 = vpop.permute.xlu0 %843 }
  0x99   : > { %v833_v61 = vsel %vm794_vm0, %v831_v62, %v832_v0  ;;  %v4216_v62 = vld [vmem:[%s3655_s30 + $0xb0] ss:$0 sps:$4 sm:$0x11]  }
  0x9a   : > { %1887 = vrot.lane.b32.xlu1 %v1851_v12, %s3572_s23  ;;  %v4163_v12 = vld [vmem:[%s3655_s30 + $0xa0] sm:$0xf]  ;;  %v1199_v35 = vshll.u32 %v4216_v62, 16 }
  0x9b   : > { %v4129_v24 = vpop.permute.xlu1 %861  ;;  %1871 = vrot.lane.b32.xlu0 %v1827_v33, %s3572_s23  ;;  %v4172_v33 = vld [vmem:[%s3655_s30 + $0x40] sm:$0xf]  ;;  %v2938_v14 = vcombine.low %v2774_v3, %v4163_v12 }
  0x9c   : > { %v2930_v48 = vcombine.low %v2758_v20, %v4172_v33  ;;  %v1189_v20 = vrot.slane %v1187_v34, 1  ;;  %v1201_v34 = vrot.slane %v1199_v35, 1 }
  0x9d   : > { %v4141_v59 = vpop.permute.xlu0 %845  ;;  %v1182_v19 = vshll.u32 %v2938_v14, 16 }
  0x9e   : > { %738 = vrot.lane.b32.xlu1 %v677_v30, %s3567_s6  ;;  %v809_v30 = vsel %vm794_vm0, %v807_v39, %v808_v17  ;;  %v1086_v43 = vshll.u32 %v2930_v48, 16  ;;  %v1084_v4 = vshrl.u32 %v2930_v48, 16  ;;  %v1192_v17 = vshrl.u32 %v2939_v41, 16 }
  0x9f   : > { %722 = vrot.lane.b32.xlu0 %v581_v40, %s3567_s6  ;;  %v4194_v40 = vld [vmem:[%s3655_s30 + $0x4c] sm:$0xf]  ;;  %v1184_v56 = vrot.slane %v1182_v19, 1 }
  0xa0   : > { %v4148_v52 = vpop.permute.xlu1 %716  ;;  %v2931_v47 = vcombine.low %v2760_v15, %v4194_v40  ;;  %v1088_v60 = vrot.slane %v1086_v43, 1  ;;  %v1103_v15 = vshll.u32 %v4222_v63, 16  ;;  %v4238_v43 = vld [vmem:[%s3655_s30 + $0xac] sm:$0xf] }
  0xa1   : > { %v4153_v36 = vpop.permute.xlu0 %714 }
  0xa2   : > { %1889 = vrot.lane.b32.xlu1 %v1854_v44, %s3572_s23  ;;  %v812_v44 = vsel %vm794_vm0, %v810_v2, %v811_v11  ;;  %v1098_v3 = vshll.u32 %v2931_v47, 16  ;;  %v1096_v11 = vshrl.u32 %v2931_v47, 16 }
  0xa3   : > { %1873 = vrot.lane.b32.xlu0 %v1830_v53, %s3572_s23  ;;  %v1180_v53 = vshrl.u32 %v2938_v14, 16 }
  0xa4   : > { %v4165_v16 = vpop.permute.xlu1 %732 }
  0xa5   : > { %v4174_v8 = vpop.permute.xlu0 %730  ;;  %v1185_v39 = vor.u32 %v1184_v56, %v1180_v53  ;;  %v2811_v53 = vld [vmem:[%s3655_s30 + $0xa8] sm:$0xe]  ;;  %v1197_v56 = vor.u32 %v1196_v10, %v1192_v17  ;;  %v4264_v10 = vld [vmem:[%s3655_s30 + $0xb8] sm:$0xf] }
  0xa6   : > { %740 = vrot.lane.b32.xlu1 %v689_v7, %s3567_s6  ;;  %v1091_v7 = vshll.u32 %v4204_v9, 16  ;;  %v2971_v17 = vcombine.low %v2811_v53, %v4184_v27  ;;  %v4272_v27 = vld [vmem:[%s3655_s30 + $0x58] sm:$0xf] }
  0xa7   : > { %724 = vrot.lane.b32.xlu0 %v593_v13, %s3567_s6  ;;  %v1190_v55 = vsel %vm521_vm1, %v1185_v39, %v1189_v20  ;;  %v4257_v39 = vld [vmem:[%s3655_s30 + $0x4c] sm:$0xf]  ;;  %v1344_v20 = vrot.slane %v4199_v42, 1 }
  0xa8   : > { %v4186_v29 = vpop.permute.xlu1 %973  ;;  %v1093_v2 = vrot.slane %v1091_v7, 1  ;;  %v1105_v7 = vrot.slane %v1103_v15, 1 }
  0xa9   : > { %v4190_v37 = vpop.permute.xlu0 %957 }
  0xaa   : > { %867 = vrot.lane.b32.xlu1 %v833_v61, %s3566_s5  ;;  %v1089_v61 = vor.u32 %v1088_v60, %v1084_v4  ;;  %v2803_v4 = vld [vmem:[%s3655_s30 + $0x48] sm:$0xe] }
  0xab   : > { %851 = vrot.lane.b32.xlu0 %v809_v30, %s3566_s5  ;;  %v2963_v35 = vcombine.low %v2803_v4, %v4194_v40  ;;  %v4282_v40 = vld [vmem:[%s3655_s30 + $0xb0] ss:$0 sps:$4 sm:$0x11]   ;;  %v1347_v4 = vrot.slane %v4216_v62, 1 }
  0xac   : > { %v4206_v45 = vpop.permute.xlu1 %1243 }
  0xad   : > { %v4210_v46 = vpop.permute.xlu0 %1227 }
  0xae   : > { %869 = vrot.lane.b32.xlu1 %v836_v58, %s3566_s5  ;;  %v2838_v58 = vld [vmem:[%s3655_s30 + $0xa8] sm:$0xf] }
  0xaf   : > { %853 = vrot.lane.b32.xlu0 %v812_v44, %s3566_s5  ;;  %v2962_v44 = vcombine.low %v2802_v25, %v4172_v33  ;;  %v1202_v25 = vsel %vm521_vm1, %v1197_v56, %v1201_v34 }
  0xb0   : > { %v4218_v0 = vpop.permute.xlu1 %1245 }
  0xb1   : > { %v4224_v13 = vpop.permute.xlu0 %1229 }
  0xb2   : > { %979 = vrot.lane.b32.xlu1 %v2938_v14, %s3565_s4  ;;  %v1100_v14 = vrot.slane %v1098_v3, 1  ;;  %v1094_v3 = vsel %vm521_vm1, %v1089_v61, %v1093_v2  ;;  %v2840_v61 = vld [vmem:[%s3655_s30 + $0xb4] sm:$0xf]  ;;  %v1319_v2 = vrot.slane %v2962_v44, 1 }
  0xb3   : > { %963 = vrot.lane.b32.xlu0 %v2930_v48, %s3565_s4  ;;  %v2970_v48 = vcombine.low %v2810_v26, %v4163_v12  ;;  %v4287_v44 = vcombine.low %v2840_v61, %v4264_v10 }
  0xb4   : > { %v4231_v30 = vpop.permute.xlu1 %1371  ;;  %v1101_v12 = vor.u32 %v1100_v14, %v1096_v11  ;;  %v1320_v11 = vrot.slane %v4204_v9, 1  ;;  %v2824_v14 = vld [vmem:[%s3655_s30 + $0x54] sm:$0xf] }
  0xb5   : > { %v4234_v19 = vpop.permute.xlu0 %1355  ;;  %v1343_v26 = vrot.slane %v2970_v48, 1  ;;  %v4292_v56 = vcombine.low %v2824_v14, %v4272_v27  ;;  %v1706_v62 = vshll.u32 %v4287_v44, 16 }
  0xb6   : > { %981 = vrot.lane.b32.xlu1 %v2939_v41, %s3565_s4  ;;  %v4251_v41 = vcombine.low %v2838_v58, %v4238_v43  ;;  %v1106_v58 = vsel %vm521_vm1, %v1101_v12, %v1105_v7  ;;  %v1321_v34 = vsel %vm794_vm0, %v1319_v2, %v1320_v11  ;;  %v1323_v12 = vrot.slane %v4222_v63, 1  ;;  %v4307_v63 = vld [vmem:[%s3655_s30 + $0x50] ss:$0 sps:$4 sm:$0x11]  }
  0xb7   : > { %965 = vrot.lane.b32.xlu0 %v2931_v47, %s3565_s4  ;;  %v2822_v47 = vld [vmem:[%s3655_s30 + $0x48] sm:$0xf]  ;;  %v1345_v9 = vsel %vm794_vm0, %v1343_v26, %v1344_v20  ;;  %v1699_v20 = vshll.u32 %v4282_v40, 16  ;;  %v4315_v2 = vld [vmem:[%s3655_s30 + $0xbc] ss:$0 sps:$4 sm:$0x11]   ;;  %v1901_v11 = vsel %vm1899_vm3, %v3692_v23, %v4153_v36 }
  0xb8   : > { %v4247_v60 = vpop.permute.xlu1 %1373  ;;  %v1694_v42 = vshll.u32 %v4251_v41, 16  ;;  %v4279_v48 = vcombine.low %v2822_v47, %v4257_v39 }
  0xb9   : > { %v4253_v33 = vpop.permute.xlu0 %1357  ;;  %v1701_v1 = vrot.slane %v1699_v20, 1 }
  0xba   : > { %1251 = vrot.lane.b32.xlu1 %v1190_v55, %s3568_s7  ;;  %v1346_v55 = vrot.slane %v2971_v17, 1  ;;  %v1598_v47 = vshll.u32 %v4279_v48, 16  ;;  %v1692_v17 = vshrl.u32 %v4251_v41, 16  ;;  %v1696_v26 = vrot.slane %v1694_v42, 1 }
  0xbb   : > { %1235 = vrot.lane.b32.xlu0 %v1094_v3, %s3568_s7  ;;  %v1322_v3 = vrot.slane %v2963_v35, 1  ;;  %v1917_v35 = vsel %vm1899_vm3, %v3687_v18, %v4174_v8  ;;  %v2874_v18 = vld [vmem:[%s3655_s30 + $0xa8] sm:$0xe]  ;;  %v4325_v8 = vld [vmem:[%s3655_s30 + $0x5c] ss:$0 sps:$4 sm:$0x11]  }
  0xbc   : > { %v4274_v15 = vpop.permute.xlu1 %1483  ;;  %v1348_v14 = vsel %vm794_vm0, %v1346_v55, %v1347_v4  ;;  %v1697_v49 = vor.u32 %v1696_v26, %v1692_v17  ;;  %v1596_v21 = vshrl.u32 %v4279_v48, 16  ;;  %v1600_v57 = vrot.slane %v1598_v47, 1 }
  0xbd   : > { %v4284_v53 = vpop.permute.xlu0 %1467  ;;  %v1950_v23 = vsel %vm1932_vm4, %v1917_v35, %v4110_v6  ;;  %v1704_v55 = vshrl.u32 %v4287_v44, 16  ;;  %v1708_v4 = vrot.slane %v1706_v62, 1  ;;  %v1608_v47 = vshrl.u32 %v4292_v56, 16 }
  0xbe   : > { %1253 = vrot.lane.b32.xlu1 %v1202_v25, %s3568_s7  ;;  %v1610_v25 = vshll.u32 %v4292_v56, 16  ;;  %v3018_v6 = vcombine.low %v2874_v18, %v4238_v43  ;;  %v1615_v20 = vshll.u32 %v4325_v8, 16  ;;  %v1702_v35 = vsel %vm521_vm1, %v1697_v49, %v1701_v1 }
  0xbf   : > { %1237 = vrot.lane.b32.xlu0 %v1106_v58, %s3568_s7  ;;  %v1324_v58 = vsel %vm794_vm0, %v1322_v3, %v1323_v12  ;;  %v1934_v3 = vsel %vm1932_vm4, %v1901_v11, %v4121_v22  ;;  %v1711_v12 = vshll.u32 %v4315_v2, 16  ;;  %v1983_v22 = vsel %vm1965_vm5, %v1950_v23, %v4080_v5  ;;  %v227_v11 = vld [vmem:[%s3655_s30 + $0xa8] sm:$0xf]  ;;  %v4359_v23 = vld [vmem:[%s3655_s30 + $0x4c] sm:$0xf] }
  0xc0   : > { %v4298_v7 = vpop.permute.xlu1 %1485  ;;  %v1612_v17 = vrot.slane %v1610_v25, 1  ;;  %v1601_v25 = vor.u32 %v1600_v57, %v1596_v21  ;;  %v2016_v43 = vsel %vm1998_vm6, %v1983_v22, %v4206_v45  ;;  %v211_v5 = vld [vmem:[%s3655_s30 + $0x48] sm:$0xf]  ;;  %v229_v22 = vld [vmem:[%s3655_s30 + $0xb4] sm:$0xf] }
  0xc1   : > { %v4303_v61 = vpop.permute.xlu0 %1469  ;;  %v2049_v57 = vsel %vm2031_vm7, %v2016_v43, %v4231_v30  ;;  %v1713_v21 = vrot.slane %v1711_v12, 1  ;;  %v1919_v30 = vsel %vm1899_vm3, %v3699_v31, %v4165_v16  ;;  %v1855_v31 = vrot.slane %v3018_v6, 1  ;;  %v4391_v16 = vld [vmem:[%s3655_s30 + $0xb0] ss:$0 sps:$4 sm:$0x11]  }
  0xc2   : > { %1379 = vrot.lane.b32.xlu1 %v1345_v9, %s3569_s8  ;;  %v2866_v9 = vld [vmem:[%s3655_s30 + $0x48] sm:$0xe]  ;;  %v1613_v49 = vor.u32 %v1612_v17, %v1608_v47  ;;  %v2082_v45 = vsel %vm2064_vm8, %v2049_v57, %v4274_v15  ;;  %v4383_v15 = vcombine.low %v211_v5, %v4359_v23  ;;  %v1952_v47 = vsel %vm1932_vm4, %v1919_v30, %v4129_v24 }
  0xc3   : > { %1363 = vrot.lane.b32.xlu0 %v1321_v34, %s3569_s8  ;;  %v1603_v34 = vshll.u32 %v4307_v63, 16  ;;  %v3010_v26 = vcombine.low %v2866_v9, %v4257_v39  ;;  %v1967_v39 = vsel %vm1965_vm5, %v1934_v3, %v4094_v50  ;;  %v1709_v9 = vor.u32 %v1708_v4, %v1704_v55 }
  0xc4   : > { %v1756_v42 = vpop.permute.xlu1 %1755  ;;  %v2000_v1 = vsel %vm1998_vm6, %v1967_v39, %v4210_v46  ;;  %v1832_v17 = vrot.slane %v4307_v63, 1  ;;  %v698_v43 = vshll.u32 %v4391_v16, 16  ;;  %v213_v39 = vld [vmem:[%s3655_s30 + $0x54] sm:$0xf] }
  0xc5   : > { %v1740_v36 = vpop.permute.xlu0 %1739  ;;  %v1605_v18 = vrot.slane %v1603_v34, 1  ;;  %v2033_v50 = vsel %vm2031_vm7, %v2000_v1, %v4234_v19  ;;  %v1617_v34 = vrot.slane %v1615_v20, 1  ;;  %v2115_v19 = vsel %vm2097_vm9, %v2082_v45, %v1756_v42 }
  0xc6   : > { %1381 = vrot.lane.b32.xlu1 %v1348_v14, %s3569_s8  ;;  %v4349_v14 = vld [vmem:[%s3655_s30 + $0xac] sm:$0xf]  ;;  %v597_v20 = vshll.u32 %v4383_v15, 16 }
  0xc7   : > { %1365 = vrot.lane.b32.xlu0 %v1324_v58, %s3569_s8  ;;  %v4374_v46 = vcombine.low %v227_v11, %v4349_v14  ;;  %v1606_v42 = vsel %vm521_vm1, %v1601_v25, %v1605_v18  ;;  %v4420_v25 = vld [vmem:[%s3655_s30 + $0xb8] sm:$0xf] }
  0xc8   : > { %v4344_v62 = vpop.permute.xlu1 %1757  ;;  %v4432_v18 = vld [vmem:[%s3655_s30 + $0x58] sm:$0xf] }
  0xc9   : > { %v4355_v58 = vpop.permute.xlu0 %1741  ;;  %v693_v6 = vshll.u32 %v4374_v46, 16 }
  0xca   : > { %1491 = vrot.lane.b32.xlu1 %v4251_v41, %s3570_s11  ;;  %v2066_v41 = vsel %vm2064_vm8, %v2033_v50, %v4284_v53  ;;  %v4449_v50 = vcombine.low %v229_v22, %v4420_v25 }
  0xcb   : > { %1475 = vrot.lane.b32.xlu0 %v4279_v48, %s3570_s11  ;;  %v1903_v48 = vsel %vm1899_vm3, %v3705_v38, %v4148_v52  ;;  %v2099_v4 = vsel %vm2097_vm9, %v2066_v41, %v1740_v36  ;;  %v1856_v38 = vrot.slane %v4282_v40, 1  ;;  %v1831_v52 = vrot.slane %v3010_v26, 1  ;;  %v4400_v36 = vld [vmem:[%s3655_s30 + $0x50] ss:$0 sps:$4 sm:$0x11]  }
  0xcc   : > { %v1884_v55 = vpop.permute.xlu1 %1883  ;;  %v1985_v40 = vsel %vm1965_vm5, %v1952_v47, %v4186_v29  ;;  %v1936_v26 = vsel %vm1932_vm4, %v1903_v48, %v4141_v59  ;;  %v691_v59 = vshrl.u32 %v4374_v46, 16  ;;  %v700_v48 = vrot.slane %v698_v43, 1  ;;  %v253_v43 = vld [vmem:[%s3655_s30 + $0x48] sm:$0xe] }
  0xcd   : > { %v1868_v3 = vpop.permute.xlu0 %1867  ;;  %v2148_v12 = vsel %vm2130_vm10, %v2115_v19, %v1884_v55  ;;  %v1969_v63 = vsel %vm1965_vm5, %v1936_v26, %v4190_v37  ;;  %v2018_v29 = vsel %vm1998_vm6, %v1985_v40, %v4218_v0  ;;  %v595_v37 = vshrl.u32 %v4383_v15, 16 }
  0xce   : > { %1493 = vrot.lane.b32.xlu1 %v4287_v44, %s3570_s11  ;;  %v2132_v53 = vsel %vm2130_vm10, %v2099_v4, %v1868_v3  ;;  %3121 = vmatprep.mubr.msk.bf16.mxu1 %vm2190_vm11, %v2148_v12  ;;  %v1714_v44 = vsel %vm521_vm1, %v1709_v9, %v1713_v21  ;;  %v2002_v9 = vsel %vm1998_vm6, %v1969_v63, %v4224_v13  ;;  %v602_v0 = vshll.u32 %v4400_v36, 16  ;;  %v2875_v21 = vld [vmem:[%s3655_s30 + $0xb4] sm:$0xe]  ;;  %v4470_v4 = vld [vmem:[%s3655_s30 + $0xbc] ss:$0 sps:$4 sm:$0x11]  }
  0xcf   : > { %1477 = vrot.lane.b32.xlu0 %v4292_v56, %s3570_s11  ;;  %3105 = vmatprep.mubr.msk.bf16.mxu0 %vm2190_vm11, %v2132_v53  ;;  %v1618_v56 = vsel %vm521_vm1, %v1613_v49, %v1617_v34  ;;  %v2051_v5 = vsel %vm2031_vm7, %v2018_v29, %v4247_v60  ;;  %v2035_v1 = vsel %vm2031_vm7, %v2002_v9, %v4253_v33  ;;  %v2867_v49 = vld [vmem:[%s3655_s30 + $0x54] sm:$0xe]  ;;  %v695_v13 = vrot.slane %v693_v6, 1 }
  0xd0   : > { %v4414_v24 = vpop.permute.xlu1 %734  ;;  %v2084_v57 = vsel %vm2064_vm8, %v2051_v5, %v4298_v7  ;;  %v2068_v60 = vsel %vm2064_vm8, %v2035_v1, %v4303_v61  ;;  %v599_v33 = vrot.slane %v597_v20, 1  ;;  %v4456_v34 = vcombine.low %v213_v39, %v4432_v18 }
  0xd1   : > { %v4426_v11 = vpop.permute.xlu0 %718  ;;  %v2101_v7 = vsel %vm2097_vm9, %v2068_v60, %v4355_v58  ;;  %v3019_v19 = vcombine.low %v2875_v21, %v4264_v10  ;;  %v3011_v61 = vcombine.low %v2867_v49, %v4272_v27  ;;  %v696_v58 = vor.u32 %v695_v13, %v691_v59  ;;  %v262_v13 = vld [vmem:[%s3655_s30 + $0xb4] sm:$0xe] }
  0xd2   : > { %1763 = vrot.lane.b32.xlu1 %v1702_v35, %s3571_s21  ;;  %v2117_v35 = vsel %vm2097_vm9, %v2084_v57, %v4344_v62  ;;  %v1857_v62 = vsel %vm794_vm0, %v1855_v31, %v1856_v38  ;;  %v705_v10 = vshll.u32 %v4449_v50, 16  ;;  %v1833_v27 = vsel %vm794_vm0, %v1831_v52, %v1832_v17 }
  0xd3   : > { %1747 = vrot.lane.b32.xlu0 %v1606_v42, %s3571_s21  ;;  %v600_v12 = vor.u32 %v599_v33, %v595_v37  ;;  %v604_v53 = vrot.slane %v602_v0, 1  ;;  %v4477_v42 = vld [vmem:[%s3655_s30 + $0x5c] ss:$0 sps:$4 sm:$0x11]   ;;  %v609_v47 = vshll.u32 %v4456_v34, 16  ;;  %v1858_v31 = vrot.slane %v3019_v19, 1 }
  0xd4   : > { %v1886_v45 = vpop.permute.xlu1 %1885  ;;  %v1859_v38 = vrot.slane %v4315_v2, 1  ;;  %v1834_v6 = vrot.slane %v3011_v61, 1  ;;  %v1835_v40 = vrot.slane %v4325_v8, 1  ;;  %v701_v52 = vsel %vm521_vm1, %v696_v58, %v700_v48  ;;  %v261_v8 = vld [vmem:[%s3655_s30 + $0xa8] sm:$0xe] }
  0xd5   : > { %v2150_v30 = vsel %vm2130_vm10, %v2117_v35, %v1886_v45  ;;  %v1870_v41 = vpop.permute.xlu0 %1869  ;;  %v703_v17 = vshrl.u32 %v4449_v50, 16  ;;  %v707_v26 = vrot.slane %v705_v10, 1  ;;  %v605_v22 = vsel %vm521_vm1, %v600_v12, %v604_v53  ;;  %v254_v35 = vld [vmem:[%s3655_s30 + $0x54] sm:$0xe] }
  0xd6   : > { %v2134_v55 = vsel %vm2130_vm10, %v2101_v7, %v1870_v41  ;;  %1765 = vrot.lane.b32.xlu1 %v1714_v44, %s3571_s21  ;;  %3122 = vmatmul.mubr.msk.bf16.vlgmr.msra.gmra.mrb[0].mxu1 %vm2190_vm11, %v2150_v30  ;;  %v607_v63 = vshrl.u32 %v4456_v34, 16  ;;  %v611_v29 = vrot.slane %v609_v47, 1  ;;  %v614_v2 = vshll.u32 %v4477_v42, 16  ;;  %v2762_v48 = vld [vmem:[%s3655_s30 + $0x54] sm:$0xf] }
  0xd7   : > { %1749 = vrot.lane.b32.xlu0 %v1618_v56, %s3571_s21  ;;  %3106 = vmatmul.mubr.msk.bf16.vlgmr.msra.gmra.mrb[0].mxu0 %vm2190_vm11, %v2134_v55  ;;  %v710_v56 = vshll.u32 %v4470_v4, 16  ;;  %v1860_v39 = vsel %vm794_vm0, %v1858_v31, %v1859_v38  ;;  %v708_v9 = vor.u32 %v707_v26, %v703_v17  ;;  %v2924_v37 = vcombine.low %v261_v8, %v4349_v14  ;;  %v2778_v55 = vld [vmem:[%s3655_s30 + $0xb4] sm:$0xf]  ;;  %v2780_v38 = vld [vmem:[%s3655_s30 + $0xc0] sm:$0xf] }
  0xd8   : > { %v4473_v3 = vpop.permute.xlu1 %736  ;;  %v1836_v1 = vsel %vm794_vm0, %v1834_v6, %v1835_v40  ;;  %v612_v57 = vor.u32 %v611_v29, %v607_v63  ;;  %v616_v21 = vrot.slane %v614_v2, 1  ;;  %v2916_v49 = vcombine.low %v253_v43, %v4359_v23  ;;  %v4542_v6 = vld [vmem:[%s3655_s30 + $0xc4] sm:$0xf] }
  0xd9   : > { %v4480_v44 = vpop.permute.xlu0 %720  ;;  %v712_v5 = vrot.slane %v710_v56, 1  ;;  %v837_v45 = vrot.slane %v2924_v37, 1  ;;  %v838_v33 = vrot.slane %v4391_v16, 1  ;;  %v2925_v7 = vcombine.low %v262_v13, %v4420_v25  ;;  %v4528_v16 = vld [vmem:[%s3655_s30 + $0x58] sm:$0xf] }
  0xda   : > { %1891 = vrot.lane.b32.xlu1 %v1857_v62, %s3572_s23  ;;  %v617_v23 = vsel %vm521_vm1, %v612_v57, %v616_v21  ;;  %v813_v41 = vrot.slane %v2916_v49, 1  ;;  %v814_v19 = vrot.slane %v4400_v36, 1  ;;  %v2917_v61 = vcombine.low %v254_v35, %v4432_v18  ;;  %v4522_v62 = vld [vmem:[%s3655_s30 + $0xb8] sm:$0xf]  ;;  %v4548_v17 = vld [vmem:[%s3655_s30 + $0x64] sm:$0xf] }
  0xdb   : > { %1875 = vrot.lane.b32.xlu0 %v1833_v27, %s3572_s23  ;;  %v713_v14 = vsel %vm521_vm1, %v708_v9, %v712_v5  ;;  %v839_v36 = vsel %vm794_vm0, %v837_v45, %v838_v33  ;;  %v840_v25 = vrot.slane %v2925_v7, 1  ;;  %v841_v18 = vrot.slane %v4470_v4, 1  ;;  %v4552_v4 = vld [vmem:[%s3655_s30 + $0xbc] ss:$0 sps:$4 sm:$0x11]  }
  0xdc   : > { %v4489_v20 = vpop.permute.xlu1 %863  ;;  %v2940_v10 = vcombine.low %v2778_v55, %v4522_v62  ;;  %v815_v12 = vsel %vm794_vm0, %v813_v41, %v814_v19  ;;  %v816_v53 = vrot.slane %v2917_v61, 1  ;;  %v817_v47 = vrot.slane %v4477_v42, 1  ;;  %v4576_v35 = vld [vmem:[%s3655_s30 + $0x68] ss:$0 sps:$4 sm:$0x11]  }
  0xdd   : > { %v4495_v59 = vpop.permute.xlu0 %847  ;;  %v2932_v31 = vcombine.low %v2762_v48, %v4528_v16  ;;  %v842_v26 = vsel %vm794_vm0, %v840_v25, %v841_v18  ;;  %v2941_v42 = vcombine.low %v2780_v38, %v4542_v6  ;;  %v1211_v9 = vshll.u32 %v4552_v4, 16 }
  0xde   : > { %742 = vrot.lane.b32.xlu1 %v701_v52, %s3567_s6  ;;  %v2764_v52 = vld [vmem:[%s3655_s30 + $0x60] sm:$0xf]  ;;  %v1206_v56 = vshll.u32 %v2940_v10, 16  ;;  %v818_v29 = vsel %vm794_vm0, %v816_v53, %v817_v47  ;;  %v1127_v18 = vshll.u32 %v4576_v35, 16  ;;  %v2804_v53 = vld [vmem:[%s3655_s30 + $0x54] sm:$0xe] }
  0xdf   : > { %726 = vrot.lane.b32.xlu0 %v605_v22, %s3567_s6  ;;  %v4558_v22 = vld [vmem:[%s3655_s30 + $0x5c] ss:$0 sps:$4 sm:$0x11]   ;;  %v2933_v2 = vcombine.low %v2764_v52, %v4548_v17  ;;  %v1110_v8 = vshll.u32 %v2932_v31, 16  ;;  %v1218_v57 = vshll.u32 %v2941_v42, 16  ;;  %v1108_v49 = vshrl.u32 %v2932_v31, 16 }
  0xe0   : > { %v4502_v0 = vpop.permute.xlu1 %865  ;;  %v1208_v5 = vrot.slane %v1206_v56, 1  ;;  %v1115_v37 = vshll.u32 %v4558_v22, 16  ;;  %v1213_v33 = vrot.slane %v1211_v9, 1  ;;  %v1216_v7 = vshrl.u32 %v2941_v42, 16  ;;  %v2813_v9 = vld [vmem:[%s3655_s30 + $0xc0] sm:$0xe] }
  0xe1   : > { %v4507_v60 = vpop.permute.xlu0 %849  ;;  %v1112_v13 = vrot.slane %v1110_v8, 1  ;;  %v1220_v19 = vrot.slane %v1218_v57, 1  ;;  %v1129_v8 = vrot.slane %v1127_v18, 1 }
  0xe2   : > { %1893 = vrot.lane.b32.xlu1 %v1860_v39, %s3572_s23  ;;  %v1204_v39 = vshrl.u32 %v2940_v10, 16  ;;  %v1117_v41 = vrot.slane %v1115_v37, 1  ;;  %v4604_v37 = vld [vmem:[%s3655_s30 + $0xc4] sm:$0xf] }
  0xe3   : > { %1877 = vrot.lane.b32.xlu0 %v1836_v1, %s3572_s23  ;;  %v4571_v1 = vld [vmem:[%s3655_s30 + $0xc8] ss:$0 sps:$4 sm:$0x11]   ;;  %v1113_v48 = vor.u32 %v1112_v13, %v1108_v49  ;;  %v2973_v13 = vcombine.low %v2813_v9, %v4542_v6 }
  0xe4   : > { %v4515_v30 = vpop.permute.xlu1 %975  ;;  %v1223_v61 = vshll.u32 %v4571_v1, 16  ;;  %v1353_v18 = vrot.slane %v4571_v1, 1 }
  0xe5   : > { %v4524_v58 = vpop.permute.xlu0 %959  ;;  %v1118_v56 = vsel %vm521_vm1, %v1113_v48, %v1117_v41  ;;  %v2844_v48 = vld [vmem:[%s3655_s30 + $0xcc] sm:$0xf] }
  0xe6   : > { %744 = vrot.lane.b32.xlu1 %v713_v14, %s3567_s6  ;;  %v1122_v14 = vshll.u32 %v2933_v2, 16  ;;  %v1225_v38 = vrot.slane %v1223_v61, 1 }
  0xe7   : > { %728 = vrot.lane.b32.xlu0 %v617_v23, %s3567_s6  ;;  %v1209_v23 = vor.u32 %v1208_v5, %v1204_v39  ;;  %v2964_v39 = vcombine.low %v2804_v53, %v4528_v16  ;;  %v2842_v5 = vld [vmem:[%s3655_s30 + $0xc0] sm:$0xf]  ;;  %v1326_v16 = vrot.slane %v4558_v22, 1  ;;  %v4627_v22 = vld [vmem:[%s3655_s30 + $0xd0] sm:$0xf] }
  0xe8   : > { %v4535_v27 = vpop.permute.xlu1 %977  ;;  %v1124_v25 = vrot.slane %v1122_v14, 1  ;;  %v2826_v14 = vld [vmem:[%s3655_s30 + $0x60] sm:$0xf] }
  0xe9   : > { %v4544_v40 = vpop.permute.xlu0 %961  ;;  %v1214_v47 = vsel %vm521_vm1, %v1209_v23, %v1213_v33  ;;  %v4614_v33 = vld [vmem:[%s3655_s30 + $0x64] sm:$0xf]  ;;  %v1325_v41 = vrot.slane %v2964_v39, 1  ;;  %v4649_v39 = vld [vmem:[%s3655_s30 + $0x68] ss:$0 sps:$4 sm:$0x11]  }
  0xea   : > { %871 = vrot.lane.b32.xlu1 %v839_v36, %s3566_s5  ;;  %v1120_v36 = vshrl.u32 %v2933_v2, 16  ;;  %v2980_v6 = vcombine.low %v2826_v14, %v4614_v33  ;;  %v1627_v14 = vshll.u32 %v4649_v39, 16 }
  0xeb   : > { %855 = vrot.lane.b32.xlu0 %v815_v12, %s3566_s5  ;;  %v2812_v12 = vld [vmem:[%s3655_s30 + $0xb4] sm:$0xe]  ;;  %v1327_v53 = vsel %vm794_vm0, %v1325_v41, %v1326_v16  ;;  %v1921_v41 = vsel %vm1899_vm3, %v3843_v51, %v4414_v24 }
  0xec   : > { %v4560_v63 = vpop.permute.xlu1 %1247  ;;  %v2972_v52 = vcombine.low %v2812_v12, %v4522_v62  ;;  %v1350_v62 = vrot.slane %v4552_v4, 1  ;;  %v1622_v9 = vshll.u32 %v2980_v6, 16 }
  0xed   : > { %v4564_v43 = vpop.permute.xlu0 %1231 }
  0xee   : > { %873 = vrot.lane.b32.xlu1 %v842_v26, %s3566_s5  ;;  %v1349_v49 = vrot.slane %v2972_v52, 1 }
  0xef   : > { %857 = vrot.lane.b32.xlu0 %v818_v29, %s3566_s5  ;;  %v1125_v29 = vor.u32 %v1124_v25, %v1120_v36  ;;  %v4630_v36 = vld [vmem:[%s3655_s30 + $0xc8] ss:$0 sps:$4 sm:$0x11]   ;;  %v1352_v25 = vrot.slane %v2973_v13, 1 }
  0xf0   : > { %v4573_v21 = vpop.permute.xlu1 %1249  ;;  %v1723_v1 = vshll.u32 %v4630_v36, 16 }
  0xf1   : > { %v4578_v45 = vpop.permute.xlu0 %1233  ;;  %v1130_v23 = vsel %vm521_vm1, %v1125_v29, %v1129_v8  ;;  %v4643_v29 = vcombine.low %v2844_v48, %v4627_v22  ;;  %v4646_v8 = vld [vmem:[%s3655_s30 + $0x70] sm:$0xf]  ;;  %v1620_v48 = vshrl.u32 %v2980_v6, 16 }
  0xf2   : > { %983 = vrot.lane.b32.xlu1 %v2940_v10, %s3565_s4 }
  0xf3   : > { %967 = vrot.lane.b32.xlu0 %v2932_v31, %s3565_s4  ;;  %v1221_v31 = vor.u32 %v1220_v19, %v1216_v7  ;;  %v2988_v19 = vcombine.low %v2842_v5, %v4604_v37 }
  0xf4   : > { %v4583_v55 = vpop.permute.xlu1 %1375 }
  0xf5   : > { %v4587_v10 = vpop.permute.xlu0 %1359  ;;  %v1226_v57 = vsel %vm521_vm1, %v1221_v31, %v1225_v38  ;;  %v1329_v31 = vrot.slane %v4576_v35, 1  ;;  %v2828_v38 = vld [vmem:[%s3655_s30 + $0x6c] sm:$0xf]  ;;  %v1718_v52 = vshll.u32 %v2988_v19, 16  ;;  %v1354_v35 = vsel %vm794_vm0, %v1352_v25, %v1353_v18 }
  0xf6   : > { %985 = vrot.lane.b32.xlu1 %v2941_v42, %s3565_s4  ;;  %v1905_v25 = vsel %vm1899_vm3, %v3846_v54, %v4426_v11  ;;  %v1954_v18 = vsel %vm1932_vm4, %v1921_v41, %v4489_v20 }
  0xf7   : > { %969 = vrot.lane.b32.xlu0 %v2933_v2, %s3565_s4  ;;  %v2805_v2 = vld [vmem:[%s3655_s30 + $0x60] sm:$0xe]  ;;  %v1720_v16 = vrot.slane %v1718_v52, 1  ;;  %v1938_v51 = vsel %vm1932_vm4, %v1905_v25, %v4495_v59  ;;  %v1987_v24 = vsel %vm1965_vm5, %v1954_v18, %v4515_v30 }
  0xf8   : > { %v4594_v26 = vpop.permute.xlu1 %1377  ;;  %v2965_v4 = vcombine.low %v2805_v2, %v4548_v17  ;;  %v1351_v17 = vsel %vm794_vm0, %v1349_v49, %v1350_v62  ;;  %v4656_v2 = vld [vmem:[%s3655_s30 + $0xd4] ss:$0 sps:$4 sm:$0x11]   ;;  %v1716_v49 = vshrl.u32 %v2988_v19, 16  ;;  %v1971_v20 = vsel %vm1965_vm5, %v1938_v51, %v4524_v58  ;;  %v2876_v58 = vld [vmem:[%s3655_s30 + $0xc0] sm:$0xe] }
  0xf9   : > { %v4599_v42 = vpop.permute.xlu0 %1361  ;;  %v2020_v52 = vsel %vm1998_vm6, %v1987_v24, %v4560_v63  ;;  %v2004_v59 = vsel %vm1998_vm6, %v1971_v20, %v4564_v43  ;;  %v2869_v24 = vld [vmem:[%s3655_s30 + $0x6c] sm:$0xe] }
  0xfa   : > { %1255 = vrot.lane.b32.xlu1 %v1214_v47, %s3568_s7  ;;  %v1328_v47 = vrot.slane %v2965_v4, 1  ;;  %v1725_v4 = vrot.slane %v1723_v1, 1  ;;  %v1721_v54 = vor.u32 %v1720_v16, %v1716_v49  ;;  %v2053_v30 = vsel %vm2031_vm7, %v2020_v52, %v4583_v55 }
  0xfb   : > { %1239 = vrot.lane.b32.xlu0 %v1118_v56, %s3568_s7  ;;  %v2037_v63 = vsel %vm2031_vm7, %v2004_v59, %v4587_v10 }
  0xfc   : > { %v4616_v7 = vpop.permute.xlu1 %1487  ;;  %v1330_v62 = vsel %vm794_vm0, %v1328_v47, %v1329_v31  ;;  %v1735_v47 = vshll.u32 %v4656_v2, 16  ;;  %v4677_v31 = vld [vmem:[%s3655_s30 + $0x74] ss:$0 sps:$4 sm:$0x11]   ;;  %v1726_v41 = vsel %vm521_vm1, %v1721_v54, %v1725_v4  ;;  %v1907_v4 = vsel %vm1899_vm3, %v3889_v32, %v4480_v44 }
  0xfd   : > { %v4621_v61 = vpop.permute.xlu0 %1471  ;;  %v2086_v16 = vsel %vm2064_vm8, %v2053_v30, %v4616_v7  ;;  %v1639_v43 = vshll.u32 %v4677_v31, 16 }
  0xfe   : > { %1257 = vrot.lane.b32.xlu1 %v1226_v57, %s3568_s7  ;;  %v4660_v57 = vcombine.low %v2828_v38, %v4646_v8  ;;  %v2070_v55 = vsel %vm2064_vm8, %v2037_v63, %v4621_v61  ;;  %v1923_v61 = vsel %vm1899_vm3, %v3884_v28, %v4473_v3  ;;  %v1940_v3 = vsel %vm1932_vm4, %v1907_v4, %v4507_v60 }
  0xff   : > { %1241 = vrot.lane.b32.xlu0 %v1130_v23, %s3568_s7  ;;  %v1730_v23 = vshll.u32 %v4643_v29, 16  ;;  %v1641_v44 = vrot.slane %v1639_v43, 1  ;;  %v1862_v60 = vrot.slane %v4630_v36, 1  ;;  %s3079_s7 = sshll.u32 %s3555_s15, 12 }
 0x100   : > { %v4635_v12 = vpop.permute.xlu1 %1489  ;;  %v1634_v11 = vshll.u32 %v4660_v57, 16  ;;  %v1632_v49 = vshrl.u32 %v4660_v57, 16  ;;  %s4988_s15 = scalar_lea.hbm %s5051_s3, %s3079_s7 }
 0x101   : > { %v4640_v56 = vpop.permute.xlu0 %1473 }
 0x102   : > { %1383 = vrot.lane.b32.xlu1 %v1351_v17, %s3569_s8  ;;  %v1624_v17 = vrot.slane %v1622_v9, 1  ;;  %v1629_v9 = vrot.slane %v1627_v14, 1  ;;  %v1737_v14 = vrot.slane %v1735_v47, 1  ;;  %v2877_v47 = vld [vmem:[%s3655_s30 + $0xcc] sm:$0xe] }
 0x103   : > { %1367 = vrot.lane.b32.xlu0 %v1327_v53, %s3569_s8  ;;  %v1728_v53 = vshrl.u32 %v4643_v29, 16  ;;  %v3021_v52 = vcombine.low %v2877_v47, %v4627_v22 }
 0x104   : > { %v1760_v5 = vpop.permute.xlu1 %1759 }
 0x105   : > { %v1744_v13 = vpop.permute.xlu0 %1743 }
 0x106   : > { %1385 = vrot.lane.b32.xlu1 %v1354_v35, %s3569_s8  ;;  %v1732_v35 = vrot.slane %v1730_v23, 1  ;;  %v2103_v10 = vsel %vm2097_vm9, %v2070_v55, %v1744_v13 }
 0x107   : > { %1369 = vrot.lane.b32.xlu0 %v1330_v62, %s3569_s8  ;;  %v1625_v62 = vor.u32 %v1624_v17, %v1620_v48  ;;  %v1636_v48 = vrot.slane %v1634_v11, 1  ;;  %v2868_v17 = vld [vmem:[%s3655_s30 + $0x60] sm:$0xe]  ;;  %s185_s30 = sand.u32 1, %s3547_s13  }
 0x108   : > { %v4683_v38 = vpop.permute.xlu1 %1761  ;;  %v1733_v18 = vor.u32 %v1732_v35, %v1728_v53  ;;  %v3012_v28 = vcombine.low %v2868_v17, %v4614_v33  ;;  %v3013_v35 = vcombine.low %v2869_v24, %v4646_v8  ;;  %v1865_v8 = vrot.slane %v4656_v2, 1  ;;  %s2748_s4 = sshll.u32 %s185_s30, 8 }
 0x109   : > { %v4690_v1 = vpop.permute.xlu0 %1745  ;;  %v1630_v13 = vsel %vm521_vm1, %v1625_v62, %v1629_v9  ;;  %v1637_v32 = vor.u32 %v1636_v48, %v1632_v49  ;;  %v1841_v49 = vrot.slane %v4677_v31, 1  ;;  %s4889_s6 = scalar_lea.vmem [#allocation2], %s2748_s4 }
 0x10a   : > { %1495 = vrot.lane.b32.xlu1 %v2988_v19, %s3570_s11  ;;  %v2119_v19 = vsel %vm2097_vm9, %v2086_v16, %v1760_v5  ;;  %v1738_v33 = vsel %vm521_vm1, %v1733_v18, %v1737_v14  ;;  %v1837_v36 = vrot.slane %v3012_v28, 1  ;;  %v1840_v62 = vrot.slane %v3013_v35, 1  ;;  %s2661_s8 = sshll.u32 %s4889_s6, 4  ;;  %s4993_s8 = int_to_ptr.vmem [resolvable:$true] %s2661_s8 }
 0x10b   : > { %1479 = vrot.lane.b32.xlu0 %v2980_v6, %s3570_s11  ;;  %v3020_v6 = vcombine.low %v2876_v58, %v4604_v37  ;;  %v1956_v37 = vsel %vm1932_vm4, %v1923_v61, %v4502_v0  ;;  %v1973_v0 = vsel %vm1965_vm5, %v1940_v3, %v4544_v40  ;;  %v1838_v40 = vrot.slane %v4649_v39, 1  ;;  %s3485_s18 = scalar_lea.vmem %s4993_s8, 4096 }
 0x10c   : > { %v1888_v23 = vpop.permute.xlu1 %1887  ;;  %v1642_v39 = vsel %vm521_vm1, %v1637_v32, %v1641_v44  ;;  %v1842_v14 = vsel %vm794_vm0, %v1840_v62, %v1841_v49  ;;  %v5063_v44 = vld [vmem:[#allocation6_spill] sm:$0xff]  ;;  %p3486_p12 = scmp.ne.s32.totalorder %s4993_s8, %s3485_s18 }
 0x10d   : > { %v2152_v25 = vsel %vm2130_vm10, %v2119_v19, %v1888_v23  ;;  %v1872_v7 = vpop.permute.xlu0 %1871  ;;  %v1861_v11 = vrot.slane %v3020_v6, 1 }
 0x10e   : > { %v2136_v5 = vsel %vm2130_vm10, %v2103_v10, %v1872_v7  ;;  %1497 = vrot.lane.b32.xlu1 %v4643_v29, %s3570_s11  ;;  %3125 = vmatprep.mubr.msk.bf16.mxu1 %vm2190_vm11, %v2152_v25  ;;  %v1989_v29 = vsel %vm1965_vm5, %v1956_v37, %v4535_v27  ;;  %v2006_v27 = vsel %vm1998_vm6, %v1973_v0, %v4578_v45  ;;  %p3487_p13 = pnand %p3486_p12, %p3635_p4 }
 0x10f   : > { %1481 = vrot.lane.b32.xlu0 %v4660_v57, %s3570_s11  ;;  %3109 = vmatprep.mubr.msk.bf16.mxu0 %vm2190_vm11, %v2136_v5  ;;  %v2022_v57 = vsel %vm1998_vm6, %v1989_v29, %v4573_v21  ;;  %v2039_v21 = vsel %vm2031_vm7, %v2006_v27, %v4599_v42  ;;  %v1863_v22 = vsel %vm794_vm0, %v1861_v11, %v1862_v60  ;;  %v5062_v29 = vld [vmem:[#allocation5_spill] sm:$0xff]  ;;  %s5001_s11 = scalar_lea.sflag [#allocation3], %s185_s30 }
 0x110   : > { %v4734_v53 = vpop.permute.xlu1 %738  ;;  %v2055_v54 = vsel %vm2031_vm7, %v2022_v57, %v4594_v26  ;;  %v2072_v45 = vsel %vm2064_vm8, %v2039_v21, %v4640_v56  ;;  %v1864_v56 = vrot.slane %v3021_v52, 1  ;;  %p3488_p0 = pneg %p3487_p13 }
 0x111   : > { %v4741_v51 = vpop.permute.xlu0 %722  ;;  %v2088_v20 = vsel %vm2064_vm8, %v2055_v54, %v4635_v12  ;;  %v2105_v42 = vsel %vm2097_vm9, %v2072_v45, %v4690_v1  ;;  %v1839_v1 = vsel %vm794_vm0, %v1837_v36, %v1838_v40  ;;  %v1925_v32 = vsel %vm1899_vm3, %v5062_v29, %v4734_v53 }
 0x112   : > { %1767 = vrot.lane.b32.xlu1 %v1726_v41, %s3571_s21  ;;  %v2121_v26 = vsel %vm2097_vm9, %v2088_v20, %v4683_v38  ;;  %v1866_v63 = vsel %vm794_vm0, %v1864_v56, %v1865_v8  ;;  %v1909_v47 = vsel %vm1899_vm3, %v5063_v44, %v4741_v51 }
 0x113   : > { %1751 = vrot.lane.b32.xlu0 %v1630_v13, %s3571_s21 }
 0x114   : > { %v1890_v9 = vpop.permute.xlu1 %1889 }
 0x115   : > { %v2154_v12 = vsel %vm2130_vm10, %v2121_v26, %v1890_v9  ;;  %v1874_v59 = vpop.permute.xlu0 %1873  ;;  %v5064_v9 = vld [vmem:[#allocation7_spill] sm:$0xff] }
 0x116   : > { %v2138_v30 = vsel %vm2130_vm10, %v2105_v42, %v1874_v59  ;;  %1769 = vrot.lane.b32.xlu1 %v1738_v33, %s3571_s21  ;;  %3126 = vmatmul.mubr.msk.bf16.gmra.mrb[4].mxu1 %vm2190_vm11, %v2154_v12  ;;  %v5065_v42 = vld [vmem:[#allocation8_spill] sm:$0xff] }
 0x117   : > { %1753 = vrot.lane.b32.xlu0 %v1642_v39, %s3571_s21  ;;  %3110 = vmatmul.mubr.msk.bf16.gmra.mrb[4].mxu0 %vm2190_vm11, %v2138_v30  ;;  %s3489_s21 = sshll.u32 %s3573_s19, 4  ;;  %s3490_s21 = int_to_ptr.vmem [resolvable:$false] %s3489_s21 }
 0x118   : > { %v741_v38 = vpop.permute.xlu1 %740  ;;  %p3492_p1 = scmp.lt.s32.totalorder %s4993_s8, %s3490_s21 }
 0x119   : > { %v725_v58 = vpop.permute.xlu0 %724  ;;  %v1927_v39 = vsel %vm1899_vm3, %v5064_v9, %v741_v38 }
 0x11a   : > { %1895 = vrot.lane.b32.xlu1 %v1863_v22, %s3572_s23  ;;  %v1911_v12 = vsel %vm1899_vm3, %v5065_v42, %v725_v58 }
 0x11b   : > { %1879 = vrot.lane.b32.xlu0 %v1839_v1, %s3572_s23 }
 0x11c   : > { %v868_v16 = vpop.permute.xlu1 %867 }
 0x11d   : > { %v852_v43 = vpop.permute.xlu0 %851  ;;  %v1958_v0 = vsel %vm1932_vm4, %v1925_v32, %v868_v16 }
 0x11e   : > { %1897 = vrot.lane.b32.xlu1 %v1866_v63, %s3572_s23  ;;  %v1942_v57 = vsel %vm1932_vm4, %v1909_v47, %v852_v43 }
 0x11f   : > { %1881 = vrot.lane.b32.xlu0 %v1842_v14, %s3572_s23  ;;  %s3491_s23 = scalar_lea.vmem %s3490_s21, 8192 }
 0x120   : > { %v870_v2 = vpop.permute.xlu1 %869  ;;  %p3493_p2 = scmp.lt.s32.totalorder %s3491_s23, %s3485_s18 }
 0x121   : > { %v854_v55 = vpop.permute.xlu0 %853  ;;  %v1960_v59 = vsel %vm1932_vm4, %v1927_v39, %v870_v2 }
 0x122   : > { %v1944_v30 = vsel %vm1932_vm4, %v1911_v12, %v854_v55  ;;  %p3494_p3 = por %p3493_p2, %p3492_p1 }
 0x124   : > { %v980_v19 = vpop.permute.xlu1 %979  ;;  %p3495_p5 = pnand %p3494_p3, %p3488_p0 }
 0x125   : > { %v964_v23 = vpop.permute.xlu0 %963  ;;  %v1991_v33 = vsel %vm1965_vm5, %v1958_v0, %v980_v19 }
 0x126   : > { %v1975_v24 = vsel %vm1965_vm5, %v1942_v57, %v964_v23 }
 0x128   : > { %v982_v31 = vpop.permute.xlu1 %981 }
 0x129   : > { %v966_v41 = vpop.permute.xlu0 %965  ;;  %v1993_v22 = vsel %vm1965_vm5, %v1960_v59, %v982_v31 }
 0x12a   : > { %v1977_v8 = vsel %vm1965_vm5, %v1944_v30, %v966_v41 }
 0x12c   : > { %v1252_v48 = vpop.permute.xlu1 %1251 }
 0x12d   : > { %v1236_v17 = vpop.permute.xlu0 %1235  ;;  %v2024_v27 = vsel %vm1998_vm6, %v1991_v33, %v1252_v48 }
 0x12e   : > { %v2008_v11 = vsel %vm1998_vm6, %v1975_v24, %v1236_v17 }
 0x130   : > { %v1254_v10 = vpop.permute.xlu1 %1253 }
 0x131   : > { %v1238_v25 = vpop.permute.xlu0 %1237  ;;  %v2026_v38 = vsel %vm1998_vm6, %v1993_v22, %v1254_v10 }
 0x132   : > { %v2010_v62 = vsel %vm1998_vm6, %v1977_v8, %v1238_v25 }
 0x134   : > { %v1380_v7 = vpop.permute.xlu1 %1379 }
 0x135   : > { %v1364_v18 = vpop.permute.xlu0 %1363  ;;  %v2057_v53 = vsel %vm2031_vm7, %v2024_v27, %v1380_v7 }
 0x136   : > { %v2041_v40 = vsel %vm2031_vm7, %v2008_v11, %v1364_v18 }
 0x138   : > { %v1382_v6 = vpop.permute.xlu1 %1381 }
 0x139   : > { %v1366_v61 = vpop.permute.xlu0 %1365  ;;  %v2059_v49 = vsel %vm2031_vm7, %v2026_v38, %v1382_v6 }
 0x13a   : > { %v2043_v58 = vsel %vm2031_vm7, %v2010_v62, %v1366_v61 }
 0x13c   : > { %v1492_v5 = vpop.permute.xlu1 %1491 }
 0x13d   : > { %v1476_v13 = vpop.permute.xlu0 %1475  ;;  %v2090_v51 = vsel %vm2064_vm8, %v2057_v53, %v1492_v5 }
 0x13e   : > { %v2074_v21 = vsel %vm2064_vm8, %v2041_v40, %v1476_v13 }
 0x140   : > { %v1494_v4 = vpop.permute.xlu1 %1493 }
 0x141   : > { %v1478_v37 = vpop.permute.xlu0 %1477  ;;  %v2092_v63 = vsel %vm2064_vm8, %v2059_v49, %v1494_v4 }
 0x142   : > { %v2076_v16 = vsel %vm2064_vm8, %v2043_v58, %v1478_v37 }
 0x144   : > { %v1764_v28 = vpop.permute.xlu1 %1763 }
 0x145   : > { %v1748_v3 = vpop.permute.xlu0 %1747  ;;  %v2123_v20 = vsel %vm2097_vm9, %v2090_v51, %v1764_v28 }
 0x146   : > { %v2107_v52 = vsel %vm2097_vm9, %v2074_v21, %v1748_v3 }
 0x148   : > { %v1766_v60 = vpop.permute.xlu1 %1765 }
 0x149   : > { %v1750_v54 = vpop.permute.xlu0 %1749  ;;  %v2125_v14 = vsel %vm2097_vm9, %v2092_v63, %v1766_v60 }
 0x14a   : > { %v2109_v2 = vsel %vm2097_vm9, %v2076_v16, %v1750_v54 }
 0x14c   : > { %v1892_v36 = vpop.permute.xlu1 %1891 }
 0x14d   : > { %v2156_v45 = vsel %vm2130_vm10, %v2123_v20, %v1892_v36  ;;  %v1876_v26 = vpop.permute.xlu0 %1875 }
 0x14e   : > { %v2140_v35 = vsel %vm2130_vm10, %v2107_v52, %v1876_v26  ;;  %3129 = vmatprep.mubr.msk.bf16.mxu1 %vm2190_vm11, %v2156_v45 }
 0x14f   : > { %3113 = vmatprep.mubr.msk.bf16.mxu0 %vm2190_vm11, %v2140_v35 }
 0x150   : > { %v743_v56 = vpop.permute.xlu1 %742 }
 0x151   : > { %v727_v1 = vpop.permute.xlu0 %726  ;;  %v1929_v24 = vsel %vm1899_vm3, %v4374_v46, %v743_v56 }
 0x152   : > { %v1913_v27 = vsel %vm1899_vm3, %v4383_v15, %v727_v1 }
 0x154   : > { %v1894_v43 = vpop.permute.xlu1 %1893 }
 0x155   : > { %v2158_v55 = vsel %vm2130_vm10, %v2125_v14, %v1894_v43  ;;  %v1878_v19 = vpop.permute.xlu0 %1877 }
 0x156   : > { %v2142_v23 = vsel %vm2130_vm10, %v2109_v2, %v1878_v19  ;;  %3130 = vmatmul.mubr.msk.bf16.gmra.mrb[8].mxu1 %vm2190_vm11, %v2158_v55  ;;  %v4867_v19 = vld [vmem:[%s5050_s2] ss:$0 sm:$0xff] }
 0x157   : > { %3114 = vmatmul.mubr.msk.bf16.gmra.mrb[8].mxu0 %vm2190_vm11, %v2142_v23 }
 0x158   : > { %v745_v31 = vpop.permute.xlu1 %744 }
 0x159   : > { %v729_v41 = vpop.permute.xlu0 %728  ;;  %v1931_v36 = vsel %vm1899_vm3, %v4449_v50, %v745_v31 }
 0x15a   : > { %v1915_v15 = vsel %vm1899_vm3, %v4456_v34, %v729_v41 }
 0x15c   : > { %v872_v48 = vpop.permute.xlu1 %871 }
 0x15d   : > { %v856_v17 = vpop.permute.xlu0 %855  ;;  %v1962_v54 = vsel %vm1932_vm4, %v1929_v24, %v872_v48 }
 0x15e   : > { %v1946_v11 = vsel %vm1932_vm4, %v1913_v27, %v856_v17 }
 0x160   : > { %v874_v10 = vpop.permute.xlu1 %873 }
 0x161   : > { %v858_v25 = vpop.permute.xlu0 %857  ;;  %v1964_v45 = vsel %vm1932_vm4, %v1931_v36, %v874_v10 }
 0x162   : > { %v1948_v39 = vsel %vm1932_vm4, %v1915_v15, %v858_v25 }
 0x164   : > { %v984_v7 = vpop.permute.xlu1 %983 }
 0x165   : > { %v968_v18 = vpop.permute.xlu0 %967  ;;  %v1995_v53 = vsel %vm1965_vm5, %v1962_v54, %v984_v7 }
 0x166   : > { %v1979_v51 = vsel %vm1965_vm5, %v1946_v11, %v968_v18 }
 0x168   : > { %v986_v6 = vpop.permute.xlu1 %985 }
 0x169   : > { %v970_v61 = vpop.permute.xlu0 %969  ;;  %v1997_v35 = vsel %vm1965_vm5, %v1964_v45, %v986_v6 }
 0x16a   : > { %v1981_v59 = vsel %vm1965_vm5, %v1948_v39, %v970_v61 }
 0x16c   : > { %v1256_v5 = vpop.permute.xlu1 %1255 }
 0x16d   : > { %v1240_v13 = vpop.permute.xlu0 %1239  ;;  %v2028_v21 = vsel %vm1998_vm6, %v1995_v53, %v1256_v5 }
 0x16e   : > { %v2012_v46 = vsel %vm1998_vm6, %v1979_v51, %v1240_v13 }
 0x170   : > { %v1258_v4 = vpop.permute.xlu1 %1257 }
 0x171   : > { %v1242_v37 = vpop.permute.xlu0 %1241  ;;  %v2030_v30 = vsel %vm1998_vm6, %v1997_v35, %v1258_v4 }
 0x172   : > { %v2014_v8 = vsel %vm1998_vm6, %v1981_v59, %v1242_v37 }
 0x174   : > { %v1384_v28 = vpop.permute.xlu1 %1383 }
 0x175   : > { %v1368_v3 = vpop.permute.xlu0 %1367  ;;  %v2061_v52 = vsel %vm2031_vm7, %v2028_v21, %v1384_v28 }
 0x176   : > { %v2045_v26 = vsel %vm2031_vm7, %v2012_v46, %v1368_v3 }
 0x178   : > { %v1386_v29 = vpop.permute.xlu1 %1385 }
 0x179   : > { %v1370_v32 = vpop.permute.xlu0 %1369  ;;  %v2063_v38 = vsel %vm2031_vm7, %v2030_v30, %v1386_v29 }
 0x17a   : > { %v2047_v62 = vsel %vm2031_vm7, %v2014_v8, %v1370_v32 }
 0x17c   : > { %v1496_v44 = vpop.permute.xlu1 %1495 }
 0x17d   : > { %v1480_v47 = vpop.permute.xlu0 %1479  ;;  %v2094_v9 = vsel %vm2064_vm8, %v2061_v52, %v1496_v44 }
 0x17e   : > { %v2078_v42 = vsel %vm2064_vm8, %v2045_v26, %v1480_v47 }
 0x180   : > { %v1498_v0 = vpop.permute.xlu1 %1497 }
 0x181   : > { %v1482_v57 = vpop.permute.xlu0 %1481  ;;  %v2096_v49 = vsel %vm2064_vm8, %v2063_v38, %v1498_v0 }
 0x182   : > { %v2080_v58 = vsel %vm2064_vm8, %v2047_v62, %v1482_v57 }
 0x184   : > { %v1768_v33 = vpop.permute.xlu1 %1767 }
 0x185   : > { %v1752_v60 = vpop.permute.xlu0 %1751  ;;  %v2127_v50 = vsel %vm2097_vm9, %v2094_v9, %v1768_v33 }
 0x186   : > { %v2111_v34 = vsel %vm2097_vm9, %v2078_v42, %v1752_v60 }
 0x188   : > { %v1770_v40 = vpop.permute.xlu1 %1769 }
 0x189   : > { %v1754_v20 = vpop.permute.xlu0 %1753  ;;  %v2129_v63 = vsel %vm2097_vm9, %v2096_v49, %v1770_v40 }
 0x18a   : > { %v2113_v14 = vsel %vm2097_vm9, %v2080_v58, %v1754_v20 }
 0x18c   : > { %v1896_v12 = vpop.permute.xlu1 %1895 }
 0x18d   : > { %v2160_v22 = vsel %vm2130_vm10, %v2127_v50, %v1896_v12  ;;  %v1880_v56 = vpop.permute.xlu0 %1879 }
 0x18e   : > { %v2144_v1 = vsel %vm2130_vm10, %v2111_v34, %v1880_v56  ;;  %3133 = vmatprep.mubr.msk.bf16.mxu1 %vm2190_vm11, %v2160_v22 }
 0x18f   : > { %3117 = vmatprep.mubr.msk.bf16.mxu0 %vm2190_vm11, %v2144_v1 }
 0x190   : > { %v1898_v16 = vpop.permute.xlu1 %1897 }
 0x191   : > { %v2162_v43 = vsel %vm2130_vm10, %v2129_v63, %v1898_v16  ;;  %v1882_v2 = vpop.permute.xlu0 %1881 }
 0x192   : > { %v2146_v55 = vsel %vm2130_vm10, %v2113_v14, %v1882_v2  ;;  %3134 = vmatmul.mubr.msk.bf16.gmra.mrb[12].mxu1 %vm2190_vm11, %v2162_v43 }
 0x193   : > { %3118 = vmatmul.mubr.msk.bf16.gmra.mrb[12].mxu0 %vm2190_vm11, %v2146_v55 }
 0x1a9   : > { %v3123_v23 = vpop.f32.mrb[0].mxu1 }
 0x1aa   : > { %v3107_v31 = vpop.f32.mrb[0].mxu0  ;;  %v2334_v41 = vadd.f32 %v3123_v23, %v4867_v19  ;;  %v2325_v48 = vpop.f32.mrb[1].mxu1 }
 0x1ab   : > { %v2270_v17 = vadd.f32 %v3107_v31, %v4867_v19  ;;  %v2261_v10 = vpop.f32.mrb[1].mxu0  ;;  %v4872_v25 = vadd.f32 %v4867_v19, %v2325_v48  ;;  %v3124_v7 = vpop.f32.mrb[2].mxu1 }
 0x1ac   : > { %v3060_v18 = vmul.f32 -1.442695, %v2334_v41  ;;  %v2262_v6 = vadd.f32 %v4867_v19, %v2261_v10  ;;  %v3108_v61 = vpop.f32.mrb[2].mxu0  ;;  %v4876_v5 = vadd.f32 %v3124_v7, %v4867_v19  ;;  %v2328_v13 = vpop.f32.mrb[3].mxu1 }
 0x1ad   : > { %v3044_v4 = vmul.f32 -1.442695, %v2270_v17  ;;  %v3058_v37 = vmul.f32 -1.442695, %v4872_v25  ;;  %v2273_v28 = vadd.f32 %v3108_v61, %v4867_v19  ;;  %v2264_v3 = vpop.f32.mrb[3].mxu0  ;;  %v4881_v29 = vadd.f32 %v4867_v19, %v2328_v13 }
 0x1ae   : > { %3357 = vpow2.f32 %v3060_v18  ;;  %v3042_v32 = vmul.f32 -1.442695, %v2262_v6  ;;  %v2265_v44 = vadd.f32 %v4867_v19, %v2264_v3  ;;  %v3061_v0 = vmul.f32 -1.442695, %v4876_v5 }
 0x1af   : > { %3359 = vpow2.f32 %v3044_v4  ;;  %v3045_v47 = vmul.f32 -1.442695, %v2273_v28  ;;  %v3059_v33 = vmul.f32 -1.442695, %v4881_v29 }
 0x1b0   : > { %3361 = vpow2.f32 %v3042_v32  ;;  %v3043_v57 = vmul.f32 -1.442695, %v2265_v44 }
 0x1b1   : > { %3363 = vpow2.f32 %v3058_v37 }
 0x1b2   : > { %3365 = vpow2.f32 %v3045_v47 }
 0x1b3   : > { %3367 = vpow2.f32 %v3061_v0 }
 0x1b4   : > { %3369 = vpow2.f32 %v3043_v57 }
 0x1b5   : > { %3371 = vpow2.f32 %v3059_v33 }
 0x1b8   : > { %v3358_v60 = vpop.eup %3357 }
 0x1b9   : > { %v3360_v24 = vpop.eup %3359  ;;  %v2502_v27 = vadd.f32 1.0, %v3358_v60 }
 0x1ba   : > { %v3362_v54 = vpop.eup %3361  ;;  %v2486_v11 = vadd.f32 1.0, %v3360_v24 }
 0x1bb   : > { %v3364_v53 = vpop.eup %3363  ;;  %3373 = vrcp.f32 %v2502_v27  ;;  %v2484_v40 = vadd.f32 1.0, %v3362_v54 }
 0x1bc   : > { %v3366_v51 = vpop.eup %3365  ;;  %3375 = vrcp.f32 %v2486_v11  ;;  %v2500_v21 = vadd.f32 1.0, %v3364_v53 }
 0x1bd   : > { %v3368_v20 = vpop.eup %3367  ;;  %3377 = vrcp.f32 %v2484_v40  ;;  %v2487_v36 = vadd.f32 1.0, %v3366_v51 }
 0x1be   : > { %v3370_v46 = vpop.eup %3369  ;;  %3379 = vrcp.f32 %v2500_v21  ;;  %v2503_v52 = vadd.f32 1.0, %v3368_v20 }
 0x1bf   : > { %v3372_v15 = vpop.eup %3371  ;;  %3381 = vrcp.f32 %v2487_v36  ;;  %v2485_v45 = vadd.f32 1.0, %v3370_v46 }
 0x1c0   : > { %3383 = vrcp.f32 %v2503_v52  ;;  %v2501_v26 = vadd.f32 1.0, %v3372_v15 }
 0x1c1   : > { %3385 = vrcp.f32 %v2485_v45 }
 0x1c2   : > { %3387 = vrcp.f32 %v2501_v26 }
 0x1c5   : > { %v3374_v9 = vpop.eup %3373 }
 0x1c6   : > { %v3376_v39 = vpop.eup %3375  ;;  %v2598_v35 = vmul.f32 %v3374_v9, %v2334_v41 }
 0x1c7   : > { %v3378_v42 = vpop.eup %3377  ;;  %v2582_v50 = vmul.f32 %v3376_v39, %v2270_v17 }
 0x1c8   : > { %v3380_v12 = vpop.eup %3379  ;;  %2630 = vst.msk [vmem:[%s4889_s6 + $0x90] sm:$0xff] %vm2130_vm10, %v2598_v35  ;;  %v2580_v59 = vmul.f32 %v3378_v42, %v2262_v6 }
 0x1c9   : > { %v3382_v30 = vpop.eup %3381  ;;  %2614 = vst.msk [vmem:[%s4889_s6 + $0x10] sm:$0xff] %vm2130_vm10, %v2582_v50  ;;  %v2596_v34 = vmul.f32 %v3380_v12, %v4872_v25 }
 0x1ca   : > { %v3384_v22 = vpop.eup %3383  ;;  %2612 = vst.msk [vmem:[%s4889_s6] sm:$0xff] %vm2130_vm10, %v2580_v59  ;;  %v2583_v56 = vmul.f32 %v3382_v30, %v2273_v28 }
 0x1cb   : > { %v3386_v8 = vpop.eup %3385  ;;  %2628 = vst.msk [vmem:[%s4889_s6 + $0x80] sm:$0xff] %vm2130_vm10, %v2596_v34  ;;  %v2599_v38 = vmul.f32 %v3384_v22, %v4876_v5 }
 0x1cc   : > { %v3388_v1 = vpop.eup %3387  ;;  %2615 = vst.msk [vmem:[%s4889_s6 + $0x18] sm:$0xff] %vm2130_vm10, %v2583_v56  ;;  %v2581_v62 = vmul.f32 %v3386_v8, %v2265_v44 }
 0x1cd   : > { %2631 = vst.msk [vmem:[%s4889_s6 + $0x98] sm:$0xff] %vm2130_vm10, %v2599_v38  ;;  %v2597_v49 = vmul.f32 %v3388_v1, %v4881_v29 }
 0x1ce   : > { %2613 = vst.msk [vmem:[%s4889_s6 + $0x8] sm:$0xff] %vm2130_vm10, %v2581_v62 }
 0x1cf   : > { %2629 = vst.msk [vmem:[%s4889_s6 + $0x88] sm:$0xff] %vm2130_vm10, %v2597_v49 }
 0x1e9   : > { %v3127_v58 = vpop.f32.mrb[4].mxu1 }
 0x1ea   : > { %v3111_v63 = vpop.f32.mrb[4].mxu0  ;;  %v2350_v16 = vadd.f32 %v3127_v58, %v4867_v19  ;;  %v2341_v14 = vpop.f32.mrb[5].mxu1 }
 0x1eb   : > { %v2286_v43 = vadd.f32 %v3111_v63, %v4867_v19  ;;  %v2277_v2 = vpop.f32.mrb[5].mxu0  ;;  %v2342_v55 = vadd.f32 %v4867_v19, %v2341_v14  ;;  %v3128_v23 = vpop.f32.mrb[6].mxu1 }
 0x1ec   : > { %v3064_v31 = vmul.f32 -1.442695, %v2350_v16  ;;  %v2278_v41 = vadd.f32 %v4867_v19, %v2277_v2  ;;  %v3112_v48 = vpop.f32.mrb[6].mxu0  ;;  %v2353_v17 = vadd.f32 %v3128_v23, %v4867_v19  ;;  %v2344_v10 = vpop.f32.mrb[7].mxu1 }
 0x1ed   : > { %v3048_v25 = vmul.f32 -1.442695, %v2286_v43  ;;  %v3062_v7 = vmul.f32 -1.442695, %v2342_v55  ;;  %v2289_v18 = vadd.f32 %v3112_v48, %v4867_v19  ;;  %v2280_v6 = vpop.f32.mrb[7].mxu0  ;;  %v2345_v61 = vadd.f32 %v4867_v19, %v2344_v10 }
 0x1ee   : > { %3389 = vpow2.f32 %v3064_v31  ;;  %v3046_v5 = vmul.f32 -1.442695, %v2278_v41  ;;  %v2281_v13 = vadd.f32 %v4867_v19, %v2280_v6  ;;  %v3065_v37 = vmul.f32 -1.442695, %v2353_v17 }
 0x1ef   : > { %3391 = vpow2.f32 %v3048_v25  ;;  %v3049_v4 = vmul.f32 -1.442695, %v2289_v18  ;;  %v3063_v3 = vmul.f32 -1.442695, %v2345_v61 }
 0x1f0   : > { %3393 = vpow2.f32 %v3046_v5  ;;  %v3047_v28 = vmul.f32 -1.442695, %v2281_v13 }
 0x1f1   : > { %3395 = vpow2.f32 %v3062_v7 }
 0x1f2   : > { %3397 = vpow2.f32 %v3049_v4 }
 0x1f3   : > { %3399 = vpow2.f32 %v3065_v37 }
 0x1f4   : > { %3401 = vpow2.f32 %v3047_v28 }
 0x1f5   : > { %3403 = vpow2.f32 %v3063_v3 }
 0x1f8   : > { %v3390_v29 = vpop.eup %3389 }
 0x1f9   : > { %v3392_v32 = vpop.eup %3391  ;;  %v2506_v44 = vadd.f32 1.0, %v3390_v29 }
 0x1fa   : > { %v3394_v47 = vpop.eup %3393  ;;  %v2490_v0 = vadd.f32 1.0, %v3392_v32 }
 0x1fb   : > { %v3396_v57 = vpop.eup %3395  ;;  %3405 = vrcp.f32 %v2506_v44  ;;  %v2488_v33 = vadd.f32 1.0, %v3394_v47 }
 0x1fc   : > { %v3398_v60 = vpop.eup %3397  ;;  %3407 = vrcp.f32 %v2490_v0  ;;  %v2504_v24 = vadd.f32 1.0, %v3396_v57 }
 0x1fd   : > { %v3400_v27 = vpop.eup %3399  ;;  %3409 = vrcp.f32 %v2488_v33  ;;  %v2491_v54 = vadd.f32 1.0, %v3398_v60 }
 0x1fe   : > { %v3402_v11 = vpop.eup %3401  ;;  %3411 = vrcp.f32 %v2504_v24  ;;  %v2507_v53 = vadd.f32 1.0, %v3400_v27 }
 0x1ff   : > { %v3404_v40 = vpop.eup %3403  ;;  %3413 = vrcp.f32 %v2491_v54  ;;  %v2489_v51 = vadd.f32 1.0, %v3402_v11 }
 0x200   : > { %3415 = vrcp.f32 %v2507_v53  ;;  %v2505_v21 = vadd.f32 1.0, %v3404_v40 }
 0x201   : > { %3417 = vrcp.f32 %v2489_v51 }
 0x202   : > { %3419 = vrcp.f32 %v2505_v21 }
 0x205   : > { %v3406_v20 = vpop.eup %3405 }
 0x206   : > { %v3408_v36 = vpop.eup %3407  ;;  %v2602_v46 = vmul.f32 %v3406_v20, %v2350_v16 }
 0x207   : > { %v3410_v52 = vpop.eup %3409  ;;  %v2586_v15 = vmul.f32 %v3408_v36, %v2286_v43 }
 0x208   : > { %v3412_v45 = vpop.eup %3411  ;;  %2634 = vst.msk [vmem:[%s4889_s6 + $0xb0] sm:$0xff] %vm2130_vm10, %v2602_v46  ;;  %v2584_v26 = vmul.f32 %v3410_v52, %v2278_v41 }
 0x209   : > { %v3414_v9 = vpop.eup %3413  ;;  %2618 = vst.msk [vmem:[%s4889_s6 + $0x30] sm:$0xff] %vm2130_vm10, %v2586_v15  ;;  %v2600_v39 = vmul.f32 %v3412_v45, %v2342_v55 }
 0x20a   : > { %v3416_v35 = vpop.eup %3415  ;;  %2616 = vst.msk [vmem:[%s4889_s6 + $0x20] sm:$0xff] %vm2130_vm10, %v2584_v26  ;;  %v2587_v42 = vmul.f32 %v3414_v9, %v2289_v18 }
 0x20b   : > { %v3418_v50 = vpop.eup %3417  ;;  %2632 = vst.msk [vmem:[%s4889_s6 + $0xa0] sm:$0xff] %vm2130_vm10, %v2600_v39  ;;  %v2603_v12 = vmul.f32 %v3416_v35, %v2353_v17 }
 0x20c   : > { %v3420_v59 = vpop.eup %3419  ;;  %2619 = vst.msk [vmem:[%s4889_s6 + $0x38] sm:$0xff] %vm2130_vm10, %v2587_v42  ;;  %v2585_v30 = vmul.f32 %v3418_v50, %v2281_v13 }
 0x20d   : > { %2635 = vst.msk [vmem:[%s4889_s6 + $0xb8] sm:$0xff] %vm2130_vm10, %v2603_v12  ;;  %v2601_v34 = vmul.f32 %v3420_v59, %v2345_v61 }
 0x20e   : > { %2617 = vst.msk [vmem:[%s4889_s6 + $0x28] sm:$0xff] %vm2130_vm10, %v2585_v30 }
 0x20f   : > { %2633 = vst.msk [vmem:[%s4889_s6 + $0xa8] sm:$0xff] %vm2130_vm10, %v2601_v34 }
 0x229   : > { %v3131_v22 = vpop.f32.mrb[8].mxu1 }
 0x22a   : > { %v3115_v56 = vpop.f32.mrb[8].mxu0  ;;  %v2366_v8 = vadd.f32 %v3131_v22, %v4867_v19  ;;  %v2357_v38 = vpop.f32.mrb[9].mxu1 }
 0x22b   : > { %v2302_v1 = vadd.f32 %v3115_v56, %v4867_v19  ;;  %v2293_v62 = vpop.f32.mrb[9].mxu0  ;;  %v2358_v49 = vadd.f32 %v4867_v19, %v2357_v38  ;;  %v3132_v58 = vpop.f32.mrb[10].mxu1 }
 0x22c   : > { %v3068_v63 = vmul.f32 -1.442695, %v2366_v8  ;;  %v2294_v16 = vadd.f32 %v4867_v19, %v2293_v62  ;;  %v3116_v14 = vpop.f32.mrb[10].mxu0  ;;  %v2369_v43 = vadd.f32 %v3132_v58, %v4867_v19  ;;  %v2360_v2 = vpop.f32.mrb[11].mxu1 }
 0x22d   : > { %v3052_v55 = vmul.f32 -1.442695, %v2302_v1  ;;  %v3066_v23 = vmul.f32 -1.442695, %v2358_v49  ;;  %v2305_v31 = vadd.f32 %v3116_v14, %v4867_v19  ;;  %v2296_v41 = vpop.f32.mrb[11].mxu0  ;;  %v2361_v48 = vadd.f32 %v4867_v19, %v2360_v2 }
 0x22e   : > { %3421 = vpow2.f32 %v3068_v63  ;;  %v3050_v17 = vmul.f32 -1.442695, %v2294_v16  ;;  %v2297_v10 = vadd.f32 %v4867_v19, %v2296_v41  ;;  %v3069_v7 = vmul.f32 -1.442695, %v2369_v43 }
 0x22f   : > { %3423 = vpow2.f32 %v3052_v55  ;;  %v3053_v25 = vmul.f32 -1.442695, %v2305_v31  ;;  %v3067_v6 = vmul.f32 -1.442695, %v2361_v48 }
 0x230   : > { %3425 = vpow2.f32 %v3050_v17  ;;  %v3051_v18 = vmul.f32 -1.442695, %v2297_v10 }
 0x231   : > { %3427 = vpow2.f32 %v3066_v23 }
 0x232   : > { %3429 = vpow2.f32 %v3053_v25 }
 0x233   : > { %3431 = vpow2.f32 %v3069_v7 }
 0x234   : > { %3433 = vpow2.f32 %v3051_v18 }
 0x235   : > { %3435 = vpow2.f32 %v3067_v6 }
 0x238   : > { %v3422_v61 = vpop.eup %3421 }
 0x239   : > { %v3424_v5 = vpop.eup %3423  ;;  %v2510_v13 = vadd.f32 1.0, %v3422_v61 }
 0x23a   : > { %v3426_v4 = vpop.eup %3425  ;;  %v2494_v37 = vadd.f32 1.0, %v3424_v5 }
 0x23b   : > { %v3428_v28 = vpop.eup %3427  ;;  %3437 = vrcp.f32 %v2510_v13  ;;  %v2492_v3 = vadd.f32 1.0, %v3426_v4 }
 0x23c   : > { %v3430_v29 = vpop.eup %3429  ;;  %3439 = vrcp.f32 %v2494_v37  ;;  %v2508_v32 = vadd.f32 1.0, %v3428_v28 }
 0x23d   : > { %v3432_v44 = vpop.eup %3431  ;;  %3441 = vrcp.f32 %v2492_v3  ;;  %v2495_v47 = vadd.f32 1.0, %v3430_v29 }
 0x23e   : > { %v3434_v0 = vpop.eup %3433  ;;  %3443 = vrcp.f32 %v2508_v32  ;;  %v2511_v57 = vadd.f32 1.0, %v3432_v44 }
 0x23f   : > { %v3436_v33 = vpop.eup %3435  ;;  %3445 = vrcp.f32 %v2495_v47  ;;  %v2493_v60 = vadd.f32 1.0, %v3434_v0 }
 0x240   : > { %3447 = vrcp.f32 %v2511_v57  ;;  %v2509_v24 = vadd.f32 1.0, %v3436_v33 }
 0x241   : > { %3449 = vrcp.f32 %v2493_v60 }
 0x242   : > { %3451 = vrcp.f32 %v2509_v24 }
 0x245   : > { %v3438_v27 = vpop.eup %3437 }
 0x246   : > { %v3440_v54 = vpop.eup %3439  ;;  %v2606_v11 = vmul.f32 %v3438_v27, %v2366_v8 }
 0x247   : > { %v3442_v53 = vpop.eup %3441  ;;  %v2590_v40 = vmul.f32 %v3440_v54, %v2302_v1 }
 0x248   : > { %v3444_v51 = vpop.eup %3443  ;;  %2638 = vst.msk [vmem:[%s4889_s6 + $0xd0] sm:$0xff] %vm2130_vm10, %v2606_v11  ;;  %v2588_v21 = vmul.f32 %v3442_v53, %v2294_v16 }
 0x249   : > { %v3446_v20 = vpop.eup %3445  ;;  %2622 = vst.msk [vmem:[%s4889_s6 + $0x50] sm:$0xff] %vm2130_vm10, %v2590_v40  ;;  %v2604_v36 = vmul.f32 %v3444_v51, %v2358_v49 }
 0x24a   : > { %v3448_v46 = vpop.eup %3447  ;;  %2620 = vst.msk [vmem:[%s4889_s6 + $0x40] sm:$0xff] %vm2130_vm10, %v2588_v21  ;;  %v2591_v52 = vmul.f32 %v3446_v20, %v2305_v31 }
 0x24b   : > { %v3450_v15 = vpop.eup %3449  ;;  %2636 = vst.msk [vmem:[%s4889_s6 + $0xc0] sm:$0xff] %vm2130_vm10, %v2604_v36  ;;  %v2607_v45 = vmul.f32 %v3448_v46, %v2369_v43 }
 0x24c   : > { %v3452_v26 = vpop.eup %3451  ;;  %2623 = vst.msk [vmem:[%s4889_s6 + $0x58] sm:$0xff] %vm2130_vm10, %v2591_v52  ;;  %v2589_v9 = vmul.f32 %v3450_v15, %v2297_v10 }
 0x24d   : > { %2639 = vst.msk [vmem:[%s4889_s6 + $0xd8] sm:$0xff] %vm2130_vm10, %v2607_v45  ;;  %v2605_v39 = vmul.f32 %v3452_v26, %v2361_v48 }
 0x24e   : > { %2621 = vst.msk [vmem:[%s4889_s6 + $0x48] sm:$0xff] %vm2130_vm10, %v2589_v9 }
 0x24f   : > { %2637 = vst.msk [vmem:[%s4889_s6 + $0xc8] sm:$0xff] %vm2130_vm10, %v2605_v39 }
 0x265   : > { %v3135_v35 = vpop.f32.mrb[12].mxu1 }
 0x266   : > { %v3119_v42 = vpop.f32.mrb[12].mxu0  ;;  %v2382_v50 = vadd.f32 %v3135_v35, %v4867_v19  ;;  %v2373_v12 = vpop.f32.mrb[13].mxu1 }
 0x267   : > { %v2318_v59 = vadd.f32 %v3119_v42, %v4867_v19  ;;  %v2309_v30 = vpop.f32.mrb[13].mxu0  ;;  %v2374_v34 = vadd.f32 %v4867_v19, %v2373_v12  ;;  %v3136_v22 = vpop.f32.mrb[14].mxu1 }
 0x268   : > { %v3072_v56 = vmul.f32 -1.442695, %v2382_v50  ;;  %v2310_v8 = vadd.f32 %v4867_v19, %v2309_v30  ;;  %v3120_v38 = vpop.f32.mrb[14].mxu0  ;;  %v4963_v1 = vadd.f32 %v3136_v22, %v4867_v19  ;;  %v2376_v62 = vpop.f32.mrb[15].mxu1 }
 0x269   : > { %v3056_v49 = vmul.f32 -1.442695, %v2318_v59  ;;  %v3070_v58 = vmul.f32 -1.442695, %v2374_v34  ;;  %v2321_v63 = vadd.f32 %v3120_v38, %v4867_v19  ;;  %v2312_v16 = vpop.f32.mrb[15].mxu0  ;;  %v4967_v14 = vadd.f32 %v4867_v19, %v2376_v62 }
 0x26a   : > { %3453 = vpow2.f32 %v3072_v56  ;;  %v3054_v43 = vmul.f32 -1.442695, %v2310_v8  ;;  %v2313_v2 = vadd.f32 %v4867_v19, %v2312_v16  ;;  %v3073_v23 = vmul.f32 -1.442695, %v4963_v1 }
 0x26b   : > { %3455 = vpow2.f32 %v3056_v49  ;;  %v3057_v55 = vmul.f32 -1.442695, %v2321_v63  ;;  %v3071_v41 = vmul.f32 -1.442695, %v4967_v14 }
 0x26c   : > { %3457 = vpow2.f32 %v3054_v43  ;;  %v3055_v31 = vmul.f32 -1.442695, %v2313_v2 }
 0x26d   : > { %3459 = vpow2.f32 %v3070_v58 }
 0x26e   : > { %3461 = vpow2.f32 %v3057_v55 }
 0x26f   : > { %3463 = vpow2.f32 %v3073_v23 }
 0x270   : > { %3465 = vpow2.f32 %v3055_v31 }
 0x271   : > { %3467 = vpow2.f32 %v3071_v41 }
 0x274   : > { %v3454_v48 = vpop.eup %3453 }
 0x275   : > { %v3456_v17 = vpop.eup %3455  ;;  %v2514_v10 = vadd.f32 1.0, %v3454_v48 }
 0x276   : > { %v3458_v25 = vpop.eup %3457  ;;  %v2498_v7 = vadd.f32 1.0, %v3456_v17 }
 0x277   : > { %v3460_v18 = vpop.eup %3459  ;;  %3469 = vrcp.f32 %v2514_v10  ;;  %v2496_v19 = vadd.f32 1.0, %v3458_v25 }
 0x278   : > { %v3462_v6 = vpop.eup %3461  ;;  %3471 = vrcp.f32 %v2498_v7  ;;  %v2512_v61 = vadd.f32 1.0, %v3460_v18 }
 0x279   : > { %v3464_v5 = vpop.eup %3463  ;;  %3473 = vrcp.f32 %v2496_v19  ;;  %v2499_v13 = vadd.f32 1.0, %v3462_v6 }
 0x27a   : > { %v3466_v4 = vpop.eup %3465  ;;  %3475 = vrcp.f32 %v2512_v61  ;;  %v2515_v37 = vadd.f32 1.0, %v3464_v5 }
 0x27b   : > { %v3468_v28 = vpop.eup %3467  ;;  %3477 = vrcp.f32 %v2499_v13  ;;  %v2497_v3 = vadd.f32 1.0, %v3466_v4 }
 0x27c   : > { %3479 = vrcp.f32 %v2515_v37  ;;  %v2513_v29 = vadd.f32 1.0, %v3468_v28 }
 0x27d   : > { %3481 = vrcp.f32 %v2497_v3 }
 0x27e   : > { %3483 = vrcp.f32 %v2513_v29 }
 0x281   : > { %v3470_v32 = vpop.eup %3469 }
 0x282   : > { %v3472_v44 = vpop.eup %3471  ;;  %v2610_v47 = vmul.f32 %v3470_v32, %v2382_v50 }
 0x283   : > { %v3474_v0 = vpop.eup %3473  ;;  %v2594_v57 = vmul.f32 %v3472_v44, %v2318_v59 }
 0x284   : > { %v3476_v33 = vpop.eup %3475  ;;  %2642 = vst.msk [vmem:[%s4889_s6 + $0xf0] sm:$0xff] %vm2130_vm10, %v2610_v47  ;;  %v2592_v60 = vmul.f32 %v3474_v0, %v2310_v8 }
 0x285   : > { %v3478_v24 = vpop.eup %3477  ;;  %2626 = vst.msk [vmem:[%s4889_s6 + $0x70] sm:$0xff] %vm2130_vm10, %v2594_v57  ;;  %v2608_v27 = vmul.f32 %v3476_v33, %v2374_v34 }
 0x286   : > { %v3480_v54 = vpop.eup %3479  ;;  %2624 = vst.msk [vmem:[%s4889_s6 + $0x60] sm:$0xff] %vm2130_vm10, %v2592_v60  ;;  %v2595_v11 = vmul.f32 %v3478_v24, %v2321_v63 }
 0x287   : > { %v3482_v53 = vpop.eup %3481  ;;  %2640 = vst.msk [vmem:[%s4889_s6 + $0xe0] sm:$0xff] %vm2130_vm10, %v2608_v27  ;;  %v2611_v40 = vmul.f32 %v3480_v54, %v4963_v1 }
 0x288   : > { %v3484_v51 = vpop.eup %3483  ;;  %2627 = vst.msk [vmem:[%s4889_s6 + $0x78] sm:$0xff] %vm2130_vm10, %v2595_v11  ;;  %v2593_v21 = vmul.f32 %v3482_v53, %v2313_v2 }
 0x289   : > { %2643 = vst.msk [vmem:[%s4889_s6 + $0xf8] sm:$0xff] %vm2130_vm10, %v2611_v40  ;;  %v2609_v20 = vmul.f32 %v3484_v51, %v4967_v14 }
 0x28a   : > { %2625 = vst.msk [vmem:[%s4889_s6 + $0x68] sm:$0xff] %vm2130_vm10, %v2593_v21 }
 0x28b   : > { %2641 = vst.msk [vmem:[%s4889_s6 + $0xe8] sm:$0xff] %vm2130_vm10, %v2609_v20 }
 0x28c   : > { %3498 = shalt.err (!%p3495_p5)
}
 0x28d   : > { %s3499_s26 = scalar_lea.hbm %s4988_s15, 4096  ;;  %s3503_s29 = scalar_lea.hbm %s5051_s3, 8192 }
 0x28e   : > { %p3500_p6 = scmp.ne.s32.totalorder %s4988_s15, %s3499_s26  ;;  %p3504_p10 = scmp.lt.u32.totalorder %s4988_s15, %s5051_s3 }
 0x28f   : > { %p3505_p11 = scmp.lt.u32.totalorder %s3503_s29, %s3499_s26  ;;  %p3507_p13 = scmp.lt.u32.totalorder %s3499_s26, %s4988_s15 }
 0x290   : > { %p3501_p7 = pnand %p3500_p6, %p3635_p4 }
 0x291   : > { %p3506_p12 = por %p3505_p11, %p3504_p10 }
 0x292   : > { %p3502_p9 = pneg %p3501_p7 }
 0x293   : > { %p3508_p0 = por %p3507_p13, %p3506_p12 }
 0x295   : > { %p3509_p1 = pnand %p3508_p0, %p3502_p9 }
 0x297   : > { %3512 = shalt.err (!%p3509_p1)
}
 0x298   : > { %s3574_s6 = smov 128  }
 0x299   : > { %3146 = dma.vmem_to_hbm [thread:$0]  (%p3635_p4), %s4993_s8, 4096, %s4988_s15, %s5001_s11, %s3574_s6, %s3574_s6, %s3566_s5  }
 0x29a PF: > { %p3152_p2 = scmp.ge.s32.totalorder %s3563_s17, 2  ;;  %s2676_s7 = sand.u32 1, %s3543_s12  }
 0x29b   : > { %s2677_s9 = scalar_lea.sflag [#allocation3], %s2676_s7 }
 0x29c   : > { %p3149_p3 = pnand %p3152_p2, %p3642_p8 }
 0x29e   : > { %3538 = dma.done.wait (!%p3149_p3), %s2677_s9, 4096  }
 0x29f   : > { %3540 = vsyncadd (!%p3149_p3), %s2677_s9, 4294963200  ;;  %s16_s17 = sadd.s32 1, %s3563_s17   ;;  %s5066_s12 = smov %s3547_s13 }
 0x2a0   : > { %p13_p5 = scmp.ge.s32.totalorder %s16_s17, 4   ;;  %s5067_s13 = smov %s3551_s14 }
 0x2a1   : > { %s5068_s14 = smov %s3648_s25  ;;  %s5069_s15 = smov %s3559_s16 }
 0x2a2   : > { %s5070_s16 = smov %s5072_s20  ;;  %15 = sbr.rel (!%p13_p5) target bundleno = 4 (0x4), region = 69 }
 0x2a9   :  { %2682 = vsyncpa [#allocation3], 1 }
 0x2aa   :  { %2684 = vsyncpa [#allocation3 + $0x1], 1 }

// kernel: tpu_custom_call.1
= control target key start
LH: loop header
LB: loop body
LE: loop exit
PB: predicated region body
PF: predicated region fallthrough
CT: control target
= control target key end

     0   :  { %8 = vsyncpa [#allocation4], 0  ;;  %s9222_s0 = inlined_call_operand.vmem [shape: bf16[2,1,18,18,4], index: 0, kind: input, shape index: {}]   ;;  %s9223_s1 = inlined_call_operand.vmem [shape: bf16[36,32], index: 1, kind: input, shape index: {}]   ;;  %s9224_s2 = inlined_call_operand.vmem [shape: f32[1,32], index: 2, kind: input, shape index: {}]   ;;  %s9225_s3 = inlined_call_operand.hbm [shape: f32[2,16,16,32], index: 3, kind: output, shape index: {}]  }
   0x1   :  { %10 = vsyncpa [#allocation4 + $0x1], 0  ;;  %s7367_s12 = smov 0   ;;  %s7369_s13 = smov 0  }
   0x2   :  { %s7371_s14 = smov 0   ;;  %s7373_s15 = smov 0  }
   0x3   :  { %s7375_s16 = smov 0   ;;  %s7377_s17 = smov 0  }
   0x4 LB: > { %s5913_s18 = sadd.s32 4294967295, %s7342_s17   ;;  %s5914_s19 = sadd.s32 4294967294, %s7342_s17   ;;  %s7342_s17 = sphi %s7377_s17, %s16_s17   ;;  %s7338_s16 = sphi %s7375_s16, %s9236_s16   ;;  %s7334_s15 = sphi %s7373_s15, %s9235_s15   ;;  %s7330_s14 = sphi %s7371_s14, %s9234_s14   ;;  %s7326_s13 = sphi %s7369_s13, %s9233_s13   ;;  %s7322_s12 = sphi %s7367_s12, %s9232_s12  }
   0x5   : > { %s28_s20 = sadd.s32 1, %s7338_s16  ;;  %s107_s21 = sadd.s32 1, %s7330_s14 }
   0x6   : > { %p30_p0 = scmp.ge.s32.totalorder %s28_s20, 2  ;;  %p117_p1 = scmp.ne.s32.totalorder %s7330_s14, %s7326_s13 }
   0x7   : > { %p118_p2 = scmp.eq.s32.totalorder %s5913_s18, 1  ;;  %p123_p3 = scmp.ne.s32.totalorder %s7326_s13, %s7322_s12 }
   0x8   : > { %s9238_s20 = smov (%p30_p0, %s28_s20), 0  ;;  %p124_p5 = scmp.eq.s32.totalorder %s5914_s19, 1 }
   0x9   : > { %p7407_p4 = por %p118_p2, %p117_p1  ;;  %s102_s23 = ssub.s32 %s7338_s16, %s9238_s20 }
   0xa   : > { %p5917_p6 = scmp.ge.s32.totalorder %s7342_s17, 1  ;;  %p105_p7 = scmp.eq.s32.totalorder %s102_s23, 0 }
   0xb   : > { %p7414_p8 = por %p124_p5, %p123_p3  ;;  %p160_p9 = scmp.lt.s32.totalorder %s7342_s17, 3 }
   0xc   : > { %s7420_s25 = scalar_select %p105_p7, %s7330_s14, %s107_s21  }
   0xd   : > { %p161_p10 = pnand %p5917_p6, %p160_p9 }
   0xe   : > { %v231_v0 = vld [vmem:[%s9223_s1] sm:$0x3] (!%p161_p10)  ;;  %vm361_vm0 = vcmask (!%p161_p10), 1041408   ;;  %p188_p11 = scmp.lt.s32.totalorder (!%p161_p10), %s7334_s15, 1  ;;  %v1566_v3 = vld [vmem:[%s9223_s1 + $0x4] sm:$0x3] (!%p161_p10) }
   0xf   : > { %164 = sbr.rel (%p161_p10) target bundleno = 623 (0x26f), region = 32  ;;  %7017 = vmatprep.subr.msk.bf16.mxu1 (!%p161_p10), %vm361_vm0, %v231_v0  ;;  %v363_v1 = vsel (!%p161_p10), %vm361_vm0, %v231_v0, 0  ;;  %v7085_v2 = vld [vmem:[%s9223_s1] ss:$0 sps:$4 sm:$0xcc] (!%p161_p10)   ;;  %7016 = vmatprep.subr.msk.bf16.mxu0 (!%p161_p10), %vm361_vm0, %v231_v0  ;;  %vm312_vm1 = vcmask (!%p161_p10), 31744  }
  0x10   : > { %7015 = vmatpush3.bf16.msra.mxu1 (!%p161_p10), %v363_v1  ;;  %6709 = vmatpush3.bf16.msra.mxu0 (!%p161_p10), %v363_v1  ;;  %v1046_v4 = vrot.slane (!%p161_p10), %v7085_v2, 2  ;;  %v7101_v5 = vld [vmem:[%s9223_s1 + $0x4] ss:$0 sps:$4 sm:$0xcc] (!%p161_p10)   ;;  %v2781_v11 = vld [vmem:[%s9223_s1 + $0x8] sm:$0x3] (!%p161_p10) }
  0x11   : > { %7019 = vmatprep.subr.msk.bf16.mxu0 (!%p161_p10), %vm361_vm0, %v1566_v3  ;;  %v2040_v9 = vrot.slane (!%p161_p10), %v7101_v5, 2  ;;  %v1664_v13 = vsel (!%p161_p10), %vm361_vm0, %v1566_v3, 0  ;;  %v7464_v15 = vld [vmem:[%s9223_s1 + $0x8] ss:$0 sps:$4 sm:$0xcc] (!%p161_p10)   ;;  %vm1451_vm3 = vcmask (!%p161_p10), 1042432  }
  0x12   : > { %7018 = vmatprep.subr.msk.bf16.mxu1 (!%p161_p10), %vm361_vm0, %v1046_v4  ;;  %v1096_v7 = vsel (!%p161_p10), %vm361_vm0, %v1046_v4, 0  ;;  %vm607_vm2 = vsmask.f32 (!%p161_p10), 3328  ;;  %v3398_v21 = vrot.slane (!%p161_p10), %v7464_v15, 2  ;;  %vm608_vm4 = vsmask.f32 (!%p161_p10), 7440 }
  0x13   : > { %vm1452_vm5 = vcmask (!%p161_p10), 1046532   ;;  %v7479_v22 = vsel (!%p161_p10), %vm361_vm0, %v2781_v11, 0  ;;  %v7484_v24 = vsel (!%p161_p10), %vm361_vm0, %v2040_v9, 0  ;;  %vm7515_vm7 = vmor (!%p161_p10), %vm607_vm2, %vm608_vm4  ;;  %vm526_vm8 = vcmask (!%p161_p10), 261120   ;;  %s185_s7 = sand.u32 (!%p161_p10), 1, %s7326_s13   ;;  %s6554_s10 = sshll.u32 (!%p161_p10), %s7334_s15, 12 }
  0x14   : > { %v7491_v27 = vsel (!%p161_p10), %vm361_vm0, %v3398_v21, 0  ;;  %vm7508_vm6 = vmor (!%p161_p10), %vm1451_vm3, %vm1452_vm5  ;;  %s8959_s8 = sshll.u32 (!%p161_p10), %s185_s7, 8  ;;  %s9164_s21 = scalar_lea.hbm (!%p161_p10), %s9225_s3, %s6554_s10 }
  0x15   : > { %s8988_s9 = scalar_lea.vmem (!%p161_p10), [#allocation3], %s8959_s8  ;;  %s7344_s26 = smov (!%p161_p10), [#allocation3]  }
  0x16   : > { %s189_s30 = scalar_select %p188_p11, %s7334_s15, 1 }
  0x17   : > { %s9176_s15 = scalar_lea.sflag [#allocation4], %s185_s7  ;;  %s7268_s27 = sshll.u32 %s7344_s26, 4  ;;  %s7269_s27 = int_to_ptr.vmem [resolvable:$false] %s7268_s27 }
  0x18   : > { %s7026_s6 = smul.u32 216, %s189_s30  ;;  %s7270_s28 = scalar_lea.vmem %s7269_s27, 8192 }
  0x1a   : > { %s7444_s11 = scalar_lea.vmem %s9222_s0, %s7026_s6 }
  0x1b   : > { %v7084_v6 = vld [vmem:[%s7444_s11 + $0x60] sm:$0xff]   ;;  %v7086_v8 = vld [vmem:[%s7444_s11 + $0x6c] sm:$0xff]   ;;  %v7089_v14 = vld [vmem:[%s7444_s11 + $0x78] sm:$0xff]  }
  0x1c   : > { %6726 = vmatprep.mubr.msk.bf16.mxu1 %vm312_vm1, %v7084_v6  ;;  %v7087_v10 = vld [vmem:[%s7444_s11] sm:$0xff]   ;;  %v7088_v12 = vld [vmem:[%s7444_s11 + $0xc] sm:$0xff]   ;;  %v7091_v16 = vld [vmem:[%s7444_s11 + $0x18] sm:$0xff]  }
  0x1d   : > { %6727 = vmatmul.mubr.msk.bf16.vlgmr.msra.gmra.mrb[0].mxu1 %vm312_vm1, %v7086_v8  ;;  %6710 = vmatprep.mubr.msk.bf16.mxu0 %vm312_vm1, %v7087_v10  ;;  %v7090_v17 = vld [vmem:[%s7444_s11 + $0x84] sm:$0xff]   ;;  %v7093_v18 = vld [vmem:[%s7444_s11 + $0x90] sm:$0xff]   ;;  %v7094_v23 = vld [vmem:[%s7444_s11 + $0x9c] sm:$0xff]  }
  0x1e   : > { %6743 = vmatpush3.bf16.msra.mxu1 %v1096_v7  ;;  %6711 = vmatmul.mubr.msk.bf16.vlgmr.msra.gmra.mrb[0].mxu0 %vm312_vm1, %v7088_v12  ;;  %v7092_v19 = vld [vmem:[%s7444_s11 + $0x24] sm:$0xff]   ;;  %v7095_v20 = vld [vmem:[%s7444_s11 + $0x30] sm:$0xff]   ;;  %v7096_v25 = vld [vmem:[%s7444_s11 + $0x3c] sm:$0xff]  }
  0x1f   : > { %7020 = vmatprep.subr.msk.bf16.mxu1 %vm361_vm0, %v2040_v9  ;;  %6730 = vmatprep.mubr.msk.bf16.mxu1 %vm312_vm1, %v7089_v14  ;;  %v7097_v26 = vld [vmem:[%s7444_s11 + $0xa8] sm:$0xff]   ;;  %v559_v29 = vld [vmem:[%s7444_s11] sm:$0xf]  ;;  %v560_v30 = vld [vmem:[%s7444_s11 + $0x4] sm:$0xf] }
  0x20   : > { %6777 = vmatpush3.bf16.msra.mxu0 %v1664_v13  ;;  %6714 = vmatprep.mubr.msk.bf16.mxu0 %vm312_vm1, %v7091_v16  ;;  %v7099_v28 = vld [vmem:[%s7444_s11 + $0x48] sm:$0xff]   ;;  %v611_v32 = vshrl.u32 %v559_v29, 16  ;;  %v614_v33 = vshll.u32 %v559_v29, 16  ;;  %v620_v34 = vshll.u32 %v560_v30, 16  ;;  %v624_v35 = vshrl.u32 %v560_v30, 16  ;;  %v7098_v63 = vld [vmem:[%s7444_s11 + $0xb4] sm:$0xff]  }
  0x21   : > { %7021 = vmatprep.subr.msk.bf16.mxu0 %vm361_vm0, %v2781_v11  ;;  %v561_v31 = vld [vmem:[%s7444_s11 + $0x8] sm:$0x1]  ;;  %v562_v36 = vld [vmem:[%s7444_s11 + $0xc] sm:$0xf]  ;;  %v563_v38 = vld [vmem:[%s7444_s11 + $0x10] sm:$0xf] }
  0x22   : > { %v630_v37 = vshll.u32 %v561_v31, 16  ;;  %v564_v39 = vld [vmem:[%s7444_s11 + $0x14] sm:$0x1]  ;;  %v635_v40 = vshrl.u32 %v562_v36, 16  ;;  %v613_v41 = vrot.slane %v611_v32, 4  ;;  %v616_v42 = vrot.slane %v614_v33, 5 }
  0x23   : > { %v622_v43 = vrot.slane %v620_v34, 5  ;;  %v626_v44 = vrot.slane %v624_v35, 4  ;;  %v1355_v45 = vld [vmem:[%s7444_s11] sm:$0xe]  ;;  %v638_v48 = vshll.u32 %v562_v36, 16  ;;  %v644_v49 = vshll.u32 %v563_v38, 16 }
  0x24   : > { %v632_v46 = vrot.slane %v630_v37, 5  ;;  %v637_v47 = vrot.slane %v635_v40, 4  ;;  %v1356_v50 = vld [vmem:[%s7444_s11 + $0x4] sm:$0xf]  ;;  %v617_v51 = vor.u32 %v616_v42, %v613_v41  ;;  %v648_v53 = vshrl.u32 %v563_v38, 16  ;;  %v7100_v9 = vld [vmem:[%s7444_s11 + $0x54] sm:$0xff]  }
  0x25   : > { %6731 = vmatmul.mubr.msk.bf16.gmra.mrb[4].mxu1 %vm312_vm1, %v7090_v17  ;;  %v627_v52 = vor.u32 %v626_v44, %v622_v43  ;;  %v654_v54 = vshll.u32 %v564_v39, 16  ;;  %v1357_v55 = vld [vmem:[%s7444_s11 + $0x8] sm:$0x1]  ;;  %v640_v58 = vrot.slane %v638_v48, 5  ;;  %v646_v59 = vrot.slane %v644_v49, 5 }
  0x26   : > { %6734 = vmatprep.mubr.msk.bf16.mxu1 %vm312_vm1, %v7093_v18  ;;  %6715 = vmatmul.mubr.msk.bf16.gmra.mrb[4].mxu0 %vm312_vm1, %v7092_v19  ;;  %v5985_v60 = vrot.slane %v1355_v45, 9  ;;  %v1456_v61 = vrot.slane %v1356_v50, 5  ;;  %v565_v62 = vld [vmem:[%s7444_s11 + $0x18] sm:$0xf]  ;;  %v618_v0 = vrot.slane %v617_v51, 4  ;;  %v650_v2 = vrot.slane %v648_v53, 4 }
  0x27   : > { %6718 = vmatprep.mubr.msk.bf16.mxu0 %vm312_vm1, %v7095_v20  ;;  %v628_v1 = vrot.slane %v627_v52, 4  ;;  %v656_v3 = vrot.slane %v654_v54, 5  ;;  %v641_v4 = vor.u32 %v640_v58, %v637_v47  ;;  %v1459_v7 = vrot.slane %v1357_v55, 5  ;;  %v566_v8 = vld [vmem:[%s7444_s11 + $0x1c] sm:$0xf] }
  0x28   : > { %v1457_v5 = vsel %vm7508_vm6, %v5985_v60, %v1456_v61  ;;  %v1458_v6 = vrot.slane %v1456_v61, 4  ;;  %v623_v10 = vsel %vm7515_vm7, %v618_v0, %v622_v43  ;;  %v651_v12 = vor.u32 %v650_v2, %v646_v59  ;;  %v567_v13 = vld [vmem:[%s7444_s11 + $0x20] sm:$0x1]  ;;  %v1358_v20 = vld [vmem:[%s7444_s11 + $0xc] sm:$0xe] }
  0x29   : > { %v633_v11 = vsel %vm7515_vm7, %v628_v1, %v632_v46  ;;  %v659_v14 = vshrl.u32 %v565_v62, 16  ;;  %v642_v17 = vrot.slane %v641_v4, 4  ;;  %v662_v19 = vshll.u32 %v565_v62, 16  ;;  %v1360_v30 = vld [vmem:[%s7444_s11 + $0x14] sm:$0x1] }
  0x2a   : > { %v5952_v16 = vcombine.low %v623_v10, %v633_v11  ;;  %v1460_v18 = vsel %vm7508_vm6, %v1458_v6, %v1459_v7  ;;  %v668_v29 = vshll.u32 %v566_v8, 16  ;;  %v672_v33 = vshrl.u32 %v566_v8, 16  ;;  %v568_v35 = vld [vmem:[%s7444_s11 + $0x24] sm:$0xf]  ;;  %v569_v40 = vld [vmem:[%s7444_s11 + $0x28] sm:$0xf] }
  0x2b   : > { %v647_v31 = vsel %vm7515_vm7, %v642_v17, %v646_v59  ;;  %v664_v32 = vrot.slane %v662_v19, 5  ;;  %v678_v34 = vshll.u32 %v567_v13, 16  ;;  %v5986_v38 = vrot.slane %v1358_v20, 9  ;;  %v570_v45 = vld [vmem:[%s7444_s11 + $0x2c] sm:$0x1] }
  0x2c   : > { %v670_v37 = vrot.slane %v668_v29, 5  ;;  %v674_v43 = vrot.slane %v672_v33, 4  ;;  %v1466_v48 = vrot.slane %v1360_v30, 5  ;;  %v683_v49 = vshrl.u32 %v568_v35, 16  ;;  %v1361_v50 = vld [vmem:[%s7444_s11 + $0x18] sm:$0xe] }
  0x2d   : > { %6735 = vmatmul.mubr.msk.bf16.gmra.mrb[8].mxu1 %vm312_vm1, %v7094_v23  ;;  %v1359_v23 = vld [vmem:[%s7444_s11 + $0x10] sm:$0xf]  ;;  %v680_v44 = vrot.slane %v678_v34, 5  ;;  %v686_v53 = vshll.u32 %v568_v35, 16  ;;  %v692_v54 = vshll.u32 %v569_v40, 16  ;;  %v696_v60 = vshrl.u32 %v569_v40, 16 }
  0x2e   : > { %6738 = vmatprep.mubr.msk.bf16.mxu1 %vm312_vm1, %v7097_v26  ;;  %6719 = vmatmul.mubr.msk.bf16.gmra.mrb[8].mxu0 %vm312_vm1, %v7096_v25  ;;  %v652_v25 = vrot.slane %v651_v12, 4  ;;  %v6001_v26 = vcombine.low %v1457_v5, %v1460_v18  ;;  %v1463_v39 = vrot.slane %v1359_v23, 5  ;;  %v675_v52 = vor.u32 %v674_v43, %v670_v37  ;;  %v1362_v55 = vld [vmem:[%s7444_s11 + $0x1c] sm:$0xf]  ;;  %v1363_v62 = vld [vmem:[%s7444_s11 + $0x20] sm:$0x1] }
  0x2f   : > { %6722 = vmatprep.mubr.msk.bf16.mxu0 %vm312_vm1, %v7099_v28  ;;  %v661_v28 = vrot.slane %v659_v14, 4  ;;  %v685_v59 = vrot.slane %v683_v49, 4  ;;  %v702_v61 = vshll.u32 %v570_v45, 16  ;;  %v688_v2 = vrot.slane %v686_v53, 5  ;;  %v572_v8 = vld [vmem:[%s7444_s11 + $0x34] sm:$0xf] }
  0x30   : > { %v657_v36 = vsel %vm7515_vm7, %v652_v25, %v656_v3  ;;  %v1464_v46 = vsel %vm7508_vm6, %v5986_v38, %v1463_v39  ;;  %v1465_v47 = vrot.slane %v1463_v39, 4  ;;  %v676_v0 = vrot.slane %v675_v52, 4  ;;  %v571_v3 = vld [vmem:[%s7444_s11 + $0x30] sm:$0xf]  ;;  %v1364_v25 = vld [vmem:[%s7444_s11 + $0x24] sm:$0xe] }
  0x31   : > { %v5953_v41 = vcombine.low %v647_v31, %v657_v36  ;;  %v665_v42 = vor.u32 %v664_v32, %v661_v28  ;;  %v694_v4 = vrot.slane %v692_v54, 5  ;;  %v698_v5 = vrot.slane %v696_v60, 4  ;;  %v1365_v30 = vld [vmem:[%s7444_s11 + $0x28] sm:$0xf]  ;;  %v1366_v33 = vld [vmem:[%s7444_s11 + $0x2c] sm:$0x1] }
  0x32   : > { %v1467_v58 = vsel %vm7508_vm6, %v1465_v47, %v1466_v48  ;;  %v704_v6 = vrot.slane %v702_v61, 5  ;;  %v5987_v7 = vrot.slane %v1361_v50, 9  ;;  %v689_v10 = vor.u32 %v688_v2, %v685_v59  ;;  %v574_v34 = vld [vmem:[%s7444_s11 + $0x3c] sm:$0xf]  ;;  %v575_v39 = vld [vmem:[%s7444_s11 + $0x40] sm:$0xf] }
  0x33   : > { %v666_v51 = vrot.slane %v665_v42, 4  ;;  %v6002_v1 = vcombine.low %v1464_v46, %v1467_v58  ;;  %v1470_v11 = vrot.slane %v1362_v55, 5  ;;  %v1473_v12 = vrot.slane %v1363_v62, 5  ;;  %v1367_v49 = vld [vmem:[%s7444_s11 + $0x30] sm:$0xe] }
  0x34   : > { %v699_v14 = vor.u32 %v698_v5, %v694_v4  ;;  %v707_v17 = vshrl.u32 %v571_v3, 16  ;;  %v710_v18 = vshll.u32 %v571_v3, 16  ;;  %v716_v23 = vshll.u32 %v572_v8, 16  ;;  %v1368_v54 = vld [vmem:[%s7444_s11 + $0x34] sm:$0xf] }
  0x35   : > { %6739 = vmatmul.mubr.msk.bf16.gmra.mrb[12].mxu1 %vm312_vm1, %v7098_v63  ;;  %v671_v63 = vsel %vm7515_vm7, %v666_v51, %v670_v37  ;;  %v1471_v19 = vsel %vm7508_vm6, %v5987_v7, %v1470_v11  ;;  %v1472_v20 = vrot.slane %v1470_v11, 4  ;;  %v720_v15 = vshrl.u32 %v572_v8, 16  ;;  %v1369_v61 = vld [vmem:[%s7444_s11 + $0x38] sm:$0x1]  ;;  %v577_v2 = vld [vmem:[%s7444_s11 + $0x48] sm:$0xf] }
  0x36   : > { %6744 = vmatprep.mubr.msk.bf16.mxu1 %vm312_vm1, %v5952_v16  ;;  %6723 = vmatmul.mubr.msk.bf16.gmra.mrb[12].mxu0 %vm312_vm1, %v7100_v9  ;;  %v681_v9 = vsel %vm7515_vm7, %v676_v0, %v680_v44  ;;  %v573_v16 = vld [vmem:[%s7444_s11 + $0x38] sm:$0x1]  ;;  %v709_v28 = vrot.slane %v707_v17, 4  ;;  %v712_v29 = vrot.slane %v710_v18, 5  ;;  %v718_v31 = vrot.slane %v716_v23, 5 }
  0x37   : > { %6778 = vmatprep.mubr.msk.bf16.mxu0 %vm312_vm1, %v6001_v26  ;;  %v5954_v13 = vcombine.low %v671_v63, %v681_v9  ;;  %v700_v26 = vrot.slane %v699_v14, 4  ;;  %v726_v32 = vshll.u32 %v573_v16, 16  ;;  %v722_v38 = vrot.slane %v720_v15, 4  ;;  %v576_v44 = vld [vmem:[%s7444_s11 + $0x44] sm:$0x1] }
  0x38   : > { %v713_v37 = vor.u32 %v712_v29, %v709_v28  ;;  %v5988_v42 = vrot.slane %v1364_v25, 9  ;;  %v1477_v43 = vrot.slane %v1365_v30, 5  ;;  %v1480_v47 = vrot.slane %v1366_v33, 5  ;;  %v578_v7 = vld [vmem:[%s7444_s11 + $0x4c] sm:$0xf] }
  0x39   : > { %v705_v35 = vsel %vm7515_vm7, %v700_v26, %v704_v6  ;;  %v723_v46 = vor.u32 %v722_v38, %v718_v31  ;;  %v731_v48 = vshrl.u32 %v574_v34, 16  ;;  %v734_v52 = vshll.u32 %v574_v34, 16  ;;  %v579_v14 = vld [vmem:[%s7444_s11 + $0x50] sm:$0x1]  ;;  %v1370_v23 = vld [vmem:[%s7444_s11 + $0x3c] sm:$0xe] }
  0x3a   : > { %v714_v45 = vrot.slane %v713_v37, 4  ;;  %v1478_v50 = vsel %vm7508_vm6, %v5988_v42, %v1477_v43  ;;  %v1479_v51 = vrot.slane %v1477_v43, 4  ;;  %v740_v53 = vshll.u32 %v575_v39, 16  ;;  %v1371_v15 = vld [vmem:[%s7444_s11 + $0x40] sm:$0xf] }
  0x3b   : > { %v724_v58 = vrot.slane %v723_v46, 4  ;;  %v733_v59 = vrot.slane %v731_v48, 4  ;;  %v744_v60 = vshrl.u32 %v575_v39, 16  ;;  %v736_v63 = vrot.slane %v734_v52, 5  ;;  %v580_v33 = vld [vmem:[%s7444_s11 + $0x54] sm:$0xf] }
  0x3c   : > { %v719_v55 = vsel %vm7515_vm7, %v714_v45, %v718_v31  ;;  %v1481_v62 = vsel %vm7508_vm6, %v1479_v51, %v1480_v47  ;;  %v742_v0 = vrot.slane %v740_v53, 5  ;;  %v5989_v6 = vrot.slane %v1367_v49, 9  ;;  %v581_v38 = vld [vmem:[%s7444_s11 + $0x58] sm:$0xf]  ;;  %v582_v43 = vld [vmem:[%s7444_s11 + $0x5c] sm:$0x1] }
  0x3d   : > { %6745 = vmatmul.mubr.msk.bf16.vlgmr.msra.gmra.mrb[16].mxu1 %vm312_vm1, %v5953_v41  ;;  %v728_v41 = vrot.slane %v726_v32, 5  ;;  %v746_v5 = vrot.slane %v744_v60, 4  ;;  %v737_v9 = vor.u32 %v736_v63, %v733_v59  ;;  %v1484_v11 = vrot.slane %v1368_v54, 5  ;;  %v1372_v32 = vld [vmem:[%s7444_s11 + $0x44] sm:$0x1] }
  0x3e   : > { %6811 = vmatpush3.bf16.msra.mxu1 %v7484_v24  ;;  %6779 = vmatmul.mubr.msk.bf16.vlgmr.msra.gmra.mrb[16].mxu0 %vm312_vm1, %v6002_v1  ;;  %v690_v24 = vrot.slane %v689_v10, 4  ;;  %v750_v1 = vshll.u32 %v576_v44, 16  ;;  %v755_v16 = vshrl.u32 %v577_v2, 16  ;;  %v758_v17 = vshll.u32 %v577_v2, 16  ;;  %v1373_v48 = vld [vmem:[%s7444_s11 + $0x48] sm:$0xe] }
  0x3f   : > { %7022 = vmatprep.subr.msk.bf16.mxu1 %vm361_vm0, %v3398_v21  ;;  %6845 = vmatpush3.bf16.msra.mxu0 %v7479_v22  ;;  %v1474_v22 = vsel %vm7508_vm6, %v1472_v20, %v1473_v12  ;;  %v729_v3 = vsel %vm7515_vm7, %v724_v58, %v728_v41  ;;  %v747_v12 = vor.u32 %v746_v5, %v742_v0  ;;  %v738_v18 = vrot.slane %v737_v9, 4  ;;  %v1374_v53 = vld [vmem:[%s7444_s11 + $0x4c] sm:$0xf]  ;;  %v1375_v60 = vld [vmem:[%s7444_s11 + $0x50] sm:$0x1] }
  0x40   : > { %6748 = vmatprep.mubr.msk.bf16.mxu1 %vm312_vm1, %v5954_v13  ;;  %v695_v21 = vsel %vm7515_vm7, %v690_v24, %v694_v4  ;;  %v6003_v36 = vcombine.low %v1471_v19, %v1474_v22  ;;  %v6004_v4 = vcombine.low %v1478_v50, %v1481_v62  ;;  %v5956_v8 = vcombine.low %v719_v55, %v729_v3 }
  0x41   : > { %v5955_v40 = vcombine.low %v695_v21, %v705_v35  ;;  %v752_v10 = vrot.slane %v750_v1, 5  ;;  %v1487_v13 = vrot.slane %v1369_v61, 5  ;;  %v1485_v24 = vsel %vm7508_vm6, %v5989_v6, %v1484_v11  ;;  %v583_v1 = vld [vmem:[%s7444_s11 + $0x60] sm:$0xf]  ;;  %v584_v6 = vld [vmem:[%s7444_s11 + $0x64] sm:$0xf] }
  0x42   : > { %6782 = vmatprep.mubr.msk.bf16.mxu0 %vm312_vm1, %v6003_v36  ;;  %v1486_v19 = vrot.slane %v1484_v11, 4  ;;  %v764_v20 = vshll.u32 %v578_v7, 16  ;;  %v748_v25 = vrot.slane %v747_v12, 4  ;;  %v757_v26 = vrot.slane %v755_v16, 4 }
  0x43   : > { %v760_v28 = vrot.slane %v758_v17, 5  ;;  %v768_v29 = vshrl.u32 %v578_v7, 16  ;;  %v743_v30 = vsel %vm7515_vm7, %v738_v18, %v742_v0  ;;  %v774_v31 = vshll.u32 %v579_v14, 16 }
  0x44   : > { %v1488_v21 = vsel %vm7508_vm6, %v1486_v19, %v1487_v13  ;;  %v766_v22 = vrot.slane %v764_v20, 5  ;;  %v753_v34 = vsel %vm7515_vm7, %v748_v25, %v752_v10  ;;  %v5990_v41 = vrot.slane %v1370_v23, 9  ;;  %v585_v13 = vld [vmem:[%s7444_s11 + $0x68] sm:$0x1]  ;;  %v1376_v20 = vld [vmem:[%s7444_s11 + $0x54] sm:$0xe] }
  0x45   : > { %6749 = vmatmul.mubr.msk.bf16.gmra.mrb[20].mxu1 %vm312_vm1, %v5955_v40  ;;  %v6005_v35 = vcombine.low %v1485_v24, %v1488_v21  ;;  %v761_v36 = vor.u32 %v760_v28, %v757_v26  ;;  %v770_v37 = vrot.slane %v768_v29, 4  ;;  %v5957_v39 = vcombine.low %v743_v30, %v753_v34  ;;  %v1377_v29 = vld [vmem:[%s7444_s11 + $0x58] sm:$0xf] }
  0x46   : > { %6783 = vmatmul.mubr.msk.bf16.gmra.mrb[20].mxu0 %vm312_vm1, %v6004_v4  ;;  %6752 = vmatprep.mubr.msk.bf16.mxu1 %vm312_vm1, %v5956_v8  ;;  %v776_v40 = vrot.slane %v774_v31, 5  ;;  %v1491_v42 = vrot.slane %v1371_v15, 5  ;;  %v1494_v46 = vrot.slane %v1372_v32, 5  ;;  %v779_v47 = vshrl.u32 %v580_v33, 16  ;;  %v1378_v31 = vld [vmem:[%s7444_s11 + $0x5c] sm:$0x1] }
  0x47   : > { %6786 = vmatprep.mubr.msk.bf16.mxu0 %vm312_vm1, %v6005_v35  ;;  %v762_v44 = vrot.slane %v761_v36, 4  ;;  %v771_v45 = vor.u32 %v770_v37, %v766_v22  ;;  %v782_v51 = vshll.u32 %v580_v33, 16  ;;  %v788_v52 = vshll.u32 %v581_v38, 16  ;;  %v586_v32 = vld [vmem:[%s7444_s11 + $0x6c] sm:$0xf] }
  0x48   : > { %v1492_v49 = vsel %vm7508_vm6, %v5990_v41, %v1491_v42  ;;  %v1493_v50 = vrot.slane %v1491_v42, 4  ;;  %v781_v58 = vrot.slane %v779_v47, 4  ;;  %v792_v59 = vshrl.u32 %v581_v38, 16  ;;  %v587_v37 = vld [vmem:[%s7444_s11 + $0x70] sm:$0xf] }
  0x49   : > { %v767_v54 = vsel %vm7515_vm7, %v762_v44, %v766_v22  ;;  %v772_v55 = vrot.slane %v771_v45, 4  ;;  %v784_v62 = vrot.slane %v782_v51, 5  ;;  %v790_v63 = vrot.slane %v788_v52, 5  ;;  %v588_v42 = vld [vmem:[%s7444_s11 + $0x74] sm:$0x1] }
  0x4a   : > { %v1495_v61 = vsel %vm7508_vm6, %v1493_v50, %v1494_v46  ;;  %v798_v0 = vshll.u32 %v582_v43, 16  ;;  %v794_v4 = vrot.slane %v792_v59, 4  ;;  %v5991_v5 = vrot.slane %v1373_v48, 9  ;;  %v1379_v47 = vld [vmem:[%s7444_s11 + $0x60] sm:$0xe] }
  0x4b   : > { %v777_v2 = vsel %vm7515_vm7, %v772_v55, %v776_v40  ;;  %v6006_v3 = vcombine.low %v1492_v49, %v1495_v61  ;;  %v785_v8 = vor.u32 %v784_v62, %v781_v58  ;;  %v1498_v10 = vrot.slane %v1374_v53, 5  ;;  %v1380_v52 = vld [vmem:[%s7444_s11 + $0x64] sm:$0xf]  ;;  %v1381_v59 = vld [vmem:[%s7444_s11 + $0x68] sm:$0x1] }
  0x4c   : > { %v5958_v7 = vcombine.low %v767_v54, %v777_v2  ;;  %v800_v9 = vrot.slane %v798_v0, 5  ;;  %v795_v11 = vor.u32 %v794_v4, %v790_v63  ;;  %v1501_v12 = vrot.slane %v1375_v60, 5  ;;  %v589_v0 = vld [vmem:[%s7444_s11 + $0x78] sm:$0xf] }
  0x4d   : > { %6753 = vmatmul.mubr.msk.bf16.gmra.mrb[24].mxu1 %vm312_vm1, %v5957_v39  ;;  %v803_v14 = vshrl.u32 %v583_v1, 16  ;;  %v806_v16 = vshll.u32 %v583_v1, 16  ;;  %v786_v17 = vrot.slane %v785_v8, 4  ;;  %v1499_v18 = vsel %vm7508_vm6, %v5991_v5, %v1498_v10  ;;  %v590_v5 = vld [vmem:[%s7444_s11 + $0x7c] sm:$0xf] }
  0x4e   : > { %6787 = vmatmul.mubr.msk.bf16.gmra.mrb[24].mxu0 %vm312_vm1, %v6006_v3  ;;  %6756 = vmatprep.mubr.msk.bf16.mxu1 %vm312_vm1, %v5958_v7  ;;  %v1500_v24 = vrot.slane %v1498_v10, 4  ;;  %v812_v19 = vshll.u32 %v584_v6, 16  ;;  %v796_v23 = vrot.slane %v795_v11, 4  ;;  %v816_v28 = vshrl.u32 %v584_v6, 16 }
  0x4f   : > { %v805_v25 = vrot.slane %v803_v14, 4  ;;  %v808_v26 = vrot.slane %v806_v16, 5  ;;  %v791_v15 = vsel %vm7515_vm7, %v786_v17, %v790_v63  ;;  %v822_v22 = vshll.u32 %v585_v13, 16 }
  0x50   : > { %v1502_v30 = vsel %vm7508_vm6, %v1500_v24, %v1501_v12  ;;  %v814_v21 = vrot.slane %v812_v19, 5  ;;  %v801_v33 = vsel %vm7515_vm7, %v796_v23, %v800_v9  ;;  %v818_v36 = vrot.slane %v816_v28, 4  ;;  %v591_v12 = vld [vmem:[%s7444_s11 + $0x80] sm:$0x1]  ;;  %v1382_v19 = vld [vmem:[%s7444_s11 + $0x6c] sm:$0xe] }
  0x51   : > { %v6007_v34 = vcombine.low %v1499_v18, %v1502_v30  ;;  %v809_v35 = vor.u32 %v808_v26, %v805_v25  ;;  %v5959_v38 = vcombine.low %v791_v15, %v801_v33  ;;  %v824_v39 = vrot.slane %v822_v22, 5  ;;  %v1383_v28 = vld [vmem:[%s7444_s11 + $0x70] sm:$0xf]  ;;  %v1384_v22 = vld [vmem:[%s7444_s11 + $0x74] sm:$0x1] }
  0x52   : > { %v5992_v40 = vrot.slane %v1376_v20, 9  ;;  %v1505_v41 = vrot.slane %v1377_v29, 5  ;;  %v819_v44 = vor.u32 %v818_v36, %v814_v21  ;;  %v1508_v45 = vrot.slane %v1378_v31, 5  ;;  %v592_v31 = vld [vmem:[%s7444_s11 + $0x84] sm:$0xf] }
  0x53   : > { %6790 = vmatprep.mubr.msk.bf16.mxu0 %vm312_vm1, %v6007_v34  ;;  %v810_v43 = vrot.slane %v809_v35, 4  ;;  %v827_v46 = vshrl.u32 %v586_v32, 16  ;;  %v830_v50 = vshll.u32 %v586_v32, 16  ;;  %v836_v51 = vshll.u32 %v587_v37, 16  ;;  %v593_v36 = vld [vmem:[%s7444_s11 + $0x88] sm:$0xf] }
  0x54   : > { %v1506_v48 = vsel %vm7508_vm6, %v5992_v40, %v1505_v41  ;;  %v1507_v49 = vrot.slane %v1505_v41, 4  ;;  %v820_v54 = vrot.slane %v819_v44, 4  ;;  %v840_v58 = vshrl.u32 %v587_v37, 16  ;;  %v594_v41 = vld [vmem:[%s7444_s11 + $0x8c] sm:$0x1] }
  0x55   : > { %6757 = vmatmul.mubr.msk.bf16.gmra.mrb[28].mxu1 %vm312_vm1, %v5959_v38  ;;  %v815_v53 = vsel %vm7515_vm7, %v810_v43, %v814_v21  ;;  %v829_v55 = vrot.slane %v827_v46, 4  ;;  %v832_v61 = vrot.slane %v830_v50, 5  ;;  %v838_v62 = vrot.slane %v836_v51, 5  ;;  %v1385_v46 = vld [vmem:[%s7444_s11 + $0x78] sm:$0xe] }
  0x56   : > { %v1509_v60 = vsel %vm7508_vm6, %v1507_v49, %v1508_v45  ;;  %v846_v63 = vshll.u32 %v588_v42, 16  ;;  %v825_v1 = vsel %vm7515_vm7, %v820_v54, %v824_v39  ;;  %v842_v3 = vrot.slane %v840_v58, 4  ;;  %v1386_v51 = vld [vmem:[%s7444_s11 + $0x7c] sm:$0xf]  ;;  %v1387_v58 = vld [vmem:[%s7444_s11 + $0x80] sm:$0x1] }
  0x57   : > { %v6008_v2 = vcombine.low %v1506_v48, %v1509_v60  ;;  %v5993_v4 = vrot.slane %v1379_v47, 9  ;;  %v5960_v6 = vcombine.low %v815_v53, %v825_v1  ;;  %v833_v7 = vor.u32 %v832_v61, %v829_v55 }
  0x58   : > { %v848_v8 = vrot.slane %v846_v63, 5  ;;  %v1512_v9 = vrot.slane %v1380_v52, 5  ;;  %v843_v10 = vor.u32 %v842_v3, %v838_v62  ;;  %v1515_v11 = vrot.slane %v1381_v59, 5  ;;  %v595_v63 = vld [vmem:[%s7444_s11 + $0x90] sm:$0xf] }
  0x59   : > { %6791 = vmatmul.mubr.msk.bf16.gmra.mrb[28].mxu0 %vm312_vm1, %v6008_v2  ;;  %v851_v13 = vshrl.u32 %v589_v0, 16  ;;  %v854_v14 = vshll.u32 %v589_v0, 16  ;;  %6760 = vmatprep.mubr.msk.bf16.mxu1 %vm312_vm1, %v5960_v6  ;;  %v834_v16 = vrot.slane %v833_v7, 4  ;;  %v860_v24 = vshll.u32 %v590_v5, 16 }
  0x5a   : > { %v1513_v17 = vsel %vm7508_vm6, %v5993_v4, %v1512_v9  ;;  %v1514_v18 = vrot.slane %v1512_v9, 4  ;;  %v844_v20 = vrot.slane %v843_v10, 4  ;;  %v864_v26 = vshrl.u32 %v590_v5, 16  ;;  %v596_v4 = vld [vmem:[%s7444_s11 + $0x94] sm:$0xf] }
  0x5b   : > { %v853_v23 = vrot.slane %v851_v13, 4  ;;  %v856_v25 = vrot.slane %v854_v14, 5  ;;  %v839_v29 = vsel %vm7515_vm7, %v834_v16, %v838_v62  ;;  %v862_v30 = vrot.slane %v860_v24, 5  ;;  %v597_v9 = vld [vmem:[%s7444_s11 + $0x98] sm:$0x1] }
  0x5c   : > { %v1516_v15 = vsel %vm7508_vm6, %v1514_v18, %v1515_v11  ;;  %v870_v21 = vshll.u32 %v591_v12, 16  ;;  %v849_v32 = vsel %vm7515_vm7, %v844_v20, %v848_v8  ;;  %v866_v35 = vrot.slane %v864_v26, 4  ;;  %v1388_v14 = vld [vmem:[%s7444_s11 + $0x84] sm:$0xe]  ;;  %v1389_v16 = vld [vmem:[%s7444_s11 + $0x88] sm:$0xf] }
  0x5d   : > { %v6009_v33 = vcombine.low %v1513_v17, %v1516_v15  ;;  %v857_v34 = vor.u32 %v856_v25, %v853_v23  ;;  %v5961_v37 = vcombine.low %v839_v29, %v849_v32  ;;  %v5994_v39 = vrot.slane %v1382_v19, 9  ;;  %v1390_v20 = vld [vmem:[%s7444_s11 + $0x8c] sm:$0x1] }
  0x5e   : > { %v872_v38 = vrot.slane %v870_v21, 5  ;;  %v1519_v40 = vrot.slane %v1383_v28, 5  ;;  %v867_v43 = vor.u32 %v866_v35, %v862_v30  ;;  %v1522_v44 = vrot.slane %v1384_v22, 5  ;;  %v598_v22 = vld [vmem:[%s7444_s11 + $0x9c] sm:$0xf] }
  0x5f   : > { %6794 = vmatprep.mubr.msk.bf16.mxu0 %vm312_vm1, %v6009_v33  ;;  %v858_v42 = vrot.slane %v857_v34, 4  ;;  %v875_v45 = vshrl.u32 %v592_v31, 16  ;;  %6761 = vmatmul.mubr.msk.bf16.gmra.mrb[32].mxu1 %vm312_vm1, %v5961_v37  ;;  %v878_v49 = vshll.u32 %v592_v31, 16  ;;  %v884_v50 = vshll.u32 %v593_v36, 16  ;;  %v599_v35 = vld [vmem:[%s7444_s11 + $0xa0] sm:$0xf] }
  0x60   : > { %v1520_v47 = vsel %vm7508_vm6, %v5994_v39, %v1519_v40  ;;  %v1521_v48 = vrot.slane %v1519_v40, 4  ;;  %v868_v53 = vrot.slane %v867_v43, 4  ;;  %v888_v55 = vshrl.u32 %v593_v36, 16  ;;  %v600_v36 = vld [vmem:[%s7444_s11 + $0xa4] sm:$0x1] }
  0x61   : > { %v863_v52 = vsel %vm7515_vm7, %v858_v42, %v862_v30  ;;  %v877_v54 = vrot.slane %v875_v45, 4  ;;  %v880_v60 = vrot.slane %v878_v49, 5  ;;  %v886_v61 = vrot.slane %v884_v50, 5 }
  0x62   : > { %v1523_v59 = vsel %vm7508_vm6, %v1521_v48, %v1522_v44  ;;  %v894_v62 = vshll.u32 %v594_v41, 16  ;;  %v873_v0 = vsel %vm7515_vm7, %v868_v53, %v872_v38  ;;  %v890_v2 = vrot.slane %v888_v55, 4  ;;  %v1391_v41 = vld [vmem:[%s7444_s11 + $0x90] sm:$0xe] }
  0x63   : > { %v6010_v1 = vcombine.low %v1520_v47, %v1523_v59  ;;  %v5995_v3 = vrot.slane %v1385_v46, 9  ;;  %v5962_v5 = vcombine.low %v863_v52, %v873_v0  ;;  %v881_v6 = vor.u32 %v880_v60, %v877_v54  ;;  %v1392_v46 = vld [vmem:[%s7444_s11 + $0x94] sm:$0xf] }
  0x64   : > { %v896_v7 = vrot.slane %v894_v62, 5  ;;  %v1526_v8 = vrot.slane %v1386_v51, 5  ;;  %v891_v10 = vor.u32 %v890_v2, %v886_v61  ;;  %v1529_v11 = vrot.slane %v1387_v58, 5  ;;  %v1393_v51 = vld [vmem:[%s7444_s11 + $0x98] sm:$0x1] }
  0x65   : > { %6795 = vmatmul.mubr.msk.bf16.gmra.mrb[32].mxu0 %vm312_vm1, %v6010_v1  ;;  %v899_v12 = vshrl.u32 %v595_v63, 16  ;;  %v902_v13 = vshll.u32 %v595_v63, 16  ;;  %6764 = vmatprep.mubr.msk.bf16.mxu1 %vm312_vm1, %v5962_v5  ;;  %v882_v17 = vrot.slane %v881_v6, 4  ;;  %v908_v19 = vshll.u32 %v596_v4, 16  ;;  %v601_v58 = vld [vmem:[%s7444_s11 + $0xa8] sm:$0xf] }
  0x66   : > { %v1527_v18 = vsel %vm7508_vm6, %v5995_v3, %v1526_v8  ;;  %v1528_v24 = vrot.slane %v1526_v8, 4  ;;  %v892_v23 = vrot.slane %v891_v10, 4  ;;  %v912_v28 = vshrl.u32 %v596_v4, 16  ;;  %v602_v63 = vld [vmem:[%s7444_s11 + $0xac] sm:$0xf] }
  0x67   : > { %v901_v25 = vrot.slane %v899_v12, 4  ;;  %v904_v26 = vrot.slane %v902_v13, 5  ;;  %v887_v29 = vsel %vm7515_vm7, %v882_v17, %v886_v61  ;;  %v910_v30 = vrot.slane %v908_v19, 5  ;;  %v603_v8 = vld [vmem:[%s7444_s11 + $0xb0] sm:$0x1] }
  0x68   : > { %v1530_v15 = vsel %vm7508_vm6, %v1528_v24, %v1529_v11  ;;  %v918_v21 = vshll.u32 %v597_v9, 16  ;;  %v897_v31 = vsel %vm7515_vm7, %v892_v23, %v896_v7  ;;  %v914_v34 = vrot.slane %v912_v28, 4  ;;  %v7729_v9 = vld [vmem:[%s9223_s1 + $0xc] sm:$0x3] }
  0x69   : > { %v6011_v32 = vcombine.low %v1527_v18, %v1530_v15  ;;  %v905_v33 = vor.u32 %v904_v26, %v901_v25  ;;  %v5963_v37 = vcombine.low %v887_v29, %v897_v31  ;;  %v5996_v39 = vrot.slane %v1388_v14, 9  ;;  %v1394_v14 = vld [vmem:[%s7444_s11 + $0x9c] sm:$0xe]  ;;  %7023 = vmatprep.subr.msk.bf16.mxu0 %vm361_vm0, %v7729_v9 }
  0x6a   : > { %v920_v38 = vrot.slane %v918_v21, 5  ;;  %v1533_v40 = vrot.slane %v1389_v16, 5  ;;  %v915_v43 = vor.u32 %v914_v34, %v910_v30  ;;  %v1536_v44 = vrot.slane %v1390_v20, 5  ;;  %v1395_v16 = vld [vmem:[%s7444_s11 + $0xa0] sm:$0xf] }
  0x6b   : > { %6798 = vmatprep.mubr.msk.bf16.mxu0 %vm312_vm1, %v6011_v32  ;;  %v906_v42 = vrot.slane %v905_v33, 4  ;;  %v923_v45 = vshrl.u32 %v598_v22, 16  ;;  %6765 = vmatmul.mubr.msk.bf16.gmra.mrb[36].mxu1 %vm312_vm1, %v5963_v37  ;;  %v926_v49 = vshll.u32 %v598_v22, 16  ;;  %v932_v50 = vshll.u32 %v599_v35, 16  ;;  %v1396_v20 = vld [vmem:[%s7444_s11 + $0xa4] sm:$0x1] }
  0x6c   : > { %v1534_v47 = vsel %vm7508_vm6, %v5996_v39, %v1533_v40  ;;  %v1535_v48 = vrot.slane %v1533_v40, 4  ;;  %v916_v53 = vrot.slane %v915_v43, 4  ;;  %v936_v55 = vshrl.u32 %v599_v35, 16  ;;  %v604_v22 = vld [vmem:[%s7444_s11 + $0xb4] sm:$0xf] }
  0x6d   : > { %v911_v52 = vsel %vm7515_vm7, %v906_v42, %v910_v30  ;;  %v925_v54 = vrot.slane %v923_v45, 4  ;;  %v928_v60 = vrot.slane %v926_v49, 5  ;;  %v934_v61 = vrot.slane %v932_v50, 5  ;;  %v605_v35 = vld [vmem:[%s7444_s11 + $0xb8] sm:$0xf] }
  0x6e   : > { %v1537_v59 = vsel %vm7508_vm6, %v1535_v48, %v1536_v44  ;;  %v942_v62 = vshll.u32 %v600_v36, 16  ;;  %v921_v0 = vsel %vm7515_vm7, %v916_v53, %v920_v38  ;;  %v938_v2 = vrot.slane %v936_v55, 4  ;;  %v606_v36 = vld [vmem:[%s7444_s11 + $0xbc] sm:$0x1] }
  0x6f   : > { %v6012_v1 = vcombine.low %v1534_v47, %v1537_v59  ;;  %v5997_v3 = vrot.slane %v1391_v41, 9  ;;  %v5964_v4 = vcombine.low %v911_v52, %v921_v0  ;;  %v929_v5 = vor.u32 %v928_v60, %v925_v54  ;;  %v1397_v41 = vld [vmem:[%s7444_s11 + $0xa8] sm:$0xe]  ;;  %v1400_v52 = vld [vmem:[%s7444_s11 + $0xb4] sm:$0xe] }
  0x70   : > { %v944_v6 = vrot.slane %v942_v62, 5  ;;  %v1540_v7 = vrot.slane %v1392_v46, 5  ;;  %v939_v10 = vor.u32 %v938_v2, %v934_v61  ;;  %v1543_v11 = vrot.slane %v1393_v51, 5  ;;  %v1398_v46 = vld [vmem:[%s7444_s11 + $0xac] sm:$0xf] }
  0x71   : > { %6799 = vmatmul.mubr.msk.bf16.gmra.mrb[36].mxu0 %vm312_vm1, %v6012_v1  ;;  %v947_v12 = vshrl.u32 %v601_v58, 16  ;;  %v950_v13 = vshll.u32 %v601_v58, 16  ;;  %6768 = vmatprep.mubr.msk.bf16.mxu1 %vm312_vm1, %v5964_v4  ;;  %v930_v17 = vrot.slane %v929_v5, 4  ;;  %v956_v19 = vshll.u32 %v602_v63, 16  ;;  %v1399_v51 = vld [vmem:[%s7444_s11 + $0xb0] sm:$0x1] }
  0x72   : > { %v1541_v18 = vsel %vm7508_vm6, %v5997_v3, %v1540_v7  ;;  %v1542_v24 = vrot.slane %v1540_v7, 4  ;;  %v940_v23 = vrot.slane %v939_v10, 4  ;;  %v960_v28 = vshrl.u32 %v602_v63, 16  ;;  %v1401_v59 = vld [vmem:[%s7444_s11 + $0xb8] sm:$0xf] }
  0x73   : > { %v949_v25 = vrot.slane %v947_v12, 4  ;;  %v952_v26 = vrot.slane %v950_v13, 5  ;;  %v935_v29 = vsel %vm7515_vm7, %v930_v17, %v934_v61  ;;  %v958_v30 = vrot.slane %v956_v19, 5  ;;  %v1402_v0 = vld [vmem:[%s7444_s11 + $0xbc] sm:$0x1] }
  0x74   : > { %v1544_v15 = vsel %vm7508_vm6, %v1542_v24, %v1543_v11  ;;  %v966_v21 = vshll.u32 %v603_v8, 16  ;;  %v945_v31 = vsel %vm7515_vm7, %v940_v23, %v944_v6  ;;  %v962_v34 = vrot.slane %v960_v28, 4  ;;  %v6098_v10 = vld [vmem:[%s7444_s11 + $0xc] sm:$0xf] }
  0x75   : > { %v6013_v32 = vcombine.low %v1541_v18, %v1544_v15  ;;  %v953_v33 = vor.u32 %v952_v26, %v949_v25  ;;  %v5965_v37 = vcombine.low %v935_v29, %v945_v31  ;;  %v5998_v39 = vrot.slane %v1394_v14, 9  ;;  %v6102_v31 = vld [vmem:[%s7444_s11 + $0x1c] sm:$0xf] }
  0x76   : > { %v968_v38 = vrot.slane %v966_v21, 5  ;;  %v1547_v40 = vrot.slane %v1395_v16, 5  ;;  %v963_v43 = vor.u32 %v962_v34, %v958_v30  ;;  %v1550_v44 = vrot.slane %v1396_v20, 5  ;;  %v6099_v16 = vld [vmem:[%s7444_s11 + $0x10] sm:$0xf] }
  0x77   : > { %6802 = vmatprep.mubr.msk.bf16.mxu0 %vm312_vm1, %v6013_v32  ;;  %v954_v42 = vrot.slane %v953_v33, 4  ;;  %v971_v45 = vshrl.u32 %v604_v22, 16  ;;  %6769 = vmatmul.mubr.msk.bf16.gmra.mrb[40].mxu1 %vm312_vm1, %v5965_v37  ;;  %v974_v49 = vshll.u32 %v604_v22, 16  ;;  %v980_v50 = vshll.u32 %v605_v35, 16  ;;  %v6100_v20 = vld [vmem:[%s7444_s11 + $0x14] sm:$0x1] }
  0x78   : > { %v1548_v47 = vsel %vm7508_vm6, %v5998_v39, %v1547_v40  ;;  %v1549_v48 = vrot.slane %v1547_v40, 4  ;;  %v964_v54 = vrot.slane %v963_v43, 4  ;;  %v984_v58 = vshrl.u32 %v605_v35, 16  ;;  %v6101_v22 = vld [vmem:[%s7444_s11 + $0x18] sm:$0xf]  ;;  %v7102_v35 = vld [vmem:[%s7444_s11 + $0xc] sm:$0xff]  }
  0x79   : > { %v959_v53 = vsel %vm7515_vm7, %v954_v42, %v958_v30  ;;  %v973_v55 = vrot.slane %v971_v45, 4  ;;  %v976_v61 = vrot.slane %v974_v49, 5  ;;  %v982_v62 = vrot.slane %v980_v50, 5  ;;  %v6103_v37 = vld [vmem:[%s7444_s11 + $0x20] sm:$0x1] }
  0x7a   : > { %v1551_v60 = vsel %vm7508_vm6, %v1549_v48, %v1550_v44  ;;  %v990_v63 = vshll.u32 %v606_v36, 16  ;;  %v969_v1 = vsel %vm7515_vm7, %v964_v54, %v968_v38  ;;  %v986_v3 = vrot.slane %v984_v58, 4 }
  0x7b   : > { %v6014_v2 = vcombine.low %v1548_v47, %v1551_v60  ;;  %v5999_v4 = vrot.slane %v1397_v41, 9  ;;  %v5966_v5 = vcombine.low %v959_v53, %v969_v1  ;;  %v977_v6 = vor.u32 %v976_v61, %v973_v55 }
  0x7c   : > { %v992_v7 = vrot.slane %v990_v63, 5  ;;  %v1554_v8 = vrot.slane %v1398_v46, 5  ;;  %v987_v11 = vor.u32 %v986_v3, %v982_v62  ;;  %v1557_v12 = vrot.slane %v1399_v51, 5  ;;  %v6104_v46 = vld [vmem:[%s7444_s11 + $0x24] sm:$0xf] }
  0x7d   : > { %6803 = vmatmul.mubr.msk.bf16.gmra.mrb[40].mxu0 %vm312_vm1, %v6014_v2  ;;  %v6000_v13 = vrot.slane %v1400_v52, 9  ;;  %v1561_v14 = vrot.slane %v1401_v59, 5  ;;  %6772 = vmatprep.mubr.msk.bf16.mxu1 %vm312_vm1, %v5966_v5  ;;  %v978_v17 = vrot.slane %v977_v6, 4  ;;  %v1564_v19 = vrot.slane %v1402_v0, 5  ;;  %v6105_v51 = vld [vmem:[%s7444_s11 + $0x28] sm:$0xf] }
  0x7e   : > { %v1555_v18 = vsel %vm7508_vm6, %v5999_v4, %v1554_v8  ;;  %v1556_v24 = vrot.slane %v1554_v8, 4  ;;  %v988_v23 = vrot.slane %v987_v11, 4  ;;  %v2398_v28 = vshrl.u32 %v6098_v10, 16  ;;  %v7105_v0 = vld [vmem:[%s7444_s11 + $0x24] sm:$0xff]   ;;  %v6106_v3 = vld [vmem:[%s7444_s11 + $0x2c] sm:$0x1] }
  0x7f   : > { %v1562_v25 = vsel %vm7508_vm6, %v6000_v13, %v1561_v14  ;;  %v1563_v26 = vrot.slane %v1561_v14, 4  ;;  %v983_v29 = vsel %vm7515_vm7, %v978_v17, %v982_v62  ;;  %v2401_v30 = vshll.u32 %v6098_v10, 16  ;;  %v7104_v62 = vld [vmem:[%s7444_s11 + $0x18] sm:$0xff]   ;;  %v6107_v10 = vld [vmem:[%s7444_s11 + $0x30] sm:$0xf] }
  0x80   : > { %v1558_v15 = vsel %vm7508_vm6, %v1556_v24, %v1557_v12  ;;  %v2407_v21 = vshll.u32 %v6099_v16, 16  ;;  %v993_v32 = vsel %vm7515_vm7, %v988_v23, %v992_v7  ;;  %v2400_v36 = vrot.slane %v2398_v28, 4  ;;  %v6108_v24 = vld [vmem:[%s7444_s11 + $0x34] sm:$0xf]  ;;  %v6110_v28 = vld [vmem:[%s7444_s11 + $0x3c] sm:$0xf] }
  0x81   : > { %v6015_v33 = vcombine.low %v1555_v18, %v1558_v15  ;;  %v1565_v34 = vsel %vm7508_vm6, %v1563_v26, %v1564_v19  ;;  %v5967_v38 = vcombine.low %v983_v29, %v993_v32  ;;  %v2403_v40 = vrot.slane %v2401_v30, 5 }
  0x82   : > { %v6016_v39 = vcombine.low %v1562_v25, %v1565_v34  ;;  %v2409_v41 = vrot.slane %v2407_v21, 5  ;;  %v2411_v42 = vshrl.u32 %v6099_v16, 16  ;;  %v2417_v43 = vshll.u32 %v6100_v20, 16  ;;  %v6109_v25 = vld [vmem:[%s7444_s11 + $0x38] sm:$0x1] }
  0x83   : > { %6806 = vmatprep.mubr.msk.bf16.mxu0 %vm312_vm1, %v6015_v33  ;;  %v2422_v44 = vshrl.u32 %v6101_v22, 16  ;;  %v2425_v45 = vshll.u32 %v6101_v22, 16  ;;  %6773 = vmatmul.mubr.msk.bf16.gmra.mrb[44].mxu1 %vm312_vm1, %v5967_v38  ;;  %v2404_v47 = vor.u32 %v2403_v40, %v2400_v36  ;;  %v2431_v48 = vshll.u32 %v6102_v31, 16  ;;  %v6111_v34 = vld [vmem:[%s7444_s11 + $0x40] sm:$0xf] }
  0x84   : > { %v2435_v49 = vshrl.u32 %v6102_v31, 16  ;;  %v2441_v50 = vshll.u32 %v6103_v37, 16  ;;  %6812 = vmatprep.mubr.msk.bf16.mxu1 %vm312_vm1, %v7102_v35  ;;  %v2413_v52 = vrot.slane %v2411_v42, 4  ;;  %v2419_v53 = vrot.slane %v2417_v43, 5  ;;  %v6113_v40 = vld [vmem:[%s7444_s11 + $0x48] sm:$0xf] }
  0x85   : > { %6807 = vmatmul.mubr.msk.bf16.gmra.mrb[44].mxu0 %vm312_vm1, %v6016_v39  ;;  %v2424_v54 = vrot.slane %v2422_v44, 4  ;;  %v2427_v55 = vrot.slane %v2425_v45, 5  ;;  %v2405_v58 = vrot.slane %v2404_v47, 4  ;;  %v2433_v59 = vrot.slane %v2431_v48, 5  ;;  %v6112_v39 = vld [vmem:[%s7444_s11 + $0x44] sm:$0x1] }
  0x86   : > { %v2437_v60 = vrot.slane %v2435_v49, 4  ;;  %v2443_v61 = vrot.slane %v2441_v50, 5  ;;  %v2414_v63 = vor.u32 %v2413_v52, %v2409_v41  ;;  %v3870_v2 = vsel %vm361_vm0, %v7729_v9, 0  ;;  %v7106_v44 = vld [vmem:[%s7444_s11 + $0x30] sm:$0xff]   ;;  %v7107_v50 = vld [vmem:[%s7444_s11 + $0x3c] sm:$0xff]  }
  0x87   : > { %v2428_v1 = vor.u32 %v2427_v55, %v2424_v54  ;;  %v2446_v4 = vshrl.u32 %v6104_v46, 16  ;;  %v2410_v5 = vsel %vm7515_vm7, %v2405_v58, %v2409_v41  ;;  %v2449_v7 = vshll.u32 %v6104_v46, 16 }
  0x88   : > { %v2438_v6 = vor.u32 %v2437_v60, %v2433_v59  ;;  %v2455_v8 = vshll.u32 %v6105_v51, 16  ;;  %v2415_v11 = vrot.slane %v2414_v63, 4  ;;  %v2459_v14 = vshrl.u32 %v6105_v51, 16  ;;  %v6114_v60 = vld [vmem:[%s7444_s11 + $0x4c] sm:$0xf] }
  0x89   : > { %v2429_v12 = vrot.slane %v2428_v1, 4  ;;  %v2448_v13 = vrot.slane %v2446_v4, 4  ;;  %v2451_v17 = vrot.slane %v2449_v7, 5  ;;  %v2465_v9 = vshll.u32 %v6106_v3, 16  ;;  %v6115_v4 = vld [vmem:[%s7444_s11 + $0x50] sm:$0x1] }
  0x8a   : > { %v2439_v16 = vrot.slane %v2438_v6, 4  ;;  %v2457_v18 = vrot.slane %v2455_v8, 5  ;;  %v2420_v19 = vsel %vm7515_vm7, %v2415_v11, %v2419_v53  ;;  %v2461_v23 = vrot.slane %v2459_v14, 4  ;;  %v6116_v11 = vld [vmem:[%s7444_s11 + $0x54] sm:$0xf] }
  0x8b   : > { %v2434_v20 = vsel %vm7515_vm7, %v2429_v12, %v2433_v59  ;;  %v2470_v26 = vshrl.u32 %v6107_v10, 16  ;;  %6813 = vmatmul.mubr.msk.bf16.vlgmr.msra.gmra.mrb[48].mxu1 %vm312_vm1, %v7104_v62  ;;  %v6146_v29 = vcombine.low %v2410_v5, %v2420_v19  ;;  %v2452_v30 = vor.u32 %v2451_v17, %v2448_v13  ;;  %v7108_v13 = vld [vmem:[%s7444_s11 + $0x48] sm:$0xff]  }
  0x8c   : > { %v2444_v15 = vsel %vm7515_vm7, %v2439_v16, %v2443_v61  ;;  %v2467_v21 = vrot.slane %v2465_v9, 5  ;;  %6879 = vmatpush3.bf16.msra.mxu1 %v7491_v27  ;;  %6816 = vmatprep.mubr.msk.bf16.mxu1 %vm312_vm1, %v7105_v0  ;;  %v2462_v31 = vor.u32 %v2461_v23, %v2457_v18  ;;  %v2473_v33 = vshll.u32 %v6107_v10, 16  ;;  %v6118_v23 = vld [vmem:[%s7444_s11 + $0x5c] sm:$0x1] }
  0x8d   : > { %v6147_v22 = vcombine.low %v2434_v20, %v2444_v15  ;;  %v2472_v32 = vrot.slane %v2470_v26, 4  ;;  %6846 = vmatprep.mubr.msk.bf16.mxu0 %vm312_vm1, %v6146_v29  ;;  %v2453_v35 = vrot.slane %v2452_v30, 4  ;;  %v2479_v36 = vshll.u32 %v6108_v24, 16  ;;  %v7109_v26 = vld [vmem:[%s7444_s11 + $0x54] sm:$0xff]   ;;  %v6119_v30 = vld [vmem:[%s7444_s11 + $0x60] sm:$0xf] }
  0x8e   : > { %v2483_v37 = vshrl.u32 %v6108_v24, 16  ;;  %v2489_v38 = vshll.u32 %v6109_v25, 16  ;;  %v2463_v27 = vrot.slane %v2462_v31, 4  ;;  %v2475_v41 = vrot.slane %v2473_v33, 5  ;;  %v6120_v33 = vld [vmem:[%s7444_s11 + $0x64] sm:$0xf] }
  0x8f   : > { %6847 = vmatmul.mubr.msk.bf16.vlgmr.msra.gmra.mrb[48].mxu0 %vm312_vm1, %v6147_v22  ;;  %v2494_v42 = vshrl.u32 %v6110_v28, 16  ;;  %v2497_v43 = vshll.u32 %v6110_v28, 16  ;;  %v2458_v45 = vsel %vm7515_vm7, %v2453_v35, %v2457_v18  ;;  %v2481_v46 = vrot.slane %v2479_v36, 5  ;;  %v6117_v18 = vld [vmem:[%s7444_s11 + $0x58] sm:$0xf] }
  0x90   : > { %6913 = vmatpush3.bf16.msra.mxu0 %v3870_v2  ;;  %v2485_v47 = vrot.slane %v2483_v37, 4  ;;  %v2491_v48 = vrot.slane %v2489_v38, 5  ;;  %v2468_v49 = vsel %vm7515_vm7, %v2463_v27, %v2467_v21  ;;  %v2476_v51 = vor.u32 %v2475_v41, %v2472_v32 }
  0x91   : > { %v2496_v52 = vrot.slane %v2494_v42, 4  ;;  %v2499_v53 = vrot.slane %v2497_v43, 5  ;;  %v6148_v54 = vcombine.low %v2458_v45, %v2468_v49  ;;  %v2503_v58 = vshll.u32 %v6111_v34, 16 }
  0x92   : > { %v2486_v55 = vor.u32 %v2485_v47, %v2481_v46  ;;  %v2507_v59 = vshrl.u32 %v6111_v34, 16  ;;  %v2477_v61 = vrot.slane %v2476_v51, 4  ;;  %v2513_v63 = vshll.u32 %v6112_v39, 16  ;;  %v6121_v47 = vld [vmem:[%s7444_s11 + $0x68] sm:$0x1] }
  0x93   : > { %v2500_v62 = vor.u32 %v2499_v53, %v2496_v52  ;;  %v2518_v0 = vshrl.u32 %v6113_v40, 16  ;;  %6817 = vmatmul.mubr.msk.bf16.gmra.mrb[52].mxu1 %vm312_vm1, %v7106_v44  ;;  %6850 = vmatprep.mubr.msk.bf16.mxu0 %vm312_vm1, %v6148_v54  ;;  %v2505_v2 = vrot.slane %v2503_v58, 5  ;;  %v2521_v5 = vshll.u32 %v6113_v40, 16  ;;  %v6122_v54 = vld [vmem:[%s7444_s11 + $0x6c] sm:$0xf] }
  0x94   : > { %v2487_v1 = vrot.slane %v2486_v55, 4  ;;  %v2509_v3 = vrot.slane %v2507_v59, 4  ;;  %6820 = vmatprep.mubr.msk.bf16.mxu1 %vm312_vm1, %v7107_v50  ;;  %v2482_v6 = vsel %vm7515_vm7, %v2477_v61, %v2481_v46  ;;  %v2515_v8 = vrot.slane %v2513_v63, 5  ;;  %v6123_v61 = vld [vmem:[%s7444_s11 + $0x70] sm:$0xf]  ;;  %v7110_v63 = vld [vmem:[%s7444_s11 + $0x60] sm:$0xff]  }
  0x95   : > { %v2501_v7 = vrot.slane %v2500_v62, 4  ;;  %v2520_v10 = vrot.slane %v2518_v0, 4  ;;  %v2523_v16 = vrot.slane %v2521_v5, 5  ;;  %v2527_v17 = vshll.u32 %v6114_v60, 16 }
  0x96   : > { %v2492_v12 = vsel %vm7515_vm7, %v2487_v1, %v2491_v48  ;;  %v2510_v14 = vor.u32 %v2509_v3, %v2505_v2  ;;  %v2531_v19 = vshrl.u32 %v6114_v60, 16  ;;  %v2537_v20 = vshll.u32 %v6115_v4, 16  ;;  %v7111_v4 = vld [vmem:[%s7444_s11 + $0x6c] sm:$0xff]  }
  0x97   : > { %v6149_v9 = vcombine.low %v2482_v6, %v2492_v12  ;;  %v2506_v24 = vsel %vm7515_vm7, %v2501_v7, %v2505_v2  ;;  %v2524_v28 = vor.u32 %v2523_v16, %v2520_v10  ;;  %v2529_v29 = vrot.slane %v2527_v17, 5  ;;  %v6124_v6 = vld [vmem:[%s7444_s11 + $0x74] sm:$0x1] }
  0x98   : > { %v2511_v25 = vrot.slane %v2510_v14, 4  ;;  %v2542_v15 = vshrl.u32 %v6116_v11, 16  ;;  %v2533_v21 = vrot.slane %v2531_v19, 4  ;;  %v2539_v22 = vrot.slane %v2537_v20, 5  ;;  %v6125_v14 = vld [vmem:[%s7444_s11 + $0x78] sm:$0xf] }
  0x99   : > { %6851 = vmatmul.mubr.msk.bf16.gmra.mrb[52].mxu0 %vm312_vm1, %v6149_v9  ;;  %v2545_v31 = vshll.u32 %v6116_v11, 16  ;;  %v2551_v32 = vshll.u32 %v6117_v18, 16  ;;  %v2525_v35 = vrot.slane %v2524_v28, 4  ;;  %v2555_v37 = vshrl.u32 %v6117_v18, 16 }
  0x9a   : > { %v2516_v34 = vsel %vm7515_vm7, %v2511_v25, %v2515_v8  ;;  %v2544_v36 = vrot.slane %v2542_v15, 4  ;;  %v2534_v39 = vor.u32 %v2533_v21, %v2529_v29  ;;  %v2561_v43 = vshll.u32 %v6118_v23, 16  ;;  %v6128_v21 = vld [vmem:[%s7444_s11 + $0x84] sm:$0xf] }
  0x9b   : > { %v6150_v38 = vcombine.low %v2506_v24, %v2516_v34  ;;  %v2547_v40 = vrot.slane %v2545_v31, 5  ;;  %v2553_v27 = vrot.slane %v2551_v32, 5  ;;  %6821 = vmatmul.mubr.msk.bf16.gmra.mrb[56].mxu1 %vm312_vm1, %v7108_v13  ;;  %v2530_v41 = vsel %vm7515_vm7, %v2525_v35, %v2529_v29  ;;  %v6126_v24 = vld [vmem:[%s7444_s11 + $0x7c] sm:$0xf] }
  0x9c   : > { %v2557_v42 = vrot.slane %v2555_v37, 4  ;;  %v2566_v44 = vshrl.u32 %v6119_v30, 16  ;;  %6824 = vmatprep.mubr.msk.bf16.mxu1 %vm312_vm1, %v7109_v26  ;;  %v2535_v45 = vrot.slane %v2534_v39, 4  ;;  %v2569_v48 = vshll.u32 %v6119_v30, 16  ;;  %v6127_v26 = vld [vmem:[%s7444_s11 + $0x80] sm:$0x1] }
  0x9d   : > { %6854 = vmatprep.mubr.msk.bf16.mxu0 %vm312_vm1, %v6150_v38  ;;  %v2548_v46 = vor.u32 %v2547_v40, %v2544_v36  ;;  %v2575_v49 = vshll.u32 %v6120_v33, 16  ;;  %v2563_v51 = vrot.slane %v2561_v43, 5  ;;  %v2579_v53 = vshrl.u32 %v6120_v33, 16  ;;  %v6129_v38 = vld [vmem:[%s7444_s11 + $0x88] sm:$0xf]  ;;  %v7112_v39 = vld [vmem:[%s7444_s11 + $0x78] sm:$0xff]  }
  0x9e   : > { %v2558_v50 = vor.u32 %v2557_v42, %v2553_v27  ;;  %v2568_v52 = vrot.slane %v2566_v44, 4  ;;  %v2540_v55 = vsel %vm7515_vm7, %v2535_v45, %v2539_v22  ;;  %v2571_v59 = vrot.slane %v2569_v48, 5 }
  0x9f   : > { %v2549_v58 = vrot.slane %v2548_v46, 4  ;;  %v2577_v60 = vrot.slane %v2575_v49, 5  ;;  %v6151_v62 = vcombine.low %v2530_v41, %v2540_v55  ;;  %v2581_v1 = vrot.slane %v2579_v53, 4  ;;  %v6130_v46 = vld [vmem:[%s7444_s11 + $0x8c] sm:$0x1] }
  0xa0   : > { %v2559_v0 = vrot.slane %v2558_v50, 4  ;;  %v2585_v2 = vshll.u32 %v6121_v47, 16  ;;  %v2572_v5 = vor.u32 %v2571_v59, %v2568_v52  ;;  %v2590_v7 = vshrl.u32 %v6122_v54, 16  ;;  %v6131_v59 = vld [vmem:[%s7444_s11 + $0x90] sm:$0xf] }
  0xa1   : > { %v2554_v3 = vsel %vm7515_vm7, %v2549_v58, %v2553_v27  ;;  %v2593_v8 = vshll.u32 %v6122_v54, 16  ;;  %6855 = vmatmul.mubr.msk.bf16.gmra.mrb[56].mxu0 %vm312_vm1, %v6151_v62  ;;  %v2582_v11 = vor.u32 %v2581_v1, %v2577_v60  ;;  %v2599_v13 = vshll.u32 %v6123_v61, 16  ;;  %v7113_v27 = vld [vmem:[%s7444_s11 + $0x84] sm:$0xff]   ;;  %v6133_v1 = vld [vmem:[%s7444_s11 + $0x98] sm:$0x1] }
  0xa2   : > { %v2564_v10 = vsel %vm7515_vm7, %v2559_v0, %v2563_v51  ;;  %v2587_v12 = vrot.slane %v2585_v2, 5  ;;  %v2573_v17 = vrot.slane %v2572_v5, 4  ;;  %v2592_v18 = vrot.slane %v2590_v7, 4  ;;  %v6132_v0 = vld [vmem:[%s7444_s11 + $0x94] sm:$0xf] }
  0xa3   : > { %v6152_v16 = vcombine.low %v2554_v3, %v2564_v10  ;;  %v2595_v9 = vrot.slane %v2593_v8, 5  ;;  %6825 = vmatmul.mubr.msk.bf16.gmra.mrb[60].mxu1 %vm312_vm1, %v7110_v63  ;;  %v2583_v19 = vrot.slane %v2582_v11, 4  ;;  %v2601_v20 = vrot.slane %v2599_v13, 5 }
  0xa4   : > { %v2603_v23 = vshrl.u32 %v6123_v61, 16  ;;  %v2609_v25 = vshll.u32 %v6124_v6, 16  ;;  %6828 = vmatprep.mubr.msk.bf16.mxu1 %vm312_vm1, %v7111_v4  ;;  %v2578_v28 = vsel %vm7515_vm7, %v2573_v17, %v2577_v60  ;;  %v2614_v15 = vshrl.u32 %v6125_v14, 16  ;;  %v7892_v6 = vld [vmem:[%s9223_s1 + $0x10] sm:$0x3] }
  0xa5   : > { %6858 = vmatprep.mubr.msk.bf16.mxu0 %vm312_vm1, %v6152_v16  ;;  %v2596_v29 = vor.u32 %v2595_v9, %v2592_v18  ;;  %v2617_v30 = vshll.u32 %v6125_v14, 16  ;;  %v2588_v22 = vsel %vm7515_vm7, %v2583_v19, %v2587_v12  ;;  %v2623_v33 = vshll.u32 %v6126_v24, 16  ;;  %7025 = vmatprep.subr.msk.bf16.mxu0 %vm361_vm0, %v7892_v6  ;;  %v7114_v12 = vld [vmem:[%s7444_s11 + $0x90] sm:$0xff]   ;;  %v6134_v18 = vld [vmem:[%s7444_s11 + $0x9c] sm:$0xf] }
  0xa6   : > { %v2605_v31 = vrot.slane %v2603_v23, 4  ;;  %v2611_v32 = vrot.slane %v2609_v25, 5  ;;  %v6153_v34 = vcombine.low %v2578_v28, %v2588_v22  ;;  %v2616_v36 = vrot.slane %v2614_v15, 4  ;;  %v6135_v25 = vld [vmem:[%s7444_s11 + $0xa0] sm:$0xf] }
  0xa7   : > { %v2597_v35 = vrot.slane %v2596_v29, 4  ;;  %v2619_v37 = vrot.slane %v2617_v30, 5  ;;  %v2625_v41 = vrot.slane %v2623_v33, 5  ;;  %v2627_v42 = vshrl.u32 %v6126_v24, 16  ;;  %v7115_v24 = vld [vmem:[%s7444_s11 + $0x9c] sm:$0xff]  }
  0xa8   : > { %v2606_v40 = vor.u32 %v2605_v31, %v2601_v20  ;;  %v2633_v43 = vshll.u32 %v6127_v26, 16  ;;  %v2638_v47 = vshrl.u32 %v6128_v21, 16  ;;  %v2641_v48 = vshll.u32 %v6128_v21, 16  ;;  %v6136_v30 = vld [vmem:[%s7444_s11 + $0xa4] sm:$0x1] }
  0xa9   : > { %v2602_v44 = vsel %vm7515_vm7, %v2597_v35, %v2601_v20  ;;  %v2620_v45 = vor.u32 %v2619_v37, %v2616_v36  ;;  %6859 = vmatmul.mubr.msk.bf16.gmra.mrb[60].mxu0 %vm312_vm1, %v6153_v34  ;;  %v2629_v50 = vrot.slane %v2627_v42, 4  ;;  %v2647_v52 = vshll.u32 %v6129_v38, 16  ;;  %v6137_v37 = vld [vmem:[%s7444_s11 + $0xa8] sm:$0xf] }
  0xaa   : > { %v2607_v49 = vrot.slane %v2606_v40, 4  ;;  %v2635_v51 = vrot.slane %v2633_v43, 5  ;;  %v2640_v54 = vrot.slane %v2638_v47, 4  ;;  %v2643_v55 = vrot.slane %v2641_v48, 5 }
  0xab   : > { %v2621_v53 = vrot.slane %v2620_v45, 4  ;;  %v2651_v58 = vshrl.u32 %v6129_v38, 16  ;;  %6829 = vmatmul.mubr.msk.bf16.gmra.mrb[64].mxu1 %vm312_vm1, %v7112_v39  ;;  %v2630_v61 = vor.u32 %v2629_v50, %v2625_v41  ;;  %v2649_v62 = vrot.slane %v2647_v52, 5 }
  0xac   : > { %v2612_v60 = vsel %vm7515_vm7, %v2607_v49, %v2611_v32  ;;  %v2657_v63 = vshll.u32 %v6130_v46, 16  ;;  %6832 = vmatprep.mubr.msk.bf16.mxu1 %vm312_vm1, %v7113_v27  ;;  %v2644_v4 = vor.u32 %v2643_v55, %v2640_v54  ;;  %v2662_v10 = vshrl.u32 %v6131_v59, 16  ;;  %v6140_v55 = vld [vmem:[%s7444_s11 + $0xb4] sm:$0xf] }
  0xad   : > { %v6154_v2 = vcombine.low %v2602_v44, %v2612_v60  ;;  %v2626_v3 = vsel %vm7515_vm7, %v2621_v53, %v2625_v41  ;;  %v2653_v5 = vrot.slane %v2651_v58, 4  ;;  %v2631_v7 = vrot.slane %v2630_v61, 4  ;;  %v6138_v41 = vld [vmem:[%s7444_s11 + $0xac] sm:$0xf]  ;;  %v6139_v53 = vld [vmem:[%s7444_s11 + $0xb0] sm:$0x1] }
  0xae   : > { %v2659_v8 = vrot.slane %v2657_v63, 5  ;;  %v2665_v11 = vshll.u32 %v6131_v59, 16  ;;  %v2645_v13 = vrot.slane %v2644_v4, 4  ;;  %v2671_v16 = vshll.u32 %v6132_v0, 16  ;;  %v7116_v59 = vld [vmem:[%s7444_s11 + $0xa8] sm:$0xff]  }
  0xaf   : > { %6862 = vmatprep.mubr.msk.bf16.mxu0 %vm312_vm1, %v6154_v2  ;;  %v2654_v14 = vor.u32 %v2653_v5, %v2649_v62  ;;  %v2675_v17 = vshrl.u32 %v6132_v0, 16  ;;  %v2636_v9 = vsel %vm7515_vm7, %v2631_v7, %v2635_v51  ;;  %v2664_v19 = vrot.slane %v2662_v10, 4  ;;  %v6141_v63 = vld [vmem:[%s7444_s11 + $0xb8] sm:$0xf] }
  0xb0   : > { %v2667_v20 = vrot.slane %v2665_v11, 5  ;;  %v2681_v23 = vshll.u32 %v6133_v1, 16  ;;  %v6155_v26 = vcombine.low %v2626_v3, %v2636_v9  ;;  %v2650_v28 = vsel %vm7515_vm7, %v2645_v13, %v2649_v62  ;;  %v7117_v3 = vld [vmem:[%s7444_s11 + $0xb4] sm:$0xff]   ;;  %v6142_v13 = vld [vmem:[%s7444_s11 + $0xbc] sm:$0x1] }
  0xb1   : > { %v2655_v29 = vrot.slane %v2654_v14, 4  ;;  %v2673_v15 = vrot.slane %v2671_v16, 5  ;;  %v2677_v22 = vrot.slane %v2675_v17, 4  ;;  %v2686_v32 = vshrl.u32 %v6134_v18, 16  ;;  %v6143_v17 = vld [vmem:[%s7444_s11 + $0xc0] sm:$0xf] }
  0xb2   : > { %v2668_v21 = vor.u32 %v2667_v20, %v2664_v19  ;;  %v2683_v31 = vrot.slane %v2681_v23, 5  ;;  %6863 = vmatmul.mubr.msk.bf16.gmra.mrb[64].mxu0 %vm312_vm1, %v6155_v26  ;;  %v2689_v34 = vshll.u32 %v6134_v18, 16  ;;  %v2695_v35 = vshll.u32 %v6135_v25, 16  ;;  %v6144_v20 = vld [vmem:[%s7444_s11 + $0xc4] sm:$0xf] }
  0xb3   : > { %v2660_v33 = vsel %vm7515_vm7, %v2655_v29, %v2659_v8  ;;  %v2699_v36 = vshrl.u32 %v6135_v25, 16  ;;  %6833 = vmatmul.mubr.msk.bf16.gmra.mrb[68].mxu1 %vm312_vm1, %v7114_v12  ;;  %v2678_v40 = vor.u32 %v2677_v22, %v2673_v15  ;;  %v2688_v27 = vrot.slane %v2686_v32, 4  ;;  %v6145_v29 = vld [vmem:[%s7444_s11 + $0xc8] sm:$0x1]  ;;  %v6179_v32 = vld [vmem:[%s7444_s11 + $0x10] sm:$0xf] }
  0xb4   : > { %v6156_v38 = vcombine.low %v2650_v28, %v2660_v33  ;;  %v2669_v39 = vrot.slane %v2668_v21, 4  ;;  %6836 = vmatprep.mubr.msk.bf16.mxu1 %vm312_vm1, %v7115_v24  ;;  %v2691_v42 = vrot.slane %v2689_v34, 5  ;;  %v2697_v43 = vrot.slane %v2695_v35, 5  ;;  %v7118_v33 = vld [vmem:[%s7444_s11 + $0xc0] sm:$0xff]  }
  0xb5   : > { %v2701_v44 = vrot.slane %v2699_v36, 4  ;;  %v2705_v45 = vshll.u32 %v6136_v30, 16  ;;  %v2679_v47 = vrot.slane %v2678_v40, 4  ;;  %v2710_v48 = vshrl.u32 %v6137_v37, 16 }
  0xb6   : > { %6866 = vmatprep.mubr.msk.bf16.mxu0 %vm312_vm1, %v6156_v38  ;;  %v2674_v46 = vsel %vm7515_vm7, %v2669_v39, %v2673_v15  ;;  %v2713_v49 = vshll.u32 %v6137_v37, 16  ;;  %v2692_v50 = vor.u32 %v2691_v42, %v2688_v27  ;;  %v2719_v54 = vshll.u32 %v6138_v41, 16  ;;  %v6178_v15 = vld [vmem:[%s7444_s11 + $0xc] sm:$0xe]  ;;  %v6180_v38 = vld [vmem:[%s7444_s11 + $0x14] sm:$0x1] }
  0xb7   : > { %v2702_v51 = vor.u32 %v2701_v44, %v2697_v43  ;;  %v2707_v52 = vrot.slane %v2705_v45, 5  ;;  %v2684_v58 = vsel %vm7515_vm7, %v2679_v47, %v2683_v31  ;;  %v2712_v60 = vrot.slane %v2710_v48, 4  ;;  %v7119_v42 = vld [vmem:[%s9223_s1 + $0xc] ss:$0 sps:$4 sm:$0xcc]  }
  0xb8   : > { %v2715_v61 = vrot.slane %v2713_v49, 5  ;;  %v2723_v62 = vshrl.u32 %v6138_v41, 16  ;;  %v6157_v0 = vcombine.low %v2674_v46, %v2684_v58  ;;  %v2693_v1 = vrot.slane %v2692_v50, 4  ;;  %v6182_v58 = vld [vmem:[%s7444_s11 + $0x1c] sm:$0xf] }
  0xb9   : > { %v2703_v2 = vrot.slane %v2702_v51, 4  ;;  %v2721_v4 = vrot.slane %v2719_v54, 5  ;;  %v2729_v8 = vshll.u32 %v6139_v53, 16  ;;  %v2734_v10 = vshrl.u32 %v6140_v55, 16  ;;  %v6181_v51 = vld [vmem:[%s7444_s11 + $0x18] sm:$0xe] }
  0xba   : > { %v2716_v5 = vor.u32 %v2715_v61, %v2712_v60  ;;  %v2725_v7 = vrot.slane %v2723_v62, 4  ;;  %6867 = vmatmul.mubr.msk.bf16.gmra.mrb[68].mxu0 %vm312_vm1, %v6157_v0  ;;  %v2698_v11 = vsel %vm7515_vm7, %v2693_v1, %v2697_v43  ;;  %v2737_v14 = vshll.u32 %v6140_v55, 16  ;;  %v6184_v0 = vld [vmem:[%s7444_s11 + $0x24] sm:$0xe]  ;;  %v6185_v1 = vld [vmem:[%s7444_s11 + $0x28] sm:$0xf] }
  0xbb   : > { %v2708_v12 = vsel %vm7515_vm7, %v2703_v2, %v2707_v52  ;;  %v2743_v16 = vshll.u32 %v6141_v63, 16  ;;  %6837 = vmatmul.mubr.msk.bf16.gmra.mrb[72].mxu1 %vm312_vm1, %v7116_v59  ;;  %v2731_v19 = vrot.slane %v2729_v8, 5  ;;  %v2736_v23 = vrot.slane %v2734_v10, 4  ;;  %v6183_v59 = vld [vmem:[%s7444_s11 + $0x20] sm:$0x1] }
  0xbc   : > { %v6158_v18 = vcombine.low %v2698_v11, %v2708_v12  ;;  %v2717_v9 = vrot.slane %v2716_v5, 4  ;;  %v2726_v24 = vor.u32 %v2725_v7, %v2721_v4  ;;  %6840 = vmatprep.mubr.msk.bf16.mxu1 %vm312_vm1, %v7117_v3  ;;  %v2739_v25 = vrot.slane %v2737_v14, 5  ;;  %v6186_v2 = vld [vmem:[%s7444_s11 + $0x2c] sm:$0x1]  ;;  %v6187_v8 = vld [vmem:[%s7444_s11 + $0x30] sm:$0xe] }
  0xbd   : > { %v2745_v26 = vrot.slane %v2743_v16, 5  ;;  %v2747_v28 = vshrl.u32 %v6141_v63, 16  ;;  %v2753_v22 = vshll.u32 %v6142_v13, 16  ;;  %v2758_v31 = vshrl.u32 %v6143_v17, 16  ;;  %v6188_v10 = vld [vmem:[%s7444_s11 + $0x34] sm:$0xf] }
  0xbe   : > { %6870 = vmatprep.mubr.msk.bf16.mxu0 %vm312_vm1, %v6158_v18  ;;  %v2722_v30 = vsel %vm7515_vm7, %v2717_v9, %v2721_v4  ;;  %v2727_v21 = vrot.slane %v2726_v24, 4  ;;  %v2740_v34 = vor.u32 %v2739_v25, %v2736_v23  ;;  %v2761_v36 = vshll.u32 %v6143_v17, 16  ;;  %v6189_v16 = vld [vmem:[%s7444_s11 + $0x38] sm:$0x1] }
  0xbf   : > { %v2749_v35 = vrot.slane %v2747_v28, 4  ;;  %v2767_v37 = vshll.u32 %v6144_v20, 16  ;;  %v2755_v40 = vrot.slane %v2753_v22, 5  ;;  %v2760_v27 = vrot.slane %v2758_v31, 4 }
  0xc0   : > { %v2732_v39 = vsel %vm7515_vm7, %v2727_v21, %v2731_v19  ;;  %v2771_v41 = vshrl.u32 %v6144_v20, 16  ;;  %v2741_v44 = vrot.slane %v2740_v34, 4  ;;  %v2763_v46 = vrot.slane %v2761_v36, 5  ;;  %v6190_v19 = vld [vmem:[%s7444_s11 + $0x3c] sm:$0xe] }
  0xc1   : > { %v6159_v43 = vcombine.low %v2722_v30, %v2732_v39  ;;  %v2750_v45 = vor.u32 %v2749_v35, %v2745_v26  ;;  %v2769_v47 = vrot.slane %v2767_v37, 5  ;;  %v2777_v49 = vshll.u32 %v6145_v29, 16  ;;  %v6191_v20 = vld [vmem:[%s7444_s11 + $0x40] sm:$0xf]  ;;  %v7120_v29 = vld [vmem:[%s7444_s11 + $0x18] sm:$0xff]  }
  0xc2   : > { %v2773_v48 = vrot.slane %v2771_v41, 4  ;;  %v6226_v50 = vrot.slane %v6178_v15, 9  ;;  %v2746_v52 = vsel %vm7515_vm7, %v2741_v44, %v2745_v26  ;;  %v2764_v54 = vor.u32 %v2763_v46, %v2760_v27  ;;  %v6192_v15 = vld [vmem:[%s7444_s11 + $0x44] sm:$0x1]  ;;  %v6193_v30 = vld [vmem:[%s7444_s11 + $0x48] sm:$0xe] }
  0xc3   : > { %6871 = vmatmul.mubr.msk.bf16.gmra.mrb[72].mxu0 %vm312_vm1, %v6159_v43  ;;  %v2751_v53 = vrot.slane %v2750_v45, 4  ;;  %v3236_v55 = vrot.slane %v6179_v32, 5  ;;  %6841 = vmatmul.mubr.msk.bf16.gmra.mrb[76].mxu1 %vm312_vm1, %v7118_v33  ;;  %v2779_v61 = vrot.slane %v2777_v49, 5  ;;  %v3239_v62 = vrot.slane %v6180_v38, 5  ;;  %v6194_v33 = vld [vmem:[%s7444_s11 + $0x4c] sm:$0xf] }
  0xc4   : > { %v2774_v60 = vor.u32 %v2773_v48, %v2769_v47  ;;  %v4613_v63 = vrot.slane %v7119_v42, 2  ;;  %v2765_v4 = vrot.slane %v2764_v54, 4  ;;  %v6227_v13 = vrot.slane %v6181_v51, 9  ;;  %v6195_v38 = vld [vmem:[%s7444_s11 + $0x50] sm:$0x1] }
  0xc5   : > { %v2756_v3 = vsel %vm7515_vm7, %v2751_v53, %v2755_v40  ;;  %v3237_v5 = vsel %vm7508_vm6, %v6226_v50, %v3236_v55  ;;  %v3238_v7 = vrot.slane %v3236_v55, 4  ;;  %v3243_v14 = vrot.slane %v6182_v58, 5  ;;  %v6196_v42 = vld [vmem:[%s7444_s11 + $0x54] sm:$0xe]  ;;  %v6197_v43 = vld [vmem:[%s7444_s11 + $0x58] sm:$0xf] }
  0xc6   : > { %v6160_v11 = vcombine.low %v2746_v52, %v2756_v3  ;;  %v2775_v12 = vrot.slane %v2774_v60, 4  ;;  %7024 = vmatprep.subr.msk.bf16.mxu1 %vm361_vm0, %v4613_v63  ;;  %v2770_v17 = vsel %vm7515_vm7, %v2765_v4, %v2769_v47  ;;  %v3246_v9 = vrot.slane %v6183_v59, 5  ;;  %v6198_v44 = vld [vmem:[%s7444_s11 + $0x5c] sm:$0x1]  ;;  %v6199_v49 = vld [vmem:[%s7444_s11 + $0x60] sm:$0xe] }
  0xc7   : > { %v3240_v18 = vsel %vm7508_vm6, %v3238_v7, %v3239_v62  ;;  %v4663_v24 = vsel %vm361_vm0, %v4613_v63, 0  ;;  %v3244_v26 = vsel %vm7508_vm6, %v6227_v13, %v3243_v14  ;;  %v3245_v28 = vrot.slane %v3243_v14, 4  ;;  %v6200_v50 = vld [vmem:[%s7444_s11 + $0x64] sm:$0xf]  ;;  %v6201_v54 = vld [vmem:[%s7444_s11 + $0x68] sm:$0x1] }
  0xc8   : > { %6874 = vmatprep.mubr.msk.bf16.mxu0 %vm312_vm1, %v6160_v11  ;;  %v2780_v23 = vsel %vm7515_vm7, %v2775_v12, %v2779_v61  ;;  %v6242_v25 = vcombine.low %v3237_v5, %v3240_v18  ;;  %v6228_v22 = vrot.slane %v6184_v0, 9  ;;  %v3250_v31 = vrot.slane %v6185_v1, 5  ;;  %v7121_v58 = vld [vmem:[%s7444_s11 + $0x24] sm:$0xff]   ;;  %v6202_v62 = vld [vmem:[%s7444_s11 + $0x6c] sm:$0xe]  ;;  %v7122_v7 = vld [vmem:[%s7444_s11 + $0x30] sm:$0xff]  }
  0xc9   : > { %v6161_v21 = vcombine.low %v2770_v17, %v2780_v23  ;;  %v3253_v32 = vrot.slane %v6186_v2, 5  ;;  %v3247_v34 = vsel %vm7508_vm6, %v3245_v28, %v3246_v9  ;;  %v6229_v35 = vrot.slane %v6187_v8, 9  ;;  %v6203_v63 = vld [vmem:[%s7444_s11 + $0x70] sm:$0xf]  ;;  %v6204_v4 = vld [vmem:[%s7444_s11 + $0x74] sm:$0x1] }
  0xca   : > { %6880 = vmatprep.mubr.msk.bf16.mxu1 %vm312_vm1, %v6242_v25  ;;  %v3257_v36 = vrot.slane %v6188_v10, 5  ;;  %v3260_v37 = vrot.slane %v6189_v16, 5  ;;  %v6243_v39 = vcombine.low %v3244_v26, %v3247_v34  ;;  %v3251_v40 = vsel %vm7508_vm6, %v6228_v22, %v3250_v31  ;;  %v6205_v5 = vld [vmem:[%s7444_s11 + $0x78] sm:$0xe]  ;;  %v6206_v13 = vld [vmem:[%s7444_s11 + $0x7c] sm:$0xf] }
  0xcb   : > { %6875 = vmatmul.mubr.msk.bf16.gmra.mrb[76].mxu0 %vm312_vm1, %v6161_v21  ;;  %v3252_v27 = vrot.slane %v3250_v31, 4  ;;  %v5228_v41 = vsel %vm361_vm0, %v7892_v6, 0  ;;  %v6230_v47 = vrot.slane %v6190_v19, 9  ;;  %v3264_v48 = vrot.slane %v6191_v20, 5  ;;  %v6207_v9 = vld [vmem:[%s7444_s11 + $0x80] sm:$0x1] }
  0xcc   : > { %6914 = vmatprep.mubr.msk.bf16.mxu0 %vm312_vm1, %v7120_v29  ;;  %v3258_v45 = vsel %vm7508_vm6, %v6229_v35, %v3257_v36  ;;  %v3259_v46 = vrot.slane %v3257_v36, 4  ;;  %6881 = vmatmul.mubr.msk.bf16.vlgmr.msra.gmra.mrb[80].mxu1 %vm312_vm1, %v6243_v39  ;;  %v3267_v51 = vrot.slane %v6192_v15, 5  ;;  %v6231_v52 = vrot.slane %v6193_v30, 9  ;;  %v6208_v25 = vld [vmem:[%s7444_s11 + $0x84] sm:$0xe] }
  0xcd   : > { %v3254_v6 = vsel %vm7508_vm6, %v3252_v27, %v3253_v32  ;;  %v3271_v53 = vrot.slane %v6194_v33, 5  ;;  %6947 = vmatpush3.bf16.msra.mxu1 %v4663_v24  ;;  %v3265_v60 = vsel %vm7508_vm6, %v6230_v47, %v3264_v48  ;;  %v3266_v61 = vrot.slane %v3264_v48, 4  ;;  %v6209_v26 = vld [vmem:[%s7444_s11 + $0x88] sm:$0xf]  ;;  %v6210_v28 = vld [vmem:[%s7444_s11 + $0x8c] sm:$0x1] }
  0xce   : > { %v6244_v55 = vcombine.low %v3251_v40, %v3254_v6  ;;  %v3261_v59 = vsel %vm7508_vm6, %v3259_v46, %v3260_v37  ;;  %v3274_v3 = vrot.slane %v6195_v38, 5  ;;  %v6232_v10 = vrot.slane %v6196_v42, 9  ;;  %v6211_v22 = vld [vmem:[%s7444_s11 + $0x90] sm:$0xe]  ;;  %v6212_v31 = vld [vmem:[%s7444_s11 + $0x94] sm:$0xf] }
  0xcf   : > { %v6245_v0 = vcombine.low %v3258_v45, %v3261_v59  ;;  %v8010_v1 = vsel %vm7508_vm6, %v6231_v52, %v3271_v53  ;;  %v3273_v2 = vrot.slane %v3271_v53, 4  ;;  %v3268_v8 = vsel %vm7508_vm6, %v3266_v61, %v3267_v51  ;;  %v6213_v36 = vld [vmem:[%s7444_s11 + $0x98] sm:$0x1]  ;;  %v7123_v37 = vld [vmem:[%s7444_s11 + $0x3c] sm:$0xff]   ;;  %v6216_v47 = vld [vmem:[%s7444_s11 + $0xa4] sm:$0x1] }
  0xd0   : > { %6884 = vmatprep.mubr.msk.bf16.mxu1 %vm312_vm1, %v6244_v55  ;;  %v3278_v11 = vrot.slane %v6197_v43, 5  ;;  %v3281_v12 = vrot.slane %v6198_v44, 5  ;;  %v6246_v14 = vcombine.low %v3265_v60, %v3268_v8  ;;  %v6233_v17 = vrot.slane %v6199_v49, 9  ;;  %v6215_v42 = vld [vmem:[%s7444_s11 + $0xa0] sm:$0xf]  ;;  %v7124_v49 = vld [vmem:[%s7444_s11 + $0x48] sm:$0xff]  }
  0xd1   : > { %v8021_v16 = vsel %vm7508_vm6, %v3273_v2, %v3274_v3  ;;  %v3285_v18 = vrot.slane %v6200_v50, 5  ;;  %v3288_v23 = vrot.slane %v6201_v54, 5  ;;  %v6234_v30 = vrot.slane %v6202_v62, 9  ;;  %v6217_v48 = vld [vmem:[%s7444_s11 + $0xa8] sm:$0xe] }
  0xd2   : > { %v6247_v24 = vcombine.low %v8010_v1, %v8021_v16  ;;  %v8028_v19 = vsel %vm7508_vm6, %v6232_v10, %v3278_v11  ;;  %v3280_v20 = vrot.slane %v3278_v11, 4  ;;  %v3292_v21 = vrot.slane %v6203_v63, 5  ;;  %v6218_v53 = vld [vmem:[%s7444_s11 + $0xac] sm:$0xf]  ;;  %v6219_v60 = vld [vmem:[%s7444_s11 + $0xb0] sm:$0x1] }
  0xd3   : > { %6915 = vmatmul.mubr.msk.bf16.vlgmr.msra.gmra.mrb[80].mxu0 %vm312_vm1, %v7121_v58  ;;  %v8036_v29 = vsel %vm7508_vm6, %v6233_v17, %v3285_v18  ;;  %v3287_v15 = vrot.slane %v3285_v18, 4  ;;  %v3295_v33 = vrot.slane %v6204_v4, 5  ;;  %v6235_v34 = vrot.slane %v6205_v5, 9  ;;  %v6220_v2 = vld [vmem:[%s7444_s11 + $0xb4] sm:$0xe] }
  0xd4   : > { %6981 = vmatpush3.bf16.msra.mxu0 %v5228_v41  ;;  %6918 = vmatprep.mubr.msk.bf16.mxu0 %vm312_vm1, %v7122_v7  ;;  %v3282_v32 = vsel %vm7508_vm6, %v3280_v20, %v3281_v12  ;;  %v3299_v35 = vrot.slane %v6206_v13, 5  ;;  %v8053_v40 = vsel %vm7508_vm6, %v6234_v30, %v3292_v21  ;;  %v3294_v27 = vrot.slane %v3292_v21, 4  ;;  %v6214_v41 = vld [vmem:[%s7444_s11 + $0x9c] sm:$0xe]  ;;  %v6221_v8 = vld [vmem:[%s7444_s11 + $0xb8] sm:$0xf] }
  0xd5   : > { %6885 = vmatmul.mubr.msk.bf16.gmra.mrb[84].mxu1 %vm312_vm1, %v6245_v0  ;;  %v6248_v38 = vcombine.low %v8028_v19, %v3282_v32  ;;  %v8049_v39 = vsel %vm7508_vm6, %v3287_v15, %v3288_v23  ;;  %v3302_v46 = vrot.slane %v6207_v9, 5  ;;  %v6236_v6 = vrot.slane %v6208_v25, 9  ;;  %v6223_v20 = vld [vmem:[%s7444_s11 + $0xc0] sm:$0xe]  ;;  %v6224_v23 = vld [vmem:[%s7444_s11 + $0xc4] sm:$0xf] }
  0xd6   : > { %6888 = vmatprep.mubr.msk.bf16.mxu1 %vm312_vm1, %v6246_v14  ;;  %v6249_v43 = vcombine.low %v8036_v29, %v8049_v39  ;;  %v8062_v44 = vsel %vm7508_vm6, %v6235_v34, %v3299_v35  ;;  %v3301_v45 = vrot.slane %v3299_v35, 4  ;;  %v8069_v50 = vsel %vm7508_vm6, %v3294_v27, %v3295_v33  ;;  %v6222_v14 = vld [vmem:[%s7444_s11 + $0xbc] sm:$0x1]  ;;  %v6225_v30 = vld [vmem:[%s7444_s11 + $0xc8] sm:$0x1] }
  0xd7   : > { %v3306_v51 = vrot.slane %v6209_v26, 5  ;;  %v3309_v52 = vrot.slane %v6210_v28, 5  ;;  %v6250_v54 = vcombine.low %v8053_v40, %v8069_v50  ;;  %v6237_v58 = vrot.slane %v6211_v22, 9  ;;  %v6339_v21 = vld [vmem:[%s7444_s11 + $0x18] sm:$0xf] }
  0xd8   : > { %v8076_v55 = vsel %vm7508_vm6, %v3301_v45, %v3302_v46  ;;  %v3313_v59 = vrot.slane %v6212_v31, 5  ;;  %v3316_v0 = vrot.slane %v6213_v36, 5  ;;  %v6238_v5 = vrot.slane %v6214_v41, 9  ;;  %v6340_v22 = vld [vmem:[%s7444_s11 + $0x1c] sm:$0xf]  ;;  %v7125_v31 = vld [vmem:[%s7444_s11 + $0x54] sm:$0xff]  }
  0xd9   : > { %v6251_v61 = vcombine.low %v8062_v44, %v8076_v55  ;;  %v8083_v62 = vsel %vm7508_vm6, %v6236_v6, %v3306_v51  ;;  %v3308_v63 = vrot.slane %v3306_v51, 4  ;;  %v3320_v7 = vrot.slane %v6215_v42, 5  ;;  %v7126_v36 = vld [vmem:[%s7444_s11 + $0x60] sm:$0xff]  }
  0xda   : > { %v8088_v3 = vsel %vm7508_vm6, %v6237_v58, %v3313_v59  ;;  %v3315_v4 = vrot.slane %v3313_v59, 4  ;;  %v3323_v11 = vrot.slane %v6216_v47, 5  ;;  %v6239_v12 = vrot.slane %v6217_v48, 9  ;;  %v6341_v42 = vld [vmem:[%s7444_s11 + $0x20] sm:$0x1] }
  0xdb   : > { %6919 = vmatmul.mubr.msk.bf16.gmra.mrb[84].mxu0 %vm312_vm1, %v7123_v37  ;;  %v8094_v10 = vsel %vm7508_vm6, %v3308_v63, %v3309_v52  ;;  %v3327_v13 = vrot.slane %v6218_v53, 5  ;;  %v8106_v9 = vsel %vm7508_vm6, %v6238_v5, %v3320_v7  ;;  %v3322_v19 = vrot.slane %v3320_v7, 4  ;;  %v6343_v58 = vld [vmem:[%s7444_s11 + $0x28] sm:$0xf] }
  0xdc   : > { %6922 = vmatprep.mubr.msk.bf16.mxu0 %vm312_vm1, %v7124_v49  ;;  %v6252_v17 = vcombine.low %v8083_v62, %v8094_v10  ;;  %v8102_v18 = vsel %vm7508_vm6, %v3315_v4, %v3316_v0  ;;  %v3330_v15 = vrot.slane %v6219_v60, 5  ;;  %v6240_v16 = vrot.slane %v6220_v2, 9  ;;  %v6342_v49 = vld [vmem:[%s7444_s11 + $0x24] sm:$0xf]  ;;  %v6344_v2 = vld [vmem:[%s7444_s11 + $0x2c] sm:$0x1] }
  0xdd   : > { %6889 = vmatmul.mubr.msk.bf16.gmra.mrb[88].mxu1 %vm312_vm1, %v6247_v24  ;;  %v6253_v25 = vcombine.low %v8088_v3, %v8102_v18  ;;  %v8118_v26 = vsel %vm7508_vm6, %v6239_v12, %v3327_v13  ;;  %v3329_v28 = vrot.slane %v3327_v13, 4  ;;  %v8125_v1 = vsel %vm7508_vm6, %v3322_v19, %v3323_v11  ;;  %v6420_v11 = vld [vmem:[%s7444_s11 + $0x18] sm:$0xe]  ;;  %v7127_v12 = vld [vmem:[%s7444_s11 + $0x6c] sm:$0xff]  }
  0xde   : > { %6892 = vmatprep.mubr.msk.bf16.mxu1 %vm312_vm1, %v6248_v38  ;;  %v3334_v24 = vrot.slane %v6221_v8, 5  ;;  %v6254_v32 = vcombine.low %v8106_v9, %v8125_v1  ;;  %v3337_v34 = vrot.slane %v6222_v14, 5  ;;  %v6241_v35 = vrot.slane %v6223_v20, 9  ;;  %v6430_v1 = vld [vmem:[%s7444_s11 + $0x40] sm:$0xf] }
  0xdf   : > { %v8133_v33 = vsel %vm7508_vm6, %v3329_v28, %v3330_v15  ;;  %v3341_v41 = vrot.slane %v6224_v23, 5  ;;  %v3344_v45 = vrot.slane %v6225_v30, 5  ;;  %v4178_v46 = vshrl.u32 %v6339_v21, 16  ;;  %v6421_v23 = vld [vmem:[%s7444_s11 + $0x1c] sm:$0xf] }
  0xe0   : > { %v6255_v37 = vcombine.low %v8118_v26, %v8133_v33  ;;  %v8140_v38 = vsel %vm7508_vm6, %v6240_v16, %v3334_v24  ;;  %v3336_v27 = vrot.slane %v3334_v24, 4  ;;  %v4181_v47 = vshll.u32 %v6339_v21, 16  ;;  %v6422_v28 = vld [vmem:[%s7444_s11 + $0x20] sm:$0x1]  ;;  %v7128_v16 = vld [vmem:[%s7444_s11 + $0x78] sm:$0xff]  }
  0xe1   : > { %v4187_v48 = vshll.u32 %v6340_v22, 16  ;;  %v8150_v51 = vsel %vm7508_vm6, %v6241_v35, %v3341_v41  ;;  %v3343_v52 = vrot.slane %v3341_v41, 4  ;;  %v4191_v53 = vshrl.u32 %v6340_v22, 16 }
  0xe2   : > { %v8146_v6 = vsel %vm7508_vm6, %v3336_v27, %v3337_v34  ;;  %v4180_v60 = vrot.slane %v4178_v46, 4  ;;  %v4183_v63 = vrot.slane %v4181_v47, 5  ;;  %v4197_v7 = vshll.u32 %v6341_v42, 16 }
  0xe3   : > { %6923 = vmatmul.mubr.msk.bf16.gmra.mrb[88].mxu0 %vm312_vm1, %v7125_v31  ;;  %v6256_v59 = vcombine.low %v8140_v38, %v8146_v6  ;;  %v4189_v0 = vrot.slane %v4187_v48, 5  ;;  %v8160_v4 = vsel %vm7508_vm6, %v3343_v52, %v3344_v45  ;;  %v4193_v5 = vrot.slane %v4191_v53, 4  ;;  %v6346_v52 = vld [vmem:[%s7444_s11 + $0x34] sm:$0xf] }
  0xe4   : > { %6926 = vmatprep.mubr.msk.bf16.mxu0 %vm312_vm1, %v7126_v36  ;;  %v4202_v8 = vshrl.u32 %v6342_v49, 16  ;;  %v6257_v13 = vcombine.low %v8150_v51, %v8160_v4  ;;  %v4184_v14 = vor.u32 %v4183_v63, %v4180_v60  ;;  %v4205_v19 = vshll.u32 %v6342_v49, 16 }
  0xe5   : > { %6893 = vmatmul.mubr.msk.bf16.gmra.mrb[92].mxu1 %vm312_vm1, %v6249_v43  ;;  %v4211_v20 = vshll.u32 %v6343_v58, 16  ;;  %v4194_v30 = vor.u32 %v4193_v5, %v4189_v0  ;;  %v4199_v29 = vrot.slane %v4197_v7, 5  ;;  %v4215_v21 = vshrl.u32 %v6343_v58, 16  ;;  %v6345_v43 = vld [vmem:[%s7444_s11 + $0x30] sm:$0xf] }
  0xe6   : > { %6896 = vmatprep.mubr.msk.bf16.mxu1 %vm312_vm1, %v6250_v54  ;;  %v4204_v39 = vrot.slane %v4202_v8, 4  ;;  %v4185_v22 = vrot.slane %v4184_v14, 4  ;;  %v4207_v31 = vrot.slane %v4205_v19, 5  ;;  %v4221_v35 = vshll.u32 %v6344_v2, 16  ;;  %v6423_v19 = vld [vmem:[%s7444_s11 + $0x24] sm:$0xe] }
  0xe7   : > { %v4213_v34 = vrot.slane %v4211_v20, 5  ;;  %v4195_v54 = vrot.slane %v4194_v30, 4  ;;  %v4217_v36 = vrot.slane %v4215_v21, 4  ;;  %v6468_v27 = vrot.slane %v6420_v11, 9 }
  0xe8   : > { %v5020_v41 = vrot.slane %v6421_v23, 5  ;;  %v4190_v46 = vsel %vm7515_vm7, %v4185_v22, %v4189_v0  ;;  %v4208_v47 = vor.u32 %v4207_v31, %v4204_v39  ;;  %v4223_v48 = vrot.slane %v4221_v35, 5  ;;  %v6347_v0 = vld [vmem:[%s7444_s11 + $0x38] sm:$0x1]  ;;  %v6349_v31 = vld [vmem:[%s7444_s11 + $0x40] sm:$0xf] }
  0xe9   : > { %v5023_v49 = vrot.slane %v6422_v28, 5  ;;  %v4200_v58 = vsel %vm7515_vm7, %v4195_v54, %v4199_v29  ;;  %v4218_v60 = vor.u32 %v4217_v36, %v4213_v34  ;;  %v4226_v11 = vshrl.u32 %v6345_v43, 16  ;;  %v6350_v54 = vld [vmem:[%s7444_s11 + $0x44] sm:$0x1] }
  0xea   : > { %v8191_v63 = vsel %vm7508_vm6, %v6468_v27, %v5020_v41  ;;  %v5022_v2 = vrot.slane %v5020_v41, 4  ;;  %v8196_v7 = vcombine.low %v4190_v46, %v4200_v58  ;;  %v4209_v8 = vrot.slane %v4208_v47, 4  ;;  %v8231_v47 = vld [vmem:[%s7444_s11 + $0x30] sm:$0xe] }
  0xeb   : > { %6927 = vmatmul.mubr.msk.bf16.gmra.mrb[92].mxu0 %vm312_vm1, %v7127_v12  ;;  %v4229_v14 = vshll.u32 %v6345_v43, 16  ;;  %v4219_v20 = vrot.slane %v4218_v60, 4  ;;  %v4235_v12 = vshll.u32 %v6346_v52, 16  ;;  %v4239_v28 = vshrl.u32 %v6346_v52, 16  ;;  %v6425_v43 = vld [vmem:[%s7444_s11 + $0x2c] sm:$0x1] }
  0xec   : > { %6930 = vmatprep.mubr.msk.bf16.mxu0 %vm312_vm1, %v7128_v16  ;;  %v8203_v23 = vsel %vm7508_vm6, %v5022_v2, %v5023_v49  ;;  %v4214_v30 = vsel %vm7515_vm7, %v4209_v8, %v4213_v34  ;;  %v4228_v39 = vrot.slane %v4226_v11, 4  ;;  %v6348_v16 = vld [vmem:[%s7444_s11 + $0x3c] sm:$0xf]  ;;  %v4245_v22 = vshll.u32 %v6347_v0, 16  ;;  %v7129_v34 = vld [vmem:[%s7444_s11 + $0x84] sm:$0xff]  }
  0xed   : > { %6897 = vmatmul.mubr.msk.bf16.gmra.mrb[96].mxu1 %vm312_vm1, %v6251_v61  ;;  %v6484_v29 = vcombine.low %v8191_v63, %v8203_v23  ;;  %v4231_v21 = vrot.slane %v4229_v14, 5  ;;  %v4224_v55 = vsel %vm7515_vm7, %v4219_v20, %v4223_v48  ;;  %v4237_v61 = vrot.slane %v4235_v12, 5  ;;  %v6427_v2 = vld [vmem:[%s7444_s11 + $0x34] sm:$0xf]  ;;  %v8241_v0 = vld [vmem:[%s7444_s11 + $0x38] sm:$0x1] }
  0xee   : > { %6900 = vmatprep.mubr.msk.bf16.mxu1 %vm312_vm1, %v6252_v17  ;;  %v6469_v62 = vrot.slane %v6423_v19, 9  ;;  %v7130_v17 = vld [vmem:[%s7444_s11 + $0x90] sm:$0xff]   ;;  %v4250_v46 = vshrl.u32 %v6348_v16, 16  ;;  %v4253_v60 = vshll.u32 %v6348_v16, 16  ;;  %v4259_v14 = vshll.u32 %v6349_v31, 16 }
  0xef   : > { %v4263_v19 = vshrl.u32 %v6349_v31, 16  ;;  %v6470_v31 = vrot.slane %v8231_v47, 9  ;;  %v5034_v18 = vrot.slane %v6427_v2, 5 }
  0xf0   : > { %v6728_v15 = vpop.f32.mrb[0].mxu1  ;;  %v4252_v11 = vrot.slane %v4250_v46, 4  ;;  %v4261_v16 = vrot.slane %v4259_v14, 5 }
  0xf1   : > { %545 = vst.msk [vmem:[#allocation2 + $0x90] sm:$0xff] %vm526_vm8, %v6728_v15  ;;  %v463_v24 = vpop.f32.mrb[1].mxu1  ;;  %v6712_v50 = vpop.f32.mrb[0].mxu0  ;;  %v6424_v15 = vld [vmem:[%s7444_s11 + $0x28] sm:$0xf] }
  0xf2   : > { %543 = vst.msk [vmem:[#allocation2 + $0x80] sm:$0xff] %vm526_vm8, %v463_v24  ;;  %v6729_v40 = vpop.f32.mrb[2].mxu1  ;;  %529 = vst.msk [vmem:[#allocation2 + $0x10] sm:$0xff] %vm526_vm8, %v6712_v50  ;;  %v399_v45 = vpop.f32.mrb[1].mxu0  ;;  %v4241_v24 = vrot.slane %v4239_v28, 4  ;;  %v4232_v50 = vor.u32 %v4231_v21, %v4228_v39  ;;  %v5027_v10 = vrot.slane %v6424_v15, 5 }
  0xf3   : > { %546 = vst.msk [vmem:[#allocation2 + $0x98] sm:$0xff] %vm526_vm8, %v6729_v40  ;;  %v466_v42 = vpop.f32.mrb[3].mxu1  ;;  %527 = vst.msk [vmem:[#allocation2] sm:$0xff] %vm526_vm8, %v399_v45  ;;  %v6713_v53 = vpop.f32.mrb[2].mxu0  ;;  %v8225_v40 = vcombine.low %v4214_v30, %v4224_v55  ;;  %v5030_v45 = vrot.slane %v6425_v43, 5  ;;  %6931 = vmatmul.mubr.msk.bf16.gmra.mrb[96].mxu0 %vm312_vm1, %v7129_v34  ;;  %v4255_v15 = vrot.slane %v4253_v60, 5 }
  0xf4   : > { %544 = vst.msk [vmem:[#allocation2 + $0x88] sm:$0xff] %vm526_vm8, %v466_v42  ;;  %530 = vst.msk [vmem:[#allocation2 + $0x18] sm:$0xff] %vm526_vm8, %v6713_v53  ;;  %v402_v5 = vpop.f32.mrb[3].mxu0  ;;  %v4242_v41 = vor.u32 %v4241_v24, %v4237_v61  ;;  %v4247_v42 = vrot.slane %v4245_v22, 5  ;;  %v4233_v52 = vrot.slane %v4232_v50, 4  ;;  %v8237_v53 = vsel %vm7508_vm6, %v6469_v62, %v5027_v10  ;;  %6934 = vmatprep.mubr.msk.bf16.mxu0 %vm312_vm1, %v7130_v17 }
  0xf5   : > { %528 = vst.msk [vmem:[#allocation2 + $0x8] sm:$0xff] %vm526_vm8, %v402_v5  ;;  %v5029_v58 = vrot.slane %v5027_v10, 4  ;;  %v4269_v30 = vshll.u32 %v6350_v54, 16  ;;  %v6351_v39 = vld [vmem:[%s7444_s11 + $0x48] sm:$0xf]  ;;  %6901 = vmatmul.mubr.msk.bf16.gmra.mrb[100].mxu1 %vm312_vm1, %v6253_v25  ;;  %v4256_v24 = vor.u32 %v4255_v15, %v4252_v11  ;;  %v5037_v25 = vrot.slane %v8241_v0, 5 }
  0xf6   : > { %v4243_v8 = vrot.slane %v4242_v41, 4  ;;  %v4238_v12 = vsel %vm7515_vm7, %v4233_v52, %v4237_v61  ;;  %v6352_v55 = vld [vmem:[%s7444_s11 + $0x4c] sm:$0xf]  ;;  %v6353_v34 = vld [vmem:[%s7444_s11 + $0x50] sm:$0x1]  ;;  %6904 = vmatprep.mubr.msk.bf16.mxu1 %vm312_vm1, %v6254_v32  ;;  %v4274_v50 = vshrl.u32 %v6351_v39, 16 }
  0xf7   : > { %v8251_v28 = vsel %vm7508_vm6, %v5029_v58, %v5030_v45  ;;  %v4271_v22 = vrot.slane %v4269_v30, 5  ;;  %v6429_v62 = vld [vmem:[%s7444_s11 + $0x3c] sm:$0xe]  ;;  %v4257_v17 = vrot.slane %v4256_v24, 4  ;;  %v4287_v9 = vshrl.u32 %v6352_v55, 16 }
  0xf8   : > { %v6732_v44 = vpop.f32.mrb[4].mxu1  ;;  %v4248_v21 = vsel %vm7515_vm7, %v4243_v8, %v4247_v42  ;;  %v6485_v43 = vcombine.low %v8237_v53, %v8251_v28  ;;  %v7131_v10 = vld [vmem:[%s7444_s11 + $0x9c] sm:$0xff]   ;;  %v8279_v41 = vld [vmem:[%s7444_s11 + $0x44] sm:$0x1]  ;;  %v6354_v32 = vld [vmem:[%s7444_s11 + $0x54] sm:$0xf] }
  0xf9   : > { %549 = vst.msk [vmem:[#allocation2 + $0xb0] sm:$0xff] %vm526_vm8, %v6732_v44  ;;  %v479_v35 = vpop.f32.mrb[5].mxu1  ;;  %v6716_v27 = vpop.f32.mrb[4].mxu0  ;;  %v4265_v44 = vrot.slane %v4263_v19, 4  ;;  %v8265_v61 = vcombine.low %v4238_v12, %v4248_v21  ;;  %v7132_v42 = vld [vmem:[%s7444_s11 + $0xa8] sm:$0xff]   ;;  %v4276_v52 = vrot.slane %v4274_v50, 4  ;;  %v4262_v60 = vsel %vm7515_vm7, %v4257_v17, %v4261_v16 }
  0xfa   : > { %547 = vst.msk [vmem:[#allocation2 + $0xa0] sm:$0xff] %vm526_vm8, %v479_v35  ;;  %v6733_v36 = vpop.f32.mrb[6].mxu1  ;;  %533 = vst.msk [vmem:[#allocation2 + $0x30] sm:$0xff] %vm526_vm8, %v6716_v27  ;;  %v415_v49 = vpop.f32.mrb[5].mxu0  ;;  %v4283_v27 = vshll.u32 %v6352_v55, 16  ;;  %v4289_v8 = vrot.slane %v4287_v9, 4 }
  0xfb   : > { %550 = vst.msk [vmem:[#allocation2 + $0xb8] sm:$0xff] %vm526_vm8, %v6733_v36  ;;  %v482_v48 = vpop.f32.mrb[7].mxu1  ;;  %531 = vst.msk [vmem:[#allocation2 + $0x20] sm:$0xff] %vm526_vm8, %v415_v49  ;;  %v6717_v5 = vpop.f32.mrb[6].mxu0  ;;  %v4266_v3 = vor.u32 %v4265_v44, %v4261_v16  ;;  %v4277_v36 = vshll.u32 %v6351_v39, 16  ;;  %v5036_v49 = vrot.slane %v5034_v18, 4  ;;  %6935 = vmatmul.mubr.msk.bf16.gmra.mrb[100].mxu0 %vm312_vm1, %v7131_v10 }
  0xfc   : > { %548 = vst.msk [vmem:[#allocation2 + $0xa8] sm:$0xff] %vm526_vm8, %v482_v48  ;;  %534 = vst.msk [vmem:[#allocation2 + $0x38] sm:$0xff] %vm526_vm8, %v6717_v5  ;;  %v418_v20 = vpop.f32.mrb[7].mxu0  ;;  %v8286_v48 = vsel %vm7508_vm6, %v6470_v31, %v5034_v18  ;;  %v4285_v5 = vrot.slane %v4283_v27, 5  ;;  %v6471_v12 = vrot.slane %v6429_v62, 9  ;;  %6938 = vmatprep.mubr.msk.bf16.mxu0 %vm312_vm1, %v7132_v42  ;;  %v5044_v31 = vrot.slane %v8279_v41, 5 }
  0xfd   : > { %532 = vst.msk [vmem:[#allocation2 + $0x28] sm:$0xff] %vm526_vm8, %v418_v20  ;;  %v4267_v46 = vrot.slane %v4266_v3, 4  ;;  %v4279_v0 = vrot.slane %v4277_v36, 5  ;;  %v8298_v19 = vsel %vm7508_vm6, %v5036_v49, %v5037_v25  ;;  %v4293_v20 = vshll.u32 %v6353_v34, 16  ;;  %v6355_v15 = vld [vmem:[%s7444_s11 + $0x58] sm:$0xf]  ;;  %6905 = vmatmul.mubr.msk.bf16.gmra.mrb[104].mxu1 %vm312_vm1, %v6255_v37 }
  0xfe   : > { %v6486_v21 = vcombine.low %v8286_v48, %v8298_v19  ;;  %v4290_v44 = vor.u32 %v4289_v8, %v4285_v5  ;;  %v6356_v55 = vld [vmem:[%s7444_s11 + $0x5c] sm:$0x1]  ;;  %v4298_v34 = vshrl.u32 %v6354_v32, 16  ;;  %v4301_v25 = vshll.u32 %v6354_v32, 16  ;;  %v6433_v62 = vld [vmem:[%s7444_s11 + $0x4c] sm:$0xf]  ;;  %6908 = vmatprep.mubr.msk.bf16.mxu1 %vm312_vm1, %v6256_v59 }
  0xff   : > { %v4272_v11 = vsel %vm7515_vm7, %v4267_v46, %v4271_v22  ;;  %v4280_v16 = vor.u32 %v4279_v0, %v4276_v52  ;;  %v4295_v24 = vrot.slane %v4293_v20, 5  ;;  %v5041_v22 = vrot.slane %v6430_v1, 5  ;;  %v6434_v17 = vld [vmem:[%s7444_s11 + $0x50] sm:$0x1]  ;;  %v7133_v36 = vld [vmem:[%s7444_s11 + $0xb4] sm:$0xff]   ;;  %v7134_v41 = vld [vmem:[%s7444_s11 + $0xc0] sm:$0xff]  }
 0x100   : > { %v6736_v35 = vpop.f32.mrb[8].mxu1  ;;  %v8302_v30 = vcombine.low %v4262_v60, %v4272_v11  ;;  %v4291_v18 = vrot.slane %v4290_v44, 4  ;;  %v4307_v50 = vshll.u32 %v6355_v15, 16  ;;  %v4300_v33 = vrot.slane %v4298_v34, 4  ;;  %v6357_v1 = vld [vmem:[%s7444_s11 + $0x60] sm:$0xf] }
 0x101   : > { %553 = vst.msk [vmem:[#allocation2 + $0xd0] sm:$0xff] %vm526_vm8, %v6736_v35  ;;  %v495_v54 = vpop.f32.mrb[9].mxu1  ;;  %v6720_v47 = vpop.f32.mrb[8].mxu0  ;;  %v6432_v35 = vld [vmem:[%s7444_s11 + $0x48] sm:$0xe]  ;;  %v4281_v3 = vrot.slane %v4280_v16, 4 }
 0x102   : > { %551 = vst.msk [vmem:[#allocation2 + $0xc0] sm:$0xff] %vm526_vm8, %v495_v54  ;;  %v6737_v45 = vpop.f32.mrb[10].mxu1  ;;  %537 = vst.msk [vmem:[#allocation2 + $0x50] sm:$0xff] %vm526_vm8, %v6720_v47  ;;  %v431_v2 = vpop.f32.mrb[9].mxu0  ;;  %v8323_v54 = vsel %vm7508_vm6, %v6471_v12, %v5041_v22  ;;  %v5043_v26 = vrot.slane %v5041_v22, 4  ;;  %v4311_v37 = vshrl.u32 %v6355_v15, 16  ;;  %v4296_v38 = vsel %vm7515_vm7, %v4291_v18, %v4295_v24 }
 0x103   : > { %554 = vst.msk [vmem:[#allocation2 + $0xd8] sm:$0xff] %vm526_vm8, %v6737_v45  ;;  %v498_v58 = vpop.f32.mrb[11].mxu1  ;;  %535 = vst.msk [vmem:[#allocation2 + $0x40] sm:$0xff] %vm526_vm8, %v431_v2  ;;  %v6721_v14 = vpop.f32.mrb[10].mxu0  ;;  %v4286_v9 = vsel %vm7515_vm7, %v4281_v3, %v4285_v5  ;;  %v4303_v6 = vrot.slane %v4301_v25, 5  ;;  %v4309_v59 = vrot.slane %v4307_v50, 5  ;;  %6939 = vmatmul.mubr.msk.bf16.gmra.mrb[104].mxu0 %vm312_vm1, %v7133_v36 }
 0x104   : > { %552 = vst.msk [vmem:[#allocation2 + $0xc8] sm:$0xff] %vm526_vm8, %v498_v58  ;;  %538 = vst.msk [vmem:[#allocation2 + $0x58] sm:$0xff] %vm526_vm8, %v6721_v14  ;;  %v434_v39 = vpop.f32.mrb[11].mxu0  ;;  %v8335_v42 = vcombine.low %v4286_v9, %v4296_v38  ;;  %v8339_v45 = vsel %vm7508_vm6, %v5043_v26, %v5044_v31  ;;  %v4313_v46 = vrot.slane %v4311_v37, 4  ;;  %v4317_v47 = vshll.u32 %v6356_v55, 16  ;;  %6942 = vmatprep.mubr.msk.bf16.mxu0 %vm312_vm1, %v7134_v41  ;;  %v7135_v25 = vld [vmem:[%s7444_s11 + $0xcc] sm:$0xff]  }
 0x105   : > { %536 = vst.msk [vmem:[#allocation2 + $0x48] sm:$0xff] %vm526_vm8, %v434_v39  ;;  %v6487_v58 = vcombine.low %v8323_v54, %v8339_v45  ;;  %v4304_v60 = vor.u32 %v4303_v6, %v4300_v33  ;;  %v6472_v0 = vrot.slane %v6432_v35, 9  ;;  %v5048_v5 = vrot.slane %v6433_v62, 5  ;;  %v6358_v8 = vld [vmem:[%s7444_s11 + $0x64] sm:$0xf]  ;;  %6909 = vmatmul.mubr.msk.bf16.gmra.mrb[108].mxu1 %vm312_vm1, %v6257_v13  ;;  %v1261_v13 = vld [vmem:[#allocation2 + $0x10] sm:$0xff] }
 0x106   : > { %v4314_v11 = vor.u32 %v4313_v46, %v4309_v59  ;;  %v4319_v14 = vrot.slane %v4317_v47, 5  ;;  %v5051_v12 = vrot.slane %v6434_v17, 5  ;;  %v6359_v15 = vld [vmem:[%s7444_s11 + $0x68] sm:$0x1]  ;;  %v4322_v39 = vshrl.u32 %v6357_v1, 16  ;;  %6948 = vmatprep.mubr.msk.bf16.mxu1 %vm312_vm1, %v8196_v7  ;;  %v1262_v41 = vld [vmem:[#allocation2 + $0x18] sm:$0xff] }
 0x107   : > { %v4305_v16 = vrot.slane %v4304_v60, 4  ;;  %v8353_v55 = vsel %vm7508_vm6, %v6472_v0, %v5048_v5  ;;  %v5050_v24 = vrot.slane %v5048_v5, 4  ;;  %v4325_v22 = vshll.u32 %v6357_v1, 16  ;;  %v6435_v18 = vld [vmem:[%s7444_s11 + $0x54] sm:$0xe]  ;;  %v1259_v1 = vld [vmem:[#allocation2] sm:$0xff] }
 0x108   : > { %v6740_v10 = vpop.f32.mrb[12].mxu1  ;;  %v4315_v31 = vrot.slane %v4314_v11, 4  ;;  %v4324_v34 = vrot.slane %v4322_v39, 4  ;;  %v4331_v35 = vshll.u32 %v6358_v8, 16  ;;  %v4335_v3 = vshrl.u32 %v6358_v8, 16 }
 0x109   : > { %557 = vst.msk [vmem:[#allocation2 + $0xf0] sm:$0xff] %vm526_vm8, %v6740_v10  ;;  %v511_v27 = vpop.f32.mrb[13].mxu1  ;;  %v6724_v49 = vpop.f32.mrb[12].mxu0  ;;  %v4310_v50 = vsel %vm7515_vm7, %v4305_v16, %v4309_v59  ;;  %v8367_v62 = vsel %vm7508_vm6, %v5050_v24, %v5051_v12  ;;  %v4327_v10 = vrot.slane %v4325_v22, 5  ;;  %v4341_v26 = vshll.u32 %v6359_v15, 16 }
 0x10a   : > { %555 = vst.msk [vmem:[#allocation2 + $0xe0] sm:$0xff] %vm526_vm8, %v511_v27  ;;  %v6741_v32 = vpop.f32.mrb[14].mxu1  ;;  %541 = vst.msk [vmem:[#allocation2 + $0x70] sm:$0xff] %vm526_vm8, %v6724_v49  ;;  %v447_v2 = vpop.f32.mrb[13].mxu0  ;;  %v6436_v33 = vld [vmem:[%s7444_s11 + $0x58] sm:$0xf]  ;;  %v4320_v51 = vsel %vm7515_vm7, %v4315_v31, %v4319_v14  ;;  %v6488_v17 = vcombine.low %v8353_v55, %v8367_v62 }
 0x10b   : > { %558 = vst.msk [vmem:[#allocation2 + $0xf8] sm:$0xff] %vm526_vm8, %v6741_v32  ;;  %v514_v52 = vpop.f32.mrb[15].mxu1  ;;  %539 = vst.msk [vmem:[#allocation2 + $0x60] sm:$0xff] %vm526_vm8, %v447_v2  ;;  %v6725_v20 = vpop.f32.mrb[14].mxu0  ;;  %v6437_v37 = vld [vmem:[%s7444_s11 + $0x5c] sm:$0x1]  ;;  %v8378_v38 = vcombine.low %v4310_v50, %v4320_v51  ;;  %v4328_v32 = vor.u32 %v4327_v10, %v4324_v34  ;;  %6943 = vmatmul.mubr.msk.bf16.gmra.mrb[108].mxu0 %vm312_vm1, %v7135_v25 }
 0x10c   : > { %556 = vst.msk [vmem:[#allocation2 + $0xe8] sm:$0xff] %vm526_vm8, %v514_v52  ;;  %542 = vst.msk [vmem:[#allocation2 + $0x78] sm:$0xff] %vm526_vm8, %v6725_v20  ;;  %v450_v44 = vpop.f32.mrb[15].mxu0  ;;  %v4333_v36 = vrot.slane %v4331_v35, 5  ;;  %v4337_v27 = vrot.slane %v4335_v3, 4  ;;  %v4343_v7 = vrot.slane %v4341_v26, 5  ;;  %6982 = vmatprep.mubr.msk.bf16.mxu0 %vm312_vm1, %v6484_v29 }
 0x10d   : > { %540 = vst.msk [vmem:[#allocation2 + $0x68] sm:$0xff] %vm526_vm8, %v450_v44  ;;  %v6360_v9 = vld [vmem:[%s7444_s11 + $0x6c] sm:$0xf]  ;;  %v6361_v46 = vld [vmem:[%s7444_s11 + $0x70] sm:$0xf]  ;;  %v6473_v60 = vrot.slane %v6435_v18, 9  ;;  %6949 = vmatmul.mubr.msk.bf16.vlgmr.msra.gmra.mrb[112].mxu1 %vm312_vm1, %v8225_v40 }
 0x10e   : > { %v4338_v52 = vor.u32 %v4337_v27, %v4333_v36  ;;  %v5055_v2 = vrot.slane %v6436_v33, 5  ;;  %v6362_v0 = vld [vmem:[%s7444_s11 + $0x74] sm:$0x1]  ;;  %v1260_v14 = vld [vmem:[#allocation2 + $0x8] sm:$0xff]  ;;  %v4329_v20 = vrot.slane %v4328_v32, 4  ;;  %v5058_v12 = vrot.slane %v6437_v37, 5  ;;  %6952 = vmatprep.mubr.msk.bf16.mxu1 %vm312_vm1, %v8265_v61 }
 0x10f   : > { %v4346_v15 = vshrl.u32 %v6360_v9, 16  ;;  %v6438_v34 = vld [vmem:[%s7444_s11 + $0x60] sm:$0xe]  ;;  %v4349_v18 = vshll.u32 %v6360_v9, 16  ;;  %v4355_v50 = vshll.u32 %v6361_v46, 16  ;;  %v4359_v37 = vshrl.u32 %v6361_v46, 16 }
 0x110   : > { %v6746_v4 = vpop.f32.mrb[16].mxu1  ;;  %v4339_v44 = vrot.slane %v4338_v52, 4  ;;  %v8386_v24 = vsel %vm7508_vm6, %v6473_v60, %v5055_v2  ;;  %v5057_v22 = vrot.slane %v5055_v2, 4  ;;  %v4334_v35 = vsel %vm7515_vm7, %v4329_v20, %v4333_v36  ;;  %v6439_v26 = vld [vmem:[%s7444_s11 + $0x64] sm:$0xf]  ;;  %v1265_v32 = vld [vmem:[#allocation2 + $0x30] sm:$0xff] }
 0x111   : > { %v1293_v6 = vadd.f32 %v6746_v4, %v1261_v13  ;;  %v1132_v59 = vpop.f32.mrb[17].mxu1  ;;  %v6780_v5 = vpop.f32.mrb[16].mxu0  ;;  %v4348_v3 = vrot.slane %v4346_v15, 4  ;;  %v4365_v51 = vshll.u32 %v6362_v0, 16  ;;  %v6440_v4 = vld [vmem:[%s7444_s11 + $0x68] sm:$0x1] }
 0x112   : > { %v1291_v47 = vadd.f32 %v1259_v1, %v1132_v59  ;;  %v6747_v49 = vpop.f32.mrb[18].mxu1  ;;  %v1700_v39 = vpop.f32.mrb[17].mxu0  ;;  %v4344_v25 = vsel %vm7515_vm7, %v4339_v44, %v4343_v7  ;;  %v8407_v33 = vsel %vm7508_vm6, %v5057_v22, %v5058_v12  ;;  %v6363_v13 = vld [vmem:[%s7444_s11 + $0x78] sm:$0xf]  ;;  %v4351_v23 = vrot.slane %v4349_v18, 5  ;;  %v1263_v7 = vld [vmem:[#allocation2 + $0x20] sm:$0xff] }
 0x113   : > { %1325 = vst.msk [vmem:[#allocation2 + $0x10] sm:$0xff] %vm526_vm8, %v1293_v6  ;;  %v1294_v8 = vadd.f32 %v6747_v49, %v1262_v41  ;;  %v1135_v11 = vpop.f32.mrb[19].mxu1  ;;  %v8388_v31 = vpop.f32.mrb[18].mxu0  ;;  %v8413_v36 = vcombine.low %v4334_v35, %v4344_v25  ;;  %v6489_v63 = vcombine.low %v8386_v24, %v8407_v33  ;;  %v4357_v29 = vrot.slane %v4355_v50, 5  ;;  %v1266_v0 = vld [vmem:[#allocation2 + $0x38] sm:$0xff]  ;;  %6983 = vmatmul.mubr.msk.bf16.vlgmr.msra.gmra.mrb[112].mxu0 %vm312_vm1, %v6485_v43 }
 0x114   : > { %1323 = vst.msk [vmem:[#allocation2] sm:$0xff] %vm526_vm8, %v1291_v47  ;;  %v1292_v16 = vadd.f32 %v1260_v14, %v1135_v11  ;;  %v8395_v10 = vpop.f32.mrb[19].mxu0  ;;  %v4361_v27 = vrot.slane %v4359_v37, 4  ;;  %v4367_v9 = vrot.slane %v4365_v51, 5  ;;  %v6474_v6 = vrot.slane %v6438_v34, 9  ;;  %6986 = vmatprep.mubr.msk.bf16.mxu0 %vm312_vm1, %v6486_v21 }
 0x115   : > { %1326 = vst.msk [vmem:[#allocation2 + $0x18] sm:$0xff] %vm526_vm8, %v1294_v8  ;;  %v5062_v59 = vrot.slane %v6439_v26, 5  ;;  %v4352_v1 = vor.u32 %v4351_v23, %v4348_v3  ;;  %v5065_v40 = vrot.slane %v6440_v4, 5  ;;  %v4370_v46 = vshrl.u32 %v6363_v13, 16  ;;  %v6364_v11 = vld [vmem:[%s7444_s11 + $0x7c] sm:$0xf]  ;;  %6953 = vmatmul.mubr.msk.bf16.gmra.mrb[116].mxu1 %vm312_vm1, %v8302_v30 }
 0x116   : > { %1324 = vst.msk [vmem:[#allocation2 + $0x8] sm:$0xff] %vm526_vm8, %v1292_v16  ;;  %v4373_v47 = vshll.u32 %v6363_v13, 16  ;;  %v4362_v49 = vor.u32 %v4361_v27, %v4357_v29  ;;  %v6365_v44 = vld [vmem:[%s7444_s11 + $0x80] sm:$0x1]  ;;  %v1264_v26 = vld [vmem:[#allocation2 + $0x28] sm:$0xff]  ;;  %v4383_v19 = vshrl.u32 %v6364_v11, 16  ;;  %6956 = vmatprep.mubr.msk.bf16.mxu1 %vm312_vm1, %v8335_v42 }
 0x117   : > { %v8421_v61 = vsel %vm7508_vm6, %v6474_v6, %v5062_v59  ;;  %v5064_v8 = vrot.slane %v5062_v59, 4  ;;  %v4353_v14 = vrot.slane %v4352_v1, 4  ;;  %v4372_v22 = vrot.slane %v4370_v46, 4  ;;  %v6442_v23 = vld [vmem:[%s7444_s11 + $0x70] sm:$0xf] }
 0x118   : > { %v6750_v41 = vpop.f32.mrb[20].mxu1  ;;  %v4363_v34 = vrot.slane %v4362_v49, 4  ;;  %v6443_v27 = vld [vmem:[%s7444_s11 + $0x74] sm:$0x1]  ;;  %v4375_v43 = vrot.slane %v4373_v47, 5  ;;  %v4389_v21 = vshll.u32 %v6365_v44, 16 }
 0x119   : > { %v1297_v60 = vadd.f32 %v6750_v41, %v1265_v32  ;;  %v1148_v2 = vpop.f32.mrb[21].mxu1  ;;  %v8428_v25 = vsel %vm7508_vm6, %v5064_v8, %v5065_v40  ;;  %v4358_v37 = vsel %vm7515_vm7, %v4353_v14, %v4357_v29  ;;  %v6366_v29 = vld [vmem:[%s7444_s11 + $0x84] sm:$0xf]  ;;  %v6784_v6 = vpop.f32.mrb[20].mxu0  ;;  %v6367_v59 = vld [vmem:[%s7444_s11 + $0x88] sm:$0xf] }
 0x11a   : > { %v1829_v52 = vld [vmem:[#allocation2 + $0x10] sm:$0xff]  ;;  %v1295_v15 = vadd.f32 %v1263_v7, %v1148_v2  ;;  %v6751_v16 = vpop.f32.mrb[22].mxu1  ;;  %v6490_v13 = vcombine.low %v8421_v61, %v8428_v25  ;;  %v4368_v53 = vsel %vm7515_vm7, %v4363_v34, %v4367_v9  ;;  %v1716_v1 = vpop.f32.mrb[21].mxu0  ;;  %v5069_v32 = vrot.slane %v6442_v23, 5  ;;  %v6368_v7 = vld [vmem:[%s7444_s11 + $0x8c] sm:$0x1] }
 0x11b   : > { %v1861_v20 = vadd.f32 %v6780_v5, %v1829_v52  ;;  %v1827_v12 = vld [vmem:[#allocation2] sm:$0xff]  ;;  %1329 = vst.msk [vmem:[#allocation2 + $0x30] sm:$0xff] %vm526_vm8, %v1297_v60  ;;  %v1298_v18 = vadd.f32 %v6751_v16, %v1266_v0  ;;  %v1151_v50 = vpop.f32.mrb[23].mxu1  ;;  %v6441_v5 = vld [vmem:[%s7444_s11 + $0x6c] sm:$0xe]  ;;  %v8456_v48 = vcombine.low %v4358_v37, %v4368_v53  ;;  %v5072_v30 = vrot.slane %v6443_v27, 5  ;;  %6987 = vmatmul.mubr.msk.bf16.gmra.mrb[116].mxu0 %vm312_vm1, %v6487_v58 }
 0x11c   : > { %v1859_v35 = vadd.f32 %v1827_v12, %v1700_v39  ;;  %v1830_v3 = vld [vmem:[#allocation2 + $0x18] sm:$0xff]  ;;  %1327 = vst.msk [vmem:[#allocation2 + $0x20] sm:$0xff] %vm526_vm8, %v1295_v15  ;;  %v1296_v4 = vadd.f32 %v1264_v26, %v1151_v50  ;;  %v6475_v9 = vrot.slane %v6441_v5, 9  ;;  %v6785_v40 = vpop.f32.mrb[22].mxu0  ;;  %v4385_v46 = vrot.slane %v4383_v19, 4  ;;  %6990 = vmatprep.mubr.msk.bf16.mxu0 %vm312_vm1, %v6488_v17 }
 0x11d   : > { %1893 = vst.msk [vmem:[#allocation2 + $0x10] sm:$0xff] %vm526_vm8, %v1861_v20  ;;  %v1862_v39 = vadd.f32 %v8388_v31, %v1830_v3  ;;  %v1828_v51 = vld [vmem:[#allocation2 + $0x8] sm:$0xff]  ;;  %1330 = vst.msk [vmem:[#allocation2 + $0x38] sm:$0xff] %vm526_vm8, %v1298_v18  ;;  %v4379_v31 = vshll.u32 %v6364_v11, 16  ;;  %v4391_v47 = vrot.slane %v4389_v21, 5  ;;  %v4394_v49 = vshrl.u32 %v6366_v29, 16  ;;  %6957 = vmatmul.mubr.msk.bf16.gmra.mrb[120].mxu1 %vm312_vm1, %v8378_v38 }
 0x11e   : > { %1891 = vst.msk [vmem:[#allocation2] sm:$0xff] %vm526_vm8, %v1859_v35  ;;  %v1860_v28 = vadd.f32 %v1828_v51, %v8395_v10  ;;  %1328 = vst.msk [vmem:[#allocation2 + $0x28] sm:$0xff] %vm526_vm8, %v1296_v4  ;;  %v4376_v10 = vor.u32 %v4375_v43, %v4372_v22  ;;  %v4397_v52 = vshll.u32 %v6366_v29, 16  ;;  %v1719_v60 = vpop.f32.mrb[23].mxu0  ;;  %v8467_v0 = vsel %vm7508_vm6, %v6475_v9, %v5069_v32  ;;  %v1269_v35 = vld [vmem:[#allocation2 + $0x50] sm:$0xff]  ;;  %v1267_v18 = vld [vmem:[#allocation2 + $0x40] sm:$0xff] }
 0x11f   : > { %1894 = vst.msk [vmem:[#allocation2 + $0x18] sm:$0xff] %vm526_vm8, %v1862_v39  ;;  %v4381_v41 = vrot.slane %v4379_v31, 5  ;;  %v5071_v8 = vrot.slane %v5069_v32, 4  ;;  %v4403_v42 = vshll.u32 %v6367_v59, 16  ;;  %v4396_v14 = vrot.slane %v4394_v49, 4  ;;  %v1270_v53 = vld [vmem:[#allocation2 + $0x58] sm:$0xff]  ;;  %6960 = vmatprep.mubr.msk.bf16.mxu1 %vm312_vm1, %v8413_v36 }
 0x120   : > { %1892 = vst.msk [vmem:[#allocation2 + $0x8] sm:$0xff] %vm526_vm8, %v1860_v28  ;;  %v4377_v2 = vrot.slane %v4376_v10, 4  ;;  %v4399_v20 = vrot.slane %v4397_v52, 5  ;;  %v4407_v12 = vshrl.u32 %v6367_v59, 16  ;;  %v4413_v34 = vshll.u32 %v6368_v7, 16  ;;  %v6754_v39 = vpop.f32.mrb[24].mxu1 }
 0x121   : > { %v4386_v11 = vor.u32 %v4385_v46, %v4381_v41  ;;  %v8473_v44 = vsel %vm7508_vm6, %v5071_v8, %v5072_v30  ;;  %v8475_v22 = vrot.slane %v4403_v42, 5  ;;  %v6444_v4 = vld [vmem:[%s7444_s11 + $0x78] sm:$0xe]  ;;  %v1301_v58 = vadd.f32 %v6754_v39, %v1269_v35  ;;  %v1164_v27 = vpop.f32.mrb[25].mxu1  ;;  %v6445_v43 = vld [vmem:[%s7444_s11 + $0x7c] sm:$0xf] }
 0x122   : > { %v1833_v15 = vld [vmem:[#allocation2 + $0x30] sm:$0xff]  ;;  %v4382_v16 = vsel %vm7515_vm7, %v4377_v2, %v4381_v41  ;;  %v6491_v26 = vcombine.low %v8467_v0, %v8473_v44  ;;  %v4400_v5 = vor.u32 %v4399_v20, %v4396_v14  ;;  %v4409_v37 = vrot.slane %v4407_v12, 4  ;;  %v6755_v17 = vpop.f32.mrb[26].mxu1  ;;  %v1268_v10 = vld [vmem:[#allocation2 + $0x48] sm:$0xff]  ;;  %v6371_v32 = vld [vmem:[%s7444_s11 + $0x98] sm:$0x1] }
 0x123   : > { %v1831_v3 = vld [vmem:[#allocation2 + $0x20] sm:$0xff]  ;;  %v4387_v50 = vrot.slane %v4386_v11, 4  ;;  %v4415_v54 = vrot.slane %v4413_v34, 5  ;;  %v1865_v45 = vadd.f32 %v6784_v6, %v1833_v15  ;;  %v1299_v62 = vadd.f32 %v1267_v18, %v1164_v27  ;;  %v6369_v19 = vld [vmem:[%s7444_s11 + $0x90] sm:$0xf]  ;;  %1333 = vst.msk [vmem:[#allocation2 + $0x50] sm:$0xff] %vm526_vm8, %v1301_v58  ;;  %6991 = vmatmul.mubr.msk.bf16.gmra.mrb[120].mxu0 %vm312_vm1, %v6489_v63 }
 0x124   : > { %v1834_v51 = vld [vmem:[#allocation2 + $0x38] sm:$0xff]  ;;  %v1863_v23 = vadd.f32 %v1831_v3, %v1716_v1  ;;  %v4401_v29 = vrot.slane %v4400_v5, 4  ;;  %v4410_v55 = vor.u32 %v4409_v37, %v8475_v22  ;;  %v6446_v6 = vld [vmem:[%s7444_s11 + $0x80] sm:$0x1]  ;;  %v1302_v9 = vadd.f32 %v6755_v17, %v1270_v53  ;;  %v1167_v1 = vpop.f32.mrb[27].mxu1  ;;  %v6788_v42 = vpop.f32.mrb[24].mxu0  ;;  %6994 = vmatprep.mubr.msk.bf16.mxu0 %vm312_vm1, %v6490_v13 }
 0x125   : > { %v1832_v28 = vld [vmem:[#allocation2 + $0x28] sm:$0xff]  ;;  %v4392_v31 = vsel %vm7515_vm7, %v4387_v50, %v4391_v47  ;;  %1897 = vst.msk [vmem:[#allocation2 + $0x30] sm:$0xff] %vm526_vm8, %v1865_v45  ;;  %v1866_v38 = vadd.f32 %v6785_v40, %v1834_v51  ;;  %v6370_v41 = vld [vmem:[%s7444_s11 + $0x94] sm:$0xf]  ;;  %1331 = vst.msk [vmem:[#allocation2 + $0x40] sm:$0xff] %vm526_vm8, %v1299_v62  ;;  %v1300_v7 = vadd.f32 %v1268_v10, %v1167_v1  ;;  %v6476_v46 = vrot.slane %v6444_v4, 9 }
 0x126   : > { %v6395_v21 = vcombine.low %v4382_v16, %v4392_v31  ;;  %1895 = vst.msk [vmem:[#allocation2 + $0x20] sm:$0xff] %vm526_vm8, %v1863_v23  ;;  %v1864_v59 = vadd.f32 %v1832_v28, %v1719_v60  ;;  %v4406_v36 = vsel %vm7515_vm7, %v4401_v29, %v8475_v22  ;;  %v4411_v30 = vrot.slane %v4410_v55, 4  ;;  %v6447_v47 = vld [vmem:[%s7444_s11 + $0x84] sm:$0xe]  ;;  %v6448_v49 = vld [vmem:[%s7444_s11 + $0x88] sm:$0xf]  ;;  %6961 = vmatmul.mubr.msk.bf16.gmra.mrb[124].mxu1 %vm312_vm1, %v8456_v48 }
 0x127   : > { %v6449_v52 = vld [vmem:[%s7444_s11 + $0x8c] sm:$0x1]  ;;  %1898 = vst.msk [vmem:[#allocation2 + $0x38] sm:$0xff] %vm526_vm8, %v1866_v38  ;;  %1334 = vst.msk [vmem:[#allocation2 + $0x58] sm:$0xff] %vm526_vm8, %v1302_v9  ;;  %v5076_v40 = vrot.slane %v6445_v43, 5  ;;  %v5079_v60 = vrot.slane %v6446_v6, 5 }
 0x128   : > { %1896 = vst.msk [vmem:[#allocation2 + $0x28] sm:$0xff] %vm526_vm8, %v1864_v59  ;;  %v4418_v2 = vshrl.u32 %v6369_v19, 16  ;;  %v4421_v8 = vshll.u32 %v6369_v19, 16  ;;  %v4416_v11 = vsel %vm7515_vm7, %v4411_v30, %v4415_v54  ;;  %1332 = vst.msk [vmem:[#allocation2 + $0x48] sm:$0xff] %vm526_vm8, %v1300_v7  ;;  %v4427_v14 = vshll.u32 %v6370_v41, 16  ;;  %v1732_v16 = vpop.f32.mrb[25].mxu0  ;;  %6964 = vmatprep.mubr.msk.bf16.mxu1 %vm312_vm1, %v6395_v21 }
 0x129   : > { %v4431_v20 = vshrl.u32 %v6370_v41, 16  ;;  %v4437_v12 = vshll.u32 %v6371_v32, 16  ;;  %v6372_v15 = vld [vmem:[%s7444_s11 + $0x9c] sm:$0xf]  ;;  %v8517_v22 = vcombine.low %v4406_v36, %v4416_v11  ;;  %v8521_v34 = vsel %vm7508_vm6, %v6476_v46, %v5076_v40  ;;  %v6373_v18 = vld [vmem:[%s7444_s11 + $0xa0] sm:$0xf] }
 0x12a   : > { %v5078_v35 = vrot.slane %v5076_v40, 4  ;;  %v4420_v3 = vrot.slane %v4418_v2, 4  ;;  %v8524_v50 = vpop.f32.mrb[26].mxu0  ;;  %v4423_v5 = vrot.slane %v4421_v8, 5  ;;  %v4429_v37 = vrot.slane %v4427_v14, 5  ;;  %v1837_v48 = vld [vmem:[#allocation2 + $0x50] sm:$0xff] }
 0x12b   : > { %v4433_v39 = vrot.slane %v4431_v20, 4  ;;  %v4439_v51 = vrot.slane %v4437_v12, 5  ;;  %v1735_v4 = vpop.f32.mrb[27].mxu0  ;;  %v6477_v45 = vrot.slane %v6447_v47, 9  ;;  %v5083_v58 = vrot.slane %v6448_v49, 5  ;;  %v6758_v62 = vpop.f32.mrb[28].mxu1  ;;  %6995 = vmatmul.mubr.msk.bf16.gmra.mrb[124].mxu0 %vm312_vm1, %v6491_v26 }
 0x12c   : > { %v5080_v54 = vsel %vm7508_vm6, %v5078_v35, %v5079_v60  ;;  %v5086_v23 = vrot.slane %v6449_v52, 5  ;;  %v4424_v33 = vor.u32 %v4423_v5, %v4420_v3  ;;  %v6374_v27 = vld [vmem:[%s7444_s11 + $0xa4] sm:$0x1]  ;;  %v4442_v53 = vshrl.u32 %v6372_v15, 16  ;;  %v1273_v38 = vld [vmem:[#allocation2 + $0x70] sm:$0xff]  ;;  %v1180_v59 = vpop.f32.mrb[29].mxu1 }
 0x12d   : > { %v6492_v24 = vcombine.low %v8521_v34, %v5080_v54  ;;  %v4434_v63 = vor.u32 %v4433_v39, %v4429_v37  ;;  %v8543_v61 = vsel %vm7508_vm6, %v6477_v45, %v5083_v58  ;;  %v5085_v25 = vrot.slane %v5083_v58, 4  ;;  %v1835_v9 = vld [vmem:[#allocation2 + $0x40] sm:$0xff]  ;;  %v6759_v7 = vpop.f32.mrb[30].mxu1  ;;  %v1274_v46 = vld [vmem:[#allocation2 + $0x78] sm:$0xff]  ;;  %v6450_v8 = vld [vmem:[%s7444_s11 + $0x90] sm:$0xe] }
 0x12e   : > { %v4445_v13 = vshll.u32 %v6372_v15, 16  ;;  %v4451_v28 = vshll.u32 %v6373_v18, 16  ;;  %v4425_v43 = vrot.slane %v4424_v33, 4  ;;  %v4444_v29 = vrot.slane %v4442_v53, 4  ;;  %v1271_v1 = vld [vmem:[#allocation2 + $0x60] sm:$0xff]  ;;  %v1838_v30 = vld [vmem:[#allocation2 + $0x58] sm:$0xff]  ;;  %6965 = vmatmul.mubr.msk.bf16.gmra.mrb[128].mxu1 %vm312_vm1, %v8517_v22 }
 0x12f   : > { %v4435_v31 = vrot.slane %v4434_v63, 4  ;;  %v4455_v55 = vshrl.u32 %v6373_v18, 16  ;;  %v8547_v17 = vsel %vm7508_vm6, %v5085_v25, %v5086_v23  ;;  %v4461_v21 = vshll.u32 %v6374_v27, 16  ;;  %v1836_v47 = vld [vmem:[#allocation2 + $0x48] sm:$0xff]  ;;  %v1183_v2 = vpop.f32.mrb[31].mxu1  ;;  %6998 = vmatprep.mubr.msk.bf16.mxu0 %vm312_vm1, %v6492_v24 }
 0x130   : > { %v4447_v6 = vrot.slane %v4445_v13, 5  ;;  %v8549_v19 = vrot.slane %v4451_v28, 5  ;;  %v4430_v10 = vsel %vm7515_vm7, %v4425_v43, %v4429_v37  ;;  %v6493_v32 = vcombine.low %v8543_v61, %v8547_v17  ;;  %v6451_v11 = vld [vmem:[%s7444_s11 + $0x94] sm:$0xf]  ;;  %v1272_v34 = vld [vmem:[#allocation2 + $0x68] sm:$0xff]  ;;  %v8571_v37 = vpop.f32.mrb[28].mxu0 }
 0x131   : > { %v4440_v41 = vsel %vm7515_vm7, %v4435_v31, %v4439_v51  ;;  %v4457_v36 = vrot.slane %v4455_v55, 4  ;;  %v4463_v40 = vrot.slane %v4461_v21, 5  ;;  %v1869_v60 = vadd.f32 %v6788_v42, %v1837_v48  ;;  %v6452_v35 = vld [vmem:[%s7444_s11 + $0x98] sm:$0x1]  ;;  %v6375_v3 = vld [vmem:[%s7444_s11 + $0xa8] sm:$0xf] }
 0x132   : > { %v6397_v49 = vcombine.low %v4430_v10, %v4440_v41  ;;  %v4448_v52 = vor.u32 %v4447_v6, %v4444_v29  ;;  %v1305_v20 = vadd.f32 %v6758_v62, %v1273_v38  ;;  %v1867_v12 = vadd.f32 %v1835_v9, %v1732_v16  ;;  %v6376_v5 = vld [vmem:[%s7444_s11 + $0xac] sm:$0xf]  ;;  %v6377_v26 = vld [vmem:[%s7444_s11 + $0xb0] sm:$0x1]  ;;  %v6453_v54 = vld [vmem:[%s7444_s11 + $0x9c] sm:$0xe] }
 0x133   : > { %v4458_v14 = vor.u32 %v4457_v36, %v8549_v19  ;;  %v1303_v15 = vadd.f32 %v1271_v1, %v1180_v59  ;;  %1901 = vst.msk [vmem:[#allocation2 + $0x50] sm:$0xff] %vm526_vm8, %v1869_v60  ;;  %v1870_v18 = vadd.f32 %v8524_v50, %v1838_v30  ;;  %v1306_v0 = vadd.f32 %v6759_v7, %v1274_v46  ;;  %v6454_v24 = vld [vmem:[%s7444_s11 + $0xa0] sm:$0xf]  ;;  %v6455_v13 = vld [vmem:[%s7444_s11 + $0xa4] sm:$0x1] }
 0x134   : > { %v4449_v42 = vrot.slane %v4448_v52, 4  ;;  %v1868_v44 = vadd.f32 %v1836_v47, %v1735_v4  ;;  %1337 = vst.msk [vmem:[#allocation2 + $0x70] sm:$0xff] %vm526_vm8, %v1305_v20  ;;  %1899 = vst.msk [vmem:[#allocation2 + $0x40] sm:$0xff] %vm526_vm8, %v1867_v12  ;;  %v1304_v39 = vadd.f32 %v1272_v34, %v1183_v2  ;;  %v6478_v51 = vrot.slane %v6450_v8, 9  ;;  %v8579_v4 = vpop.f32.mrb[29].mxu0  ;;  %6968 = vmatprep.mubr.msk.bf16.mxu1 %vm312_vm1, %v6397_v49  ;;  %v6762_v47 = vpop.f32.mrb[32].mxu1 }
 0x135   : > { %v4459_v16 = vrot.slane %v4458_v14, 4  ;;  %1335 = vst.msk [vmem:[#allocation2 + $0x60] sm:$0xff] %vm526_vm8, %v1303_v15  ;;  %v5090_v50 = vrot.slane %v6451_v11, 5  ;;  %1902 = vst.msk [vmem:[#allocation2 + $0x58] sm:$0xff] %vm526_vm8, %v1870_v18  ;;  %v5093_v45 = vrot.slane %v6452_v35, 5  ;;  %v4466_v58 = vshrl.u32 %v6375_v3, 16  ;;  %6999 = vmatmul.mubr.msk.bf16.gmra.mrb[128].mxu0 %vm312_vm1, %v6493_v32 }
 0x136   : > { %v4454_v22 = vsel %vm7515_vm7, %v4449_v42, %v8549_v19  ;;  %1338 = vst.msk [vmem:[#allocation2 + $0x78] sm:$0xff] %vm526_vm8, %v1306_v0  ;;  %1900 = vst.msk [vmem:[#allocation2 + $0x48] sm:$0xff] %vm526_vm8, %v1868_v44  ;;  %v4469_v23 = vshll.u32 %v6375_v3, 16  ;;  %v8589_v33 = vpop.f32.mrb[30].mxu0  ;;  %v4475_v25 = vshll.u32 %v6376_v5, 16  ;;  %v4479_v55 = vshrl.u32 %v6376_v5, 16 }
 0x137   : > { %v4464_v63 = vsel %vm7515_vm7, %v4459_v16, %v4463_v40  ;;  %1336 = vst.msk [vmem:[#allocation2 + $0x68] sm:$0xff] %vm526_vm8, %v1304_v39  ;;  %v5091_v27 = vsel %vm7508_vm6, %v6478_v51, %v5090_v50  ;;  %v5092_v53 = vrot.slane %v5090_v50, 4  ;;  %v8597_v28 = vpop.f32.mrb[31].mxu0  ;;  %v4468_v31 = vrot.slane %v4466_v58, 4  ;;  %v6378_v48 = vld [vmem:[%s7444_s11 + $0xb4] sm:$0xf] }
 0x138   : > { %v6398_v43 = vcombine.low %v4454_v22, %v4464_v63  ;;  %v4471_v29 = vrot.slane %v4469_v23, 5  ;;  %v4477_v6 = vrot.slane %v4475_v25, 5  ;;  %v4485_v19 = vshll.u32 %v6377_v26, 16  ;;  %v6379_v10 = vld [vmem:[%s7444_s11 + $0xb8] sm:$0xf]  ;;  %v1196_v2 = vpop.f32.mrb[33].mxu1 }
 0x139   : > { %v5094_v62 = vsel %vm7508_vm6, %v5092_v53, %v5093_v45  ;;  %v6479_v21 = vrot.slane %v6453_v54, 9  ;;  %v4481_v59 = vrot.slane %v4479_v55, 4  ;;  %v5097_v1 = vrot.slane %v6454_v24, 5  ;;  %v6380_v41 = vld [vmem:[%s7444_s11 + $0xbc] sm:$0x1]  ;;  %v6763_v14 = vpop.f32.mrb[34].mxu1 }
 0x13a   : > { %v6494_v38 = vcombine.low %v5091_v27, %v5094_v62  ;;  %v4472_v9 = vor.u32 %v4471_v29, %v4468_v31  ;;  %v4487_v36 = vrot.slane %v4485_v19, 5  ;;  %v5100_v30 = vrot.slane %v6455_v13, 5  ;;  %6969 = vmatmul.mubr.msk.bf16.gmra.mrb[132].mxu1 %vm312_vm1, %v6398_v43  ;;  %v1277_v35 = vld [vmem:[#allocation2 + $0x90] sm:$0xff]  ;;  %v1199_v42 = vpop.f32.mrb[35].mxu1  ;;  %v1275_v26 = vld [vmem:[#allocation2 + $0x80] sm:$0xff]  ;;  %v1278_v39 = vld [vmem:[#allocation2 + $0x98] sm:$0xff] }
 0x13b   : > { %v4490_v7 = vshrl.u32 %v6378_v48, 16  ;;  %v4493_v46 = vshll.u32 %v6378_v48, 16  ;;  %v4482_v52 = vor.u32 %v4481_v59, %v4477_v6  ;;  %v5098_v40 = vsel %vm7508_vm6, %v6479_v21, %v5097_v1  ;;  %v1841_v11 = vld [vmem:[#allocation2 + $0x70] sm:$0xff]  ;;  %v6456_v58 = vld [vmem:[%s7444_s11 + $0xa8] sm:$0xe]  ;;  %v8621_v24 = vpop.f32.mrb[32].mxu0 }
 0x13c   : > { %7002 = vmatprep.mubr.msk.bf16.mxu0 %vm312_vm1, %v6494_v38  ;;  %v4473_v49 = vrot.slane %v4472_v9, 4  ;;  %v5099_v60 = vrot.slane %v5097_v1, 4  ;;  %v4499_v17 = vshll.u32 %v6379_v10, 16  ;;  %v4503_v32 = vshrl.u32 %v6379_v10, 16  ;;  %v1839_v3 = vld [vmem:[#allocation2 + $0x60] sm:$0xff]  ;;  %v8626_v31 = vpop.f32.mrb[33].mxu0 }
 0x13d   : > { %v4492_v8 = vrot.slane %v4490_v7, 4  ;;  %v4495_v61 = vrot.slane %v4493_v46, 5  ;;  %v4483_v12 = vrot.slane %v4482_v52, 4  ;;  %v4509_v34 = vshll.u32 %v6380_v41, 16  ;;  %v1842_v16 = vld [vmem:[#allocation2 + $0x78] sm:$0xff]  ;;  %v1276_v62 = vld [vmem:[#allocation2 + $0x88] sm:$0xff] }
 0x13e   : > { %v4478_v20 = vsel %vm7515_vm7, %v4473_v49, %v4477_v6  ;;  %v5101_v15 = vsel %vm7508_vm6, %v5099_v60, %v5100_v30  ;;  %v4501_v44 = vrot.slane %v4499_v17, 5  ;;  %v4505_v5 = vrot.slane %v4503_v32, 4  ;;  %v1840_v51 = vld [vmem:[#allocation2 + $0x68] sm:$0xff]  ;;  %v6458_v13 = vld [vmem:[%s7444_s11 + $0xb0] sm:$0x1]  ;;  %v8634_v21 = vpop.f32.mrb[34].mxu0 }
 0x13f   : > { %v6495_v18 = vcombine.low %v5098_v40, %v5101_v15  ;;  %v4496_v0 = vor.u32 %v4495_v61, %v4492_v8  ;;  %v4488_v50 = vsel %vm7515_vm7, %v4483_v12, %v4487_v36  ;;  %v4511_v54 = vrot.slane %v4509_v34, 5  ;;  %v6457_v23 = vld [vmem:[%s7444_s11 + $0xac] sm:$0xf]  ;;  %v6381_v43 = vld [vmem:[%s7444_s11 + $0xc0] sm:$0xf]  ;;  %v6766_v12 = vpop.f32.mrb[36].mxu1 }
 0x140   : > { %v1873_v22 = vadd.f32 %v8571_v37, %v1841_v11  ;;  %v1309_v45 = vadd.f32 %v6762_v47, %v1277_v35  ;;  %v6399_v63 = vcombine.low %v4478_v20, %v4488_v50  ;;  %v4506_v53 = vor.u32 %v4505_v5, %v4501_v44  ;;  %v6382_v6 = vld [vmem:[%s7444_s11 + $0xc4] sm:$0xf]  ;;  %v6383_v19 = vld [vmem:[%s7444_s11 + $0xc8] sm:$0x1]  ;;  %v6459_v59 = vld [vmem:[%s7444_s11 + $0xb4] sm:$0xe] }
 0x141   : > { %v4497_v27 = vrot.slane %v4496_v0, 4  ;;  %v1871_v25 = vadd.f32 %v1839_v3, %v8579_v4  ;;  %v1307_v37 = vadd.f32 %v1275_v26, %v1196_v2  ;;  %v1874_v29 = vadd.f32 %v8589_v33, %v1842_v16  ;;  %7003 = vmatmul.mubr.msk.bf16.gmra.mrb[132].mxu0 %vm312_vm1, %v6495_v18  ;;  %v6460_v30 = vld [vmem:[%s7444_s11 + $0xb8] sm:$0xf]  ;;  %v6461_v52 = vld [vmem:[%s7444_s11 + $0xbc] sm:$0x1] }
 0x142   : > { %1905 = vst.msk [vmem:[#allocation2 + $0x70] sm:$0xff] %vm526_vm8, %v1873_v22  ;;  %1341 = vst.msk [vmem:[#allocation2 + $0x90] sm:$0xff] %vm526_vm8, %v1309_v45  ;;  %v1310_v55 = vadd.f32 %v6763_v14, %v1278_v39  ;;  %v1872_v48 = vadd.f32 %v1840_v51, %v8597_v28  ;;  %6972 = vmatprep.mubr.msk.bf16.mxu1 %vm312_vm1, %v6399_v63  ;;  %v4507_v38 = vrot.slane %v4506_v53, 4  ;;  %v6480_v9 = vrot.slane %v6456_v58, 9  ;;  %v8642_v28 = vpop.f32.mrb[35].mxu0 }
 0x143   : > { %v4502_v4 = vsel %vm7515_vm7, %v4497_v27, %v4501_v44  ;;  %1903 = vst.msk [vmem:[#allocation2 + $0x60] sm:$0xff] %vm526_vm8, %v1871_v25  ;;  %v1308_v33 = vadd.f32 %v1276_v62, %v1199_v42  ;;  %1339 = vst.msk [vmem:[#allocation2 + $0x80] sm:$0xff] %vm526_vm8, %v1307_v37  ;;  %v5104_v1 = vrot.slane %v6457_v23, 5  ;;  %v5107_v10 = vrot.slane %v6458_v13, 5  ;;  %v6384_v61 = vld [vmem:[%s7444_s11 + $0xcc] sm:$0xf] }
 0x144   : > { %1906 = vst.msk [vmem:[#allocation2 + $0x78] sm:$0xff] %vm526_vm8, %v1874_v29  ;;  %1342 = vst.msk [vmem:[#allocation2 + $0x98] sm:$0xff] %vm526_vm8, %v1310_v55  ;;  %v4514_v41 = vshrl.u32 %v6381_v43, 16  ;;  %v4517_v36 = vshll.u32 %v6381_v43, 16  ;;  %v4512_v7 = vsel %vm7515_vm7, %v4507_v38, %v4511_v54  ;;  %v4523_v46 = vshll.u32 %v6382_v6, 16  ;;  %v1212_v42 = vpop.f32.mrb[37].mxu1 }
 0x145   : > { %1904 = vst.msk [vmem:[#allocation2 + $0x68] sm:$0xff] %vm526_vm8, %v1872_v48  ;;  %1340 = vst.msk [vmem:[#allocation2 + $0x88] sm:$0xff] %vm526_vm8, %v1308_v33  ;;  %v4527_v47 = vshrl.u32 %v6382_v6, 16  ;;  %v4533_v49 = vshll.u32 %v6383_v19, 16  ;;  %v6400_v40 = vcombine.low %v4502_v4, %v4512_v7  ;;  %v5105_v60 = vsel %vm7508_vm6, %v6480_v9, %v5104_v1  ;;  %v6385_v17 = vld [vmem:[%s7444_s11 + $0xd0] sm:$0xf] }
 0x146   : > { %v5106_v2 = vrot.slane %v5104_v1, 4  ;;  %v4516_v8 = vrot.slane %v4514_v41, 4  ;;  %v4519_v32 = vrot.slane %v4517_v36, 5  ;;  %v4525_v11 = vrot.slane %v4523_v46, 5  ;;  %v6386_v5 = vld [vmem:[%s7444_s11 + $0xd4] sm:$0x1] }
 0x147   : > { %v4529_v14 = vrot.slane %v4527_v47, 4  ;;  %v4535_v20 = vrot.slane %v4533_v49, 5  ;;  %6973 = vmatmul.mubr.msk.bf16.gmra.mrb[136].mxu1 %vm312_vm1, %v6400_v40  ;;  %v6481_v34 = vrot.slane %v6459_v59, 9  ;;  %v5111_v35 = vrot.slane %v6460_v30, 5  ;;  %v6767_v16 = vpop.f32.mrb[38].mxu1  ;;  %v1281_v37 = vld [vmem:[#allocation2 + $0xb0] sm:$0xff] }
 0x148   : > { %v5108_v15 = vsel %vm7508_vm6, %v5106_v2, %v5107_v10  ;;  %v5114_v3 = vrot.slane %v6461_v52, 5  ;;  %v4520_v0 = vor.u32 %v4519_v32, %v4516_v8  ;;  %v4538_v26 = vshrl.u32 %v6384_v61, 16  ;;  %v1215_v22 = vpop.f32.mrb[39].mxu1  ;;  %v1279_v55 = vld [vmem:[#allocation2 + $0xa0] sm:$0xff]  ;;  %v8666_v48 = vpop.f32.mrb[36].mxu0 }
 0x149   : > { %v6496_v18 = vcombine.low %v5105_v60, %v5108_v15  ;;  %v4530_v44 = vor.u32 %v4529_v14, %v4525_v11  ;;  %v5112_v39 = vsel %vm7508_vm6, %v6481_v34, %v5111_v35  ;;  %v5113_v51 = vrot.slane %v5111_v35, 4  ;;  %v1845_v27 = vld [vmem:[#allocation2 + $0x90] sm:$0xff]  ;;  %v6462_v9 = vld [vmem:[%s7444_s11 + $0xc0] sm:$0xe]  ;;  %v8673_v59 = vpop.f32.mrb[37].mxu0  ;;  %v1282_v60 = vld [vmem:[#allocation2 + $0xb8] sm:$0xff] }
 0x14a   : > { %v4541_v50 = vshll.u32 %v6384_v61, 16  ;;  %v4547_v54 = vshll.u32 %v6385_v17, 16  ;;  %v4521_v45 = vrot.slane %v4520_v0, 4  ;;  %v4540_v23 = vrot.slane %v4538_v26, 4  ;;  %v1843_v29 = vld [vmem:[#allocation2 + $0x80] sm:$0xff]  ;;  %v8678_v46 = vpop.f32.mrb[38].mxu0 }
 0x14b   : > { %7006 = vmatprep.mubr.msk.bf16.mxu0 %vm312_vm1, %v6496_v18  ;;  %v4531_v58 = vrot.slane %v4530_v44, 4  ;;  %v4551_v63 = vshrl.u32 %v6385_v17, 16  ;;  %v5115_v53 = vsel %vm7508_vm6, %v5113_v51, %v5114_v3  ;;  %v4557_v43 = vshll.u32 %v6386_v5, 16  ;;  %v1846_v38 = vld [vmem:[#allocation2 + $0x98] sm:$0xff]  ;;  %v6463_v30 = vld [vmem:[%s7444_s11 + $0xc4] sm:$0xf] }
 0x14c   : > { %v4543_v25 = vrot.slane %v4541_v50, 5  ;;  %v4549_v13 = vrot.slane %v4547_v54, 5  ;;  %v4526_v62 = vsel %vm7515_vm7, %v4521_v45, %v4525_v11  ;;  %v6497_v19 = vcombine.low %v5112_v39, %v5115_v53  ;;  %v1844_v33 = vld [vmem:[#allocation2 + $0x88] sm:$0xff]  ;;  %v6466_v8 = vld [vmem:[%s7444_s11 + $0xd0] sm:$0xf]  ;;  %v8684_v61 = vpop.f32.mrb[39].mxu0 }
 0x14d   : > { %v4536_v6 = vsel %vm7515_vm7, %v4531_v58, %v4535_v20  ;;  %v4553_v4 = vrot.slane %v4551_v63, 4  ;;  %v4559_v41 = vrot.slane %v4557_v43, 5  ;;  %v1877_v36 = vadd.f32 %v8621_v24, %v1845_v27  ;;  %v6464_v7 = vld [vmem:[%s7444_s11 + $0xc8] sm:$0x1]  ;;  %v6465_v2 = vld [vmem:[%s7444_s11 + $0xcc] sm:$0xe] }
 0x14e   : > { %v6401_v1 = vcombine.low %v4526_v62, %v4536_v6  ;;  %v4544_v10 = vor.u32 %v4543_v25, %v4540_v23  ;;  %7007 = vmatmul.mubr.msk.bf16.gmra.mrb[136].mxu0 %vm312_vm1, %v6497_v19  ;;  %v1313_v49 = vadd.f32 %v6766_v12, %v1281_v37  ;;  %v1875_v52 = vadd.f32 %v1843_v29, %v8626_v31  ;;  %v1280_v14 = vld [vmem:[#allocation2 + $0xa8] sm:$0xff]  ;;  %v6467_v20 = vld [vmem:[%s7444_s11 + $0xd4] sm:$0x1]  ;;  %v6770_v5 = vpop.f32.mrb[40].mxu1  ;;  %v1286_v23 = vld [vmem:[#allocation2 + $0xd8] sm:$0xff]  ;;  %s5831_s11 = sshll.u32 %s8988_s9, 4  ;;  %s9166_s11 = int_to_ptr.vmem [resolvable:$true] %s5831_s11 }
 0x14f   : > { %v4554_v47 = vor.u32 %v4553_v4, %v4549_v13  ;;  %v1311_v40 = vadd.f32 %v1279_v55, %v1212_v42  ;;  %1909 = vst.msk [vmem:[#allocation2 + $0x90] sm:$0xff] %vm526_vm8, %v1877_v36  ;;  %v1878_v17 = vadd.f32 %v8634_v21, %v1846_v38  ;;  %v1314_v32 = vadd.f32 %v6767_v16, %v1282_v60  ;;  %v1285_v26 = vld [vmem:[#allocation2 + $0xd0] sm:$0xff]  ;;  %v1228_v54 = vpop.f32.mrb[41].mxu1  ;;  %s7264_s23 = scalar_lea.vmem %s9166_s11, 4096  ;;  %p7271_p1 = scmp.lt.s32.totalorder %s9166_s11, %s7269_s27 }
 0x150   : > { %6976 = vmatprep.mubr.msk.bf16.mxu1 %vm312_vm1, %v6401_v1  ;;  %v4545_v24 = vrot.slane %v4544_v10, 4  ;;  %v1876_v11 = vadd.f32 %v1844_v33, %v8642_v28  ;;  %1345 = vst.msk [vmem:[#allocation2 + $0xb0] sm:$0xff] %vm526_vm8, %v1313_v49  ;;  %1907 = vst.msk [vmem:[#allocation2 + $0x80] sm:$0xff] %vm526_vm8, %v1875_v52  ;;  %v1312_v31 = vadd.f32 %v1280_v14, %v1215_v22  ;;  %v6482_v15 = vrot.slane %v6462_v9, 9  ;;  %v1283_v22 = vld [vmem:[#allocation2 + $0xc0] sm:$0xff]  ;;  %v6771_v58 = vpop.f32.mrb[42].mxu1  ;;  %p7265_p12 = scmp.ne.s32.totalorder %s9166_s11, %s7264_s23  ;;  %p7272_p2 = scmp.lt.s32.totalorder %s7270_s28, %s7264_s23 }
 0x151   : > { %v4555_v12 = vrot.slane %v4554_v47, 4  ;;  %1343 = vst.msk [vmem:[#allocation2 + $0xa0] sm:$0xff] %vm526_vm8, %v1311_v40  ;;  %v5118_v34 = vrot.slane %v6463_v30, 5  ;;  %1910 = vst.msk [vmem:[#allocation2 + $0x98] sm:$0xff] %vm526_vm8, %v1878_v17  ;;  %v5121_v21 = vrot.slane %v6464_v7, 5  ;;  %v6483_v28 = vrot.slane %v6465_v2, 9 }
 0x152   : > { %v4550_v35 = vsel %vm7515_vm7, %v4545_v24, %v4549_v13  ;;  %1346 = vst.msk [vmem:[#allocation2 + $0xb8] sm:$0xff] %vm526_vm8, %v1314_v32  ;;  %1908 = vst.msk [vmem:[#allocation2 + $0x88] sm:$0xff] %vm526_vm8, %v1876_v11  ;;  %v5125_v3 = vrot.slane %v6466_v8, 5  ;;  %v5128_v44 = vrot.slane %v6467_v20, 5  ;;  %v1317_v50 = vadd.f32 %v6770_v5, %v1285_v26  ;;  %v1231_v25 = vpop.f32.mrb[43].mxu1  ;;  %v1284_v13 = vld [vmem:[#allocation2 + $0xc8] sm:$0xff]  ;;  %p7266_p13 = pnand %p7265_p12, %p7407_p4  ;;  %p7273_p3 = por %p7272_p2, %p7271_p1 }
 0x153   : > { %v4560_v42 = vsel %vm7515_vm7, %v4555_v12, %v4559_v41  ;;  %1344 = vst.msk [vmem:[#allocation2 + $0xa8] sm:$0xff] %vm526_vm8, %v1312_v31  ;;  %v5119_v18 = vsel %vm7508_vm6, %v6482_v15, %v5118_v34  ;;  %v5120_v0 = vrot.slane %v5118_v34, 4  ;;  %v1315_v45 = vadd.f32 %v1283_v22, %v1228_v54  ;;  %v6804_v62 = vpop.f32.mrb[40].mxu0  ;;  %v1289_v30 = vld [vmem:[#allocation2 + $0xf0] sm:$0xff]  ;;  %v1287_v52 = vld [vmem:[#allocation2 + $0xe0] sm:$0xff]  ;;  %v1290_v24 = vld [vmem:[#allocation2 + $0xf8] sm:$0xff] }
 0x154   : > { %v6402_v16 = vcombine.low %v4550_v35, %v4560_v42  ;;  %v5126_v39 = vsel %vm7508_vm6, %v6483_v28, %v5125_v3  ;;  %v5127_v51 = vrot.slane %v5125_v3, 4  ;;  %1349 = vst.msk [vmem:[#allocation2 + $0xd0] sm:$0xff] %vm526_vm8, %v1317_v50  ;;  %v1318_v53 = vadd.f32 %v6771_v58, %v1286_v23  ;;  %v1796_v4 = vpop.f32.mrb[41].mxu0  ;;  %v1288_v20 = vld [vmem:[#allocation2 + $0xe8] sm:$0xff]  ;;  %v2255_v35 = vld [vmem:[#allocation2 + $0x10] sm:$0xff]  ;;  %v2253_v3 = vld [vmem:[#allocation2] sm:$0xff]  ;;  %p7267_p0 = pneg %p7266_p13 }
 0x155   : > { %v5122_v57 = vsel %vm7508_vm6, %v5120_v0, %v5121_v21  ;;  %1347 = vst.msk [vmem:[#allocation2 + $0xc0] sm:$0xff] %vm526_vm8, %v1315_v45  ;;  %v1316_v37 = vadd.f32 %v1284_v13, %v1231_v25  ;;  %v6805_v9 = vpop.f32.mrb[42].mxu0  ;;  %v2259_v13 = vld [vmem:[#allocation2 + $0x30] sm:$0xff] }
 0x156   : > { %6977 = vmatmul.mubr.msk.bf16.gmra.mrb[140].mxu1 %vm312_vm1, %v6402_v16  ;;  %v6498_v63 = vcombine.low %v5119_v18, %v5122_v57  ;;  %v5129_v27 = vsel %vm7508_vm6, %v5127_v51, %v5128_v44  ;;  %1350 = vst.msk [vmem:[#allocation2 + $0xd8] sm:$0xff] %vm526_vm8, %v1318_v53  ;;  %v1799_v10 = vpop.f32.mrb[43].mxu0  ;;  %v6774_v36 = vpop.f32.mrb[44].mxu1  ;;  %v2256_v44 = vld [vmem:[#allocation2 + $0x18] sm:$0xff]  ;;  %v2254_v51 = vld [vmem:[#allocation2 + $0x8] sm:$0xff]  ;;  %p7274_p5 = pnand %p7273_p3, %p7267_p0 }
 0x157   : > { %v6499_v43 = vcombine.low %v5126_v39, %v5129_v27  ;;  %v1849_v29 = vld [vmem:[#allocation2 + $0xb0] sm:$0xff]  ;;  %1348 = vst.msk [vmem:[#allocation2 + $0xc8] sm:$0xff] %vm526_vm8, %v1316_v37  ;;  %v1321_v47 = vadd.f32 %v6774_v36, %v1289_v30  ;;  %v1244_v49 = vpop.f32.mrb[45].mxu1 }
 0x158   : > { %7010 = vmatprep.mubr.msk.bf16.mxu0 %vm312_vm1, %v6498_v63  ;;  %v1847_v55 = vld [vmem:[#allocation2 + $0xa0] sm:$0xff]  ;;  %v1881_v56 = vadd.f32 %v8666_v48, %v1849_v29  ;;  %v6808_v2 = vpop.f32.mrb[44].mxu0  ;;  %v1319_v8 = vadd.f32 %v1287_v52, %v1244_v49  ;;  %v2263_v49 = vld [vmem:[#allocation2 + $0x50] sm:$0xff] }
 0x159   : > { %7011 = vmatmul.mubr.msk.bf16.gmra.mrb[140].mxu0 %vm312_vm1, %v6499_v43  ;;  %v1879_v6 = vadd.f32 %v1847_v55, %v8673_v59  ;;  %v1850_v19 = vld [vmem:[#allocation2 + $0xb8] sm:$0xff]  ;;  %v1812_v32 = vpop.f32.mrb[45].mxu0  ;;  %1353 = vst.msk [vmem:[#allocation2 + $0xf0] sm:$0xff] %vm526_vm8, %v1321_v47  ;;  %v2257_v29 = vld [vmem:[#allocation2 + $0x20] sm:$0xff] }
 0x15a   : > { %v1882_v38 = vadd.f32 %v8678_v46, %v1850_v19  ;;  %v1848_v33 = vld [vmem:[#allocation2 + $0xa8] sm:$0xff]  ;;  %1913 = vst.msk [vmem:[#allocation2 + $0xb0] sm:$0xff] %vm526_vm8, %v1881_v56  ;;  %v6809_v12 = vpop.f32.mrb[46].mxu0  ;;  %1351 = vst.msk [vmem:[#allocation2 + $0xe0] sm:$0xff] %vm526_vm8, %v1319_v8 }
 0x15b   : > { %1911 = vst.msk [vmem:[#allocation2 + $0xa0] sm:$0xff] %vm526_vm8, %v1879_v6  ;;  %v1880_v1 = vadd.f32 %v1848_v33, %v8684_v61  ;;  %v1853_v48 = vld [vmem:[#allocation2 + $0xd0] sm:$0xff]  ;;  %v6775_v61 = vpop.f32.mrb[46].mxu1  ;;  %v1815_v15 = vpop.f32.mrb[47].mxu0  ;;  %v2260_v6 = vld [vmem:[#allocation2 + $0x38] sm:$0xff] }
 0x15c   : > { %1914 = vst.msk [vmem:[#allocation2 + $0xb8] sm:$0xff] %vm526_vm8, %v1882_v38  ;;  %v1885_v59 = vadd.f32 %v6804_v62, %v1853_v48  ;;  %v1851_v41 = vld [vmem:[#allocation2 + $0xc0] sm:$0xff]  ;;  %v1322_v11 = vadd.f32 %v6775_v61, %v1290_v24  ;;  %v1247_v14 = vpop.f32.mrb[47].mxu1 }
 0x15d   : > { %1912 = vst.msk [vmem:[#allocation2 + $0xa8] sm:$0xff] %vm526_vm8, %v1880_v1  ;;  %v1883_v7 = vadd.f32 %v1851_v41, %v1796_v4  ;;  %v1854_v46 = vld [vmem:[#allocation2 + $0xd8] sm:$0xff]  ;;  %v1320_v31 = vadd.f32 %v1288_v20, %v1247_v14 }
 0x15e   : > { %1917 = vst.msk [vmem:[#allocation2 + $0xd0] sm:$0xff] %vm526_vm8, %v1885_v59  ;;  %v1886_v40 = vadd.f32 %v6805_v9, %v1854_v46  ;;  %v1852_v60 = vld [vmem:[#allocation2 + $0xc8] sm:$0xff]  ;;  %1354 = vst.msk [vmem:[#allocation2 + $0xf8] sm:$0xff] %vm526_vm8, %v1322_v11  ;;  %v6814_v34 = vpop.f32.mrb[48].mxu1 }
 0x15f   : > { %1915 = vst.msk [vmem:[#allocation2 + $0xc0] sm:$0xff] %vm526_vm8, %v1883_v7  ;;  %v1884_v17 = vadd.f32 %v1852_v60, %v1799_v10  ;;  %1352 = vst.msk [vmem:[#allocation2 + $0xe8] sm:$0xff] %vm526_vm8, %v1320_v31  ;;  %v2287_v21 = vadd.f32 %v6814_v34, %v2255_v35  ;;  %v2126_v28 = vpop.f32.mrb[49].mxu1  ;;  %v2258_v9 = vld [vmem:[#allocation2 + $0x28] sm:$0xff] }
 0x160   : > { %1918 = vst.msk [vmem:[#allocation2 + $0xd8] sm:$0xff] %vm526_vm8, %v1886_v40  ;;  %v1857_v42 = vld [vmem:[#allocation2 + $0xf0] sm:$0xff]  ;;  %v2285_v18 = vadd.f32 %v2253_v3, %v2126_v28  ;;  %v6815_v0 = vpop.f32.mrb[50].mxu1 }
 0x161   : > { %1916 = vst.msk [vmem:[#allocation2 + $0xc8] sm:$0xff] %vm526_vm8, %v1884_v17  ;;  %v1889_v5 = vadd.f32 %v6808_v2, %v1857_v42  ;;  %v1855_v26 = vld [vmem:[#allocation2 + $0xe0] sm:$0xff]  ;;  %2319 = vst.msk [vmem:[#allocation2 + $0x10] sm:$0xff] %vm526_vm8, %v2287_v21  ;;  %v2288_v16 = vadd.f32 %v6815_v0, %v2256_v44  ;;  %v2129_v39 = vpop.f32.mrb[51].mxu1  ;;  %v2264_v17 = vld [vmem:[#allocation2 + $0x58] sm:$0xff] }
 0x162   : > { %v6848_v50 = vpop.f32.mrb[48].mxu0  ;;  %v1887_v54 = vadd.f32 %v1855_v26, %v1812_v32  ;;  %2317 = vst.msk [vmem:[#allocation2] sm:$0xff] %vm526_vm8, %v2285_v18  ;;  %v2286_v57 = vadd.f32 %v2254_v51, %v2129_v39  ;;  %v2261_v2 = vld [vmem:[#allocation2 + $0x40] sm:$0xff]  ;;  %v2267_v0 = vld [vmem:[#allocation2 + $0x70] sm:$0xff] }
 0x163   : > { %v2915_v45 = vpop.f32.mrb[49].mxu0  ;;  %1921 = vst.msk [vmem:[#allocation2 + $0xf0] sm:$0xff] %vm526_vm8, %v1889_v5  ;;  %2320 = vst.msk [vmem:[#allocation2 + $0x18] sm:$0xff] %vm526_vm8, %v2288_v16  ;;  %v2265_v16 = vld [vmem:[#allocation2 + $0x60] sm:$0xff] }
 0x164   : > { %v6849_v63 = vpop.f32.mrb[50].mxu0  ;;  %1919 = vst.msk [vmem:[#allocation2 + $0xe0] sm:$0xff] %vm526_vm8, %v1887_v54  ;;  %2318 = vst.msk [vmem:[#allocation2 + $0x8] sm:$0xff] %vm526_vm8, %v2286_v57 }
 0x165   : > { %v1858_v22 = vld [vmem:[#allocation2 + $0xf8] sm:$0xff]  ;;  %v2918_v53 = vpop.f32.mrb[51].mxu0 }
 0x166   : > { %v1890_v58 = vadd.f32 %v6809_v12, %v1858_v22  ;;  %v1856_v23 = vld [vmem:[#allocation2 + $0xe8] sm:$0xff]  ;;  %v6818_v25 = vpop.f32.mrb[52].mxu1  ;;  %v2268_v22 = vld [vmem:[#allocation2 + $0x78] sm:$0xff] }
 0x167   : > { %v1888_v27 = vadd.f32 %v1856_v23, %v1815_v15  ;;  %v2291_v43 = vadd.f32 %v6818_v25, %v2259_v13  ;;  %v2142_v37 = vpop.f32.mrb[53].mxu1  ;;  %v2262_v12 = vld [vmem:[#allocation2 + $0x48] sm:$0xff] }
 0x168   : > { %1922 = vst.msk [vmem:[#allocation2 + $0xf8] sm:$0xff] %vm526_vm8, %v1890_v58  ;;  %v3044_v55 = vld [vmem:[#allocation2 + $0x10] sm:$0xff]  ;;  %v2289_v62 = vadd.f32 %v2257_v29, %v2142_v37  ;;  %v6819_v56 = vpop.f32.mrb[54].mxu1 }
 0x169   : > { %1920 = vst.msk [vmem:[#allocation2 + $0xe8] sm:$0xff] %vm526_vm8, %v1888_v27  ;;  %v3076_v19 = vadd.f32 %v6848_v50, %v3044_v55  ;;  %2323 = vst.msk [vmem:[#allocation2 + $0x30] sm:$0xff] %vm526_vm8, %v2291_v43  ;;  %v3042_v4 = vld [vmem:[#allocation2] sm:$0xff]  ;;  %v2292_v38 = vadd.f32 %v6819_v56, %v2260_v6  ;;  %v2145_v33 = vpop.f32.mrb[55].mxu1  ;;  %v2271_v56 = vld [vmem:[#allocation2 + $0x90] sm:$0xff] }
 0x16a   : > { %v3074_v1 = vadd.f32 %v3042_v4, %v2915_v45  ;;  %2321 = vst.msk [vmem:[#allocation2 + $0x20] sm:$0xff] %vm526_vm8, %v2289_v62  ;;  %v3045_v10 = vld [vmem:[#allocation2 + $0x18] sm:$0xff]  ;;  %v2290_v48 = vadd.f32 %v2258_v9, %v2145_v33 }
 0x16b   : > { %3108 = vst.msk [vmem:[#allocation2 + $0x10] sm:$0xff] %vm526_vm8, %v3076_v19  ;;  %v3077_v59 = vadd.f32 %v6849_v63, %v3045_v10  ;;  %2324 = vst.msk [vmem:[#allocation2 + $0x38] sm:$0xff] %vm526_vm8, %v2292_v38  ;;  %v3043_v41 = vld [vmem:[#allocation2 + $0x8] sm:$0xff]  ;;  %v2269_v38 = vld [vmem:[#allocation2 + $0x80] sm:$0xff] }
 0x16c   : > { %v6852_v36 = vpop.f32.mrb[52].mxu0  ;;  %3106 = vst.msk [vmem:[#allocation2] sm:$0xff] %vm526_vm8, %v3074_v1  ;;  %v3075_v30 = vadd.f32 %v3043_v41, %v2918_v53  ;;  %2322 = vst.msk [vmem:[#allocation2 + $0x28] sm:$0xff] %vm526_vm8, %v2290_v48  ;;  %v2266_v63 = vld [vmem:[#allocation2 + $0x68] sm:$0xff]  ;;  %v2272_v48 = vld [vmem:[#allocation2 + $0x98] sm:$0xff] }
 0x16d   : > { %v2931_v7 = vpop.f32.mrb[53].mxu0  ;;  %3109 = vst.msk [vmem:[#allocation2 + $0x18] sm:$0xff] %vm526_vm8, %v3077_v59 }
 0x16e   : > { %v6853_v46 = vpop.f32.mrb[54].mxu0  ;;  %3107 = vst.msk [vmem:[#allocation2 + $0x8] sm:$0xff] %vm526_vm8, %v3075_v30  ;;  %v6822_v47 = vpop.f32.mrb[56].mxu1 }
 0x16f   : > { %v2934_v52 = vpop.f32.mrb[55].mxu0  ;;  %v2295_v40 = vadd.f32 %v6822_v47, %v2263_v49  ;;  %v2158_v60 = vpop.f32.mrb[57].mxu1 }
 0x170   : > { %v3048_v8 = vld [vmem:[#allocation2 + $0x30] sm:$0xff]  ;;  %v2293_v61 = vadd.f32 %v2261_v2, %v2158_v60  ;;  %v6823_v24 = vpop.f32.mrb[58].mxu1 }
 0x171   : > { %v3080_v32 = vadd.f32 %v6852_v36, %v3048_v8  ;;  %2327 = vst.msk [vmem:[#allocation2 + $0x50] sm:$0xff] %vm526_vm8, %v2295_v40  ;;  %v3046_v11 = vld [vmem:[#allocation2 + $0x20] sm:$0xff]  ;;  %v2296_v14 = vadd.f32 %v6823_v24, %v2264_v17  ;;  %v2161_v20 = vpop.f32.mrb[59].mxu1 }
 0x172   : > { %v3078_v31 = vadd.f32 %v3046_v11, %v2931_v7  ;;  %2325 = vst.msk [vmem:[#allocation2 + $0x40] sm:$0xff] %vm526_vm8, %v2293_v61  ;;  %v3049_v15 = vld [vmem:[#allocation2 + $0x38] sm:$0xff]  ;;  %v2294_v34 = vadd.f32 %v2262_v12, %v2161_v20  ;;  %v2270_v7 = vld [vmem:[#allocation2 + $0x88] sm:$0xff]  ;;  %v2275_v61 = vld [vmem:[#allocation2 + $0xb0] sm:$0xff] }
 0x173   : > { %3112 = vst.msk [vmem:[#allocation2 + $0x30] sm:$0xff] %vm526_vm8, %v3080_v32  ;;  %v3081_v35 = vadd.f32 %v6853_v46, %v3049_v15  ;;  %2328 = vst.msk [vmem:[#allocation2 + $0x58] sm:$0xff] %vm526_vm8, %v2296_v14  ;;  %v3047_v21 = vld [vmem:[#allocation2 + $0x28] sm:$0xff]  ;;  %v2273_v11 = vld [vmem:[#allocation2 + $0xa0] sm:$0xff] }
 0x174   : > { %3110 = vst.msk [vmem:[#allocation2 + $0x20] sm:$0xff] %vm526_vm8, %v3078_v31  ;;  %v3079_v28 = vadd.f32 %v3047_v21, %v2934_v52  ;;  %2326 = vst.msk [vmem:[#allocation2 + $0x48] sm:$0xff] %vm526_vm8, %v2294_v34  ;;  %v6856_v3 = vpop.f32.mrb[56].mxu0  ;;  %v2276_v15 = vld [vmem:[#allocation2 + $0xb8] sm:$0xff] }
 0x175   : > { %3113 = vst.msk [vmem:[#allocation2 + $0x38] sm:$0xff] %vm526_vm8, %v3081_v35  ;;  %v2947_v42 = vpop.f32.mrb[57].mxu0 }
 0x176   : > { %3111 = vst.msk [vmem:[#allocation2 + $0x28] sm:$0xff] %vm526_vm8, %v3079_v28  ;;  %v6826_v18 = vpop.f32.mrb[60].mxu1  ;;  %v6857_v44 = vpop.f32.mrb[58].mxu0 }
 0x177   : > { %v2299_v5 = vadd.f32 %v6826_v18, %v2267_v0  ;;  %v2174_v26 = vpop.f32.mrb[61].mxu1  ;;  %v2950_v39 = vpop.f32.mrb[59].mxu0 }
 0x178   : > { %v3052_v51 = vld [vmem:[#allocation2 + $0x50] sm:$0xff]  ;;  %v2297_v50 = vadd.f32 %v2265_v16, %v2174_v26  ;;  %v6827_v54 = vpop.f32.mrb[62].mxu1 }
 0x179   : > { %v3084_v57 = vadd.f32 %v6856_v3, %v3052_v51  ;;  %2331 = vst.msk [vmem:[#allocation2 + $0x70] sm:$0xff] %vm526_vm8, %v2299_v5  ;;  %v3050_v45 = vld [vmem:[#allocation2 + $0x40] sm:$0xff]  ;;  %v2300_v58 = vadd.f32 %v6827_v54, %v2268_v22  ;;  %v2177_v23 = vpop.f32.mrb[63].mxu1 }
 0x17a   : > { %v3082_v27 = vadd.f32 %v3050_v45, %v2947_v42  ;;  %2329 = vst.msk [vmem:[#allocation2 + $0x60] sm:$0xff] %vm526_vm8, %v2297_v50  ;;  %v3053_v53 = vld [vmem:[#allocation2 + $0x58] sm:$0xff]  ;;  %v2298_v25 = vadd.f32 %v2266_v63, %v2177_v23  ;;  %v2274_v42 = vld [vmem:[#allocation2 + $0xa8] sm:$0xff]  ;;  %v2279_v50 = vld [vmem:[#allocation2 + $0xd0] sm:$0xff] }
 0x17b   : > { %3116 = vst.msk [vmem:[#allocation2 + $0x50] sm:$0xff] %vm526_vm8, %v3084_v57  ;;  %v3085_v13 = vadd.f32 %v6857_v44, %v3053_v53  ;;  %2332 = vst.msk [vmem:[#allocation2 + $0x78] sm:$0xff] %vm526_vm8, %v2300_v58  ;;  %v3051_v43 = vld [vmem:[#allocation2 + $0x48] sm:$0xff]  ;;  %v2277_v45 = vld [vmem:[#allocation2 + $0xc0] sm:$0xff] }
 0x17c   : > { %3114 = vst.msk [vmem:[#allocation2 + $0x40] sm:$0xff] %vm526_vm8, %v3082_v27  ;;  %v3083_v37 = vadd.f32 %v3051_v43, %v2950_v39  ;;  %2330 = vst.msk [vmem:[#allocation2 + $0x68] sm:$0xff] %vm526_vm8, %v2298_v25  ;;  %v6860_v29 = vpop.f32.mrb[60].mxu0  ;;  %v2280_v53 = vld [vmem:[#allocation2 + $0xd8] sm:$0xff] }
 0x17d   : > { %3117 = vst.msk [vmem:[#allocation2 + $0x58] sm:$0xff] %vm526_vm8, %v3085_v13  ;;  %v2963_v55 = vpop.f32.mrb[61].mxu0 }
 0x17e   : > { %3115 = vst.msk [vmem:[#allocation2 + $0x48] sm:$0xff] %vm526_vm8, %v3083_v37  ;;  %v6830_v62 = vpop.f32.mrb[64].mxu1  ;;  %v6861_v6 = vpop.f32.mrb[62].mxu0 }
 0x17f   : > { %v2303_v19 = vadd.f32 %v6830_v62, %v2271_v56  ;;  %v2190_v4 = vpop.f32.mrb[65].mxu1  ;;  %v2966_v33 = vpop.f32.mrb[63].mxu0 }
 0x180   : > { %v3056_v9 = vld [vmem:[#allocation2 + $0x70] sm:$0xff]  ;;  %v2301_v1 = vadd.f32 %v2269_v38, %v2190_v4  ;;  %v6831_v10 = vpop.f32.mrb[66].mxu1 }
 0x181   : > { %v3088_v59 = vadd.f32 %v6860_v29, %v3056_v9  ;;  %2335 = vst.msk [vmem:[#allocation2 + $0x90] sm:$0xff] %vm526_vm8, %v2303_v19  ;;  %v3054_v41 = vld [vmem:[#allocation2 + $0x60] sm:$0xff]  ;;  %v2304_v36 = vadd.f32 %v6831_v10, %v2272_v48  ;;  %v2193_v30 = vpop.f32.mrb[67].mxu1 }
 0x182   : > { %v3086_v46 = vadd.f32 %v3054_v41, %v2963_v55  ;;  %2333 = vst.msk [vmem:[#allocation2 + $0x80] sm:$0xff] %vm526_vm8, %v2301_v1  ;;  %v3057_v47 = vld [vmem:[#allocation2 + $0x78] sm:$0xff]  ;;  %v2302_v49 = vadd.f32 %v2270_v7, %v2193_v30  ;;  %v2278_v55 = vld [vmem:[#allocation2 + $0xc8] sm:$0xff]  ;;  %v2283_v1 = vld [vmem:[#allocation2 + $0xf0] sm:$0xff] }
 0x183   : > { %3120 = vst.msk [vmem:[#allocation2 + $0x70] sm:$0xff] %vm526_vm8, %v3088_v59  ;;  %v3089_v52 = vadd.f32 %v6861_v6, %v3057_v47  ;;  %2336 = vst.msk [vmem:[#allocation2 + $0x98] sm:$0xff] %vm526_vm8, %v2304_v36  ;;  %v3055_v40 = vld [vmem:[#allocation2 + $0x68] sm:$0xff]  ;;  %v2281_v41 = vld [vmem:[#allocation2 + $0xe0] sm:$0xff] }
 0x184   : > { %3118 = vst.msk [vmem:[#allocation2 + $0x60] sm:$0xff] %vm526_vm8, %v3086_v46  ;;  %v3087_v60 = vadd.f32 %v3055_v40, %v2966_v33  ;;  %2334 = vst.msk [vmem:[#allocation2 + $0x88] sm:$0xff] %vm526_vm8, %v2302_v49  ;;  %v2284_v47 = vld [vmem:[#allocation2 + $0xf8] sm:$0xff] }
 0x185   : > { %3121 = vst.msk [vmem:[#allocation2 + $0x78] sm:$0xff] %vm526_vm8, %v3089_v52  ;;  %v6864_v2 = vpop.f32.mrb[64].mxu0 }
 0x186   : > { %3119 = vst.msk [vmem:[#allocation2 + $0x68] sm:$0xff] %vm526_vm8, %v3087_v60  ;;  %v6834_v8 = vpop.f32.mrb[68].mxu1  ;;  %v2979_v24 = vpop.f32.mrb[65].mxu0 }
 0x187   : > { %v2307_v17 = vadd.f32 %v6834_v8, %v2275_v61  ;;  %v2206_v32 = vpop.f32.mrb[69].mxu1  ;;  %v6865_v14 = vpop.f32.mrb[66].mxu0  ;;  %v2282_v8 = vld [vmem:[#allocation2 + $0xe8] sm:$0xff] }
 0x188   : > { %v3060_v20 = vld [vmem:[#allocation2 + $0x90] sm:$0xff]  ;;  %v2305_v12 = vadd.f32 %v2273_v11, %v2206_v32  ;;  %v6835_v31 = vpop.f32.mrb[70].mxu1  ;;  %v2982_v34 = vpop.f32.mrb[67].mxu0 }
 0x189   : > { %v3092_v35 = vadd.f32 %v6864_v2, %v3060_v20  ;;  %2339 = vst.msk [vmem:[#allocation2 + $0xb0] sm:$0xff] %vm526_vm8, %v2307_v17  ;;  %v3058_v21 = vld [vmem:[#allocation2 + $0x80] sm:$0xff]  ;;  %v2308_v28 = vadd.f32 %v6835_v31, %v2276_v15  ;;  %v2209_v3 = vpop.f32.mrb[71].mxu1  ;;  %v3613_v15 = vld [vmem:[#allocation2 + $0x10] sm:$0xff] }
 0x18a   : > { %v3090_v18 = vadd.f32 %v3058_v21, %v2979_v24  ;;  %2337 = vst.msk [vmem:[#allocation2 + $0xa0] sm:$0xff] %vm526_vm8, %v2305_v12  ;;  %v3061_v0 = vld [vmem:[#allocation2 + $0x98] sm:$0xff]  ;;  %v2306_v44 = vadd.f32 %v2274_v42, %v2209_v3  ;;  %v3611_v3 = vld [vmem:[#allocation2] sm:$0xff] }
 0x18b   : > { %3124 = vst.msk [vmem:[#allocation2 + $0x90] sm:$0xff] %vm526_vm8, %v3092_v35  ;;  %v3093_v5 = vadd.f32 %v6865_v14, %v3061_v0  ;;  %2340 = vst.msk [vmem:[#allocation2 + $0xb8] sm:$0xff] %vm526_vm8, %v2308_v28  ;;  %v3059_v26 = vld [vmem:[#allocation2 + $0x88] sm:$0xff] }
 0x18c   : > { %3122 = vst.msk [vmem:[#allocation2 + $0x80] sm:$0xff] %vm526_vm8, %v3090_v18  ;;  %v3091_v16 = vadd.f32 %v3059_v26, %v2982_v34  ;;  %2338 = vst.msk [vmem:[#allocation2 + $0xa8] sm:$0xff] %vm526_vm8, %v2306_v44  ;;  %v3614_v26 = vld [vmem:[#allocation2 + $0x18] sm:$0xff] }
 0x18d   : > { %3125 = vst.msk [vmem:[#allocation2 + $0x98] sm:$0xff] %vm526_vm8, %v3093_v5  ;;  %v6868_v39 = vpop.f32.mrb[68].mxu0 }
 0x18e   : > { %3123 = vst.msk [vmem:[#allocation2 + $0x88] sm:$0xff] %vm526_vm8, %v3091_v16  ;;  %v6838_v51 = vpop.f32.mrb[72].mxu1  ;;  %v2995_v54 = vpop.f32.mrb[69].mxu0 }
 0x18f   : > { %v2311_v22 = vadd.f32 %v6838_v51, %v2279_v50  ;;  %v2222_v57 = vpop.f32.mrb[73].mxu1  ;;  %v6869_v58 = vpop.f32.mrb[70].mxu0 }
 0x190   : > { %v3064_v23 = vld [vmem:[#allocation2 + $0xb0] sm:$0xff]  ;;  %v2309_v63 = vadd.f32 %v2277_v45, %v2222_v57  ;;  %v6839_v27 = vpop.f32.mrb[74].mxu1  ;;  %v2998_v25 = vpop.f32.mrb[71].mxu0 }
 0x191   : > { %v3096_v13 = vadd.f32 %v6868_v39, %v3064_v23  ;;  %2343 = vst.msk [vmem:[#allocation2 + $0xd0] sm:$0xff] %vm526_vm8, %v2311_v22  ;;  %v3062_v43 = vld [vmem:[#allocation2 + $0xa0] sm:$0xff]  ;;  %v2312_v37 = vadd.f32 %v6839_v27, %v2280_v53  ;;  %v2225_v29 = vpop.f32.mrb[75].mxu1  ;;  %v3617_v53 = vld [vmem:[#allocation2 + $0x30] sm:$0xff] }
 0x192   : > { %v3094_v62 = vadd.f32 %v3062_v43, %v2995_v54  ;;  %2341 = vst.msk [vmem:[#allocation2 + $0xc0] sm:$0xff] %vm526_vm8, %v2309_v63  ;;  %v3065_v56 = vld [vmem:[#allocation2 + $0xb8] sm:$0xff]  ;;  %v2310_v6 = vadd.f32 %v2278_v55, %v2225_v29  ;;  %v3612_v54 = vld [vmem:[#allocation2 + $0x8] sm:$0xff] }
 0x193   : > { %3128 = vst.msk [vmem:[#allocation2 + $0xb0] sm:$0xff] %vm526_vm8, %v3096_v13  ;;  %v3097_v19 = vadd.f32 %v6869_v58, %v3065_v56  ;;  %2344 = vst.msk [vmem:[#allocation2 + $0xd8] sm:$0xff] %vm526_vm8, %v2312_v37  ;;  %v3063_v4 = vld [vmem:[#allocation2 + $0xa8] sm:$0xff]  ;;  %v3615_v37 = vld [vmem:[#allocation2 + $0x20] sm:$0xff] }
 0x194   : > { %3126 = vst.msk [vmem:[#allocation2 + $0xa0] sm:$0xff] %vm526_vm8, %v3094_v62  ;;  %v3095_v38 = vadd.f32 %v3063_v4, %v2998_v25  ;;  %2342 = vst.msk [vmem:[#allocation2 + $0xc8] sm:$0xff] %vm526_vm8, %v2310_v6  ;;  %v3618_v6 = vld [vmem:[#allocation2 + $0x38] sm:$0xff] }
 0x195   : > { %3129 = vst.msk [vmem:[#allocation2 + $0xb8] sm:$0xff] %vm526_vm8, %v3097_v19 }
 0x196   : > { %v6872_v33 = vpop.f32.mrb[72].mxu0  ;;  %3127 = vst.msk [vmem:[#allocation2 + $0xa8] sm:$0xff] %vm526_vm8, %v3095_v38  ;;  %v6842_v9 = vpop.f32.mrb[76].mxu1 }
 0x197   : > { %v3011_v10 = vpop.f32.mrb[73].mxu0  ;;  %v2315_v48 = vadd.f32 %v6842_v9, %v2283_v1  ;;  %v2238_v59 = vpop.f32.mrb[77].mxu1  ;;  %v3616_v9 = vld [vmem:[#allocation2 + $0x28] sm:$0xff] }
 0x198   : > { %v6873_v36 = vpop.f32.mrb[74].mxu0  ;;  %v3068_v30 = vld [vmem:[#allocation2 + $0xd0] sm:$0xff]  ;;  %v2313_v7 = vadd.f32 %v2281_v41, %v2238_v59  ;;  %v6843_v46 = vpop.f32.mrb[78].mxu1 }
 0x199   : > { %v3014_v49 = vpop.f32.mrb[75].mxu0  ;;  %v3100_v52 = vadd.f32 %v6872_v33, %v3068_v30  ;;  %2347 = vst.msk [vmem:[#allocation2 + $0xf0] sm:$0xff] %vm526_vm8, %v2315_v48  ;;  %v3066_v40 = vld [vmem:[#allocation2 + $0xc0] sm:$0xff]  ;;  %v2316_v60 = vadd.f32 %v6843_v46, %v2284_v47  ;;  %v2241_v2 = vpop.f32.mrb[79].mxu1  ;;  %v3621_v47 = vld [vmem:[#allocation2 + $0x50] sm:$0xff] }
 0x19a   : > { %v3098_v61 = vadd.f32 %v3066_v40, %v3011_v10  ;;  %2345 = vst.msk [vmem:[#allocation2 + $0xe0] sm:$0xff] %vm526_vm8, %v2313_v7  ;;  %v3069_v24 = vld [vmem:[#allocation2 + $0xd8] sm:$0xff]  ;;  %v2314_v17 = vadd.f32 %v2282_v8, %v2241_v2 }
 0x19b   : > { %3132 = vst.msk [vmem:[#allocation2 + $0xd0] sm:$0xff] %vm526_vm8, %v3100_v52  ;;  %v3101_v32 = vadd.f32 %v6873_v36, %v3069_v24  ;;  %2348 = vst.msk [vmem:[#allocation2 + $0xf8] sm:$0xff] %vm526_vm8, %v2316_v60  ;;  %v3067_v11 = vld [vmem:[#allocation2 + $0xc8] sm:$0xff]  ;;  %v3619_v60 = vld [vmem:[#allocation2 + $0x40] sm:$0xff] }
 0x19c   : > { %3130 = vst.msk [vmem:[#allocation2 + $0xc0] sm:$0xff] %vm526_vm8, %v3098_v61  ;;  %v3099_v14 = vadd.f32 %v3067_v11, %v3014_v49  ;;  %2346 = vst.msk [vmem:[#allocation2 + $0xe8] sm:$0xff] %vm526_vm8, %v2314_v17  ;;  %v3622_v17 = vld [vmem:[#allocation2 + $0x58] sm:$0xff] }
 0x19d   : > { %3133 = vst.msk [vmem:[#allocation2 + $0xd8] sm:$0xff] %vm526_vm8, %v3101_v32 }
 0x19e   : > { %v6876_v20 = vpop.f32.mrb[76].mxu0  ;;  %3131 = vst.msk [vmem:[#allocation2 + $0xc8] sm:$0xff] %vm526_vm8, %v3099_v14 }
 0x19f   : > { %v3027_v12 = vpop.f32.mrb[77].mxu0  ;;  %v6882_v31 = vpop.f32.mrb[80].mxu1 }
 0x1a0   : > { %v6877_v34 = vpop.f32.mrb[78].mxu0  ;;  %v3072_v35 = vld [vmem:[#allocation2 + $0xf0] sm:$0xff]  ;;  %v3645_v21 = vadd.f32 %v6882_v31, %v3613_v15  ;;  %v3484_v28 = vpop.f32.mrb[81].mxu1 }
 0x1a1   : > { %v3030_v42 = vpop.f32.mrb[79].mxu0  ;;  %v3104_v18 = vadd.f32 %v6876_v20, %v3072_v35  ;;  %v3070_v0 = vld [vmem:[#allocation2 + $0xe0] sm:$0xff]  ;;  %v3643_v44 = vadd.f32 %v3611_v3, %v3484_v28  ;;  %v6883_v5 = vpop.f32.mrb[82].mxu1 }
 0x1a2   : > { %v3102_v16 = vadd.f32 %v3070_v0, %v3027_v12  ;;  %3677 = vst.msk [vmem:[#allocation2 + $0x10] sm:$0xff] %vm526_vm8, %v3645_v21  ;;  %v3073_v39 = vld [vmem:[#allocation2 + $0xf8] sm:$0xff]  ;;  %v3646_v51 = vadd.f32 %v6883_v5, %v3614_v26  ;;  %v3487_v50 = vpop.f32.mrb[83].mxu1  ;;  %v3620_v12 = vld [vmem:[#allocation2 + $0x48] sm:$0xff]  ;;  %v3625_v0 = vld [vmem:[#allocation2 + $0x70] sm:$0xff] }
 0x1a3   : > { %3136 = vst.msk [vmem:[#allocation2 + $0xf0] sm:$0xff] %vm526_vm8, %v3104_v18  ;;  %v3105_v22 = vadd.f32 %v6877_v34, %v3073_v39  ;;  %3675 = vst.msk [vmem:[#allocation2] sm:$0xff] %vm526_vm8, %v3643_v44  ;;  %v3071_v57 = vld [vmem:[#allocation2 + $0xe8] sm:$0xff]  ;;  %v3644_v45 = vadd.f32 %v3612_v54, %v3487_v50 }
 0x1a4   : > { %3134 = vst.msk [vmem:[#allocation2 + $0xe0] sm:$0xff] %vm526_vm8, %v3102_v16  ;;  %v3103_v58 = vadd.f32 %v3071_v57, %v3030_v42  ;;  %3678 = vst.msk [vmem:[#allocation2 + $0x18] sm:$0xff] %vm526_vm8, %v3646_v51  ;;  %v3623_v16 = vld [vmem:[#allocation2 + $0x60] sm:$0xff] }
 0x1a5   : > { %3137 = vst.msk [vmem:[#allocation2 + $0xf8] sm:$0xff] %vm526_vm8, %v3105_v22  ;;  %3676 = vst.msk [vmem:[#allocation2 + $0x8] sm:$0xff] %vm526_vm8, %v3644_v45  ;;  %v3626_v22 = vld [vmem:[#allocation2 + $0x78] sm:$0xff] }
 0x1a6   : > { %v6916_v23 = vpop.f32.mrb[80].mxu0  ;;  %3135 = vst.msk [vmem:[#allocation2 + $0xe8] sm:$0xff] %vm526_vm8, %v3103_v58 }
 0x1a7   : > { %v3906_v63 = vpop.f32.mrb[81].mxu0 }
 0x1a8   : > { %v6886_v27 = vpop.f32.mrb[84].mxu1  ;;  %v6917_v25 = vpop.f32.mrb[82].mxu0 }
 0x1a9   : > { %v3649_v13 = vadd.f32 %v6886_v27, %v3617_v53  ;;  %v3500_v43 = vpop.f32.mrb[85].mxu1  ;;  %v3909_v29 = vpop.f32.mrb[83].mxu0  ;;  %v4035_v55 = vld [vmem:[#allocation2 + $0x10] sm:$0xff] }
 0x1aa   : > { %v3647_v62 = vadd.f32 %v3615_v37, %v3500_v43  ;;  %v6887_v56 = vpop.f32.mrb[86].mxu1  ;;  %v4067_v19 = vadd.f32 %v6916_v23, %v4035_v55  ;;  %v4033_v4 = vld [vmem:[#allocation2] sm:$0xff] }
 0x1ab   : > { %3681 = vst.msk [vmem:[#allocation2 + $0x30] sm:$0xff] %vm526_vm8, %v3649_v13  ;;  %v3650_v38 = vadd.f32 %v6887_v56, %v3618_v6  ;;  %v3503_v33 = vpop.f32.mrb[87].mxu1  ;;  %v4065_v1 = vadd.f32 %v4033_v4, %v3906_v63  ;;  %v4036_v10 = vld [vmem:[#allocation2 + $0x18] sm:$0xff]  ;;  %v3624_v63 = vld [vmem:[#allocation2 + $0x68] sm:$0xff]  ;;  %v3629_v56 = vld [vmem:[#allocation2 + $0x90] sm:$0xff] }
 0x1ac   : > { %3679 = vst.msk [vmem:[#allocation2 + $0x20] sm:$0xff] %vm526_vm8, %v3647_v62  ;;  %v3648_v48 = vadd.f32 %v3616_v9, %v3503_v33  ;;  %4099 = vst.msk [vmem:[#allocation2 + $0x10] sm:$0xff] %vm526_vm8, %v4067_v19  ;;  %v4068_v59 = vadd.f32 %v6917_v25, %v4036_v10  ;;  %v4034_v41 = vld [vmem:[#allocation2 + $0x8] sm:$0xff] }
 0x1ad   : > { %3682 = vst.msk [vmem:[#allocation2 + $0x38] sm:$0xff] %vm526_vm8, %v3650_v38  ;;  %4097 = vst.msk [vmem:[#allocation2] sm:$0xff] %vm526_vm8, %v4065_v1  ;;  %v4066_v36 = vadd.f32 %v4034_v41, %v3909_v29  ;;  %v3627_v38 = vld [vmem:[#allocation2 + $0x80] sm:$0xff] }
 0x1ae   : > { %3680 = vst.msk [vmem:[#allocation2 + $0x28] sm:$0xff] %vm526_vm8, %v3648_v48  ;;  %v6920_v30 = vpop.f32.mrb[84].mxu0  ;;  %4100 = vst.msk [vmem:[#allocation2 + $0x18] sm:$0xff] %vm526_vm8, %v4068_v59  ;;  %v3630_v48 = vld [vmem:[#allocation2 + $0x98] sm:$0xff] }
 0x1af   : > { %v3922_v7 = vpop.f32.mrb[85].mxu0  ;;  %4098 = vst.msk [vmem:[#allocation2 + $0x8] sm:$0xff] %vm526_vm8, %v4066_v36 }
 0x1b0   : > { %v6890_v46 = vpop.f32.mrb[88].mxu1  ;;  %v6921_v49 = vpop.f32.mrb[86].mxu0 }
 0x1b1   : > { %v3653_v52 = vadd.f32 %v6890_v46, %v3621_v47  ;;  %v3516_v40 = vpop.f32.mrb[89].mxu1  ;;  %v3925_v2 = vpop.f32.mrb[87].mxu0 }
 0x1b2   : > { %v4039_v8 = vld [vmem:[#allocation2 + $0x30] sm:$0xff]  ;;  %v3651_v61 = vadd.f32 %v3619_v60, %v3516_v40  ;;  %v6891_v24 = vpop.f32.mrb[90].mxu1 }
 0x1b3   : > { %v4071_v32 = vadd.f32 %v6920_v30, %v4039_v8  ;;  %3685 = vst.msk [vmem:[#allocation2 + $0x50] sm:$0xff] %vm526_vm8, %v3653_v52  ;;  %v4037_v11 = vld [vmem:[#allocation2 + $0x20] sm:$0xff]  ;;  %v3654_v14 = vadd.f32 %v6891_v24, %v3622_v17  ;;  %v3519_v20 = vpop.f32.mrb[91].mxu1  ;;  %v3633_v24 = vld [vmem:[#allocation2 + $0xb0] sm:$0xff] }
 0x1b4   : > { %v4069_v31 = vadd.f32 %v4037_v11, %v3922_v7  ;;  %3683 = vst.msk [vmem:[#allocation2 + $0x40] sm:$0xff] %vm526_vm8, %v3651_v61  ;;  %v4040_v15 = vld [vmem:[#allocation2 + $0x38] sm:$0xff]  ;;  %v3652_v34 = vadd.f32 %v3620_v12, %v3519_v20  ;;  %v3628_v7 = vld [vmem:[#allocation2 + $0x88] sm:$0xff] }
 0x1b5   : > { %4103 = vst.msk [vmem:[#allocation2 + $0x30] sm:$0xff] %vm526_vm8, %v4071_v32  ;;  %v4072_v35 = vadd.f32 %v6921_v49, %v4040_v15  ;;  %3686 = vst.msk [vmem:[#allocation2 + $0x58] sm:$0xff] %vm526_vm8, %v3654_v14  ;;  %v4038_v21 = vld [vmem:[#allocation2 + $0x28] sm:$0xff]  ;;  %v3631_v14 = vld [vmem:[#allocation2 + $0xa0] sm:$0xff] }
 0x1b6   : > { %4101 = vst.msk [vmem:[#allocation2 + $0x20] sm:$0xff] %vm526_vm8, %v4069_v31  ;;  %v4070_v28 = vadd.f32 %v4038_v21, %v3925_v2  ;;  %3684 = vst.msk [vmem:[#allocation2 + $0x48] sm:$0xff] %vm526_vm8, %v3652_v34  ;;  %v6924_v3 = vpop.f32.mrb[88].mxu0  ;;  %v3634_v34 = vld [vmem:[#allocation2 + $0xb8] sm:$0xff] }
 0x1b7   : > { %4104 = vst.msk [vmem:[#allocation2 + $0x38] sm:$0xff] %vm526_vm8, %v4072_v35  ;;  %v3938_v42 = vpop.f32.mrb[89].mxu0 }
 0x1b8   : > { %4102 = vst.msk [vmem:[#allocation2 + $0x28] sm:$0xff] %vm526_vm8, %v4070_v28  ;;  %v6894_v18 = vpop.f32.mrb[92].mxu1  ;;  %v6925_v44 = vpop.f32.mrb[90].mxu0 }
 0x1b9   : > { %v3657_v5 = vadd.f32 %v6894_v18, %v3625_v0  ;;  %v3532_v26 = vpop.f32.mrb[93].mxu1  ;;  %v3941_v39 = vpop.f32.mrb[91].mxu0 }
 0x1ba   : > { %v4043_v51 = vld [vmem:[#allocation2 + $0x50] sm:$0xff]  ;;  %v3655_v50 = vadd.f32 %v3623_v16, %v3532_v26  ;;  %v6895_v54 = vpop.f32.mrb[94].mxu1 }
 0x1bb   : > { %v4075_v57 = vadd.f32 %v6924_v3, %v4043_v51  ;;  %3689 = vst.msk [vmem:[#allocation2 + $0x70] sm:$0xff] %vm526_vm8, %v3657_v5  ;;  %v4041_v45 = vld [vmem:[#allocation2 + $0x40] sm:$0xff]  ;;  %v3658_v58 = vadd.f32 %v6895_v54, %v3626_v22  ;;  %v3535_v23 = vpop.f32.mrb[95].mxu1  ;;  %v3637_v54 = vld [vmem:[#allocation2 + $0xd0] sm:$0xff] }
 0x1bc   : > { %v4073_v27 = vadd.f32 %v4041_v45, %v3938_v42  ;;  %3687 = vst.msk [vmem:[#allocation2 + $0x60] sm:$0xff] %vm526_vm8, %v3655_v50  ;;  %v4044_v53 = vld [vmem:[#allocation2 + $0x58] sm:$0xff]  ;;  %v3656_v25 = vadd.f32 %v3624_v63, %v3535_v23  ;;  %v3632_v42 = vld [vmem:[#allocation2 + $0xa8] sm:$0xff] }
 0x1bd   : > { %4107 = vst.msk [vmem:[#allocation2 + $0x50] sm:$0xff] %vm526_vm8, %v4075_v57  ;;  %v4076_v13 = vadd.f32 %v6925_v44, %v4044_v53  ;;  %3690 = vst.msk [vmem:[#allocation2 + $0x78] sm:$0xff] %vm526_vm8, %v3658_v58  ;;  %v4042_v43 = vld [vmem:[#allocation2 + $0x48] sm:$0xff]  ;;  %v3635_v58 = vld [vmem:[#allocation2 + $0xc0] sm:$0xff] }
 0x1be   : > { %4105 = vst.msk [vmem:[#allocation2 + $0x40] sm:$0xff] %vm526_vm8, %v4073_v27  ;;  %v4074_v37 = vadd.f32 %v4042_v43, %v3941_v39  ;;  %3688 = vst.msk [vmem:[#allocation2 + $0x68] sm:$0xff] %vm526_vm8, %v3656_v25  ;;  %v6928_v29 = vpop.f32.mrb[92].mxu0  ;;  %v3638_v25 = vld [vmem:[#allocation2 + $0xd8] sm:$0xff] }
 0x1bf   : > { %4108 = vst.msk [vmem:[#allocation2 + $0x58] sm:$0xff] %vm526_vm8, %v4076_v13  ;;  %v3954_v55 = vpop.f32.mrb[93].mxu0 }
 0x1c0   : > { %4106 = vst.msk [vmem:[#allocation2 + $0x48] sm:$0xff] %vm526_vm8, %v4074_v37  ;;  %v6898_v62 = vpop.f32.mrb[96].mxu1  ;;  %v6929_v6 = vpop.f32.mrb[94].mxu0 }
 0x1c1   : > { %v3661_v19 = vadd.f32 %v6898_v62, %v3629_v56  ;;  %v3548_v4 = vpop.f32.mrb[97].mxu1  ;;  %v3957_v33 = vpop.f32.mrb[95].mxu0 }
 0x1c2   : > { %v4047_v9 = vld [vmem:[#allocation2 + $0x70] sm:$0xff]  ;;  %v3659_v1 = vadd.f32 %v3627_v38, %v3548_v4  ;;  %v6899_v10 = vpop.f32.mrb[98].mxu1 }
 0x1c3   : > { %v4079_v59 = vadd.f32 %v6928_v29, %v4047_v9  ;;  %3693 = vst.msk [vmem:[#allocation2 + $0x90] sm:$0xff] %vm526_vm8, %v3661_v19  ;;  %v4045_v41 = vld [vmem:[#allocation2 + $0x60] sm:$0xff]  ;;  %v3662_v36 = vadd.f32 %v6899_v10, %v3630_v48  ;;  %v3551_v30 = vpop.f32.mrb[99].mxu1  ;;  %v3641_v10 = vld [vmem:[#allocation2 + $0xf0] sm:$0xff] }
 0x1c4   : > { %v4077_v46 = vadd.f32 %v4045_v41, %v3954_v55  ;;  %3691 = vst.msk [vmem:[#allocation2 + $0x80] sm:$0xff] %vm526_vm8, %v3659_v1  ;;  %v4048_v47 = vld [vmem:[#allocation2 + $0x78] sm:$0xff]  ;;  %v3660_v49 = vadd.f32 %v3628_v7, %v3551_v30  ;;  %v3636_v55 = vld [vmem:[#allocation2 + $0xc8] sm:$0xff] }
 0x1c5   : > { %4111 = vst.msk [vmem:[#allocation2 + $0x70] sm:$0xff] %vm526_vm8, %v4079_v59  ;;  %v4080_v52 = vadd.f32 %v6929_v6, %v4048_v47  ;;  %3694 = vst.msk [vmem:[#allocation2 + $0x98] sm:$0xff] %vm526_vm8, %v3662_v36  ;;  %v4046_v40 = vld [vmem:[#allocation2 + $0x68] sm:$0xff]  ;;  %v3639_v36 = vld [vmem:[#allocation2 + $0xe0] sm:$0xff] }
 0x1c6   : > { %4109 = vst.msk [vmem:[#allocation2 + $0x60] sm:$0xff] %vm526_vm8, %v4077_v46  ;;  %v4078_v60 = vadd.f32 %v4046_v40, %v3957_v33  ;;  %3692 = vst.msk [vmem:[#allocation2 + $0x88] sm:$0xff] %vm526_vm8, %v3660_v49  ;;  %v6932_v2 = vpop.f32.mrb[96].mxu0  ;;  %v3642_v49 = vld [vmem:[#allocation2 + $0xf8] sm:$0xff] }
 0x1c7   : > { %4112 = vst.msk [vmem:[#allocation2 + $0x78] sm:$0xff] %vm526_vm8, %v4080_v52  ;;  %v3970_v8 = vpop.f32.mrb[97].mxu0 }
 0x1c8   : > { %4110 = vst.msk [vmem:[#allocation2 + $0x68] sm:$0xff] %vm526_vm8, %v4078_v60  ;;  %v6902_v61 = vpop.f32.mrb[100].mxu1  ;;  %v6933_v17 = vpop.f32.mrb[98].mxu0 }
 0x1c9   : > { %v3665_v32 = vadd.f32 %v6902_v61, %v3633_v24  ;;  %v3564_v11 = vpop.f32.mrb[101].mxu1  ;;  %v3973_v20 = vpop.f32.mrb[99].mxu0 }
 0x1ca   : > { %v4051_v12 = vld [vmem:[#allocation2 + $0x90] sm:$0xff]  ;;  %v3663_v31 = vadd.f32 %v3631_v14, %v3564_v11  ;;  %v6903_v15 = vpop.f32.mrb[102].mxu1 }
 0x1cb   : > { %v4083_v35 = vadd.f32 %v6932_v2, %v4051_v12  ;;  %3697 = vst.msk [vmem:[#allocation2 + $0xb0] sm:$0xff] %vm526_vm8, %v3665_v32  ;;  %v4049_v21 = vld [vmem:[#allocation2 + $0x80] sm:$0xff]  ;;  %v3666_v28 = vadd.f32 %v6903_v15, %v3634_v34  ;;  %v3567_v3 = vpop.f32.mrb[103].mxu1  ;;  %v4828_v15 = vld [vmem:[#allocation2 + $0x10] sm:$0xff] }
 0x1cc   : > { %v4081_v18 = vadd.f32 %v4049_v21, %v3970_v8  ;;  %3695 = vst.msk [vmem:[#allocation2 + $0xa0] sm:$0xff] %vm526_vm8, %v3663_v31  ;;  %v4052_v0 = vld [vmem:[#allocation2 + $0x98] sm:$0xff]  ;;  %v3664_v44 = vadd.f32 %v3632_v42, %v3567_v3  ;;  %v3640_v8 = vld [vmem:[#allocation2 + $0xe8] sm:$0xff] }
 0x1cd   : > { %4115 = vst.msk [vmem:[#allocation2 + $0x90] sm:$0xff] %vm526_vm8, %v4083_v35  ;;  %v4084_v5 = vadd.f32 %v6933_v17, %v4052_v0  ;;  %3698 = vst.msk [vmem:[#allocation2 + $0xb8] sm:$0xff] %vm526_vm8, %v3666_v28  ;;  %v4050_v26 = vld [vmem:[#allocation2 + $0x88] sm:$0xff]  ;;  %v4826_v28 = vld [vmem:[#allocation2] sm:$0xff] }
 0x1ce   : > { %4113 = vst.msk [vmem:[#allocation2 + $0x80] sm:$0xff] %vm526_vm8, %v4081_v18  ;;  %v4082_v16 = vadd.f32 %v4050_v26, %v3973_v20  ;;  %3696 = vst.msk [vmem:[#allocation2 + $0xa8] sm:$0xff] %vm526_vm8, %v3664_v44  ;;  %v6936_v39 = vpop.f32.mrb[100].mxu0  ;;  %v4829_v44 = vld [vmem:[#allocation2 + $0x18] sm:$0xff] }
 0x1cf   : > { %4116 = vst.msk [vmem:[#allocation2 + $0x98] sm:$0xff] %vm526_vm8, %v4084_v5  ;;  %v3986_v51 = vpop.f32.mrb[101].mxu0 }
 0x1d0   : > { %4114 = vst.msk [vmem:[#allocation2 + $0x88] sm:$0xff] %vm526_vm8, %v4082_v16  ;;  %v6906_v50 = vpop.f32.mrb[104].mxu1  ;;  %v6937_v22 = vpop.f32.mrb[102].mxu0 }
 0x1d1   : > { %v3669_v57 = vadd.f32 %v6906_v50, %v3637_v54  ;;  %v3580_v45 = vpop.f32.mrb[105].mxu1  ;;  %v3989_v23 = vpop.f32.mrb[103].mxu0 }
 0x1d2   : > { %v4055_v63 = vld [vmem:[#allocation2 + $0xb0] sm:$0xff]  ;;  %v3667_v27 = vadd.f32 %v3635_v58, %v3580_v45  ;;  %v6907_v53 = vpop.f32.mrb[106].mxu1 }
 0x1d3   : > { %v4087_v13 = vadd.f32 %v6936_v39, %v4055_v63  ;;  %3701 = vst.msk [vmem:[#allocation2 + $0xd0] sm:$0xff] %vm526_vm8, %v3669_v57  ;;  %v4053_v43 = vld [vmem:[#allocation2 + $0xa0] sm:$0xff]  ;;  %v3670_v37 = vadd.f32 %v6907_v53, %v3638_v25  ;;  %v3583_v29 = vpop.f32.mrb[107].mxu1  ;;  %v4832_v53 = vld [vmem:[#allocation2 + $0x30] sm:$0xff] }
 0x1d4   : > { %v4085_v62 = vadd.f32 %v4053_v43, %v3986_v51  ;;  %3699 = vst.msk [vmem:[#allocation2 + $0xc0] sm:$0xff] %vm526_vm8, %v3667_v27  ;;  %v4056_v56 = vld [vmem:[#allocation2 + $0xb8] sm:$0xff]  ;;  %v3668_v6 = vadd.f32 %v3636_v55, %v3583_v29  ;;  %v4827_v51 = vld [vmem:[#allocation2 + $0x8] sm:$0xff] }
 0x1d5   : > { %4119 = vst.msk [vmem:[#allocation2 + $0xb0] sm:$0xff] %vm526_vm8, %v4087_v13  ;;  %v4088_v19 = vadd.f32 %v6937_v22, %v4056_v56  ;;  %3702 = vst.msk [vmem:[#allocation2 + $0xd8] sm:$0xff] %vm526_vm8, %v3670_v37  ;;  %v4054_v4 = vld [vmem:[#allocation2 + $0xa8] sm:$0xff]  ;;  %v4830_v37 = vld [vmem:[#allocation2 + $0x20] sm:$0xff] }
 0x1d6   : > { %4117 = vst.msk [vmem:[#allocation2 + $0xa0] sm:$0xff] %vm526_vm8, %v4085_v62  ;;  %v4086_v38 = vadd.f32 %v4054_v4, %v3989_v23  ;;  %3700 = vst.msk [vmem:[#allocation2 + $0xc8] sm:$0xff] %vm526_vm8, %v3668_v6  ;;  %v6940_v33 = vpop.f32.mrb[104].mxu0  ;;  %v4833_v6 = vld [vmem:[#allocation2 + $0x38] sm:$0xff] }
 0x1d7   : > { %4120 = vst.msk [vmem:[#allocation2 + $0xb8] sm:$0xff] %vm526_vm8, %v4088_v19  ;;  %v4002_v9 = vpop.f32.mrb[105].mxu0 }
 0x1d8   : > { %4118 = vst.msk [vmem:[#allocation2 + $0xa8] sm:$0xff] %vm526_vm8, %v4086_v38  ;;  %v6910_v1 = vpop.f32.mrb[108].mxu1  ;;  %v6941_v48 = vpop.f32.mrb[106].mxu0 }
 0x1d9   : > { %v3673_v59 = vadd.f32 %v6910_v1, %v3641_v10  ;;  %v3596_v41 = vpop.f32.mrb[109].mxu1  ;;  %v4005_v30 = vpop.f32.mrb[107].mxu0 }
 0x1da   : > { %v4059_v7 = vld [vmem:[#allocation2 + $0xd0] sm:$0xff]  ;;  %v3671_v46 = vadd.f32 %v3639_v36, %v3596_v41  ;;  %v6911_v47 = vpop.f32.mrb[110].mxu1 }
 0x1db   : > { %v4091_v52 = vadd.f32 %v6940_v33, %v4059_v7  ;;  %3705 = vst.msk [vmem:[#allocation2 + $0xf0] sm:$0xff] %vm526_vm8, %v3673_v59  ;;  %v4057_v40 = vld [vmem:[#allocation2 + $0xc0] sm:$0xff]  ;;  %v3674_v60 = vadd.f32 %v6911_v47, %v3642_v49  ;;  %v3599_v2 = vpop.f32.mrb[111].mxu1  ;;  %v4836_v47 = vld [vmem:[#allocation2 + $0x50] sm:$0xff] }
 0x1dc   : > { %v4089_v61 = vadd.f32 %v4057_v40, %v4002_v9  ;;  %3703 = vst.msk [vmem:[#allocation2 + $0xe0] sm:$0xff] %vm526_vm8, %v3671_v46  ;;  %v4060_v24 = vld [vmem:[#allocation2 + $0xd8] sm:$0xff]  ;;  %v3672_v17 = vadd.f32 %v3640_v8, %v3599_v2  ;;  %v4831_v9 = vld [vmem:[#allocation2 + $0x28] sm:$0xff]  ;;  %v8880_v8 = vld [vmem:[%s9224_s2] ss:$0 sm:$0xff] }
 0x1dd   : > { %4123 = vst.msk [vmem:[#allocation2 + $0xd0] sm:$0xff] %vm526_vm8, %v4091_v52  ;;  %v4092_v32 = vadd.f32 %v6941_v48, %v4060_v24  ;;  %3706 = vst.msk [vmem:[#allocation2 + $0xf8] sm:$0xff] %vm526_vm8, %v3674_v60  ;;  %v4058_v11 = vld [vmem:[#allocation2 + $0xc8] sm:$0xff]  ;;  %v4834_v60 = vld [vmem:[#allocation2 + $0x40] sm:$0xff] }
 0x1de   : > { %4121 = vst.msk [vmem:[#allocation2 + $0xc0] sm:$0xff] %vm526_vm8, %v4089_v61  ;;  %v4090_v14 = vadd.f32 %v4058_v11, %v4005_v30  ;;  %3704 = vst.msk [vmem:[#allocation2 + $0xe8] sm:$0xff] %vm526_vm8, %v3672_v17  ;;  %v6944_v20 = vpop.f32.mrb[108].mxu0 }
 0x1df   : > { %4124 = vst.msk [vmem:[#allocation2 + $0xd8] sm:$0xff] %vm526_vm8, %v4092_v32  ;;  %v4018_v12 = vpop.f32.mrb[109].mxu0  ;;  %v4837_v32 = vld [vmem:[#allocation2 + $0x58] sm:$0xff] }
 0x1e0   : > { %4122 = vst.msk [vmem:[#allocation2 + $0xc8] sm:$0xff] %vm526_vm8, %v4090_v14  ;;  %v6950_v31 = vpop.f32.mrb[112].mxu1  ;;  %v6945_v34 = vpop.f32.mrb[110].mxu0 }
 0x1e1   : > { %v4860_v35 = vadd.f32 %v6950_v31, %v4828_v15  ;;  %v4699_v21 = vpop.f32.mrb[113].mxu1  ;;  %v4021_v3 = vpop.f32.mrb[111].mxu0  ;;  %v4835_v31 = vld [vmem:[#allocation2 + $0x48] sm:$0xff] }
 0x1e2   : > { %v4063_v42 = vld [vmem:[#allocation2 + $0xf0] sm:$0xff]  ;;  %v4858_v18 = vadd.f32 %v4826_v28, %v4699_v21  ;;  %v6951_v0 = vpop.f32.mrb[114].mxu1 }
 0x1e3   : > { %v4095_v5 = vadd.f32 %v6944_v20, %v4063_v42  ;;  %v4061_v26 = vld [vmem:[#allocation2 + $0xe0] sm:$0xff]  ;;  %4892 = vst.msk [vmem:[#allocation2 + $0x10] sm:$0xff] %vm526_vm8, %v4860_v35  ;;  %v4861_v16 = vadd.f32 %v6951_v0, %v4829_v44  ;;  %v4702_v39 = vpop.f32.mrb[115].mxu1 }
 0x1e4   : > { %v4093_v50 = vadd.f32 %v4061_v26, %v4018_v12  ;;  %v4064_v54 = vld [vmem:[#allocation2 + $0xf8] sm:$0xff]  ;;  %4890 = vst.msk [vmem:[#allocation2] sm:$0xff] %vm526_vm8, %v4858_v18  ;;  %v4859_v22 = vadd.f32 %v4827_v51, %v4702_v39 }
 0x1e5   : > { %4127 = vst.msk [vmem:[#allocation2 + $0xf0] sm:$0xff] %vm526_vm8, %v4095_v5  ;;  %v4096_v57 = vadd.f32 %v6945_v34, %v4064_v54  ;;  %v4062_v45 = vld [vmem:[#allocation2 + $0xe8] sm:$0xff]  ;;  %4893 = vst.msk [vmem:[#allocation2 + $0x18] sm:$0xff] %vm526_vm8, %v4861_v16 }
 0x1e6   : > { %4125 = vst.msk [vmem:[#allocation2 + $0xe0] sm:$0xff] %vm526_vm8, %v4093_v50  ;;  %v4094_v58 = vadd.f32 %v4062_v45, %v4021_v3  ;;  %4891 = vst.msk [vmem:[#allocation2 + $0x8] sm:$0xff] %vm526_vm8, %v4859_v22  ;;  %v6984_v23 = vpop.f32.mrb[112].mxu0  ;;  %v4840_v45 = vld [vmem:[#allocation2 + $0x70] sm:$0xff] }
 0x1e7   : > { %4128 = vst.msk [vmem:[#allocation2 + $0xf8] sm:$0xff] %vm526_vm8, %v4096_v57  ;;  %v5264_v63 = vpop.f32.mrb[113].mxu0 }
 0x1e8   : > { %4126 = vst.msk [vmem:[#allocation2 + $0xe8] sm:$0xff] %vm526_vm8, %v4094_v58  ;;  %v6954_v27 = vpop.f32.mrb[116].mxu1  ;;  %v6985_v25 = vpop.f32.mrb[114].mxu0 }
 0x1e9   : > { %v4864_v13 = vadd.f32 %v6954_v27, %v4832_v53  ;;  %v4715_v43 = vpop.f32.mrb[117].mxu1  ;;  %v5267_v29 = vpop.f32.mrb[115].mxu0  ;;  %v4838_v53 = vld [vmem:[#allocation2 + $0x60] sm:$0xff] }
 0x1ea   : > { %v5393_v55 = vld [vmem:[#allocation2 + $0x10] sm:$0xff]  ;;  %v4862_v62 = vadd.f32 %v4830_v37, %v4715_v43  ;;  %v6955_v56 = vpop.f32.mrb[118].mxu1 }
 0x1eb   : > { %v5425_v19 = vadd.f32 %v6984_v23, %v5393_v55  ;;  %4896 = vst.msk [vmem:[#allocation2 + $0x30] sm:$0xff] %vm526_vm8, %v4864_v13  ;;  %v5391_v4 = vld [vmem:[#allocation2] sm:$0xff]  ;;  %v4865_v38 = vadd.f32 %v6955_v56, %v4833_v6  ;;  %v4718_v33 = vpop.f32.mrb[119].mxu1  ;;  %v4841_v55 = vld [vmem:[#allocation2 + $0x78] sm:$0xff] }
 0x1ec   : > { %v5423_v1 = vadd.f32 %v5391_v4, %v5264_v63  ;;  %4894 = vst.msk [vmem:[#allocation2 + $0x20] sm:$0xff] %vm526_vm8, %v4862_v62  ;;  %v5394_v10 = vld [vmem:[#allocation2 + $0x18] sm:$0xff]  ;;  %v4863_v48 = vadd.f32 %v4831_v9, %v4718_v33  ;;  %v4839_v4 = vld [vmem:[#allocation2 + $0x68] sm:$0xff] }
 0x1ed   : > { %5457 = vst.msk [vmem:[#allocation2 + $0x10] sm:$0xff] %vm526_vm8, %v5425_v19  ;;  %v5426_v59 = vadd.f32 %v6985_v25, %v5394_v10  ;;  %4897 = vst.msk [vmem:[#allocation2 + $0x38] sm:$0xff] %vm526_vm8, %v4865_v38  ;;  %v5392_v41 = vld [vmem:[#allocation2 + $0x8] sm:$0xff] }
 0x1ee   : > { %5455 = vst.msk [vmem:[#allocation2] sm:$0xff] %vm526_vm8, %v5423_v1  ;;  %v5424_v36 = vadd.f32 %v5392_v41, %v5267_v29  ;;  %4895 = vst.msk [vmem:[#allocation2 + $0x28] sm:$0xff] %vm526_vm8, %v4863_v48  ;;  %v6988_v30 = vpop.f32.mrb[116].mxu0 }
 0x1ef   : > { %5458 = vst.msk [vmem:[#allocation2 + $0x18] sm:$0xff] %vm526_vm8, %v5426_v59  ;;  %v5280_v7 = vpop.f32.mrb[117].mxu0 }
 0x1f0   : > { %5456 = vst.msk [vmem:[#allocation2 + $0x8] sm:$0xff] %vm526_vm8, %v5424_v36  ;;  %v6958_v46 = vpop.f32.mrb[120].mxu1  ;;  %v6989_v49 = vpop.f32.mrb[118].mxu0 }
 0x1f1   : > { %v4868_v52 = vadd.f32 %v6958_v46, %v4836_v47  ;;  %v4731_v40 = vpop.f32.mrb[121].mxu1  ;;  %v5283_v2 = vpop.f32.mrb[119].mxu0 }
 0x1f2   : > { %v5397_v61 = vld [vmem:[#allocation2 + $0x30] sm:$0xff]  ;;  %v4866_v24 = vadd.f32 %v4834_v60, %v4731_v40  ;;  %v6959_v17 = vpop.f32.mrb[122].mxu1 }
 0x1f3   : > { %v5429_v11 = vadd.f32 %v6988_v30, %v5397_v61  ;;  %4900 = vst.msk [vmem:[#allocation2 + $0x50] sm:$0xff] %vm526_vm8, %v4868_v52  ;;  %v5395_v14 = vld [vmem:[#allocation2 + $0x20] sm:$0xff]  ;;  %v4869_v20 = vadd.f32 %v6959_v17, %v4837_v32  ;;  %v4734_v12 = vpop.f32.mrb[123].mxu1 }
 0x1f4   : > { %v5489_v15 = vld [vmem:[#allocation2 + $0x10] sm:$0xff]  ;;  %v5427_v34 = vadd.f32 %v5395_v14, %v5280_v7  ;;  %4898 = vst.msk [vmem:[#allocation2 + $0x40] sm:$0xff] %vm526_vm8, %v4866_v24  ;;  %v5398_v35 = vld [vmem:[#allocation2 + $0x38] sm:$0xff]  ;;  %v4867_v21 = vadd.f32 %v4835_v31, %v4734_v12 }
 0x1f5   : > { %v8885_v28 = vadd.f32 %v8880_v8, %v5489_v15  ;;  %v5487_v3 = vld [vmem:[#allocation2] sm:$0xff]  ;;  %5461 = vst.msk [vmem:[#allocation2 + $0x30] sm:$0xff] %vm526_vm8, %v5429_v11  ;;  %v5430_v42 = vadd.f32 %v6989_v49, %v5398_v35  ;;  %4901 = vst.msk [vmem:[#allocation2 + $0x58] sm:$0xff] %vm526_vm8, %v4869_v20  ;;  %v5396_v18 = vld [vmem:[#allocation2 + $0x28] sm:$0xff] }
 0x1f6   : > { %v8890_v0 = vadd.f32 %v8880_v8, %v5487_v3  ;;  %v5490_v44 = vld [vmem:[#allocation2 + $0x18] sm:$0xff]  ;;  %5459 = vst.msk [vmem:[#allocation2 + $0x20] sm:$0xff] %vm526_vm8, %v5427_v34  ;;  %v5428_v5 = vadd.f32 %v5396_v18, %v5283_v2  ;;  %4899 = vst.msk [vmem:[#allocation2 + $0x48] sm:$0xff] %vm526_vm8, %v4867_v21  ;;  %v6992_v26 = vpop.f32.mrb[120].mxu0  ;;  %v4844_v24 = vld [vmem:[#allocation2 + $0x90] sm:$0xff] }
 0x1f7   : > { %v6519_v16 = vmul.f32 -1.442695, %v8885_v28  ;;  %v8896_v39 = vadd.f32 %v8880_v8, %v5490_v44  ;;  %v5488_v51 = vld [vmem:[#allocation2 + $0x8] sm:$0xff]  ;;  %5462 = vst.msk [vmem:[#allocation2 + $0x38] sm:$0xff] %vm526_vm8, %v5430_v42  ;;  %v5296_v50 = vpop.f32.mrb[121].mxu0  ;;  %v4842_v20 = vld [vmem:[#allocation2 + $0x80] sm:$0xff] }
 0x1f8   : > { %v6517_v54 = vmul.f32 -1.442695, %v8890_v0  ;;  %v8901_v22 = vadd.f32 %v8880_v8, %v5488_v51  ;;  %5460 = vst.msk [vmem:[#allocation2 + $0x28] sm:$0xff] %vm526_vm8, %v5428_v5  ;;  %v6993_v58 = vpop.f32.mrb[122].mxu0  ;;  %v4845_v21 = vld [vmem:[#allocation2 + $0x98] sm:$0xff] }
 0x1f9   : > { %v6962_v57 = vpop.f32.mrb[124].mxu1  ;;  %7136 = vpow2.f32 %v6519_v16  ;;  %v6520_v23 = vmul.f32 -1.442695, %v8896_v39  ;;  %v5299_v25 = vpop.f32.mrb[123].mxu0 }
 0x1fa   : > { %v4872_v63 = vadd.f32 %v6962_v57, %v4840_v45  ;;  %v4747_v27 = vpop.f32.mrb[125].mxu1  ;;  %7138 = vpow2.f32 %v6517_v54  ;;  %v6518_v13 = vmul.f32 -1.442695, %v8901_v22  ;;  %v5401_v43 = vld [vmem:[#allocation2 + $0x50] sm:$0xff] }
 0x1fb   : > { %v4870_v37 = vadd.f32 %v4838_v53, %v4747_v27  ;;  %v6963_v29 = vpop.f32.mrb[126].mxu1  ;;  %7140 = vpow2.f32 %v6520_v23  ;;  %v5433_v62 = vadd.f32 %v6992_v26, %v5401_v43  ;;  %v5399_v56 = vld [vmem:[#allocation2 + $0x40] sm:$0xff]  ;;  %v4843_v26 = vld [vmem:[#allocation2 + $0x88] sm:$0xff] }
 0x1fc   : > { %4904 = vst.msk [vmem:[#allocation2 + $0x70] sm:$0xff] %vm526_vm8, %v4872_v63  ;;  %v4873_v6 = vadd.f32 %v6963_v29, %v4841_v55  ;;  %v4750_v19 = vpop.f32.mrb[127].mxu1  ;;  %7142 = vpow2.f32 %v6518_v13  ;;  %v5493_v38 = vld [vmem:[#allocation2 + $0x30] sm:$0xff]  ;;  %v5431_v33 = vadd.f32 %v5399_v56, %v5296_v50  ;;  %v5402_v9 = vld [vmem:[#allocation2 + $0x58] sm:$0xff] }
 0x1fd   : > { %4902 = vst.msk [vmem:[#allocation2 + $0x60] sm:$0xff] %vm526_vm8, %v4870_v37  ;;  %v4871_v1 = vadd.f32 %v4839_v4, %v4750_v19  ;;  %v8909_v10 = vadd.f32 %v8880_v8, %v5493_v38  ;;  %v5491_v48 = vld [vmem:[#allocation2 + $0x20] sm:$0xff]  ;;  %5465 = vst.msk [vmem:[#allocation2 + $0x50] sm:$0xff] %vm526_vm8, %v5433_v62  ;;  %v5434_v59 = vadd.f32 %v6993_v58, %v5402_v9  ;;  %v5400_v41 = vld [vmem:[#allocation2 + $0x48] sm:$0xff] }
 0x1fe   : > { %4905 = vst.msk [vmem:[#allocation2 + $0x78] sm:$0xff] %vm526_vm8, %v4873_v6  ;;  %v8914_v36 = vadd.f32 %v8880_v8, %v5491_v48  ;;  %v5494_v30 = vld [vmem:[#allocation2 + $0x38] sm:$0xff]  ;;  %5463 = vst.msk [vmem:[#allocation2 + $0x40] sm:$0xff] %vm526_vm8, %v5431_v33  ;;  %v5432_v7 = vadd.f32 %v5400_v41, %v5299_v25  ;;  %v6996_v46 = vpop.f32.mrb[124].mxu0  ;;  %v4848_v48 = vld [vmem:[#allocation2 + $0xb0] sm:$0xff] }
 0x1ff   : > { %4903 = vst.msk [vmem:[#allocation2 + $0x68] sm:$0xff] %vm526_vm8, %v4871_v1  ;;  %v6523_v47 = vmul.f32 -1.442695, %v8909_v10  ;;  %v8920_v49 = vadd.f32 %v8880_v8, %v5494_v30  ;;  %v5492_v52 = vld [vmem:[#allocation2 + $0x28] sm:$0xff]  ;;  %5466 = vst.msk [vmem:[#allocation2 + $0x58] sm:$0xff] %vm526_vm8, %v5434_v59  ;;  %v5312_v40 = vpop.f32.mrb[125].mxu0 }
 0x200   : > { %v6521_v60 = vmul.f32 -1.442695, %v8914_v36  ;;  %v8925_v2 = vadd.f32 %v8880_v8, %v5492_v52  ;;  %5464 = vst.msk [vmem:[#allocation2 + $0x48] sm:$0xff] %vm526_vm8, %v5432_v7  ;;  %v6997_v17 = vpop.f32.mrb[126].mxu0 }
 0x201   : > { %v6966_v61 = vpop.f32.mrb[128].mxu1  ;;  %7144 = vpow2.f32 %v6523_v47  ;;  %v6524_v32 = vmul.f32 -1.442695, %v8920_v49  ;;  %v5315_v12 = vpop.f32.mrb[127].mxu0 }
 0x202   : > { %v4876_v11 = vadd.f32 %v6966_v61, %v4844_v24  ;;  %v4763_v14 = vpop.f32.mrb[129].mxu1  ;;  %7146 = vpow2.f32 %v6521_v60  ;;  %v6522_v31 = vmul.f32 -1.442695, %v8925_v2  ;;  %v4849_v24 = vld [vmem:[#allocation2 + $0xb8] sm:$0xff] }
 0x203   : > { %v5405_v15 = vld [vmem:[#allocation2 + $0x70] sm:$0xff]  ;;  %v4874_v34 = vadd.f32 %v4842_v20, %v4763_v14  ;;  %v6967_v35 = vpop.f32.mrb[130].mxu1  ;;  %v7137_v3 = vpop.eup %7136  ;;  %7148 = vpow2.f32 %v6524_v32 }
 0x204   : > { %v5437_v42 = vadd.f32 %v6996_v46, %v5405_v15  ;;  %4908 = vst.msk [vmem:[#allocation2 + $0x90] sm:$0xff] %vm526_vm8, %v4876_v11  ;;  %v5403_v18 = vld [vmem:[#allocation2 + $0x60] sm:$0xff]  ;;  %v4877_v44 = vadd.f32 %v6967_v35, %v4845_v21  ;;  %v4766_v5 = vpop.f32.mrb[131].mxu1  ;;  %v7139_v16 = vpop.eup %7138  ;;  %v5656_v51 = vadd.f32 1.0, %v7137_v3  ;;  %7150 = vpow2.f32 %v6522_v31  ;;  %v5497_v50 = vld [vmem:[#allocation2 + $0x50] sm:$0xff] }
 0x205   : > { %v5435_v54 = vadd.f32 %v5403_v18, %v5312_v40  ;;  %4906 = vst.msk [vmem:[#allocation2 + $0x80] sm:$0xff] %vm526_vm8, %v4874_v34  ;;  %v5406_v57 = vld [vmem:[#allocation2 + $0x78] sm:$0xff]  ;;  %v4875_v45 = vadd.f32 %v4843_v26, %v4766_v5  ;;  %v7141_v58 = vpop.eup %7140  ;;  %v5654_v23 = vadd.f32 1.0, %v7139_v16  ;;  %v8933_v63 = vadd.f32 %v8880_v8, %v5497_v50  ;;  %v5495_v27 = vld [vmem:[#allocation2 + $0x40] sm:$0xff] }
 0x206   : > { %5469 = vst.msk [vmem:[#allocation2 + $0x70] sm:$0xff] %vm526_vm8, %v5437_v42  ;;  %v5438_v53 = vadd.f32 %v6997_v17, %v5406_v57  ;;  %4909 = vst.msk [vmem:[#allocation2 + $0x98] sm:$0xff] %vm526_vm8, %v4877_v44  ;;  %v5404_v25 = vld [vmem:[#allocation2 + $0x68] sm:$0xff]  ;;  %v7143_v13 = vpop.eup %7142  ;;  %7152 = vrcp.f32 %v5656_v51  ;;  %v5657_v43 = vadd.f32 1.0, %v7141_v58  ;;  %v8938_v37 = vadd.f32 %v8880_v8, %v5495_v27  ;;  %v5498_v29 = vld [vmem:[#allocation2 + $0x58] sm:$0xff] }
 0x207   : > { %5467 = vst.msk [vmem:[#allocation2 + $0x60] sm:$0xff] %vm526_vm8, %v5435_v54  ;;  %v5436_v55 = vadd.f32 %v5404_v25, %v5315_v12  ;;  %4907 = vst.msk [vmem:[#allocation2 + $0x88] sm:$0xff] %vm526_vm8, %v4875_v45  ;;  %7154 = vrcp.f32 %v5654_v23  ;;  %v5655_v56 = vadd.f32 1.0, %v7143_v13  ;;  %v6527_v6 = vmul.f32 -1.442695, %v8933_v63  ;;  %v5496_v4 = vld [vmem:[#allocation2 + $0x48] sm:$0xff] }
 0x208   : > { %v7000_v62 = vpop.f32.mrb[128].mxu0  ;;  %v8944_v19 = vadd.f32 %v8880_v8, %v5498_v29  ;;  %5470 = vst.msk [vmem:[#allocation2 + $0x78] sm:$0xff] %vm526_vm8, %v5438_v53  ;;  %7156 = vrcp.f32 %v5657_v43  ;;  %v6525_v33 = vmul.f32 -1.442695, %v8938_v37  ;;  %v8949_v9 = vadd.f32 %v8880_v8, %v5496_v4  ;;  %v4846_v46 = vld [vmem:[#allocation2 + $0xa0] sm:$0xff]  ;;  %v4847_v12 = vld [vmem:[#allocation2 + $0xa8] sm:$0xff] }
 0x209   : > { %v5328_v38 = vpop.f32.mrb[129].mxu0  ;;  %5468 = vst.msk [vmem:[#allocation2 + $0x68] sm:$0xff] %vm526_vm8, %v5436_v55  ;;  %7158 = vrcp.f32 %v5655_v56 }
 0x20a   : > { %v7001_v59 = vpop.f32.mrb[130].mxu0  ;;  %v6528_v41 = vmul.f32 -1.442695, %v8944_v19  ;;  %7160 = vpow2.f32 %v6527_v6  ;;  %v6526_v52 = vmul.f32 -1.442695, %v8949_v9 }
 0x20b   : > { %v5331_v47 = vpop.f32.mrb[131].mxu0  ;;  %v5409_v40 = vld [vmem:[#allocation2 + $0x90] sm:$0xff]  ;;  %v7145_v17 = vpop.eup %7144  ;;  %7162 = vpow2.f32 %v6525_v33 }
 0x20c   : > { %v5441_v32 = vadd.f32 %v7000_v62, %v5409_v40  ;;  %v5407_v11 = vld [vmem:[#allocation2 + $0x80] sm:$0xff]  ;;  %v7147_v31 = vpop.eup %7146  ;;  %v5660_v15 = vadd.f32 1.0, %v7145_v17  ;;  %7164 = vpow2.f32 %v6528_v41 }
 0x20d   : > { %v6970_v1 = vpop.f32.mrb[132].mxu1  ;;  %v5501_v34 = vld [vmem:[#allocation2 + $0x70] sm:$0xff]  ;;  %v5439_v35 = vadd.f32 %v5407_v11, %v5328_v38  ;;  %v5410_v21 = vld [vmem:[#allocation2 + $0x98] sm:$0xff]  ;;  %v7149_v42 = vpop.eup %7148  ;;  %v5658_v18 = vadd.f32 1.0, %v7147_v31  ;;  %7166 = vpow2.f32 %v6526_v52  ;;  %v4850_v17 = vld [vmem:[#allocation2 + $0xc0] sm:$0xff] }
 0x20e   : > { %v4880_v30 = vadd.f32 %v6970_v1, %v4848_v48  ;;  %v4779_v7 = vpop.f32.mrb[133].mxu1  ;;  %v8962_v44 = vadd.f32 %v8880_v8, %v5501_v34  ;;  %v5499_v5 = vld [vmem:[#allocation2 + $0x60] sm:$0xff]  ;;  %5473 = vst.msk [vmem:[#allocation2 + $0x90] sm:$0xff] %vm526_vm8, %v5441_v32  ;;  %v5442_v26 = vadd.f32 %v7001_v59, %v5410_v21  ;;  %v5408_v16 = vld [vmem:[#allocation2 + $0x88] sm:$0xff]  ;;  %v7151_v51 = vpop.eup %7150  ;;  %7168 = vrcp.f32 %v5660_v15  ;;  %v4853_v31 = vld [vmem:[#allocation2 + $0xd8] sm:$0xff] }
 0x20f   : > { %v4878_v60 = vadd.f32 %v4846_v46, %v4779_v7  ;;  %v6971_v61 = vpop.f32.mrb[134].mxu1  ;;  %v5661_v50 = vadd.f32 1.0, %v7149_v42  ;;  %v8967_v54 = vadd.f32 %v8880_v8, %v5499_v5  ;;  %v5502_v57 = vld [vmem:[#allocation2 + $0x78] sm:$0xff]  ;;  %5471 = vst.msk [vmem:[#allocation2 + $0x80] sm:$0xff] %vm526_vm8, %v5439_v35  ;;  %v5440_v45 = vadd.f32 %v5408_v16, %v5331_v47  ;;  %v4852_v46 = vld [vmem:[#allocation2 + $0xd0] sm:$0xff] }
 0x210   : > { %4912 = vst.msk [vmem:[#allocation2 + $0xb0] sm:$0xff] %vm526_vm8, %v4880_v30  ;;  %v4881_v14 = vadd.f32 %v6971_v61, %v4849_v24  ;;  %v4782_v20 = vpop.f32.mrb[135].mxu1  ;;  %7170 = vrcp.f32 %v5658_v18  ;;  %v5659_v23 = vadd.f32 1.0, %v7151_v51  ;;  %v6531_v27 = vmul.f32 -1.442695, %v8962_v44  ;;  %v5500_v25 = vld [vmem:[#allocation2 + $0x68] sm:$0xff]  ;;  %v7153_v43 = vpop.eup %7152 }
 0x211   : > { %4910 = vst.msk [vmem:[#allocation2 + $0xa0] sm:$0xff] %vm526_vm8, %v4878_v60  ;;  %v4879_v3 = vadd.f32 %v4847_v12, %v4782_v20  ;;  %v8973_v53 = vadd.f32 %v8880_v8, %v5502_v57  ;;  %5474 = vst.msk [vmem:[#allocation2 + $0x98] sm:$0xff] %vm526_vm8, %v5442_v26  ;;  %7172 = vrcp.f32 %v5661_v50  ;;  %v6529_v29 = vmul.f32 -1.442695, %v8967_v54  ;;  %v7155_v56 = vpop.eup %7154 }
 0x212   : > { %4913 = vst.msk [vmem:[#allocation2 + $0xb8] sm:$0xff] %vm526_vm8, %v4881_v14  ;;  %v8978_v55 = vadd.f32 %v8880_v8, %v5500_v25  ;;  %5472 = vst.msk [vmem:[#allocation2 + $0x88] sm:$0xff] %vm526_vm8, %v5440_v45  ;;  %v5752_v6 = vmul.f32 %v7153_v43, %v8885_v28  ;;  %7174 = vrcp.f32 %v5659_v23  ;;  %v7157_v33 = vpop.eup %7156  ;;  %v5750_v1 = vmul.f32 %v7155_v56, %v8890_v0 }
 0x213   : > { %4911 = vst.msk [vmem:[#allocation2 + $0xa8] sm:$0xff] %vm526_vm8, %v4879_v3  ;;  %v6532_v4 = vmul.f32 -1.442695, %v8973_v53  ;;  %7176 = vpow2.f32 %v6531_v27  ;;  %v7159_v41 = vpop.eup %7158  ;;  %v5753_v28 = vmul.f32 %v7157_v33, %v8896_v39 }
 0x214   : > { %v7004_v58 = vpop.f32.mrb[132].mxu0  ;;  %v6530_v48 = vmul.f32 -1.442695, %v8978_v55  ;;  %5784 = vst.msk [vmem:[%s8988_s9 + $0x10] sm:$0xff] %vm526_vm8, %v5752_v6  ;;  %7178 = vpow2.f32 %v6529_v29  ;;  %v7161_v0 = vpop.eup %7160  ;;  %5782 = vst.msk [vmem:[%s8988_s9] sm:$0xff] %vm526_vm8, %v5750_v1  ;;  %v5751_v52 = vmul.f32 %v7159_v41, %v8901_v22 }
 0x215   : > { %v5344_v13 = vpop.f32.mrb[133].mxu0  ;;  %7180 = vpow2.f32 %v6532_v4  ;;  %v5505_v40 = vld [vmem:[#allocation2 + $0x90] sm:$0xff]  ;;  %v7163_v39 = vpop.eup %7162  ;;  %5785 = vst.msk [vmem:[%s8988_s9 + $0x18] sm:$0xff] %vm526_vm8, %v5753_v28  ;;  %v5664_v11 = vadd.f32 1.0, %v7161_v0 }
 0x216   : > { %v7005_v62 = vpop.f32.mrb[134].mxu0  ;;  %7182 = vpow2.f32 %v6530_v48  ;;  %v8999_v14 = vadd.f32 %v8880_v8, %v5505_v40  ;;  %v5503_v20 = vld [vmem:[#allocation2 + $0x80] sm:$0xff]  ;;  %v7165_v15 = vpop.eup %7164  ;;  %5783 = vst.msk [vmem:[%s8988_s9 + $0x8] sm:$0xff] %vm526_vm8, %v5751_v52  ;;  %v5662_v34 = vadd.f32 1.0, %v7163_v39 }
 0x217   : > { %v8983_v38 = vpop.f32.mrb[135].mxu0  ;;  %v5413_v59 = vld [vmem:[#allocation2 + $0xb0] sm:$0xff]  ;;  %v9005_v35 = vadd.f32 %v8880_v8, %v5503_v20  ;;  %v7167_v26 = vpop.eup %7166  ;;  %7184 = vrcp.f32 %v5664_v11  ;;  %v5665_v16 = vadd.f32 1.0, %v7165_v15 }
 0x218   : > { %v5445_v30 = vadd.f32 %v7004_v58, %v5413_v59  ;;  %v5411_v47 = vld [vmem:[#allocation2 + $0xa0] sm:$0xff]  ;;  %v5506_v21 = vld [vmem:[#allocation2 + $0x98] sm:$0xff]  ;;  %v6535_v51 = vmul.f32 -1.442695, %v8999_v14  ;;  %v7169_v45 = vpop.eup %7168  ;;  %7186 = vrcp.f32 %v5662_v34  ;;  %v5663_v58 = vadd.f32 1.0, %v7167_v26 }
 0x219   : > { %v5443_v61 = vadd.f32 %v5411_v47, %v5344_v13  ;;  %v5414_v32 = vld [vmem:[#allocation2 + $0xb8] sm:$0xff]  ;;  %v9011_v50 = vadd.f32 %v8880_v8, %v5506_v21  ;;  %v5504_v57 = vld [vmem:[#allocation2 + $0x88] sm:$0xff]  ;;  %v6533_v23 = vmul.f32 -1.442695, %v9005_v35  ;;  %v5756_v13 = vmul.f32 %v7169_v45, %v8909_v10  ;;  %v4856_v21 = vld [vmem:[#allocation2 + $0xf0] sm:$0xff] }
 0x21a   : > { %v6974_v7 = vpop.f32.mrb[136].mxu1  ;;  %5477 = vst.msk [vmem:[#allocation2 + $0xb0] sm:$0xff] %vm526_vm8, %v5445_v30  ;;  %v5446_v3 = vadd.f32 %v7005_v62, %v5414_v32  ;;  %v5412_v18 = vld [vmem:[#allocation2 + $0xa8] sm:$0xff]  ;;  %v9016_v27 = vadd.f32 %v8880_v8, %v5504_v57  ;;  %v7171_v25 = vpop.eup %7170  ;;  %7188 = vrcp.f32 %v5665_v16  ;;  %v4854_v57 = vld [vmem:[#allocation2 + $0xe0] sm:$0xff] }
 0x21b   : > { %v4884_v60 = vadd.f32 %v6974_v7, %v4852_v46  ;;  %v4795_v24 = vpop.f32.mrb[137].mxu1  ;;  %5475 = vst.msk [vmem:[#allocation2 + $0xa0] sm:$0xff] %vm526_vm8, %v5443_v61  ;;  %v6536_v43 = vmul.f32 -1.442695, %v9011_v50  ;;  %v5444_v29 = vadd.f32 %v5412_v18, %v8983_v38  ;;  %v4851_v62 = vld [vmem:[#allocation2 + $0xc8] sm:$0xff]  ;;  %v7173_v56 = vpop.eup %7172  ;;  %v5754_v6 = vmul.f32 %v7171_v25, %v8914_v36  ;;  %5788 = vst.msk [vmem:[%s8988_s9 + $0x30] sm:$0xff] %vm526_vm8, %v5756_v13 }
 0x21c   : > { %v4882_v22 = vadd.f32 %v4850_v17, %v4795_v24  ;;  %v6975_v12 = vpop.f32.mrb[138].mxu1  ;;  %5478 = vst.msk [vmem:[#allocation2 + $0xb8] sm:$0xff] %vm526_vm8, %v5446_v3  ;;  %7190 = vrcp.f32 %v5663_v58  ;;  %v6534_v4 = vmul.f32 -1.442695, %v9016_v27  ;;  %v7175_v48 = vpop.eup %7174  ;;  %v5757_v10 = vmul.f32 %v7173_v56, %v8920_v49  ;;  %v4857_v13 = vld [vmem:[#allocation2 + $0xf8] sm:$0xff] }
 0x21d   : > { %4916 = vst.msk [vmem:[#allocation2 + $0xd0] sm:$0xff] %vm526_vm8, %v4884_v60  ;;  %v4885_v42 = vadd.f32 %v6975_v12, %v4853_v31  ;;  %v4798_v5 = vpop.f32.mrb[139].mxu1  ;;  %7192 = vpow2.f32 %v6535_v51  ;;  %5476 = vst.msk [vmem:[#allocation2 + $0xa8] sm:$0xff] %vm526_vm8, %v5444_v29  ;;  %v7177_v38 = vpop.eup %7176  ;;  %v5755_v36 = vmul.f32 %v7175_v48, %v8925_v2 }
 0x21e   : > { %4914 = vst.msk [vmem:[#allocation2 + $0xc0] sm:$0xff] %vm526_vm8, %v4882_v22  ;;  %v4883_v33 = vadd.f32 %v4851_v62, %v4798_v5  ;;  %5786 = vst.msk [vmem:[%s8988_s9 + $0x20] sm:$0xff] %vm526_vm8, %v5754_v6  ;;  %7194 = vpow2.f32 %v6533_v23  ;;  %v7179_v30 = vpop.eup %7178  ;;  %v5668_v7 = vadd.f32 1.0, %v7177_v38 }
 0x21f   : > { %4917 = vst.msk [vmem:[#allocation2 + $0xd8] sm:$0xff] %vm526_vm8, %v4885_v42  ;;  %5789 = vst.msk [vmem:[%s8988_s9 + $0x38] sm:$0xff] %vm526_vm8, %v5757_v10  ;;  %7196 = vpow2.f32 %v6536_v43  ;;  %v7181_v52 = vpop.eup %7180  ;;  %v5666_v2 = vadd.f32 1.0, %v7179_v30 }
 0x220   : > { %4915 = vst.msk [vmem:[#allocation2 + $0xc8] sm:$0xff] %vm526_vm8, %v4883_v33  ;;  %5787 = vst.msk [vmem:[%s8988_s9 + $0x28] sm:$0xff] %vm526_vm8, %v5755_v36  ;;  %7198 = vpow2.f32 %v6534_v4  ;;  %v7183_v24 = vpop.eup %7182  ;;  %v5669_v17 = vadd.f32 1.0, %v7181_v52  ;;  %v4855_v4 = vld [vmem:[#allocation2 + $0xe8] sm:$0xff] }
 0x221   : > { %v7008_v1 = vpop.f32.mrb[136].mxu0  ;;  %v5509_v41 = vld [vmem:[#allocation2 + $0xb0] sm:$0xff]  ;;  %7200 = vrcp.f32 %v5668_v7  ;;  %v5667_v22 = vadd.f32 1.0, %v7183_v24  ;;  %v7185_v15 = vpop.eup %7184 }
 0x222   : > { %v5360_v59 = vpop.f32.mrb[137].mxu0  ;;  %v9036_v49 = vadd.f32 %v8880_v8, %v5509_v41  ;;  %v5507_v46 = vld [vmem:[#allocation2 + $0xa0] sm:$0xff]  ;;  %7202 = vrcp.f32 %v5666_v2  ;;  %v7187_v42 = vpop.eup %7186  ;;  %v5760_v18 = vmul.f32 %v7185_v15, %v8933_v63 }
 0x223   : > { %v7009_v28 = vpop.f32.mrb[138].mxu0  ;;  %v9041_v40 = vadd.f32 %v8880_v8, %v5507_v46  ;;  %v5510_v39 = vld [vmem:[#allocation2 + $0xb8] sm:$0xff]  ;;  %7204 = vrcp.f32 %v5669_v17  ;;  %v5758_v58 = vmul.f32 %v7187_v42, %v8938_v37 }
 0x224   : > { %v5417_v47 = vld [vmem:[#allocation2 + $0xd0] sm:$0xff]  ;;  %v5363_v0 = vpop.f32.mrb[139].mxu0  ;;  %v6539_v32 = vmul.f32 -1.442695, %v9036_v49  ;;  %v9046_v31 = vadd.f32 %v8880_v8, %v5510_v39  ;;  %7206 = vrcp.f32 %v5667_v22  ;;  %v5508_v26 = vld [vmem:[#allocation2 + $0xa8] sm:$0xff]  ;;  %v7189_v45 = vpop.eup %7188  ;;  %5792 = vst.msk [vmem:[%s8988_s9 + $0x50] sm:$0xff] %vm526_vm8, %v5760_v18 }
 0x225   : > { %v5449_v60 = vadd.f32 %v7008_v1, %v5417_v47  ;;  %v5415_v61 = vld [vmem:[#allocation2 + $0xc0] sm:$0xff]  ;;  %v6537_v12 = vmul.f32 -1.442695, %v9041_v40  ;;  %v9054_v23 = vadd.f32 %v8880_v8, %v5508_v26  ;;  %v5761_v62 = vmul.f32 %v7189_v45, %v8944_v19  ;;  %5790 = vst.msk [vmem:[%s8988_s9 + $0x40] sm:$0xff] %vm526_vm8, %v5758_v58 }
 0x226   : > { %v5447_v11 = vadd.f32 %v5415_v61, %v5360_v59  ;;  %v5418_v20 = vld [vmem:[#allocation2 + $0xd8] sm:$0xff]  ;;  %v6540_v5 = vmul.f32 -1.442695, %v9046_v31  ;;  %7208 = vpow2.f32 %v6539_v32  ;;  %v7191_v29 = vpop.eup %7190 }
 0x227   : > { %5481 = vst.msk [vmem:[#allocation2 + $0xd0] sm:$0xff] %vm526_vm8, %v5449_v60  ;;  %v5450_v3 = vadd.f32 %v7009_v28, %v5418_v20  ;;  %v5416_v43 = vld [vmem:[#allocation2 + $0xc8] sm:$0xff]  ;;  %7210 = vpow2.f32 %v6537_v12  ;;  %v7193_v1 = vpop.eup %7192  ;;  %v5759_v48 = vmul.f32 %v7191_v29, %v8949_v9  ;;  %v6538_v10 = vmul.f32 -1.442695, %v9054_v23  ;;  %5793 = vst.msk [vmem:[%s8988_s9 + $0x58] sm:$0xff] %vm526_vm8, %v5761_v62 }
 0x228   : > { %5479 = vst.msk [vmem:[#allocation2 + $0xc0] sm:$0xff] %vm526_vm8, %v5447_v11  ;;  %v5448_v56 = vadd.f32 %v5416_v43, %v5363_v0  ;;  %7212 = vpow2.f32 %v6540_v5  ;;  %v7195_v38 = vpop.eup %7194  ;;  %v5672_v36 = vadd.f32 1.0, %v7193_v1 }
 0x229   : > { %v6978_v34 = vpop.f32.mrb[140].mxu1  ;;  %5482 = vst.msk [vmem:[#allocation2 + $0xd8] sm:$0xff] %vm526_vm8, %v5450_v3  ;;  %v7197_v28 = vpop.eup %7196  ;;  %5791 = vst.msk [vmem:[%s8988_s9 + $0x48] sm:$0xff] %vm526_vm8, %v5759_v48  ;;  %v5670_v9 = vadd.f32 1.0, %v7195_v38  ;;  %7214 = vpow2.f32 %v6538_v10 }
 0x22a   : > { %v4888_v16 = vadd.f32 %v6978_v34, %v4856_v21  ;;  %v4811_v51 = vpop.f32.mrb[141].mxu1  ;;  %5480 = vst.msk [vmem:[#allocation2 + $0xc8] sm:$0xff] %vm526_vm8, %v5448_v56  ;;  %v7199_v46 = vpop.eup %7198  ;;  %7216 = vrcp.f32 %v5672_v36  ;;  %v5673_v47 = vadd.f32 1.0, %v7197_v28 }
 0x22b   : > { %v4886_v25 = vadd.f32 %v4854_v57, %v4811_v51  ;;  %v6979_v63 = vpop.f32.mrb[142].mxu1  ;;  %v7201_v2 = vpop.eup %7200  ;;  %7218 = vrcp.f32 %v5670_v9  ;;  %v5671_v60 = vadd.f32 1.0, %v7199_v46 }
 0x22c   : > { %4920 = vst.msk [vmem:[#allocation2 + $0xf0] sm:$0xff] %vm526_vm8, %v4888_v16  ;;  %v4889_v37 = vadd.f32 %v6979_v63, %v4857_v13  ;;  %v4814_v6 = vpop.f32.mrb[143].mxu1  ;;  %v7012_v33 = vpop.f32.mrb[140].mxu0  ;;  %v5764_v17 = vmul.f32 %v7201_v2, %v8962_v44  ;;  %7220 = vrcp.f32 %v5673_v47 }
 0x22d   : > { %4918 = vst.msk [vmem:[#allocation2 + $0xe0] sm:$0xff] %vm526_vm8, %v4886_v25  ;;  %v4887_v19 = vadd.f32 %v4855_v4, %v4814_v6  ;;  %v5376_v59 = vpop.f32.mrb[141].mxu0  ;;  %v7203_v24 = vpop.eup %7202  ;;  %7222 = vrcp.f32 %v5671_v60 }
 0x22e   : > { %4921 = vst.msk [vmem:[#allocation2 + $0xf8] sm:$0xff] %vm526_vm8, %v4889_v37  ;;  %v7013_v41 = vpop.f32.mrb[142].mxu0  ;;  %v5513_v30 = vld [vmem:[#allocation2 + $0xd0] sm:$0xff]  ;;  %v7205_v11 = vpop.eup %7204  ;;  %v5762_v20 = vmul.f32 %v7203_v24, %v8967_v54  ;;  %5796 = vst.msk [vmem:[%s8988_s9 + $0x70] sm:$0xff] %vm526_vm8, %v5764_v17 }
 0x22f   : > { %4919 = vst.msk [vmem:[#allocation2 + $0xe8] sm:$0xff] %vm526_vm8, %v4887_v19  ;;  %v5379_v7 = vpop.f32.mrb[143].mxu0  ;;  %v9074_v0 = vadd.f32 %v8880_v8, %v5513_v30  ;;  %v5511_v52 = vld [vmem:[#allocation2 + $0xc0] sm:$0xff]  ;;  %v7207_v34 = vpop.eup %7206  ;;  %v5765_v44 = vmul.f32 %v7205_v11, %v8973_v53 }
 0x230   : > { %v9077_v61 = vadd.f32 %v8880_v8, %v5511_v52  ;;  %v5514_v39 = vld [vmem:[#allocation2 + $0xd8] sm:$0xff]  ;;  %v7209_v42 = vpop.eup %7208  ;;  %5794 = vst.msk [vmem:[%s8988_s9 + $0x60] sm:$0xff] %vm526_vm8, %v5762_v20  ;;  %v5763_v54 = vmul.f32 %v7207_v34, %v8978_v55 }
 0x231   : > { %v6543_v32 = vmul.f32 -1.442695, %v9074_v0  ;;  %v9084_v12 = vadd.f32 %v8880_v8, %v5514_v39  ;;  %v5512_v5 = vld [vmem:[#allocation2 + $0xc8] sm:$0xff]  ;;  %v7211_v51 = vpop.eup %7210  ;;  %5797 = vst.msk [vmem:[%s8988_s9 + $0x78] sm:$0xff] %vm526_vm8, %v5765_v44  ;;  %v5676_v57 = vadd.f32 1.0, %v7209_v42 }
 0x232   : > { %v6541_v22 = vmul.f32 -1.442695, %v9077_v61  ;;  %v9096_v53 = vadd.f32 %v8880_v8, %v5512_v5  ;;  %v7213_v25 = vpop.eup %7212  ;;  %5795 = vst.msk [vmem:[%s8988_s9 + $0x68] sm:$0xff] %vm526_vm8, %v5763_v54  ;;  %v5674_v55 = vadd.f32 1.0, %v7211_v51 }
 0x233   : > { %v5421_v15 = vld [vmem:[#allocation2 + $0xf0] sm:$0xff]  ;;  %7224 = vpow2.f32 %v6543_v32  ;;  %v6544_v18 = vmul.f32 -1.442695, %v9084_v12  ;;  %v5677_v13 = vadd.f32 1.0, %v7213_v25  ;;  %v7215_v29 = vpop.eup %7214 }
 0x234   : > { %v5453_v21 = vadd.f32 %v7012_v33, %v5421_v15  ;;  %v5419_v3 = vld [vmem:[#allocation2 + $0xe0] sm:$0xff]  ;;  %7226 = vpow2.f32 %v6541_v22  ;;  %v6542_v43 = vmul.f32 -1.442695, %v9096_v53  ;;  %v7217_v62 = vpop.eup %7216  ;;  %v5675_v37 = vadd.f32 1.0, %v7215_v29 }
 0x235   : > { %v5451_v26 = vadd.f32 %v5419_v3, %v5376_v59  ;;  %v5422_v16 = vld [vmem:[#allocation2 + $0xf8] sm:$0xff]  ;;  %7228 = vpow2.f32 %v6544_v18  ;;  %v7219_v56 = vpop.eup %7218  ;;  %v5768_v6 = vmul.f32 %v7217_v62, %v8999_v14 }
 0x236   : > { %5485 = vst.msk [vmem:[#allocation2 + $0xf0] sm:$0xff] %vm526_vm8, %v5453_v21  ;;  %v5454_v45 = vadd.f32 %v7013_v41, %v5422_v16  ;;  %v5420_v58 = vld [vmem:[#allocation2 + $0xe8] sm:$0xff]  ;;  %7230 = vrcp.f32 %v5676_v57  ;;  %v7221_v4 = vpop.eup %7220  ;;  %v5766_v33 = vmul.f32 %v7219_v56, %v9005_v35 }
 0x237   : > { %5483 = vst.msk [vmem:[#allocation2 + $0xe0] sm:$0xff] %vm526_vm8, %v5451_v26  ;;  %v5452_v63 = vadd.f32 %v5420_v58, %v5379_v7  ;;  %7232 = vrcp.f32 %v5674_v55  ;;  %v7223_v1 = vpop.eup %7222  ;;  %5800 = vst.msk [vmem:[%s8988_s9 + $0x90] sm:$0xff] %vm526_vm8, %v5768_v6  ;;  %v5769_v48 = vmul.f32 %v7221_v4, %v9011_v50 }
 0x238   : > { %5486 = vst.msk [vmem:[#allocation2 + $0xf8] sm:$0xff] %vm526_vm8, %v5454_v45  ;;  %7234 = vrcp.f32 %v5677_v13  ;;  %5798 = vst.msk [vmem:[%s8988_s9 + $0x80] sm:$0xff] %vm526_vm8, %v5766_v33  ;;  %v5767_v59 = vmul.f32 %v7223_v1, %v9016_v27 }
 0x239   : > { %5484 = vst.msk [vmem:[#allocation2 + $0xe8] sm:$0xff] %vm526_vm8, %v5452_v63  ;;  %7236 = vpow2.f32 %v6542_v43  ;;  %5801 = vst.msk [vmem:[%s8988_s9 + $0x98] sm:$0xff] %vm526_vm8, %v5769_v48 }
 0x23a   : > { %7238 = vrcp.f32 %v5675_v37  ;;  %5799 = vst.msk [vmem:[%s8988_s9 + $0x88] sm:$0xff] %vm526_vm8, %v5767_v59 }
 0x23d   : > { %v5517_v10 = vld [vmem:[#allocation2 + $0xf0] sm:$0xff]  ;;  %v7225_v19 = vpop.eup %7224 }
 0x23e   : > { %v9114_v38 = vadd.f32 %v8880_v8, %v5517_v10  ;;  %v5515_v14 = vld [vmem:[#allocation2 + $0xe0] sm:$0xff]  ;;  %v7227_v36 = vpop.eup %7226  ;;  %v5680_v35 = vadd.f32 1.0, %v7225_v19 }
 0x23f   : > { %v9119_v41 = vadd.f32 %v8880_v8, %v5515_v14  ;;  %v5518_v28 = vld [vmem:[#allocation2 + $0xf8] sm:$0xff]  ;;  %v5678_v50 = vadd.f32 1.0, %v7227_v36  ;;  %v7229_v7 = vpop.eup %7228 }
 0x240   : > { %v6547_v9 = vmul.f32 -1.442695, %v9114_v38  ;;  %v9125_v30 = vadd.f32 %v8880_v8, %v5518_v28  ;;  %v5516_v27 = vld [vmem:[#allocation2 + $0xe8] sm:$0xff]  ;;  %7240 = vrcp.f32 %v5680_v35  ;;  %v7231_v52 = vpop.eup %7230  ;;  %v5681_v2 = vadd.f32 1.0, %v7229_v7 }
 0x241   : > { %v6545_v46 = vmul.f32 -1.442695, %v9119_v41  ;;  %v5555_v47 = vadd.f32 %v8880_v8, %v5516_v27  ;;  %7242 = vrcp.f32 %v5678_v50  ;;  %v7233_v24 = vpop.eup %7232  ;;  %v5772_v17 = vmul.f32 %v7231_v52, %v9036_v49 }
 0x242   : > { %v6548_v60 = vmul.f32 -1.442695, %v9125_v30  ;;  %7244 = vpow2.f32 %v6547_v9  ;;  %v7235_v39 = vpop.eup %7234  ;;  %v5770_v11 = vmul.f32 %v7233_v24, %v9041_v40 }
 0x243   : > { %v6546_v32 = vmul.f32 -1.442695, %v5555_v47  ;;  %7246 = vrcp.f32 %v5681_v2  ;;  %v7237_v20 = vpop.eup %7236  ;;  %5804 = vst.msk [vmem:[%s8988_s9 + $0xb0] sm:$0xff] %vm526_vm8, %v5772_v17  ;;  %v5773_v8 = vmul.f32 %v7235_v39, %v9046_v31 }
 0x244   : > { %7248 = vpow2.f32 %v6545_v46  ;;  %v7239_v22 = vpop.eup %7238  ;;  %5802 = vst.msk [vmem:[%s8988_s9 + $0xa0] sm:$0xff] %vm526_vm8, %v5770_v11  ;;  %v5679_v15 = vadd.f32 1.0, %v7237_v20 }
 0x245   : > { %7250 = vpow2.f32 %v6548_v60  ;;  %5805 = vst.msk [vmem:[%s8988_s9 + $0xb8] sm:$0xff] %vm526_vm8, %v5773_v8  ;;  %v5771_v49 = vmul.f32 %v7239_v22, %v9054_v23 }
 0x246   : > { %7252 = vpow2.f32 %v6546_v32 }
 0x247   : > { %7254 = vrcp.f32 %v5679_v15  ;;  %5803 = vst.msk [vmem:[%s8988_s9 + $0xa8] sm:$0xff] %vm526_vm8, %v5771_v49 }
 0x24a   : > { %v7241_v40 = vpop.eup %7240 }
 0x24b   : > { %v7243_v34 = vpop.eup %7242  ;;  %v5776_v31 = vmul.f32 %v7241_v40, %v9074_v0 }
 0x24c   : > { %v7245_v44 = vpop.eup %7244  ;;  %v5774_v21 = vmul.f32 %v7243_v34, %v9077_v61 }
 0x24d   : > { %v7247_v3 = vpop.eup %7246  ;;  %5808 = vst.msk [vmem:[%s8988_s9 + $0xd0] sm:$0xff] %vm526_vm8, %v5776_v31  ;;  %v5684_v42 = vadd.f32 1.0, %v7245_v44 }
 0x24e   : > { %v7249_v54 = vpop.eup %7248  ;;  %5806 = vst.msk [vmem:[%s8988_s9 + $0xc0] sm:$0xff] %vm526_vm8, %v5774_v21  ;;  %v5777_v23 = vmul.f32 %v7247_v3, %v9084_v12 }
 0x24f   : > { %v7251_v18 = vpop.eup %7250  ;;  %7256 = vrcp.f32 %v5684_v42  ;;  %v5682_v5 = vadd.f32 1.0, %v7249_v54 }
 0x250   : > { %v7253_v26 = vpop.eup %7252  ;;  %5809 = vst.msk [vmem:[%s8988_s9 + $0xd8] sm:$0xff] %vm526_vm8, %v5777_v23  ;;  %v5685_v0 = vadd.f32 1.0, %v7251_v18 }
 0x251   : > { %v7255_v61 = vpop.eup %7254  ;;  %7258 = vrcp.f32 %v5682_v5  ;;  %v5683_v16 = vadd.f32 1.0, %v7253_v26 }
 0x252   : > { %v5775_v51 = vmul.f32 %v7255_v61, %v9096_v53  ;;  %7260 = vrcp.f32 %v5685_v0 }
 0x253   : > { %7262 = vrcp.f32 %v5683_v16 }
 0x254   : > { %5807 = vst.msk [vmem:[%s8988_s9 + $0xc8] sm:$0xff] %vm526_vm8, %v5775_v51 }
 0x259   : > { %v7257_v12 = vpop.eup %7256 }
 0x25a   : > { %v5780_v57 = vmul.f32 %v7257_v12, %v9114_v38 }
 0x25b   : > { %v7259_v45 = vpop.eup %7258 }
 0x25c   : > { %v7261_v58 = vpop.eup %7260  ;;  %5812 = vst.msk [vmem:[%s8988_s9 + $0xf0] sm:$0xff] %vm526_vm8, %v5780_v57  ;;  %v5778_v53 = vmul.f32 %v7259_v45, %v9119_v41 }
 0x25d   : > { %v7263_v25 = vpop.eup %7262  ;;  %v5781_v55 = vmul.f32 %v7261_v58, %v9125_v30 }
 0x25e   : > { %5810 = vst.msk [vmem:[%s8988_s9 + $0xe0] sm:$0xff] %vm526_vm8, %v5778_v53  ;;  %v5779_v63 = vmul.f32 %v7263_v25, %v5555_v47 }
 0x25f   : > { %5813 = vst.msk [vmem:[%s8988_s9 + $0xf8] sm:$0xff] %vm526_vm8, %v5781_v55 }
 0x260   : > { %5811 = vst.msk [vmem:[%s8988_s9 + $0xe8] sm:$0xff] %vm526_vm8, %v5779_v63 }
 0x261   : > { %7277 = shalt.err (!%p7274_p5)
}
 0x262   : > { %s7278_s29 = scalar_lea.hbm %s9164_s21, 4096  ;;  %s7282_s5 = scalar_lea.hbm %s9225_s3, 8192 }
 0x263   : > { %p7279_p6 = scmp.ne.s32.totalorder %s9164_s21, %s7278_s29  ;;  %p7283_p10 = scmp.lt.u32.totalorder %s9164_s21, %s9225_s3 }
 0x264   : > { %p7284_p11 = scmp.lt.u32.totalorder %s7282_s5, %s7278_s29  ;;  %p7286_p13 = scmp.lt.u32.totalorder %s7278_s29, %s9164_s21 }
 0x265   : > { %p7280_p7 = pnand %p7279_p6, %p7407_p4 }
 0x266   : > { %p7285_p12 = por %p7284_p11, %p7283_p10 }
 0x267   : > { %p7281_p9 = pneg %p7280_p7 }
 0x268   : > { %p7287_p0 = por %p7286_p13, %p7285_p12 }
 0x26a   : > { %p7288_p1 = pnand %p7287_p0, %p7281_p9 }
 0x26c   : > { %7291 = shalt.err (!%p7288_p1)
}
 0x26d   : > { %s7345_s8 = smov 128   ;;  %s7346_s9 = smov 8  }
 0x26e   : > { %7027 = dma.vmem_to_hbm [thread:$0]  (%p7407_p4), %s9166_s11, 4096, %s9164_s21, %s9176_s15, %s7345_s8, %s7345_s8, %s7346_s9  }
 0x26f PF: > { %p7033_p2 = scmp.ge.s32.totalorder %s7342_s17, 2  ;;  %s5846_s10 = sand.u32 1, %s7322_s12  }
 0x270   : > { %s5847_s18 = scalar_lea.sflag [#allocation4], %s5846_s10 }
 0x271   : > { %p7030_p3 = pnand %p7033_p2, %p7414_p8 }
 0x273   : > { %7317 = dma.done.wait (!%p7030_p3), %s5847_s18, 4096  }
 0x274   : > { %7319 = vsyncadd (!%p7030_p3), %s5847_s18, 4294963200  ;;  %s16_s17 = sadd.s32 1, %s7342_s17   ;;  %s9232_s12 = smov %s7326_s13 }
 0x275   : > { %p13_p5 = scmp.ge.s32.totalorder %s16_s17, 4   ;;  %s9233_s13 = smov %s7330_s14 }
 0x276   : > { %s9234_s14 = smov %s7420_s25  ;;  %s9235_s15 = smov %s7338_s16 }
 0x277   : > { %s9236_s16 = smov %s9238_s20  ;;  %15 = sbr.rel (!%p13_p5) target bundleno = 4 (0x4), region = 69 }
 0x27e   :  { %5852 = vsyncpa [#allocation4], 1 }
 0x27f   :  { %5854 = vsyncpa [#allocation4 + $0x1], 1 }

</bundles_post_ra>
